<compile_context>
chip_gen: v7x
topology: tpu7x:2x2x1
jax: 0.10.0
libtpu: 0.0.40
codegen_flags: <defaults>
</compile_context>

<pallas_src>
import functools

import jax
import jax.numpy as jnp
from jax import lax
from jax.experimental import pallas as pl
from jax.experimental.pallas import tpu as pltpu


# ---------------------------------------------------------------------------
# Parameter plumbing (plain JAX glue, runs once at trace time)
# ---------------------------------------------------------------------------
def _channel_shuffle_src(c, groups):
    # PyTorch nn.ChannelShuffle(groups): out[o] = in[(o % groups)*(c//groups) + o//groups]
    return [(o % groups) * (c // groups) + (o // groups) for o in range(c)]


def _perm_matrix(c, groups, dtype=jnp.float32):
    # h_shuffled = h @ P   (channels-last)
    p = jnp.zeros((c, c), dtype)
    for o, src in enumerate(_channel_shuffle_src(c, groups)):
        p = p.at[src, o].set(1.0)
    return p


def _grouped_conv_dense(w, groups):
    # w: (out_c, in_c_per_group) == PyTorch Conv3d weight (out, in/g, 1, 1, 1) squeezed.
    # Returns dense (in_c, out_c) so that (channels-last) y = h @ dense == grouped 1x1x1 conv.
    out_c, ipg = w.shape
    opg = out_c // groups
    in_c = ipg * groups
    dense = jnp.zeros((in_c, out_c), w.dtype)
    for gi in range(groups):
        blk = w[gi * opg:(gi + 1) * opg, :]                    # (opg, ipg)
        dense = dense.at[gi * ipg:(gi + 1) * ipg, gi * opg:(gi + 1) * opg].set(blk.T)
    return dense


def _round_up(v, m):
    return (v + m - 1) // m * m


# ---------------------------------------------------------------------------
# Pallas kernel
# ---------------------------------------------------------------------------
def _bitonic_stages(c):
    # (k, j) compare-exchange stages of an ascending bitonic sort of c = 2^p elems.
    stages = []
    k = 2
    while k <= c:
        j = k // 2
        while j >= 1:
            stages.append((k, j))
            j //= 2
        k *= 2
    return stages


def sort_attn_kernel(x_ref, wx_ref, ws_ref, w4_ref, y_ref, *, c, n, sub):
    tm, L = x_ref.shape                              # static block shape, L = 128
    cpn = c // n

    # ---- per-stage compare-exchange masks: depend only on the lane index, so
    #      build them once per grid step (outside the row-chunk loop) ---------
    lane = lax.broadcasted_iota(jnp.int32, (1, L), 1)
    il = lane & (c - 1)                              # local lane index within its c-lane segment
    stages = []
    for k, j in _bitonic_stages(c):
        bit_j = (il >> (j.bit_length() - 1)) & 1     # lane is the upper element of its pair
        bit_k = (il >> (k.bit_length() - 1)) & 1     # lane sits inside a descending block
        lower = bit_j == 0
        take_min = bit_j == bit_k
        stages.append((j, lower, take_min))

    # ---- small folded weight matrices: load once, keep resident -------------
    wx = wx_ref[...]                                 # (L, hp)  bf16
    ws = ws_ref[...]                                 # (L, hp)  bf16
    w4 = w4_ref[...]                                 # (hp, L)  bf16

    n_chunks = tm // sub

    def chunk(ci, carry):
        r0 = pl.multiple_of(ci * sub, sub)
        x = x_ref[pl.ds(r0, sub), :]                 # (sub, L) f32, vreg-resident working set

        # -- segment-local bitonic sort (ascending) over each c-lane segment --
        sx = x
        for j, lower, take_min in stages:
            up = pltpu.roll(sx, shift=L - j, axis=1)     # value from lane i + j
            dn = pltpu.roll(sx, shift=j, axis=1)         # value from lane i - j
            partner = jnp.where(lower, up, dn)           # value at lane i ^ j (stays in segment)
            sx = jnp.where(take_min,
                           jnp.minimum(sx, partner),
                           jnp.maximum(sx, partner))

        # -- attention MLP: two accumulating K=128 bf16 matmuls (no concat
        #    buffer), ReLU in f32, one more bf16 matmul, EUP sigmoid ----------
        h = jnp.dot(x.astype(jnp.bfloat16), wx, preferred_element_type=jnp.float32)
        h = h + jnp.dot(sx.astype(jnp.bfloat16), ws, preferred_element_type=jnp.float32)
        h = jnp.maximum(h, 0.0)                                           # ReLU (f32)
        h = jnp.dot(h.astype(jnp.bfloat16), w4,
                    preferred_element_type=jnp.float32)                   # (sub, L)
        # sigmoid = 1 / (1 + exp(-h)): exp and reciprocal both on the EUP slot
        scores = pl.reciprocal(1.0 + jnp.exp(-h), approx=True)

        # -- gate and sum the n input groups (segment-local lane roll + add) --
        prod = x * scores
        acc = prod
        for i in range(1, n):
            acc = acc + pltpu.roll(prod, shift=L - i * cpn, axis=1)       # prod[lane + i*cpn]
        # only lanes with (lane % c) < c//n are meaningful; the wrapper slices them.
        y_ref[pl.ds(r0, sub), :] = acc
        return carry

    lax.fori_loop(0, n_chunks, chunk, 0)


# ---------------------------------------------------------------------------
# Wrapper
# ---------------------------------------------------------------------------
def sort_attn_3d(xs, weights, group=2, *, tm=2048, sub=256):
    n = len(xs)
    w1, w2, w3, w4 = weights
    x = jnp.concatenate(xs, axis=1)                                   # (B, C, D, H, W)
    B, C, D, H, W = x.shape
    g = n * group
    hidden = w2.shape[0]

    assert C & (C - 1) == 0 and 128 % C == 0, "kernel assumes power-of-two C dividing 128"
    assert C % n == 0
    pack = 128 // C                       # spatial positions packed per 128-lane row
    L = pack * C                          # 128

    # ---- fold shuffles + the whole pre-ReLU conv chain into dense matrices ----
    a1 = _grouped_conv_dense(w1, 2 * g)                               # (2C, hidden)
    p = _perm_matrix(hidden, g)
    a2 = p @ _grouped_conv_dense(w2, g)                               # shuffle folded in
    a3 = p @ _grouped_conv_dense(w3, g)
    a4 = p @ _grouped_conv_dense(w4, g)                               # (hidden, C)
    a_pre = a1 @ a2 @ a3                                              # no nonlinearity between
    a_pre_x, a_pre_s = a_pre[:C], a_pre[C:]                           # (C, hidden) each

    # ---- lane-pack weights: block-diagonal replicas; pre-ReLU kept as two
    #      (L, hp) halves so the kernel needs no concat buffer ----------------
    hp = pack * hidden
    wx_p = jnp.zeros((L, hp), jnp.float32)
    ws_p = jnp.zeros((L, hp), jnp.float32)
    w4_p = jnp.zeros((hp, L), jnp.float32)
    for pk in range(pack):
        wx_p = wx_p.at[pk * C:(pk + 1) * C, pk * hidden:(pk + 1) * hidden].set(a_pre_x)
        ws_p = ws_p.at[pk * C:(pk + 1) * C, pk * hidden:(pk + 1) * hidden].set(a_pre_s)
        w4_p = w4_p.at[pk * hidden:(pk + 1) * hidden, pk * C:(pk + 1) * C].set(a4)
    wx_p = wx_p.astype(jnp.bfloat16)      # MXU is bf16-native; accumulation stays f32
    ws_p = ws_p.astype(jnp.bfloat16)
    w4_p = w4_p.astype(jnp.bfloat16)

    # ---- channels-last, lane-packed activations (zero-pad ragged shapes) ----
    # TODO(synk): fold this relayout and the unpack below into the kernel.
    xr = jnp.transpose(x, (0, 2, 3, 4, 1)).reshape(-1, C)             # (M, C)
    M = xr.shape[0]
    m_pad = _round_up(M, pack) - M
    if m_pad:
        xr = jnp.pad(xr, ((0, m_pad), (0, 0)))
    xp = xr.reshape(-1, L)                                            # (Mp, 128) lane-dense
    Mp = xp.shape[0]

    # Tile: aim for >= 2 grid steps (v7x has two TensorCores) and keep the tile
    # a multiple of the in-kernel row sub-chunk so the strip-mine loop divides.
    tm_eff = min(tm, _round_up(-(-Mp // 2), 8))
    sub_eff = min(sub, tm_eff)
    sub_eff = max(8, sub_eff - sub_eff % 8)
    tm_eff = _round_up(tm_eff, sub_eff)
    r_pad = _round_up(Mp, tm_eff) - Mp
    if r_pad:
        xp = jnp.pad(xp, ((0, r_pad), (0, 0)))
    Mp_pad = xp.shape[0]

    flops_per_row = 2 * (2 * L * hp) + 2 * hp * L
    cost = pl.CostEstimate(
        flops=int(flops_per_row * Mp_pad),
        transcendentals=int(L * Mp_pad),
        bytes_accessed=int(2 * Mp_pad * L * 4 + 2 * (2 * L * hp + hp * L)),
    )

    kernel = functools.partial(sort_attn_kernel, c=C, n=n, sub=sub_eff)
    yp = pl.pallas_call(
        kernel,
        out_shape=jax.ShapeDtypeStruct((Mp_pad, L), jnp.float32),
        grid_spec=pltpu.PrefetchScalarGridSpec(
            num_scalar_prefetch=0,
            grid=(Mp_pad // tm_eff,),
            in_specs=[
                pl.BlockSpec((tm_eff, L), lambda i: (i, 0)),
                pl.BlockSpec((L, hp), lambda i: (0, 0)),
                pl.BlockSpec((L, hp), lambda i: (0, 0)),
                pl.BlockSpec((hp, L), lambda i: (0, 0)),
            ],
            out_specs=pl.BlockSpec((tm_eff, L), lambda i: (i, 0)),
        ),
        compiler_params=pltpu.CompilerParams(
            dimension_semantics=("parallel",),
            vmem_limit_bytes=32 * 1024 * 1024,
        ),
        cost_estimate=cost,
    )(xp, wx_p, ws_p, w4_p)

    # ---- unpack: lane (pk*C + ch) of row r is position r*pack+pk, channel ch ----
    cpn = C // n
    y2d = yp.reshape(Mp_pad * pack, C)[:M, :cpn]
    y = y2d.reshape(B, D, H, W, cpn).transpose(0, 4, 1, 2, 3)         # back to NCDHW
    return y


# ---------------------------------------------------------------------------
# Pure-JAX reference (mirrors the PyTorch forward exactly) for a sanity check
# ---------------------------------------------------------------------------
def sort_attn_3d_ref(xs, weights, group=2):
    n = len(xs)
    w1, w2, w3, w4 = weights
    x = jnp.concatenate(xs, axis=1)
    B, C, D, H, W = x.shape
    g = n * group

    def gconv(h, w, groups):
        dense = _grouped_conv_dense(w, groups)                        # (in, out)
        return jnp.einsum('bidhw,io->bodhw', h, dense)

    def shuffle(h, groups):
        b, c = h.shape[0], h.shape[1]
        return (h.reshape(b, groups, c // groups, *h.shape[2:])
                 .transpose(0, 2, 1, 3, 4, 5)
                 .reshape(b, c, *h.shape[2:]))

    sorted_x = jnp.sort(x, axis=1)
    se = jnp.concatenate([x, sorted_x], axis=1)
    h = gconv(se, w1, 2 * g)
    h = shuffle(h, g)
    h = gconv(h, w2, g)
    h = shuffle(h, g)
    h = gconv(h, w3, g)
    h = jnp.maximum(h, 0.0)
    h = shuffle(h, g)
    h = gconv(h, w4, g)
    scores = jax.nn.sigmoid(h)
    y = (x * scores).reshape(B, n, C // n, D, H, W).sum(axis=1)
    return y


if __name__ == "__main__":
    key = jax.random.PRNGKey(0)

    # Module config: SortAttn3d(in_channels_list=[16, 16], fact=4, group=2)
    in_channels_list = [16, 16]
    group, fact = 2, 4
    n = len(in_channels_list)
    C = sum(in_channels_list)                                   # 32
    g = n * group                                               # 4
    hidden = C // fact                                          # 8
    # Spatial 16^3 so the kernel exercises a 2-step grid and multiple
    # in-kernel row sub-chunks while staying small (~0.5 MiB per input).
    B, D, H, W = 2, 16, 16, 16

    k1, k2, k3, k4, kx = jax.random.split(key, 5)
    # Conv3d weights (out, in/groups) -- the trailing 1x1x1 kernel dims are squeezed.
    w1 = 0.2 * jax.random.normal(k1, (hidden, (2 * C) // (2 * g)), jnp.float32)
    w2 = 0.2 * jax.random.normal(k2, (hidden, hidden // g), jnp.float32)
    w3 = 0.2 * jax.random.normal(k3, (hidden, hidden // g), jnp.float32)
    w4 = 0.2 * jax.random.normal(k4, (C, hidden // g), jnp.float32)
    weights = (w1, w2, w3, w4)

    kxs = jax.random.split(kx, n)
    xs = [jax.random.normal(kxs[i], (B, ci, D, H, W), jnp.float32)
          for i, ci in enumerate(in_channels_list)]

    y = jax.block_until_ready(sort_attn_3d(xs, weights, group=group))
    assert y.shape == (B, C // n, D, H, W), y.shape

    y_ref = sort_attn_3d_ref(xs, weights, group=group)
    # Loose tolerance: in-kernel matmuls run in bf16 on the MXU (f32 accumulation).
    if not bool(jnp.allclose(y, y_ref, atol=5e-2, rtol=5e-2)):
        raise AssertionError(
            f"kernel/reference mismatch: max abs err {float(jnp.max(jnp.abs(y - y_ref)))}")

    print("KERNEL_OK")
</pallas_src>

<mosaic_0001>
module attributes {stable_mosaic.version = 11 : i64} {
  func.func @sort_attn_kernel(%arg0: i32, %arg1: memref<1024x128xf32, #tpu.memory_space<vmem>>, %arg2: memref<128x32xbf16, #tpu.memory_space<vmem>>, %arg3: memref<128x32xbf16, #tpu.memory_space<vmem>>, %arg4: memref<32x128xbf16, #tpu.memory_space<vmem>>, %arg5: memref<1024x128xf32, #tpu.memory_space<vmem>>) attributes {dimension_semantics = [#tpu.dimension_semantics<parallel>], iteration_bounds = array<i64: 2>, scalar_prefetch = 0 : i64, scratch_operands = 0 : i64, tpu.core_type = #tpu.core_type<tc>, window_params = [{transform_indices = @transform_0, window_bounds = array<i64: 1024, 128>}, {pipeline_mode = #tpu.pipeline_mode<synchronous>, transform_indices = @transform_1, window_bounds = array<i64: 128, 32>}, {pipeline_mode = #tpu.pipeline_mode<synchronous>, transform_indices = @transform_2, window_bounds = array<i64: 128, 32>}, {pipeline_mode = #tpu.pipeline_mode<synchronous>, transform_indices = @transform_3, window_bounds = array<i64: 32, 128>}, {transform_indices = @transform_4, window_bounds = array<i64: 1024, 128>}]} {
    %0 = tpu.iota {dimensions = array<i32: 1>} : vector<1x128xi32>
    %c31_i32 = arith.constant 31 : i32
    %1 = vector.broadcast %c31_i32 : i32 to vector<1x128xi32>
    %2 = arith.andi %0, %1 : vector<1x128xi32>
    %c0_i32 = arith.constant 0 : i32
    %3 = vector.broadcast %c0_i32 : i32 to vector<1x128xi32>
    %4 = arith.shrsi %2, %3 : vector<1x128xi32>
    %c1_i32 = arith.constant 1 : i32
    %5 = vector.broadcast %c1_i32 : i32 to vector<1x128xi32>
    %6 = arith.andi %4, %5 : vector<1x128xi32>
    %c1_i32_0 = arith.constant 1 : i32
    %7 = vector.broadcast %c1_i32_0 : i32 to vector<1x128xi32>
    %8 = arith.shrsi %2, %7 : vector<1x128xi32>
    %c1_i32_1 = arith.constant 1 : i32
    %9 = vector.broadcast %c1_i32_1 : i32 to vector<1x128xi32>
    %10 = arith.andi %8, %9 : vector<1x128xi32>
    %c0_i32_2 = arith.constant 0 : i32
    %11 = vector.broadcast %c0_i32_2 : i32 to vector<1x128xi32>
    %12 = arith.cmpi eq, %6, %11 : vector<1x128xi32>
    %13 = arith.cmpi eq, %6, %10 : vector<1x128xi32>
    %c1_i32_3 = arith.constant 1 : i32
    %14 = vector.broadcast %c1_i32_3 : i32 to vector<1x128xi32>
    %15 = arith.shrsi %2, %14 : vector<1x128xi32>
    %c1_i32_4 = arith.constant 1 : i32
    %16 = vector.broadcast %c1_i32_4 : i32 to vector<1x128xi32>
    %17 = arith.andi %15, %16 : vector<1x128xi32>
    %c2_i32 = arith.constant 2 : i32
    %18 = vector.broadcast %c2_i32 : i32 to vector<1x128xi32>
    %19 = arith.shrsi %2, %18 : vector<1x128xi32>
    %c1_i32_5 = arith.constant 1 : i32
    %20 = vector.broadcast %c1_i32_5 : i32 to vector<1x128xi32>
    %21 = arith.andi %19, %20 : vector<1x128xi32>
    %c0_i32_6 = arith.constant 0 : i32
    %22 = vector.broadcast %c0_i32_6 : i32 to vector<1x128xi32>
    %23 = arith.cmpi eq, %17, %22 : vector<1x128xi32>
    %24 = arith.cmpi eq, %17, %21 : vector<1x128xi32>
    %c0_i32_7 = arith.constant 0 : i32
    %25 = vector.broadcast %c0_i32_7 : i32 to vector<1x128xi32>
    %26 = arith.shrsi %2, %25 : vector<1x128xi32>
    %c1_i32_8 = arith.constant 1 : i32
    %27 = vector.broadcast %c1_i32_8 : i32 to vector<1x128xi32>
    %28 = arith.andi %26, %27 : vector<1x128xi32>
    %c2_i32_9 = arith.constant 2 : i32
    %29 = vector.broadcast %c2_i32_9 : i32 to vector<1x128xi32>
    %30 = arith.shrsi %2, %29 : vector<1x128xi32>
    %c1_i32_10 = arith.constant 1 : i32
    %31 = vector.broadcast %c1_i32_10 : i32 to vector<1x128xi32>
    %32 = arith.andi %30, %31 : vector<1x128xi32>
    %c0_i32_11 = arith.constant 0 : i32
    %33 = vector.broadcast %c0_i32_11 : i32 to vector<1x128xi32>
    %34 = arith.cmpi eq, %28, %33 : vector<1x128xi32>
    %35 = arith.cmpi eq, %28, %32 : vector<1x128xi32>
    %c2_i32_12 = arith.constant 2 : i32
    %36 = vector.broadcast %c2_i32_12 : i32 to vector<1x128xi32>
    %37 = arith.shrsi %2, %36 : vector<1x128xi32>
    %c1_i32_13 = arith.constant 1 : i32
    %38 = vector.broadcast %c1_i32_13 : i32 to vector<1x128xi32>
    %39 = arith.andi %37, %38 : vector<1x128xi32>
    %c3_i32 = arith.constant 3 : i32
    %40 = vector.broadcast %c3_i32 : i32 to vector<1x128xi32>
    %41 = arith.shrsi %2, %40 : vector<1x128xi32>
    %c1_i32_14 = arith.constant 1 : i32
    %42 = vector.broadcast %c1_i32_14 : i32 to vector<1x128xi32>
    %43 = arith.andi %41, %42 : vector<1x128xi32>
    %c0_i32_15 = arith.constant 0 : i32
    %44 = vector.broadcast %c0_i32_15 : i32 to vector<1x128xi32>
    %45 = arith.cmpi eq, %39, %44 : vector<1x128xi32>
    %46 = arith.cmpi eq, %39, %43 : vector<1x128xi32>
    %c1_i32_16 = arith.constant 1 : i32
    %47 = vector.broadcast %c1_i32_16 : i32 to vector<1x128xi32>
    %48 = arith.shrsi %2, %47 : vector<1x128xi32>
    %c1_i32_17 = arith.constant 1 : i32
    %49 = vector.broadcast %c1_i32_17 : i32 to vector<1x128xi32>
    %50 = arith.andi %48, %49 : vector<1x128xi32>
    %c3_i32_18 = arith.constant 3 : i32
    %51 = vector.broadcast %c3_i32_18 : i32 to vector<1x128xi32>
    %52 = arith.shrsi %2, %51 : vector<1x128xi32>
    %c1_i32_19 = arith.constant 1 : i32
    %53 = vector.broadcast %c1_i32_19 : i32 to vector<1x128xi32>
    %54 = arith.andi %52, %53 : vector<1x128xi32>
    %c0_i32_20 = arith.constant 0 : i32
    %55 = vector.broadcast %c0_i32_20 : i32 to vector<1x128xi32>
    %56 = arith.cmpi eq, %50, %55 : vector<1x128xi32>
    %57 = arith.cmpi eq, %50, %54 : vector<1x128xi32>
    %c0_i32_21 = arith.constant 0 : i32
    %58 = vector.broadcast %c0_i32_21 : i32 to vector<1x128xi32>
    %59 = arith.shrsi %2, %58 : vector<1x128xi32>
    %c1_i32_22 = arith.constant 1 : i32
    %60 = vector.broadcast %c1_i32_22 : i32 to vector<1x128xi32>
    %61 = arith.andi %59, %60 : vector<1x128xi32>
    %c3_i32_23 = arith.constant 3 : i32
    %62 = vector.broadcast %c3_i32_23 : i32 to vector<1x128xi32>
    %63 = arith.shrsi %2, %62 : vector<1x128xi32>
    %c1_i32_24 = arith.constant 1 : i32
    %64 = vector.broadcast %c1_i32_24 : i32 to vector<1x128xi32>
    %65 = arith.andi %63, %64 : vector<1x128xi32>
    %c0_i32_25 = arith.constant 0 : i32
    %66 = vector.broadcast %c0_i32_25 : i32 to vector<1x128xi32>
    %67 = arith.cmpi eq, %61, %66 : vector<1x128xi32>
    %68 = arith.cmpi eq, %61, %65 : vector<1x128xi32>
    %c3_i32_26 = arith.constant 3 : i32
    %69 = vector.broadcast %c3_i32_26 : i32 to vector<1x128xi32>
    %70 = arith.shrsi %2, %69 : vector<1x128xi32>
    %c1_i32_27 = arith.constant 1 : i32
    %71 = vector.broadcast %c1_i32_27 : i32 to vector<1x128xi32>
    %72 = arith.andi %70, %71 : vector<1x128xi32>
    %c4_i32 = arith.constant 4 : i32
    %73 = vector.broadcast %c4_i32 : i32 to vector<1x128xi32>
    %74 = arith.shrsi %2, %73 : vector<1x128xi32>
    %c1_i32_28 = arith.constant 1 : i32
    %75 = vector.broadcast %c1_i32_28 : i32 to vector<1x128xi32>
    %76 = arith.andi %74, %75 : vector<1x128xi32>
    %c0_i32_29 = arith.constant 0 : i32
    %77 = vector.broadcast %c0_i32_29 : i32 to vector<1x128xi32>
    %78 = arith.cmpi eq, %72, %77 : vector<1x128xi32>
    %79 = arith.cmpi eq, %72, %76 : vector<1x128xi32>
    %c2_i32_30 = arith.constant 2 : i32
    %80 = vector.broadcast %c2_i32_30 : i32 to vector<1x128xi32>
    %81 = arith.shrsi %2, %80 : vector<1x128xi32>
    %c1_i32_31 = arith.constant 1 : i32
    %82 = vector.broadcast %c1_i32_31 : i32 to vector<1x128xi32>
    %83 = arith.andi %81, %82 : vector<1x128xi32>
    %c4_i32_32 = arith.constant 4 : i32
    %84 = vector.broadcast %c4_i32_32 : i32 to vector<1x128xi32>
    %85 = arith.shrsi %2, %84 : vector<1x128xi32>
    %c1_i32_33 = arith.constant 1 : i32
    %86 = vector.broadcast %c1_i32_33 : i32 to vector<1x128xi32>
    %87 = arith.andi %85, %86 : vector<1x128xi32>
    %c0_i32_34 = arith.constant 0 : i32
    %88 = vector.broadcast %c0_i32_34 : i32 to vector<1x128xi32>
    %89 = arith.cmpi eq, %83, %88 : vector<1x128xi32>
    %90 = arith.cmpi eq, %83, %87 : vector<1x128xi32>
    %c1_i32_35 = arith.constant 1 : i32
    %91 = vector.broadcast %c1_i32_35 : i32 to vector<1x128xi32>
    %92 = arith.shrsi %2, %91 : vector<1x128xi32>
    %c1_i32_36 = arith.constant 1 : i32
    %93 = vector.broadcast %c1_i32_36 : i32 to vector<1x128xi32>
    %94 = arith.andi %92, %93 : vector<1x128xi32>
    %c4_i32_37 = arith.constant 4 : i32
    %95 = vector.broadcast %c4_i32_37 : i32 to vector<1x128xi32>
    %96 = arith.shrsi %2, %95 : vector<1x128xi32>
    %c1_i32_38 = arith.constant 1 : i32
    %97 = vector.broadcast %c1_i32_38 : i32 to vector<1x128xi32>
    %98 = arith.andi %96, %97 : vector<1x128xi32>
    %c0_i32_39 = arith.constant 0 : i32
    %99 = vector.broadcast %c0_i32_39 : i32 to vector<1x128xi32>
    %100 = arith.cmpi eq, %94, %99 : vector<1x128xi32>
    %101 = arith.cmpi eq, %94, %98 : vector<1x128xi32>
    %c0_i32_40 = arith.constant 0 : i32
    %102 = vector.broadcast %c0_i32_40 : i32 to vector<1x128xi32>
    %103 = arith.shrsi %2, %102 : vector<1x128xi32>
    %c1_i32_41 = arith.constant 1 : i32
    %104 = vector.broadcast %c1_i32_41 : i32 to vector<1x128xi32>
    %105 = arith.andi %103, %104 : vector<1x128xi32>
    %c4_i32_42 = arith.constant 4 : i32
    %106 = vector.broadcast %c4_i32_42 : i32 to vector<1x128xi32>
    %107 = arith.shrsi %2, %106 : vector<1x128xi32>
    %c1_i32_43 = arith.constant 1 : i32
    %108 = vector.broadcast %c1_i32_43 : i32 to vector<1x128xi32>
    %109 = arith.andi %107, %108 : vector<1x128xi32>
    %c0_i32_44 = arith.constant 0 : i32
    %110 = vector.broadcast %c0_i32_44 : i32 to vector<1x128xi32>
    %111 = arith.cmpi eq, %105, %110 : vector<1x128xi32>
    %112 = arith.cmpi eq, %105, %109 : vector<1x128xi32>
    %c4_i32_45 = arith.constant 4 : i32
    %113 = vector.broadcast %c4_i32_45 : i32 to vector<1x128xi32>
    %114 = arith.shrsi %2, %113 : vector<1x128xi32>
    %c1_i32_46 = arith.constant 1 : i32
    %115 = vector.broadcast %c1_i32_46 : i32 to vector<1x128xi32>
    %116 = arith.andi %114, %115 : vector<1x128xi32>
    %c5_i32 = arith.constant 5 : i32
    %117 = vector.broadcast %c5_i32 : i32 to vector<1x128xi32>
    %118 = arith.shrsi %2, %117 : vector<1x128xi32>
    %c1_i32_47 = arith.constant 1 : i32
    %119 = vector.broadcast %c1_i32_47 : i32 to vector<1x128xi32>
    %120 = arith.andi %118, %119 : vector<1x128xi32>
    %c0_i32_48 = arith.constant 0 : i32
    %121 = vector.broadcast %c0_i32_48 : i32 to vector<1x128xi32>
    %122 = arith.cmpi eq, %116, %121 : vector<1x128xi32>
    %123 = arith.cmpi eq, %116, %120 : vector<1x128xi32>
    %c3_i32_49 = arith.constant 3 : i32
    %124 = vector.broadcast %c3_i32_49 : i32 to vector<1x128xi32>
    %125 = arith.shrsi %2, %124 : vector<1x128xi32>
    %c1_i32_50 = arith.constant 1 : i32
    %126 = vector.broadcast %c1_i32_50 : i32 to vector<1x128xi32>
    %127 = arith.andi %125, %126 : vector<1x128xi32>
    %c5_i32_51 = arith.constant 5 : i32
    %128 = vector.broadcast %c5_i32_51 : i32 to vector<1x128xi32>
    %129 = arith.shrsi %2, %128 : vector<1x128xi32>
    %c1_i32_52 = arith.constant 1 : i32
    %130 = vector.broadcast %c1_i32_52 : i32 to vector<1x128xi32>
    %131 = arith.andi %129, %130 : vector<1x128xi32>
    %c0_i32_53 = arith.constant 0 : i32
    %132 = vector.broadcast %c0_i32_53 : i32 to vector<1x128xi32>
    %133 = arith.cmpi eq, %127, %132 : vector<1x128xi32>
    %134 = arith.cmpi eq, %127, %131 : vector<1x128xi32>
    %c2_i32_54 = arith.constant 2 : i32
    %135 = vector.broadcast %c2_i32_54 : i32 to vector<1x128xi32>
    %136 = arith.shrsi %2, %135 : vector<1x128xi32>
    %c1_i32_55 = arith.constant 1 : i32
    %137 = vector.broadcast %c1_i32_55 : i32 to vector<1x128xi32>
    %138 = arith.andi %136, %137 : vector<1x128xi32>
    %c5_i32_56 = arith.constant 5 : i32
    %139 = vector.broadcast %c5_i32_56 : i32 to vector<1x128xi32>
    %140 = arith.shrsi %2, %139 : vector<1x128xi32>
    %c1_i32_57 = arith.constant 1 : i32
    %141 = vector.broadcast %c1_i32_57 : i32 to vector<1x128xi32>
    %142 = arith.andi %140, %141 : vector<1x128xi32>
    %c0_i32_58 = arith.constant 0 : i32
    %143 = vector.broadcast %c0_i32_58 : i32 to vector<1x128xi32>
    %144 = arith.cmpi eq, %138, %143 : vector<1x128xi32>
    %145 = arith.cmpi eq, %138, %142 : vector<1x128xi32>
    %c1_i32_59 = arith.constant 1 : i32
    %146 = vector.broadcast %c1_i32_59 : i32 to vector<1x128xi32>
    %147 = arith.shrsi %2, %146 : vector<1x128xi32>
    %c1_i32_60 = arith.constant 1 : i32
    %148 = vector.broadcast %c1_i32_60 : i32 to vector<1x128xi32>
    %149 = arith.andi %147, %148 : vector<1x128xi32>
    %c5_i32_61 = arith.constant 5 : i32
    %150 = vector.broadcast %c5_i32_61 : i32 to vector<1x128xi32>
    %151 = arith.shrsi %2, %150 : vector<1x128xi32>
    %c1_i32_62 = arith.constant 1 : i32
    %152 = vector.broadcast %c1_i32_62 : i32 to vector<1x128xi32>
    %153 = arith.andi %151, %152 : vector<1x128xi32>
    %c0_i32_63 = arith.constant 0 : i32
    %154 = vector.broadcast %c0_i32_63 : i32 to vector<1x128xi32>
    %155 = arith.cmpi eq, %149, %154 : vector<1x128xi32>
    %156 = arith.cmpi eq, %149, %153 : vector<1x128xi32>
    %c0_i32_64 = arith.constant 0 : i32
    %157 = vector.broadcast %c0_i32_64 : i32 to vector<1x128xi32>
    %158 = arith.shrsi %2, %157 : vector<1x128xi32>
    %c1_i32_65 = arith.constant 1 : i32
    %159 = vector.broadcast %c1_i32_65 : i32 to vector<1x128xi32>
    %160 = arith.andi %158, %159 : vector<1x128xi32>
    %c5_i32_66 = arith.constant 5 : i32
    %161 = vector.broadcast %c5_i32_66 : i32 to vector<1x128xi32>
    %162 = arith.shrsi %2, %161 : vector<1x128xi32>
    %c1_i32_67 = arith.constant 1 : i32
    %163 = vector.broadcast %c1_i32_67 : i32 to vector<1x128xi32>
    %164 = arith.andi %162, %163 : vector<1x128xi32>
    %c0_i32_68 = arith.constant 0 : i32
    %165 = vector.broadcast %c0_i32_68 : i32 to vector<1x128xi32>
    %166 = arith.cmpi eq, %160, %165 : vector<1x128xi32>
    %167 = arith.cmpi eq, %160, %164 : vector<1x128xi32>
    %c0 = arith.constant 0 : index
    %c0_69 = arith.constant 0 : index
    %168 = vector.load %arg2[%c0, %c0_69] : memref<128x32xbf16, #tpu.memory_space<vmem>>, vector<128x32xbf16>
    %c0_70 = arith.constant 0 : index
    %c0_71 = arith.constant 0 : index
    %169 = vector.load %arg3[%c0_70, %c0_71] : memref<128x32xbf16, #tpu.memory_space<vmem>>, vector<128x32xbf16>
    %c0_72 = arith.constant 0 : index
    %c0_73 = arith.constant 0 : index
    %170 = vector.load %arg4[%c0_72, %c0_73] : memref<32x128xbf16, #tpu.memory_space<vmem>>, vector<32x128xbf16>
    %c0_i32_74 = arith.constant 0 : i32
    %c4_i32_75 = arith.constant 4 : i32
    %171 = arith.addi %c0_i32_74, %c4_i32_75 : i32
    %c1_i32_76 = arith.constant 1 : i32
    scf.for %arg6 = %c0_i32_74 to %171 step %c1_i32_76  : i32 {
      %c256_i32 = arith.constant 256 : i32
      %172 = arith.muli %arg6, %c256_i32 : i32
      %173 = tpu.assume_multiple %172, 256 : i32
      %174 = arith.index_cast %173 : i32 to index
      %c0_78 = arith.constant 0 : index
      %175 = vector.load %arg1[%174, %c0_78] : memref<1024x128xf32, #tpu.memory_space<vmem>>, vector<256x128xf32>
      %c127_i32 = arith.constant 127 : i32
      %176 = tpu.dynamic_rotate %175 by %c127_i32 dim 1 : vector<256x128xf32>, i32 -> vector<256x128xf32>
      %c1_i32_79 = arith.constant 1 : i32
      %177 = tpu.dynamic_rotate %175 by %c1_i32_79 dim 1 : vector<256x128xf32>, i32 -> vector<256x128xf32>
      %178 = vector.shape_cast %12 : vector<1x128xi1> to vector<1x128xi1>
      %179 = vector.broadcast %178 : vector<1x128xi1> to vector<256x128xi1>
      %180 = arith.select %179, %176, %177 : vector<256x128xi1>, vector<256x128xf32>
      %181 = arith.minimumf %175, %180 : vector<256x128xf32>
      %182 = arith.maximumf %175, %180 : vector<256x128xf32>
      %183 = vector.shape_cast %13 : vector<1x128xi1> to vector<1x128xi1>
      %184 = vector.broadcast %183 : vector<1x128xi1> to vector<256x128xi1>
      %185 = arith.select %184, %181, %182 : vector<256x128xi1>, vector<256x128xf32>
      %c126_i32 = arith.constant 126 : i32
      %186 = tpu.dynamic_rotate %185 by %c126_i32 dim 1 : vector<256x128xf32>, i32 -> vector<256x128xf32>
      %c2_i32_80 = arith.constant 2 : i32
      %187 = tpu.dynamic_rotate %185 by %c2_i32_80 dim 1 : vector<256x128xf32>, i32 -> vector<256x128xf32>
      %188 = vector.shape_cast %23 : vector<1x128xi1> to vector<1x128xi1>
      %189 = vector.broadcast %188 : vector<1x128xi1> to vector<256x128xi1>
      %190 = arith.select %189, %186, %187 : vector<256x128xi1>, vector<256x128xf32>
      %191 = arith.minimumf %185, %190 : vector<256x128xf32>
      %192 = arith.maximumf %185, %190 : vector<256x128xf32>
      %193 = vector.shape_cast %24 : vector<1x128xi1> to vector<1x128xi1>
      %194 = vector.broadcast %193 : vector<1x128xi1> to vector<256x128xi1>
      %195 = arith.select %194, %191, %192 : vector<256x128xi1>, vector<256x128xf32>
      %c127_i32_81 = arith.constant 127 : i32
      %196 = tpu.dynamic_rotate %195 by %c127_i32_81 dim 1 : vector<256x128xf32>, i32 -> vector<256x128xf32>
      %c1_i32_82 = arith.constant 1 : i32
      %197 = tpu.dynamic_rotate %195 by %c1_i32_82 dim 1 : vector<256x128xf32>, i32 -> vector<256x128xf32>
      %198 = vector.shape_cast %34 : vector<1x128xi1> to vector<1x128xi1>
      %199 = vector.broadcast %198 : vector<1x128xi1> to vector<256x128xi1>
      %200 = arith.select %199, %196, %197 : vector<256x128xi1>, vector<256x128xf32>
      %201 = arith.minimumf %195, %200 : vector<256x128xf32>
      %202 = arith.maximumf %195, %200 : vector<256x128xf32>
      %203 = vector.shape_cast %35 : vector<1x128xi1> to vector<1x128xi1>
      %204 = vector.broadcast %203 : vector<1x128xi1> to vector<256x128xi1>
      %205 = arith.select %204, %201, %202 : vector<256x128xi1>, vector<256x128xf32>
      %c124_i32 = arith.constant 124 : i32
      %206 = tpu.dynamic_rotate %205 by %c124_i32 dim 1 : vector<256x128xf32>, i32 -> vector<256x128xf32>
      %c4_i32_83 = arith.constant 4 : i32
      %207 = tpu.dynamic_rotate %205 by %c4_i32_83 dim 1 : vector<256x128xf32>, i32 -> vector<256x128xf32>
      %208 = vector.shape_cast %45 : vector<1x128xi1> to vector<1x128xi1>
      %209 = vector.broadcast %208 : vector<1x128xi1> to vector<256x128xi1>
      %210 = arith.select %209, %206, %207 : vector<256x128xi1>, vector<256x128xf32>
      %211 = arith.minimumf %205, %210 : vector<256x128xf32>
      %212 = arith.maximumf %205, %210 : vector<256x128xf32>
      %213 = vector.shape_cast %46 : vector<1x128xi1> to vector<1x128xi1>
      %214 = vector.broadcast %213 : vector<1x128xi1> to vector<256x128xi1>
      %215 = arith.select %214, %211, %212 : vector<256x128xi1>, vector<256x128xf32>
      %c126_i32_84 = arith.constant 126 : i32
      %216 = tpu.dynamic_rotate %215 by %c126_i32_84 dim 1 : vector<256x128xf32>, i32 -> vector<256x128xf32>
      %c2_i32_85 = arith.constant 2 : i32
      %217 = tpu.dynamic_rotate %215 by %c2_i32_85 dim 1 : vector<256x128xf32>, i32 -> vector<256x128xf32>
      %218 = vector.shape_cast %56 : vector<1x128xi1> to vector<1x128xi1>
      %219 = vector.broadcast %218 : vector<1x128xi1> to vector<256x128xi1>
      %220 = arith.select %219, %216, %217 : vector<256x128xi1>, vector<256x128xf32>
      %221 = arith.minimumf %215, %220 : vector<256x128xf32>
      %222 = arith.maximumf %215, %220 : vector<256x128xf32>
      %223 = vector.shape_cast %57 : vector<1x128xi1> to vector<1x128xi1>
      %224 = vector.broadcast %223 : vector<1x128xi1> to vector<256x128xi1>
      %225 = arith.select %224, %221, %222 : vector<256x128xi1>, vector<256x128xf32>
      %c127_i32_86 = arith.constant 127 : i32
      %226 = tpu.dynamic_rotate %225 by %c127_i32_86 dim 1 : vector<256x128xf32>, i32 -> vector<256x128xf32>
      %c1_i32_87 = arith.constant 1 : i32
      %227 = tpu.dynamic_rotate %225 by %c1_i32_87 dim 1 : vector<256x128xf32>, i32 -> vector<256x128xf32>
      %228 = vector.shape_cast %67 : vector<1x128xi1> to vector<1x128xi1>
      %229 = vector.broadcast %228 : vector<1x128xi1> to vector<256x128xi1>
      %230 = arith.select %229, %226, %227 : vector<256x128xi1>, vector<256x128xf32>
      %231 = arith.minimumf %225, %230 : vector<256x128xf32>
      %232 = arith.maximumf %225, %230 : vector<256x128xf32>
      %233 = vector.shape_cast %68 : vector<1x128xi1> to vector<1x128xi1>
      %234 = vector.broadcast %233 : vector<1x128xi1> to vector<256x128xi1>
      %235 = arith.select %234, %231, %232 : vector<256x128xi1>, vector<256x128xf32>
      %c120_i32 = arith.constant 120 : i32
      %236 = tpu.dynamic_rotate %235 by %c120_i32 dim 1 : vector<256x128xf32>, i32 -> vector<256x128xf32>
      %c8_i32 = arith.constant 8 : i32
      %237 = tpu.dynamic_rotate %235 by %c8_i32 dim 1 : vector<256x128xf32>, i32 -> vector<256x128xf32>
      %238 = vector.shape_cast %78 : vector<1x128xi1> to vector<1x128xi1>
      %239 = vector.broadcast %238 : vector<1x128xi1> to vector<256x128xi1>
      %240 = arith.select %239, %236, %237 : vector<256x128xi1>, vector<256x128xf32>
      %241 = arith.minimumf %235, %240 : vector<256x128xf32>
      %242 = arith.maximumf %235, %240 : vector<256x128xf32>
      %243 = vector.shape_cast %79 : vector<1x128xi1> to vector<1x128xi1>
      %244 = vector.broadcast %243 : vector<1x128xi1> to vector<256x128xi1>
      %245 = arith.select %244, %241, %242 : vector<256x128xi1>, vector<256x128xf32>
      %c124_i32_88 = arith.constant 124 : i32
      %246 = tpu.dynamic_rotate %245 by %c124_i32_88 dim 1 : vector<256x128xf32>, i32 -> vector<256x128xf32>
      %c4_i32_89 = arith.constant 4 : i32
      %247 = tpu.dynamic_rotate %245 by %c4_i32_89 dim 1 : vector<256x128xf32>, i32 -> vector<256x128xf32>
      %248 = vector.shape_cast %89 : vector<1x128xi1> to vector<1x128xi1>
      %249 = vector.broadcast %248 : vector<1x128xi1> to vector<256x128xi1>
      %250 = arith.select %249, %246, %247 : vector<256x128xi1>, vector<256x128xf32>
      %251 = arith.minimumf %245, %250 : vector<256x128xf32>
      %252 = arith.maximumf %245, %250 : vector<256x128xf32>
      %253 = vector.shape_cast %90 : vector<1x128xi1> to vector<1x128xi1>
      %254 = vector.broadcast %253 : vector<1x128xi1> to vector<256x128xi1>
      %255 = arith.select %254, %251, %252 : vector<256x128xi1>, vector<256x128xf32>
      %c126_i32_90 = arith.constant 126 : i32
      %256 = tpu.dynamic_rotate %255 by %c126_i32_90 dim 1 : vector<256x128xf32>, i32 -> vector<256x128xf32>
      %c2_i32_91 = arith.constant 2 : i32
      %257 = tpu.dynamic_rotate %255 by %c2_i32_91 dim 1 : vector<256x128xf32>, i32 -> vector<256x128xf32>
      %258 = vector.shape_cast %100 : vector<1x128xi1> to vector<1x128xi1>
      %259 = vector.broadcast %258 : vector<1x128xi1> to vector<256x128xi1>
      %260 = arith.select %259, %256, %257 : vector<256x128xi1>, vector<256x128xf32>
      %261 = arith.minimumf %255, %260 : vector<256x128xf32>
      %262 = arith.maximumf %255, %260 : vector<256x128xf32>
      %263 = vector.shape_cast %101 : vector<1x128xi1> to vector<1x128xi1>
      %264 = vector.broadcast %263 : vector<1x128xi1> to vector<256x128xi1>
      %265 = arith.select %264, %261, %262 : vector<256x128xi1>, vector<256x128xf32>
      %c127_i32_92 = arith.constant 127 : i32
      %266 = tpu.dynamic_rotate %265 by %c127_i32_92 dim 1 : vector<256x128xf32>, i32 -> vector<256x128xf32>
      %c1_i32_93 = arith.constant 1 : i32
      %267 = tpu.dynamic_rotate %265 by %c1_i32_93 dim 1 : vector<256x128xf32>, i32 -> vector<256x128xf32>
      %268 = vector.shape_cast %111 : vector<1x128xi1> to vector<1x128xi1>
      %269 = vector.broadcast %268 : vector<1x128xi1> to vector<256x128xi1>
      %270 = arith.select %269, %266, %267 : vector<256x128xi1>, vector<256x128xf32>
      %271 = arith.minimumf %265, %270 : vector<256x128xf32>
      %272 = arith.maximumf %265, %270 : vector<256x128xf32>
      %273 = vector.shape_cast %112 : vector<1x128xi1> to vector<1x128xi1>
      %274 = vector.broadcast %273 : vector<1x128xi1> to vector<256x128xi1>
      %275 = arith.select %274, %271, %272 : vector<256x128xi1>, vector<256x128xf32>
      %c112_i32 = arith.constant 112 : i32
      %276 = tpu.dynamic_rotate %275 by %c112_i32 dim 1 : vector<256x128xf32>, i32 -> vector<256x128xf32>
      %c16_i32 = arith.constant 16 : i32
      %277 = tpu.dynamic_rotate %275 by %c16_i32 dim 1 : vector<256x128xf32>, i32 -> vector<256x128xf32>
      %278 = vector.shape_cast %122 : vector<1x128xi1> to vector<1x128xi1>
      %279 = vector.broadcast %278 : vector<1x128xi1> to vector<256x128xi1>
      %280 = arith.select %279, %276, %277 : vector<256x128xi1>, vector<256x128xf32>
      %281 = arith.minimumf %275, %280 : vector<256x128xf32>
      %282 = arith.maximumf %275, %280 : vector<256x128xf32>
      %283 = vector.shape_cast %123 : vector<1x128xi1> to vector<1x128xi1>
      %284 = vector.broadcast %283 : vector<1x128xi1> to vector<256x128xi1>
      %285 = arith.select %284, %281, %282 : vector<256x128xi1>, vector<256x128xf32>
      %c120_i32_94 = arith.constant 120 : i32
      %286 = tpu.dynamic_rotate %285 by %c120_i32_94 dim 1 : vector<256x128xf32>, i32 -> vector<256x128xf32>
      %c8_i32_95 = arith.constant 8 : i32
      %287 = tpu.dynamic_rotate %285 by %c8_i32_95 dim 1 : vector<256x128xf32>, i32 -> vector<256x128xf32>
      %288 = vector.shape_cast %133 : vector<1x128xi1> to vector<1x128xi1>
      %289 = vector.broadcast %288 : vector<1x128xi1> to vector<256x128xi1>
      %290 = arith.select %289, %286, %287 : vector<256x128xi1>, vector<256x128xf32>
      %291 = arith.minimumf %285, %290 : vector<256x128xf32>
      %292 = arith.maximumf %285, %290 : vector<256x128xf32>
      %293 = vector.shape_cast %134 : vector<1x128xi1> to vector<1x128xi1>
      %294 = vector.broadcast %293 : vector<1x128xi1> to vector<256x128xi1>
      %295 = arith.select %294, %291, %292 : vector<256x128xi1>, vector<256x128xf32>
      %c124_i32_96 = arith.constant 124 : i32
      %296 = tpu.dynamic_rotate %295 by %c124_i32_96 dim 1 : vector<256x128xf32>, i32 -> vector<256x128xf32>
      %c4_i32_97 = arith.constant 4 : i32
      %297 = tpu.dynamic_rotate %295 by %c4_i32_97 dim 1 : vector<256x128xf32>, i32 -> vector<256x128xf32>
      %298 = vector.shape_cast %144 : vector<1x128xi1> to vector<1x128xi1>
      %299 = vector.broadcast %298 : vector<1x128xi1> to vector<256x128xi1>
      %300 = arith.select %299, %296, %297 : vector<256x128xi1>, vector<256x128xf32>
      %301 = arith.minimumf %295, %300 : vector<256x128xf32>
      %302 = arith.maximumf %295, %300 : vector<256x128xf32>
      %303 = vector.shape_cast %145 : vector<1x128xi1> to vector<1x128xi1>
      %304 = vector.broadcast %303 : vector<1x128xi1> to vector<256x128xi1>
      %305 = arith.select %304, %301, %302 : vector<256x128xi1>, vector<256x128xf32>
      %c126_i32_98 = arith.constant 126 : i32
      %306 = tpu.dynamic_rotate %305 by %c126_i32_98 dim 1 : vector<256x128xf32>, i32 -> vector<256x128xf32>
      %c2_i32_99 = arith.constant 2 : i32
      %307 = tpu.dynamic_rotate %305 by %c2_i32_99 dim 1 : vector<256x128xf32>, i32 -> vector<256x128xf32>
      %308 = vector.shape_cast %155 : vector<1x128xi1> to vector<1x128xi1>
      %309 = vector.broadcast %308 : vector<1x128xi1> to vector<256x128xi1>
      %310 = arith.select %309, %306, %307 : vector<256x128xi1>, vector<256x128xf32>
      %311 = arith.minimumf %305, %310 : vector<256x128xf32>
      %312 = arith.maximumf %305, %310 : vector<256x128xf32>
      %313 = vector.shape_cast %156 : vector<1x128xi1> to vector<1x128xi1>
      %314 = vector.broadcast %313 : vector<1x128xi1> to vector<256x128xi1>
      %315 = arith.select %314, %311, %312 : vector<256x128xi1>, vector<256x128xf32>
      %c127_i32_100 = arith.constant 127 : i32
      %316 = tpu.dynamic_rotate %315 by %c127_i32_100 dim 1 : vector<256x128xf32>, i32 -> vector<256x128xf32>
      %c1_i32_101 = arith.constant 1 : i32
      %317 = tpu.dynamic_rotate %315 by %c1_i32_101 dim 1 : vector<256x128xf32>, i32 -> vector<256x128xf32>
      %318 = vector.shape_cast %166 : vector<1x128xi1> to vector<1x128xi1>
      %319 = vector.broadcast %318 : vector<1x128xi1> to vector<256x128xi1>
      %320 = arith.select %319, %316, %317 : vector<256x128xi1>, vector<256x128xf32>
      %321 = arith.minimumf %315, %320 : vector<256x128xf32>
      %322 = arith.maximumf %315, %320 : vector<256x128xf32>
      %323 = vector.shape_cast %167 : vector<1x128xi1> to vector<1x128xi1>
      %324 = vector.broadcast %323 : vector<1x128xi1> to vector<256x128xi1>
      %325 = arith.select %324, %321, %322 : vector<256x128xi1>, vector<256x128xf32>
      %326 = arith.truncf %175 : vector<256x128xf32> to vector<256x128xbf16>
      %cst = arith.constant dense<0.000000e+00> : vector<256x32xf32>
      %327 = tpu.matmul %326, %168, %cst {dimension_numbers = #tpu.dot_dimension_numbers<[1], [0], [0], [1], [0, 0, 1, 1], [], []>} : vector<256x128xbf16>, vector<128x32xbf16>, vector<256x32xf32> -> vector<256x32xf32>
      %328 = arith.truncf %325 : vector<256x128xf32> to vector<256x128xbf16>
      %cst_102 = arith.constant dense<0.000000e+00> : vector<256x32xf32>
      %329 = tpu.matmul %328, %169, %cst_102 {dimension_numbers = #tpu.dot_dimension_numbers<[1], [0], [0], [1], [0, 0, 1, 1], [], []>} : vector<256x128xbf16>, vector<128x32xbf16>, vector<256x32xf32> -> vector<256x32xf32>
      %330 = arith.addf %327, %329 : vector<256x32xf32>
      %cst_103 = arith.constant 0.000000e+00 : f32
      %331 = vector.broadcast %cst_103 : f32 to vector<256x32xf32>
      %332 = arith.maximumf %330, %331 : vector<256x32xf32>
      %333 = arith.truncf %332 : vector<256x32xf32> to vector<256x32xbf16>
      %cst_104 = arith.constant dense<0.000000e+00> : vector<256x128xf32>
      %334 = tpu.matmul %333, %170, %cst_104 {dimension_numbers = #tpu.dot_dimension_numbers<[1], [0], [0], [1], [0, 0, 1, 1], [], []>} : vector<256x32xbf16>, vector<32x128xbf16>, vector<256x128xf32> -> vector<256x128xf32>
      %cst_105 = arith.constant 0.000000e+00 : f32
      %335 = vector.broadcast %cst_105 : f32 to vector<256x128xf32>
      %336 = arith.subf %335, %334 : vector<256x128xf32>
      %337 = math.exp %336 : vector<256x128xf32>
      %cst_106 = arith.constant 1.000000e+00 : f32
      %338 = vector.broadcast %cst_106 : f32 to vector<256x128xf32>
      %339 = arith.addf %338, %337 : vector<256x128xf32>
      %340 = tpu.reciprocal %339 {approx = true} : vector<256x128xf32> -> vector<256x128xf32>
      %341 = arith.mulf %175, %340 : vector<256x128xf32>
      %c112_i32_107 = arith.constant 112 : i32
      %342 = tpu.dynamic_rotate %341 by %c112_i32_107 dim 1 : vector<256x128xf32>, i32 -> vector<256x128xf32>
      %343 = arith.addf %341, %342 : vector<256x128xf32>
      %344 = arith.index_cast %173 : i32 to index
      %c0_108 = arith.constant 0 : index
      %345 = vector.load %arg5[%344, %c0_108] : memref<1024x128xf32, #tpu.memory_space<vmem>>, vector<256x128xf32>
      tpu.vector_store %arg5[%344, %c0_108], %343 {strides = array<i32>} : memref<1024x128xf32, #tpu.memory_space<vmem>>, vector<256x128xf32>,
    }
    %c4_i32_77 = arith.constant 4 : i32
    return
  }
  func.func @transform_0(%arg0: i32) -> (i32, i32) {
    %c0_i32 = arith.constant 0 : i32
    %c0_i32_0 = arith.constant 0 : i32
    return %arg0, %c0_i32 : i32, i32
  }
  func.func @transform_1(%arg0: i32) -> (i32, i32) {
    %c0_i32 = arith.constant 0 : i32
    %c0_i32_0 = arith.constant 0 : i32
    %c0_i32_1 = arith.constant 0 : i32
    return %c0_i32, %c0_i32_0 : i32, i32
  }
  func.func @transform_2(%arg0: i32) -> (i32, i32) {
    %c0_i32 = arith.constant 0 : i32
    %c0_i32_0 = arith.constant 0 : i32
    %c0_i32_1 = arith.constant 0 : i32
    return %c0_i32, %c0_i32_0 : i32, i32
  }
  func.func @transform_3(%arg0: i32) -> (i32, i32) {
    %c0_i32 = arith.constant 0 : i32
    %c0_i32_0 = arith.constant 0 : i32
    %c0_i32_1 = arith.constant 0 : i32
    return %c0_i32, %c0_i32_0 : i32, i32
  }
  func.func @transform_4(%arg0: i32) -> (i32, i32) {
    %c0_i32 = arith.constant 0 : i32
    %c0_i32_0 = arith.constant 0 : i32
    return %arg0, %c0_i32 : i32, i32
  }
}

</mosaic_0001>

<bundles_post_ra>
// kernel: tpu_custom_call.1
= control target key start
LH: loop header
LB: loop body
LE: loop exit
PB: predicated region body
PF: predicated region fallthrough
CT: control target
= control target key end

     0   :  { %9 = vsyncpa [#allocation3], 0  ;;  %s15034_s0 = inlined_call_operand.hbm [shape: f32[2048,128], index: 0, kind: input, shape index: {}]   ;;  %s15035_s1 = inlined_call_operand.vmem [shape: bf16[128,32], index: 1, kind: input, shape index: {}]   ;;  %s15036_s2 = inlined_call_operand.vmem [shape: bf16[128,32], index: 2, kind: input, shape index: {}]   ;;  %s15037_s3 = inlined_call_operand.vmem [shape: bf16[32,128], index: 3, kind: input, shape index: {}]   ;;  %s15038_s4 = inlined_call_operand.hbm [shape: f32[2048,128], index: 4, kind: output, shape index: {}]  }
   0x1   :  { %11 = vsyncpa [#allocation3 + $0x1], 0 }
   0x2   :  { %12 = vsyncpa [#allocation4], 0 }
   0x3   :  { %14 = vsyncpa [#allocation4 + $0x1], 0  ;;  %s8418_s15 = smov 0   ;;  %s8420_s16 = smov 0  }
   0x4   :  { %s8422_s17 = smov 0   ;;  %s8424_s18 = smov 0  }
   0x5 LB: > { %s8439_s19 = sadd.s32 4294967295, %s8371_s18   ;;  %s5346_s20 = sadd.s32 4294967294, %s8371_s18   ;;  %s8371_s18 = sphi %s8424_s18, %s15854_s18   ;;  %s8367_s17 = sphi %s8422_s17, %s15853_s17   ;;  %s8363_s16 = sphi %s8420_s16, %s15852_s16   ;;  %s8359_s15 = sphi %s8418_s15, %s15851_s15  }
   0x6   : > { %s8443_s21 = sadd.s32 1, %s8371_s18   ;;  %s27_s22 = sadd.s32 1, %s8367_s17 }
   0x7   : > { %s24_s23 = ssub.s32 %s8371_s18, %s8443_s21  ;;  %p34_p0 = scmp.ne.s32.totalorder %s8367_s17, %s8363_s16 }
   0x8   : > { %p25_p1 = scmp.eq.s32.totalorder %s24_s23, 0  ;;  %p35_p2 = scmp.eq.s32.totalorder %s8371_s18, 0 }
   0x9   : > { %p40_p3 = scmp.ne.s32.totalorder %s8363_s16, %s8359_s15  ;;  %p41_p4 = scmp.eq.s32.totalorder %s8439_s19, 0 }
   0xa   : > { %s8455_s24 = scalar_select %p25_p1, %s8367_s17, %s27_s22  }
   0xb   : > { %p8457_p5 = por %p35_p2, %p34_p0  ;;  %p8461_p6 = por %p41_p4, %p40_p3 }
   0xc   : > { %p127_p7 = scmp.eq.s32.totalorder %s8439_s19, 1  ;;  %p133_p8 = scmp.eq.s32.totalorder %s5346_s20, 1 }
   0xd   : > { %p5655_p10 = scmp.lt.s32.totalorder %s8371_s18, 2  ;;  %s162_s29 = sand.u32 1, %s8367_s17  }
   0xe   : > { %p8468_p11 = por %p127_p7, %p34_p0  ;;  %p8472_p12 = por %p133_p8, %p40_p3 }
   0xf   : > { %s5395_s30 = sshll.u32 %s8371_s18, 14  ;;  %s5349_s5 = sshll.u32 %s162_s29, 10 }
  0x10   : > { %s15162_s27 = scalar_select %p8468_p11, 1, 0 }
  0x11   : > { %s15163_s28 = scalar_select %p8472_p12, 1, 0 }
  0x12   : > { %s8481_s8 = scalar_lea.hbm %s15034_s0, %s5395_s30  ;;  %s166_s9 = scalar_lea.vmem [#allocation2], %s5349_s5 }
  0x13   : > { %s173_s10 = sshll.u32 %s166_s9, 4  ;;  %p8485_p13 = pnand %p5655_p10, %p8457_p5  ;;  %s8489_s10 = int_to_ptr.vmem [resolvable:$true] %s173_s10 }
  0x14   : > { %s8491_s12 = scalar_lea.sflag [#allocation3], %s162_s29  ;;  %s8271_s13 = scalar_lea.hbm %s8481_s8, 16384 }
  0x15   : > { %p8272_p0 = scmp.ne.s32.totalorder %s8481_s8, %s8271_s13  ;;  %p8273_p1 = pneg %p8485_p13 }
  0x16   : > { %s8276_s22 = scalar_lea.hbm %s15034_s0, 32768  ;;  %p8277_p4 = scmp.lt.u32.totalorder %s8481_s8, %s15034_s0 }
  0x17   : > { %p8274_p2 = pnand %p8273_p1, %p8272_p0  ;;  %p8278_p5 = scmp.lt.u32.totalorder %s8276_s22, %s8271_s13 }
  0x18   : > { %p8280_p8 = scmp.lt.u32.totalorder %s8271_s13, %s8481_s8 }
  0x19   : > { %p8275_p3 = pneg %p8274_p2  ;;  %p8279_p7 = por %p8278_p5, %p8277_p4 }
  0x1b   : > { %p8281_p10 = por %p8280_p8, %p8279_p7 }
  0x1d   : > { %p8282_p9 = pnand %p8281_p10, %p8275_p3 }
  0x1f   : > { %8285 = shalt.err (!%p8282_p9)
}
  0x20   : > { %s8286_s29 = scalar_lea.vmem %s8489_s10, 16384  ;;  %s8377_s30 = smov [#allocation2]  }
  0x21   : > { %p8287_p0 = scmp.ne.s32.totalorder %s8489_s10, %s8286_s29  ;;  %s8291_s5 = sshll.u32 %s8377_s30, 4  ;;  %s8292_s5 = int_to_ptr.vmem [resolvable:$false] %s8291_s5 }
  0x22   : > { %s8293_s6 = scalar_lea.vmem %s8292_s5, 32768  ;;  %p8294_p11 = scmp.lt.s32.totalorder %s8489_s10, %s8292_s5 }
  0x23   : > { %p8289_p2 = pnand %p8287_p0, %p8273_p1  ;;  %p8295_p4 = scmp.lt.s32.totalorder %s8293_s6, %s8286_s29 }
  0x25   : > { %p8290_p12 = pneg %p8289_p2  ;;  %p8296_p5 = por %p8295_p4, %p8294_p11 }
  0x27   : > { %p8297_p7 = pnand %p8296_p5, %p8290_p12 }
  0x29   : > { %8300 = shalt.err (!%p8297_p7)
}
  0x2a   : > { %s8378_s7 = smov 128   ;;  %s8379_s9 = smov 8  }
  0x2b   : > { %5650 = dma.hbm_to_vmem [thread:$0]  (!%p8485_p13), %s8481_s8, 16384, %s8489_s10, %s8491_s12, %s8378_s7, %s8378_s7, %s8379_s9  }
  0x2c   : > { %p5352_p9 = scmp.ge.s32.totalorder %s8371_s18, 1  ;;  %p181_p1 = scmp.lt.s32.totalorder %s8371_s18, 3 }
  0x2e   : > { %p182_p3 = pnand %p5352_p9, %p181_p1 }
  0x30   : > { %185 = sbr.rel (%p182_p3) target bundleno = 3039 (0xbdf), region = 36 }
  0x37   : > { %s8522_s13 = sand.u32 1, %s8363_s16  }
  0x38   : > { %s5353_s14 = sshll.u32 %s8522_s13, 10  ;;  %s188_s20 = scalar_lea.sflag [#allocation3], %s8522_s13 }
  0x39   : > { %s8528_s22 = scalar_lea.vmem [#allocation2], %s5353_s14 }
  0x3a   : > { %8350 = dma.done.wait (%p8461_p6), %s188_s20, 16384  }
  0x3b   : > { %8352 = vsyncadd (%p8461_p6), %s188_s20, 4294950912  ;;  %v219_v0 = vlaneseq  ;;  %v8539_v9 = vld [vmem:[%s15035_s1] sm:$0xf]  ;;  %v8544_v10 = vld [vmem:[%s15035_s1 + $0x4] sm:$0xf]  ;;  %v15175_v19 = vmov 0 }
  0x3c   : > { %15166 = vst [vmem:[#allocation9_spill] sm:$0xff] %v8539_v9  ;;  %15167 = vst [vmem:[#allocation10_spill] sm:$0xff] %v8544_v10  ;;  %v8556_v14 = vld [vmem:[%s15035_s1 + $0x8] sm:$0xf]  ;;  %v8563_v17 = vld [vmem:[%s15035_s1 + $0xc] sm:$0xf] }
  0x3d   : > { %v220_v1 = vand.u32 127, %v219_v0  ;;  %15171 = vst [vmem:[#allocation14_spill] sm:$0xff] %v8556_v14  ;;  %15173 = vst [vmem:[#allocation16_spill] sm:$0xff] %v8563_v17  ;;  %v8568_v18 = vld [vmem:[%s15035_s1 + $0x10] sm:$0xf]  ;;  %v15178_v20 = vmov 0 }
  0x3e   : > { %15174 = vst [vmem:[#allocation17_spill] sm:$0xff] %v8568_v18  ;;  %v15181_v21 = vmov 0  ;;  %v8592_v22 = vld [vmem:[%s15035_s1 + $0x14] sm:$0xf]  ;;  %v8597_v23 = vld [vmem:[%s15035_s1 + $0x18] sm:$0xf] }
  0x3f   : > { %v221_v2 = vand.u32 31, %v220_v1  ;;  %15184 = vst [vmem:[#allocation21_spill] sm:$0xff] %v8592_v22  ;;  %15185 = vst [vmem:[#allocation22_spill] sm:$0xff] %v8597_v23  ;;  %v15186_v24 = vmov 0  ;;  %v15189_v25 = vmov 0  ;;  %v15192_v26 = vmov 0 }
  0x40   : > { %v8621_v27 = vld [vmem:[%s15035_s1 + $0x1c] sm:$0xf]  ;;  %v8626_v28 = vld [vmem:[%s15035_s1 + $0x20] sm:$0xf]  ;;  %v15197_v29 = vmov 0  ;;  %v15200_v30 = vmov 0 }
  0x41   : > { %v8534_v3 = vand.u32 1, %v221_v2  ;;  %v223_v4 = vshra.s32 %v221_v2, 1  ;;  %v227_v5 = vshra.s32 %v221_v2, 2  ;;  %v232_v6 = vshra.s32 %v221_v2, 3  ;;  %15195 = vst [vmem:[#allocation26_spill] sm:$0xff] %v8621_v27  ;;  %15196 = vst [vmem:[#allocation27_spill] sm:$0xff] %v8626_v28 }
  0x42   : > { %v238_v7 = vshra.s32 %v221_v2, 4  ;;  %v245_v8 = vshra.s32 %v221_v2, 5  ;;  %v15203_v31 = vmov 0  ;;  %v8650_v32 = vld [vmem:[%s15035_s1 + $0x24] sm:$0xf]  ;;  %v15208_v34 = vmov 0 }
  0x43   : > { %15165 = vst [vmem:[#allocation8_spill] sm:$0xff] %v8534_v3  ;;  %v8546_v11 = vand.u32 1, %v223_v4  ;;  %v8549_v12 = vand.u32 1, %v227_v5  ;;  %v8551_v13 = vand.u32 1, %v232_v6  ;;  %15206 = vst [vmem:[#allocation31_spill] sm:$0xff] %v8650_v32  ;;  %v15211_v35 = vmov 0 }
  0x44   : > { %v8558_v15 = vand.u32 1, %v238_v7  ;;  %v246_v16 = vand.u32 1, %v245_v8  ;;  %v8655_v33 = vld [vmem:[%s15035_s1 + $0x28] sm:$0xf]  ;;  %v15214_v36 = vmov 0  ;;  %v15219_v39 = vmov 0 }
  0x45   : > { %15168 = vst [vmem:[#allocation11_spill] sm:$0xff] %v8546_v11  ;;  %15169 = vst [vmem:[#allocation12_spill] sm:$0xff] %v8549_v12  ;;  %vm8572_vm1 = vcmp.eq.s32.totalorder %v8534_v3, %v8546_v11  ;;  %vm8579_vm3 = vcmp.eq.s32.totalorder %v8546_v11, %v8549_v12  ;;  %vm8585_vm4 = vcmp.eq.s32.totalorder %v8534_v3, %v8549_v12  ;;  %v8677_v37 = vld [vmem:[%s15035_s1 + $0x2c] sm:$0xf]  ;;  %v8682_v38 = vld [vmem:[%s15035_s1 + $0x30] sm:$0xf] }
  0x46   : > { %15170 = vst [vmem:[#allocation13_spill] sm:$0xff] %v8551_v13  ;;  %15172 = vst [vmem:[#allocation15_spill] sm:$0xff] %v8558_v15  ;;  %v15176_v19 = vsel %vm8572_vm1, 4294967295, %v15175_v19  ;;  %v15179_v20 = vsel %vm8579_vm3, 4294967295, %v15178_v20  ;;  %v15182_v21 = vsel %vm8585_vm4, 4294967295, %v15181_v21  ;;  %vm8602_vm6 = vcmp.eq.s32.totalorder %v8549_v12, %v8551_v13  ;;  %s8816_s11 = scalar_lea.vmem [#allocation5], %s5353_s14 }
  0x47   : > { %15177 = vst [vmem:[#allocation18_spill] sm:$0xff] %v15176_v19  ;;  %15180 = vst [vmem:[#allocation19_spill] sm:$0xff] %v15179_v20  ;;  %v15187_v24 = vsel %vm8602_vm6, 4294967295, %v15186_v24  ;;  %vm8608_vm7 = vcmp.eq.s32.totalorder %v8546_v11, %v8551_v13  ;;  %vm8614_vm8 = vcmp.eq.s32.totalorder %v8534_v3, %v8551_v13  ;;  %vm8631_vm10 = vcmp.eq.s32.totalorder %v8551_v13, %v8558_v15  ;;  %v8702_v42 = vld [vmem:[%s15035_s1 + $0x34] sm:$0xf]  ;;  %s8818_s12 = smov 0  }
  0x48   : > { %15183 = vst [vmem:[#allocation20_spill] sm:$0xff] %v15182_v21  ;;  %15188 = vst [vmem:[#allocation23_spill] sm:$0xff] %v15187_v24  ;;  %v15190_v25 = vsel %vm8608_vm7, 4294967295, %v15189_v25  ;;  %v15193_v26 = vsel %vm8614_vm8, 4294967295, %v15192_v26  ;;  %v15198_v29 = vsel %vm8631_vm10, 4294967295, %v15197_v29  ;;  %vm8637_vm11 = vcmp.eq.s32.totalorder %v8549_v12, %v8558_v15 }
  0x49   : > { %15191 = vst [vmem:[#allocation24_spill] sm:$0xff] %v15190_v25  ;;  %15194 = vst [vmem:[#allocation25_spill] sm:$0xff] %v15193_v26  ;;  %v15201_v30 = vsel %vm8637_vm11, 4294967295, %v15200_v30  ;;  %vm8643_vm12 = vcmp.eq.s32.totalorder %v8546_v11, %v8558_v15  ;;  %vm8659_vm13 = vcmp.eq.s32.totalorder %v8534_v3, %v8558_v15  ;;  %vm8665_vm15 = vcmp.eq.s32.totalorder %v8558_v15, %v246_v16  ;;  %v8707_v43 = vld [vmem:[%s15035_s1 + $0x38] sm:$0xf] }
  0x4a   : > { %15199 = vst [vmem:[#allocation28_spill] sm:$0xff] %v15198_v29  ;;  %15202 = vst [vmem:[#allocation29_spill] sm:$0xff] %v15201_v30  ;;  %v15204_v31 = vsel %vm8643_vm12, 4294967295, %v15203_v31  ;;  %v15209_v34 = vsel %vm8659_vm13, 4294967295, %v15208_v34  ;;  %v15212_v35 = vsel %vm8665_vm15, 4294967295, %v15211_v35  ;;  %vm8670_vm9 = vcmp.eq.s32.totalorder %v8551_v13, %v246_v16 }
  0x4b   : > { %15205 = vst [vmem:[#allocation30_spill] sm:$0xff] %v15204_v31  ;;  %15207 = vst [vmem:[#allocation32_spill] sm:$0xff] %v8655_v33  ;;  %v15215_v36 = vsel %vm8670_vm9, 4294967295, %v15214_v36  ;;  %vm8685_vm14 = vcmp.eq.s32.totalorder %v8549_v12, %v246_v16  ;;  %vm8690_vm5 = vcmp.eq.s32.totalorder %v8546_v11, %v246_v16  ;;  %v15222_v40 = vmov 0  ;;  %v8712_v44 = vld [vmem:[%s15035_s1 + $0x3c] sm:$0xf] }
  0x4c   : > { %15210 = vst [vmem:[#allocation33_spill] sm:$0xff] %v15209_v34  ;;  %15213 = vst [vmem:[#allocation34_spill] sm:$0xff] %v15212_v35  ;;  %v15220_v39 = vsel %vm8685_vm14, 4294967295, %v15219_v39  ;;  %v15223_v40 = vsel %vm8690_vm5, 4294967295, %v15222_v40  ;;  %vm8695_vm2 = vcmp.eq.s32.totalorder %v8534_v3, %v246_v16  ;;  %v15225_v41 = vmov 0 }
  0x4d   : > { %15216 = vst [vmem:[#allocation35_spill] sm:$0xff] %v15215_v36  ;;  %15217 = vst [vmem:[#allocation36_spill] sm:$0xff] %v8677_v37  ;;  %v15226_v41 = vsel %vm8695_vm2, 4294967295, %v15225_v41  ;;  %v8717_v45 = vld [vmem:[%s15036_s2] sm:$0xf] }
  0x4e   : > { %15218 = vst [vmem:[#allocation37_spill] sm:$0xff] %v8682_v38  ;;  %15221 = vst [vmem:[#allocation38_spill] sm:$0xff] %v15220_v39  ;;  %v8722_v46 = vld [vmem:[%s15036_s2 + $0x4] sm:$0xf]  ;;  %v8727_v47 = vld [vmem:[%s15036_s2 + $0x8] sm:$0xf] }
  0x4f   : > { %15224 = vst [vmem:[#allocation39_spill] sm:$0xff] %v15223_v40  ;;  %15227 = vst [vmem:[#allocation40_spill] sm:$0xff] %v15226_v41  ;;  %v8732_v48 = vld [vmem:[%s15036_s2 + $0xc] sm:$0xf]  ;;  %v8737_v49 = vld [vmem:[%s15036_s2 + $0x10] sm:$0xf] }
  0x50   : > { %15228 = vst [vmem:[#allocation41_spill] sm:$0xff] %v8702_v42  ;;  %15229 = vst [vmem:[#allocation42_spill] sm:$0xff] %v8707_v43  ;;  %v8742_v50 = vld [vmem:[%s15036_s2 + $0x14] sm:$0xf]  ;;  %v8747_v51 = vld [vmem:[%s15036_s2 + $0x18] sm:$0xf] }
  0x51   : > { %15230 = vst [vmem:[#allocation43_spill] sm:$0xff] %v8712_v44  ;;  %15231 = vst [vmem:[#allocation44_spill] sm:$0xff] %v8717_v45  ;;  %v8752_v52 = vld [vmem:[%s15036_s2 + $0x1c] sm:$0xf]  ;;  %v8757_v53 = vld [vmem:[%s15036_s2 + $0x20] sm:$0xf] }
  0x52   : > { %15232 = vst [vmem:[#allocation45_spill] sm:$0xff] %v8722_v46  ;;  %15233 = vst [vmem:[#allocation46_spill] sm:$0xff] %v8727_v47  ;;  %v8762_v54 = vld [vmem:[%s15036_s2 + $0x24] sm:$0xf]  ;;  %v8767_v55 = vld [vmem:[%s15036_s2 + $0x28] sm:$0xf] }
  0x53   : > { %15234 = vst [vmem:[#allocation47_spill] sm:$0xff] %v8732_v48  ;;  %15235 = vst [vmem:[#allocation48_spill] sm:$0xff] %v8737_v49  ;;  %v8772_v56 = vld [vmem:[%s15036_s2 + $0x2c] sm:$0xf]  ;;  %v8777_v57 = vld [vmem:[%s15036_s2 + $0x30] sm:$0xf] }
  0x54   : > { %15236 = vst [vmem:[#allocation49_spill] sm:$0xff] %v8742_v50  ;;  %15237 = vst [vmem:[#allocation50_spill] sm:$0xff] %v8747_v51  ;;  %v8782_v58 = vld [vmem:[%s15036_s2 + $0x34] sm:$0xf]  ;;  %v8787_v59 = vld [vmem:[%s15036_s2 + $0x38] sm:$0xf] }
  0x55   : > { %15238 = vst [vmem:[#allocation51_spill] sm:$0xff] %v8752_v52  ;;  %15239 = vst [vmem:[#allocation52_spill] sm:$0xff] %v8757_v53  ;;  %v8792_v60 = vld [vmem:[%s15036_s2 + $0x3c] sm:$0xf]  ;;  %v8797_v61 = vld [vmem:[%s15037_s3] sm:$0xf] }
  0x56   : > { %15240 = vst [vmem:[#allocation53_spill] sm:$0xff] %v8762_v54  ;;  %15241 = vst [vmem:[#allocation54_spill] sm:$0xff] %v8767_v55  ;;  %v8802_v62 = vld [vmem:[%s15037_s3 + $0x4] sm:$0xf]  ;;  %v8807_v63 = vld [vmem:[%s15037_s3 + $0x8] sm:$0xf] }
  0x57   : > { %15242 = vst [vmem:[#allocation55_spill] sm:$0xff] %v8772_v56  ;;  %15243 = vst [vmem:[#allocation56_spill] sm:$0xff] %v8777_v57  ;;  %v8812_v0 = vld [vmem:[%s15037_s3 + $0xc] sm:$0xf] }
  0x58   : > { %15244 = vst [vmem:[#allocation57_spill] sm:$0xff] %v8782_v58  ;;  %15245 = vst [vmem:[#allocation58_spill] sm:$0xff] %v8787_v59 }
  0x59   : > { %15246 = vst [vmem:[#allocation59_spill] sm:$0xff] %v8792_v60  ;;  %15247 = vst [vmem:[#allocation60_spill] sm:$0xff] %v8797_v61 }
  0x5a   : > { %15248 = vst [vmem:[#allocation61_spill] sm:$0xff] %v8802_v62  ;;  %15249 = vst [vmem:[#allocation62_spill] sm:$0xff] %v8807_v63 }
  0x5b   : > { %15250 = vst [vmem:[#allocation63_spill] sm:$0xff] %v8812_v0 }
  0x5c LB: >> { %v15251_v3 = vld [vmem:[#allocation8_spill] sm:$0xff]  ;;  %v15252_v19 = vld [vmem:[#allocation18_spill] sm:$0xff]  ;;  %s5355_s26 = sshll.u32 %s8375_s12, 8  ;;  %s8380_s14 = smov 127   ;;  %s8375_s12 = sphi %s8818_s12, %s294_s12  }
  0x5d   : >> { %s8827_s23 = scalar_lea.vmem %s8528_s22, %s5355_s26 [#allocation2]  ;;  %s8381_s25 = smov 1   ;;  %vm15258_vm0 = vcmp.eq.s32.totalorder %v15251_v3, 0  ;;  %vm15265_vm1 = vnez %v15252_v19 }
  0x5e   : >> { %v8830_v1 = vld [vmem:[%s8827_s23 + $0x20] sm:$0xff]  ;;  %v8833_v2 = vld [vmem:[%s8827_s23 + $0x28] sm:$0xff]  ;;  %v8846_v7 = vld [vmem:[%s8827_s23 + $0x30] sm:$0xff]  ;;  %s8382_s29 = smov 126   ;;  %s8383_s30 = smov 2  }
  0x5f   : >> { %v8836_v4 = vld [vmem:[%s8827_s23] sm:$0xff]  ;;  %v8840_v5 = vpack.i.bf16 %v8833_v2, %v8830_v1  ;;  %v8843_v6 = vld [vmem:[%s8827_s23 + $0x8] sm:$0xff]  ;;  %v8849_v8 = vld [vmem:[%s8827_s23 + $0x38] sm:$0xff]  ;;  %s8384_s5 = smov 124   ;;  %s8385_s6 = smov 4  }
  0x60   : >> { %v5711_v16 = vpack.i.bf16 %v8843_v6, %v8836_v4  ;;  %v8854_v63 = vld [vmem:[%s8827_s23 + $0x10] sm:$0xff]  ;;  %v8857_v0 = vld [vmem:[%s8827_s23 + $0x18] sm:$0xff]  ;;  %v5726_v61 = vpack.i.bf16 %v8849_v8, %v8846_v7  ;;  %v8873_v38 = vld [vmem:[%s8827_s23 + $0x40] sm:$0xff]  ;;  %s8386_s7 = smov 120   ;;  %s8387_s9 = smov 8  }
  0x61   : >> { %5722 = vrot.lane.b32.xlu1 %v8840_v5, %s8380_s14  ;;  %v5716_v62 = vpack.i.bf16 %v8857_v0, %v8854_v63  ;;  %v8867_v43 = vld [vmem:[%s8827_s23 + $0x50] sm:$0xff]  ;;  %v8870_v44 = vld [vmem:[%s8827_s23 + $0x58] sm:$0xff]  ;;  %v8876_v42 = vld [vmem:[%s8827_s23 + $0x48] sm:$0xff]  ;;  %s8388_s20 = smov 16   ;;  %s8389_s8 = smov 112  }
  0x62   : >> { %5712 = vrot.lane.b32.xlu0 %v5711_v16, %s8380_s14  ;;  %v5736_v33 = vpack.i.bf16 %v8870_v44, %v8867_v43  ;;  %v5731_v37 = vpack.i.bf16 %v8876_v42, %v8873_v38  ;;  %v8885_v28 = vld [vmem:[%s8827_s23 + $0x70] sm:$0xff]  ;;  %v8888_v32 = vld [vmem:[%s8827_s23 + $0x78] sm:$0xff]  ;;  %v8891_v23 = vld [vmem:[%s8827_s23 + $0x60] sm:$0xff]  ;;  %s14894_s10 = scalar_lea.vmem %s8816_s11, %s5355_s26 [#allocation5]  ;;  %s294_s12 = sadd.s32 1, %s8375_s12  }
  0x63   : >> { %v8894_v27 = vld [vmem:[%s8827_s23 + $0x68] sm:$0xff]  ;;  %v5746_v18 = vpack.i.bf16 %v8888_v32, %v8885_v28  ;;  %v8903_v14 = vld [vmem:[%s8827_s23 + $0x90] sm:$0xff]  ;;  %v8906_v17 = vld [vmem:[%s8827_s23 + $0x98] sm:$0xff]  ;;  %p291_p6 = scmp.ge.s32.totalorder %s294_s12, 4  }
  0x64   : >> { %v5741_v22 = vpack.i.bf16 %v8894_v27, %v8891_v23  ;;  %v8909_v41 = vld [vmem:[%s8827_s23 + $0x80] sm:$0xff]  ;;  %v8912_v9 = vld [vmem:[%s8827_s23 + $0x88] sm:$0xff]  ;;  %v5756_v10 = vpack.i.bf16 %v8906_v17, %v8903_v14  ;;  %v8921_v60 = vld [vmem:[%s8827_s23 + $0xb0] sm:$0xff]  ;;  %s5396_s26 = sshll.u32 (%p291_p6), %s8439_s19, 14  ;;  %p15848_p12 = scmp.ne.s32.totalorder (%p291_p6), %s15162_s27, 0 }
  0x65   : >> { %5727 = vrot.lane.b32.xlu1 %v5726_v61, %s8380_s14  ;;  %v5751_v59 = vpack.i.bf16 %v8912_v9, %v8909_v41  ;;  %v8924_v40 = vld [vmem:[%s8827_s23 + $0xb8] sm:$0xff]  ;;  %v8927_v57 = vld [vmem:[%s8827_s23 + $0xa0] sm:$0xff]  ;;  %v8930_v58 = vld [vmem:[%s8827_s23 + $0xa8] sm:$0xff]  ;;  %s8390_s22 = smov (%p291_p6), [#allocation5]  }
  0x66   : >> { %5717 = vrot.lane.b32.xlu0 %v5716_v62, %s8380_s14  ;;  %v5766_v55 = vpack.i.bf16 %v8924_v40, %v8921_v60  ;;  %v5761_v56 = vpack.i.bf16 %v8930_v58, %v8927_v57  ;;  %v8939_v53 = vld [vmem:[%s8827_s23 + $0xd0] sm:$0xff]  ;;  %v8942_v54 = vld [vmem:[%s8827_s23 + $0xd8] sm:$0xff]  ;;  %v8945_v51 = vld [vmem:[%s8827_s23 + $0xc0] sm:$0xff]  ;;  %s8305_s12 = sshll.u32 (%p291_p6), %s8390_s22, 4  ;;  %s8306_s12 = int_to_ptr.vmem [resolvable:$false] %s8305_s12 }
  0x67   : >> { %v8948_v52 = vld [vmem:[%s8827_s23 + $0xc8] sm:$0xff]  ;;  %v5776_v49 = vpack.i.bf16 %v8942_v54, %v8939_v53  ;;  %v8957_v47 = vld [vmem:[%s8827_s23 + $0xf0] sm:$0xff]  ;;  %v8960_v48 = vld [vmem:[%s8827_s23 + $0xf8] sm:$0xff]  ;;  %s8307_s19 = scalar_lea.vmem (%p291_p6), %s8306_s12, 32768 }
  0x68   : >> { %v5771_v50 = vpack.i.bf16 %v8948_v52, %v8945_v51  ;;  %15253 = vst [vmem:[#allocation64_spill] sm:$0xff] %v8957_v47  ;;  %15254 = vst [vmem:[#allocation65_spill] sm:$0xff] %v8960_v48  ;;  %v8963_v45 = vld [vmem:[%s8827_s23 + $0xe0] sm:$0xff]  ;;  %v8966_v46 = vld [vmem:[%s8827_s23 + $0xe8] sm:$0xff]  ;;  %v5786_v39 = vpack.i.bf16 %v8960_v48, %v8957_v47 }
  0x69   : >> { %5737 = vrot.lane.b32.xlu1 %v5736_v33, %s8380_s14  ;;  %15255 = vst [vmem:[#allocation66_spill] sm:$0xff] %v8963_v45  ;;  %15256 = vst [vmem:[#allocation67_spill] sm:$0xff] %v8966_v46  ;;  %v5781_v36 = vpack.i.bf16 %v8966_v46, %v8963_v45 }
  0x6a   : >> { %5732 = vrot.lane.b32.xlu0 %v5731_v37, %s8380_s14 }
  0x6d   : >> { %5747 = vrot.lane.b32.xlu1 %v5746_v18, %s8380_s14 }
  0x6e   : >> { %5742 = vrot.lane.b32.xlu0 %v5741_v22, %s8380_s14 }
  0x71   : >> { %5757 = vrot.lane.b32.xlu1 %v5756_v10, %s8380_s14 }
  0x72   : >> { %5752 = vrot.lane.b32.xlu0 %v5751_v59, %s8380_s14 }
  0x75   : >> { %5767 = vrot.lane.b32.xlu1 %v5766_v55, %s8380_s14 }
  0x76   : >> { %5762 = vrot.lane.b32.xlu0 %v5761_v56, %s8380_s14 }
  0x79   : >> { %5777 = vrot.lane.b32.xlu1 %v5776_v49, %s8380_s14 }
  0x7a   : >> { %5772 = vrot.lane.b32.xlu0 %v5771_v50, %s8380_s14 }
  0x7d   : >> { %5787 = vrot.lane.b32.xlu1 %v5786_v39, %s8380_s14 }
  0x7e   : >> { %5782 = vrot.lane.b32.xlu0 %v5781_v36, %s8380_s14 }
  0x81   : >> { %5797 = vrot.lane.b32.xlu1 %v5716_v62, %s8381_s25 }
  0x82   : >> { %5792 = vrot.lane.b32.xlu0 %v5711_v16, %s8381_s25 }
  0x85   : >> { %5807 = vrot.lane.b32.xlu1 %v5726_v61, %s8381_s25 }
  0x86   : >> { %5802 = vrot.lane.b32.xlu0 %v8840_v5, %s8381_s25 }
  0x89   : >> { %5817 = vrot.lane.b32.xlu1 %v5736_v33, %s8381_s25 }
  0x8a   : >> { %5812 = vrot.lane.b32.xlu0 %v5731_v37, %s8381_s25 }
  0x8d   : >> { %5827 = vrot.lane.b32.xlu1 %v5746_v18, %s8381_s25 }
  0x8e   : >> { %5822 = vrot.lane.b32.xlu0 %v5741_v22, %s8381_s25 }
  0x91   : >> { %5837 = vrot.lane.b32.xlu1 %v5756_v10, %s8381_s25 }
  0x92   : >> { %5832 = vrot.lane.b32.xlu0 %v5751_v59, %s8381_s25 }
  0x95   : >> { %5847 = vrot.lane.b32.xlu1 %v5766_v55, %s8381_s25 }
  0x96   : >> { %5842 = vrot.lane.b32.xlu0 %v5761_v56, %s8381_s25 }
  0x99   : >> { %5857 = vrot.lane.b32.xlu1 %v5776_v49, %s8381_s25 }
  0x9a   : >> { %5852 = vrot.lane.b32.xlu0 %v5771_v50, %s8381_s25 }
  0x9d   : >> { %5867 = vrot.lane.b32.xlu1 %v5786_v39, %s8381_s25 }
  0x9e   : >> { %5862 = vrot.lane.b32.xlu0 %v5781_v36, %s8381_s25 }
  0xd3   : >> { %v8993_v33 = vpop.permute.xlu1 %5722 }
  0xd4   : >> { %v8995_v18 = vpop.permute.xlu0 %5712 }
  0xd5   : >> { %v5715_v35 = vunpack.i.h.bf16 %v8995_v18  ;;  %v5714_v15 = vunpack.i.l.bf16 %v8995_v18 }
  0xd7   : >> { %v8997_v22 = vpop.permute.xlu1 %5727 }
  0xd8   : >> { %v5718_v10 = vpop.permute.xlu0 %5717  ;;  %v5730_v34 = vunpack.i.h.bf16 %v8997_v22  ;;  %v5729_v31 = vunpack.i.l.bf16 %v8997_v22 }
  0xd9   : >> { %v5720_v30 = vunpack.i.h.bf16 %v5718_v10  ;;  %v5719_v29 = vunpack.i.l.bf16 %v5718_v10 }
  0xdb   : >> { %v8999_v37 = vpop.permute.xlu1 %5737 }
  0xdc   : >> { %v9001_v55 = vpop.permute.xlu0 %5732 }
  0xdf   : >> { %v9003_v56 = vpop.permute.xlu1 %5747 }
  0xe0   : >> { %v9005_v49 = vpop.permute.xlu0 %5742 }
  0xe3   : >> { %v9007_v50 = vpop.permute.xlu1 %5757 }
  0xe4   : >> { %v9009_v39 = vpop.permute.xlu0 %5752 }
  0xe7   : >> { %v9011_v36 = vpop.permute.xlu1 %5767 }
  0xe8   : >> { %v9013_v59 = vpop.permute.xlu0 %5762 }
  0xeb   : >> { %v9015_v61 = vpop.permute.xlu1 %5777 }
  0xec   : >> { %v9017_v62 = vpop.permute.xlu0 %5772 }
  0xef   : >> { %v9027_v25 = vpop.permute.xlu1 %5787 }
  0xf0   : >> { %v9033_v12 = vpop.permute.xlu0 %5782 }
  0xf1   : >> { %15257 = vst [vmem:[#allocation68_spill] sm:$0xff] %v9033_v12 }
  0xf3   : >> { %v5798_v11 = vpop.permute.xlu1 %5797 }
  0xf4   : >> { %v5800_v21 = vunpack.i.h.bf16 %v5798_v11  ;;  %v5799_v46 = vunpack.i.l.bf16 %v5798_v11  ;;  %v5793_v5 = vpop.permute.xlu0 %5792 }
  0xf5   : >> { %v5795_v45 = vunpack.i.h.bf16 %v5793_v5  ;;  %v5794_v18 = vunpack.i.l.bf16 %v5793_v5 }
  0xf6   : >> { %v461_v10 = vsel %vm15258_vm0, %v5719_v29, %v5799_v46  ;;  %v462_v13 = vsel %vm15258_vm0, %v5720_v30, %v5800_v21 }
  0xf7   : >> { %v493_v26 = vmin.f32 %v8854_v63, %v461_v10  ;;  %v494_v11 = vmin.f32 %v8857_v0, %v462_v13  ;;  %v525_v16 = vmax.f32 %v8854_v63, %v461_v10  ;;  %v526_v24 = vmax.f32 %v8857_v0, %v462_v13  ;;  %v5808_v47 = vpop.permute.xlu1 %5807 }
  0xf8   : >> { %v459_v5 = vsel %vm15258_vm0, %v5714_v15, %v5794_v18  ;;  %v460_v20 = vsel %vm15258_vm0, %v5715_v35, %v5795_v45  ;;  %v5810_v22 = vunpack.i.h.bf16 %v5808_v47  ;;  %v5809_v29 = vunpack.i.l.bf16 %v5808_v47  ;;  %v5803_v46 = vpop.permute.xlu0 %5802 }
  0xf9   : >> { %v491_v21 = vmin.f32 %v8836_v4, %v459_v5  ;;  %v492_v30 = vmin.f32 %v8843_v6, %v460_v20  ;;  %v523_v12 = vmax.f32 %v8836_v4, %v459_v5  ;;  %v524_v63 = vmax.f32 %v8843_v6, %v460_v20 }
  0xfa   : >> { %v466_v13 = vsel %vm15258_vm0, %v5730_v34, %v5810_v22  ;;  %v465_v15 = vsel %vm15258_vm0, %v5729_v31, %v5809_v29  ;;  %v5805_v0 = vunpack.i.h.bf16 %v5803_v46  ;;  %v5804_v18 = vunpack.i.l.bf16 %v5803_v46 }
  0xfb   : >> { %v498_v35 = vmin.f32 %v8849_v8, %v466_v13  ;;  %v530_v45 = vmax.f32 %v8849_v8, %v466_v13  ;;  %v497_v47 = vmin.f32 %v8846_v7, %v465_v15  ;;  %v529_v10 = vmax.f32 %v8846_v7, %v465_v15  ;;  %v5818_v48 = vpop.permute.xlu1 %5817 }
  0xfc   : >> { %v15259_v4 = vunpack.i.h.bf16 %v8993_v33  ;;  %v15260_v34 = vunpack.i.l.bf16 %v8993_v33  ;;  %v5820_v6 = vunpack.i.h.bf16 %v5818_v48  ;;  %v5819_v22 = vunpack.i.l.bf16 %v5818_v48  ;;  %v5813_v5 = vpop.permute.xlu0 %5812 }
  0xfd   : >> { %v15261_v13 = vunpack.i.h.bf16 %v8999_v37  ;;  %v15262_v33 = vunpack.i.l.bf16 %v8999_v37  ;;  %v5815_v48 = vunpack.i.h.bf16 %v5813_v5  ;;  %v15264_v37 = vunpack.i.h.bf16 %v9001_v55 }
  0xfe   : >> { %v464_v20 = vsel %vm15258_vm0, %v15259_v4, %v5805_v0  ;;  %v463_v31 = vsel %vm15258_vm0, %v15260_v34, %v5804_v18  ;;  %v5814_v18 = vunpack.i.l.bf16 %v5813_v5 }
  0xff   : >> { %v496_v8 = vmin.f32 %v8833_v2, %v464_v20  ;;  %v528_v29 = vmax.f32 %v8833_v2, %v464_v20  ;;  %v495_v7 = vmin.f32 %v8830_v1, %v463_v31  ;;  %v527_v46 = vmax.f32 %v8830_v1, %v463_v31  ;;  %v5828_v34 = vpop.permute.xlu1 %5827 }
 0x100   : >> { %v470_v15 = vsel %vm15258_vm0, %v15261_v13, %v5820_v6  ;;  %v469_v0 = vsel %vm15258_vm0, %v15262_v33, %v5819_v22  ;;  %v15263_v31 = vunpack.i.l.bf16 %v9001_v55  ;;  %v9111_v22 = vsel %vm15258_vm0, %v15264_v37, %v5815_v48  ;;  %v5823_v5 = vpop.permute.xlu0 %5822 }
 0x101   : >> { %v502_v4 = vmin.f32 %v8870_v44, %v470_v15  ;;  %v534_v2 = vmax.f32 %v8870_v44, %v470_v15  ;;  %v501_v20 = vmin.f32 %v8867_v43, %v469_v0  ;;  %v533_v1 = vmax.f32 %v8867_v43, %v469_v0 }
 0x102   : >> { %v9105_v6 = vsel %vm15258_vm0, %v15263_v31, %v5814_v18  ;;  %v9115_v44 = vsel %vm15265_vm1, %v493_v26, %v525_v16  ;;  %v9119_v43 = vsel %vm15265_vm1, %v494_v11, %v526_v24  ;;  %v500_v15 = vmin.f32 %v8876_v42, %v9111_v22 }
 0x103   : >> { %v499_v13 = vmin.f32 %v8873_v38, %v9105_v6  ;;  %v531_v55 = vmax.f32 %v8873_v38, %v9105_v6  ;;  %v532_v33 = vmax.f32 %v8876_v42, %v9111_v22  ;;  %v9131_v26 = vpack.i.bf16 %v9119_v43, %v9115_v44  ;;  %v5838_v18 = vpop.permute.xlu1 %5837 }
 0x104   : >> { %v9135_v24 = vsel %vm15265_vm1, %v491_v21, %v523_v12  ;;  %v9139_v16 = vsel %vm15265_vm1, %v492_v30, %v524_v63  ;;  %v5830_v11 = vunpack.i.h.bf16 %v5828_v34  ;;  %v5829_v38 = vunpack.i.l.bf16 %v5828_v34  ;;  %v5833_v31 = vpop.permute.xlu0 %5832 }
 0x105   : >> { %v9143_v0 = vpack.i.bf16 %v9139_v16, %v9135_v24  ;;  %v5825_v48 = vunpack.i.h.bf16 %v5823_v5  ;;  %v5824_v42 = vunpack.i.l.bf16 %v5823_v5  ;;  %5877 = vrot.lane.b32.xlu1 %v9131_v26, %s8382_s29  ;;  %v15266_v12 = vunpack.i.h.bf16 %v9003_v56 }
 0x106   : >> { %v9153_v30 = vsel %vm15265_vm1, %v497_v47, %v529_v10  ;;  %v9157_v63 = vsel %vm15265_vm1, %v498_v35, %v530_v45  ;;  %v9161_v34 = vsel %vm15265_vm1, %v495_v7, %v527_v46  ;;  %v15267_v22 = vunpack.i.l.bf16 %v9003_v56 }
 0x107   : >> { %v474_v21 = vsel %vm15258_vm0, %v15266_v12, %v5830_v11  ;;  %5872 = vrot.lane.b32.xlu0 %v9143_v0, %s8382_s29  ;;  %v15268_v35 = vunpack.i.l.bf16 %v9005_v49  ;;  %v15269_v46 = vunpack.i.h.bf16 %v9005_v49  ;;  %v5840_v49 = vunpack.i.h.bf16 %v5838_v18 }
 0x108   : >> { %v506_v6 = vmin.f32 %v8888_v32, %v474_v21  ;;  %v538_v37 = vmax.f32 %v8888_v32, %v474_v21  ;;  %v473_v47 = vsel %vm15258_vm0, %v15267_v22, %v5829_v38  ;;  %v5839_v12 = vunpack.i.l.bf16 %v5838_v18 }
 0x109   : >> { %v471_v45 = vsel %vm15258_vm0, %v15268_v35, %v5824_v42  ;;  %v505_v10 = vmin.f32 %v8885_v28, %v473_v47  ;;  %v537_v7 = vmax.f32 %v8885_v28, %v473_v47  ;;  %v472_v5 = vsel %vm15258_vm0, %v15269_v46, %v5825_v48 }
 0x10a   : >> { %v503_v32 = vmin.f32 %v8891_v23, %v471_v45  ;;  %v504_v56 = vmin.f32 %v8894_v27, %v472_v5  ;;  %v535_v11 = vmax.f32 %v8891_v23, %v471_v45  ;;  %v536_v38 = vmax.f32 %v8894_v27, %v472_v5 }
 0x10b   : >> { %v9187_v42 = vpack.i.bf16 %v9157_v63, %v9153_v30  ;;  %v9191_v28 = vsel %vm15265_vm1, %v496_v8, %v528_v29  ;;  %v5835_v21 = vunpack.i.h.bf16 %v5833_v31  ;;  %v5834_v23 = vunpack.i.l.bf16 %v5833_v31  ;;  %v5848_v8 = vpop.permute.xlu1 %5847 }
 0x10c   : >> { %v9197_v48 = vpack.i.bf16 %v9191_v28, %v9161_v34  ;;  %v9201_v27 = vsel %vm15265_vm1, %v501_v20, %v533_v1  ;;  %v9205_v22 = vsel %vm15265_vm1, %v502_v4, %v534_v2  ;;  %v15270_v29 = vunpack.i.h.bf16 %v9007_v50  ;;  %v5843_v2 = vpop.permute.xlu0 %5842 }
 0x10d   : >> { %5887 = vrot.lane.b32.xlu1 %v9187_v42, %s8382_s29  ;;  %v15271_v47 = vunpack.i.l.bf16 %v9007_v50  ;;  %v15272_v31 = vunpack.i.h.bf16 %v9009_v39  ;;  %v9223_v4 = vpack.i.bf16 %v9205_v22, %v9201_v27  ;;  %v15273_v5 = vunpack.i.l.bf16 %v9009_v39 }
 0x10e   : >> { %v478_v18 = vsel %vm15258_vm0, %v15270_v29, %v5840_v49  ;;  %5882 = vrot.lane.b32.xlu0 %v9197_v48, %s8382_s29  ;;  %v9241_v29 = vsel %vm15265_vm1, %v499_v13, %v531_v55  ;;  %v5850_v39 = vunpack.i.h.bf16 %v5848_v8  ;;  %v5844_v13 = vunpack.i.l.bf16 %v5843_v2 }
 0x10f   : >> { %v477_v35 = vsel %vm15258_vm0, %v15271_v47, %v5839_v12  ;;  %v9219_v20 = vsel %vm15258_vm0, %v15272_v31, %v5835_v21  ;;  %v510_v1 = vmin.f32 %v8906_v17, %v478_v18  ;;  %v542_v50 = vmax.f32 %v8906_v17, %v478_v18 }
 0x110   : >> { %v509_v45 = vmin.f32 %v8903_v14, %v477_v35  ;;  %v541_v46 = vmax.f32 %v8903_v14, %v477_v35  ;;  %v475_v49 = vsel %vm15258_vm0, %v15273_v5, %v5834_v23  ;;  %v508_v12 = vmin.f32 %v8912_v9, %v9219_v20 }
 0x111   : >> { %v540_v21 = vmax.f32 %v8912_v9, %v9219_v20  ;;  %v507_v17 = vmin.f32 %v8909_v41, %v475_v49  ;;  %v539_v18 = vmax.f32 %v8909_v41, %v475_v49  ;;  %5897 = vrot.lane.b32.xlu1 %v9223_v4, %s8382_s29  ;;  %v9249_v14 = vsel %vm15265_vm1, %v500_v15, %v532_v33 }
 0x112   : >> { %v9253_v23 = vpack.i.bf16 %v9249_v14, %v9241_v29  ;;  %v5849_v9 = vunpack.i.l.bf16 %v5848_v8  ;;  %v5845_v47 = vunpack.i.h.bf16 %v5843_v2  ;;  %v15274_v55 = vunpack.i.h.bf16 %v9011_v36  ;;  %v5858_v8 = vpop.permute.xlu1 %5857 }
 0x113   : >> { %v9261_v35 = vsel %vm15265_vm1, %v505_v10, %v537_v7  ;;  %v9265_v15 = vsel %vm15265_vm1, %v506_v6, %v538_v37  ;;  %v9269_v33 = vsel %vm15265_vm1, %v503_v32, %v535_v11  ;;  %v15275_v2 = vunpack.i.l.bf16 %v9011_v36  ;;  %v5853_v7 = vpop.permute.xlu0 %5852 }
 0x114   : >> { %v482_v41 = vsel %vm15258_vm0, %v15274_v55, %v5850_v39  ;;  %5892 = vrot.lane.b32.xlu0 %v9253_v23, %s8382_s29  ;;  %v15276_v6 = vunpack.i.l.bf16 %v9013_v59  ;;  %v15277_v5 = vunpack.i.h.bf16 %v9013_v59  ;;  %v5860_v59 = vunpack.i.h.bf16 %v5858_v8 }
 0x115   : >> { %v514_v31 = vmin.f32 %v8924_v40, %v482_v41  ;;  %v546_v20 = vmax.f32 %v8924_v40, %v482_v41  ;;  %v481_v10 = vsel %vm15258_vm0, %v15275_v2, %v5849_v9  ;;  %v5859_v55 = vunpack.i.l.bf16 %v5858_v8 }
 0x116   : >> { %v479_v37 = vsel %vm15258_vm0, %v15276_v6, %v5844_v13  ;;  %v513_v32 = vmin.f32 %v8921_v60, %v481_v10  ;;  %v545_v11 = vmax.f32 %v8921_v60, %v481_v10  ;;  %v480_v40 = vsel %vm15258_vm0, %v15277_v5, %v5845_v47 }
 0x117   : >> { %v511_v36 = vmin.f32 %v8927_v57, %v479_v37  ;;  %v512_v49 = vmin.f32 %v8930_v58, %v480_v40  ;;  %v543_v39 = vmax.f32 %v8927_v57, %v479_v37  ;;  %v544_v9 = vmax.f32 %v8930_v58, %v480_v40  ;;  %v5863_v5 = vpop.permute.xlu0 %5862 }
 0x118   : >> { %v9295_v13 = vpack.i.bf16 %v9265_v15, %v9261_v35  ;;  %v9299_v60 = vsel %vm15265_vm1, %v504_v56, %v536_v38  ;;  %v5855_v41 = vunpack.i.h.bf16 %v5853_v7  ;;  %v5854_v57 = vunpack.i.l.bf16 %v5853_v7 }
 0x119   : >> { %v9305_v47 = vpack.i.bf16 %v9299_v60, %v9269_v33  ;;  %v9309_v58 = vsel %vm15265_vm1, %v509_v45, %v541_v46  ;;  %v9313_v2 = vsel %vm15265_vm1, %v510_v1, %v542_v50  ;;  %v15278_v56 = vunpack.i.h.bf16 %v9015_v61  ;;  %v5868_v1 = vpop.permute.xlu1 %5867 }
 0x11a   : >> { %5907 = vrot.lane.b32.xlu1 %v9295_v13, %s8382_s29  ;;  %v15279_v8 = vunpack.i.l.bf16 %v9015_v61  ;;  %v15280_v6 = vunpack.i.h.bf16 %v9017_v62  ;;  %v9329_v46 = vpack.i.bf16 %v9313_v2, %v9309_v58  ;;  %v15281_v40 = vunpack.i.l.bf16 %v9017_v62 }
 0x11b   : >> { %v486_v38 = vsel %vm15258_vm0, %v15278_v56, %v5860_v59  ;;  %5902 = vrot.lane.b32.xlu0 %v9305_v47, %s8382_s29  ;;  %v9345_v56 = vsel %vm15265_vm1, %v507_v17, %v539_v18  ;;  %v5870_v62 = vunpack.i.h.bf16 %v5868_v1  ;;  %v15282_v17 = vunpack.i.h.bf16 %v9027_v25 }
 0x11c   : >> { %v485_v10 = vsel %vm15258_vm0, %v15279_v8, %v5859_v55  ;;  %v484_v45 = vsel %vm15258_vm0, %v15280_v6, %v5855_v41  ;;  %v518_v50 = vmin.f32 %v8942_v54, %v486_v38  ;;  %v550_v61 = vmax.f32 %v8942_v54, %v486_v38  ;;  %v15283_v6 = vld [vmem:[#allocation65_spill] sm:$0xff] }
 0x11d   : >> { %v517_v37 = vmin.f32 %v8939_v53, %v485_v10  ;;  %v549_v7 = vmax.f32 %v8939_v53, %v485_v10  ;;  %v483_v59 = vsel %vm15258_vm0, %v15281_v40, %v5854_v57  ;;  %v516_v55 = vmin.f32 %v8948_v52, %v484_v45 }
 0x11e   : >> { %v548_v41 = vmax.f32 %v8948_v52, %v484_v45  ;;  %v515_v54 = vmin.f32 %v8945_v51, %v483_v59  ;;  %v547_v38 = vmax.f32 %v8945_v51, %v483_v59  ;;  %5917 = vrot.lane.b32.xlu1 %v9329_v46, %s8382_s29  ;;  %v9353_v53 = vsel %vm15265_vm1, %v508_v12, %v540_v21 }
 0x11f   : >> { %v5911_v57 = vpack.i.bf16 %v9353_v53, %v9345_v56  ;;  %v5869_v52 = vunpack.i.l.bf16 %v5868_v1  ;;  %v5865_v8 = vunpack.i.h.bf16 %v5863_v5  ;;  %v5864_v10 = vunpack.i.l.bf16 %v5863_v5 }
 0x120   : >> { %v490_v18 = vsel %vm15258_vm0, %v15282_v17, %v5870_v62  ;;  %v9363_v51 = vsel %vm15265_vm1, %v513_v32, %v545_v11  ;;  %v9367_v12 = vsel %vm15265_vm1, %v514_v31, %v546_v20  ;;  %v9371_v21 = vsel %vm15265_vm1, %v511_v36, %v543_v39  ;;  %v15285_v11 = vld [vmem:[#allocation68_spill] sm:$0xff]  ;;  %v15289_v17 = vld [vmem:[#allocation66_spill] sm:$0xff] }
 0x121   : >> { %5912 = vrot.lane.b32.xlu0 %v5911_v57, %s8382_s29  ;;  %v522_v45 = vmin.f32 %v15283_v6, %v490_v18  ;;  %v554_v1 = vmax.f32 %v15283_v6, %v490_v18  ;;  %v15284_v5 = vunpack.i.l.bf16 %v9027_v25  ;;  %v15286_v40 = vunpack.i.l.bf16 %v15285_v11  ;;  %v15287_v20 = vld [vmem:[#allocation64_spill] sm:$0xff]  ;;  %v15290_v25 = vld [vmem:[#allocation67_spill] sm:$0xff] }
 0x122   : >> { %v15288_v39 = vunpack.i.h.bf16 %v15285_v11  ;;  %v9410_v11 = vsel %vm15265_vm1, %v515_v54, %v547_v38 }
 0x123   : >> { %v489_v32 = vsel %vm15258_vm0, %v15284_v5, %v5869_v52  ;;  %v487_v31 = vsel %vm15258_vm0, %v15286_v40, %v5864_v10  ;;  %v5926_v10 = vpack.i.bf16 %v9367_v12, %v9363_v51  ;;  %v9398_v40 = vsel %vm15265_vm1, %v512_v49, %v544_v9 }
 0x124   : >> { %v521_v59 = vmin.f32 %v15287_v20, %v489_v32  ;;  %v553_v36 = vmax.f32 %v15287_v20, %v489_v32  ;;  %v488_v62 = vsel %vm15258_vm0, %v15288_v39, %v5865_v8  ;;  %v519_v18 = vmin.f32 %v15289_v17, %v487_v31 }
 0x125   : >> { %v520_v6 = vmin.f32 %v15290_v25, %v488_v62  ;;  %v551_v52 = vmax.f32 %v15289_v17, %v487_v31  ;;  %v552_v5 = vmax.f32 %v15290_v25, %v488_v62  ;;  %v9402_v32 = vsel %vm15265_vm1, %v517_v37, %v549_v7  ;;  %5927 = vrot.lane.b32.xlu1 %v5926_v10, %s8382_s29 }
 0x126   : >> { %v9406_v8 = vsel %vm15265_vm1, %v518_v50, %v550_v61  ;;  %v5921_v31 = vpack.i.bf16 %v9398_v40, %v9371_v21  ;;  %v9419_v9 = vsel %vm15265_vm1, %v516_v55, %v548_v41  ;;  %v9423_v50 = vsel %vm15265_vm1, %v521_v59, %v553_v36 }
 0x127   : >> { %v5936_v49 = vpack.i.bf16 %v9406_v8, %v9402_v32  ;;  %15291 = vst [vmem:[#allocation65_spill] sm:$0xff] %v9423_v50  ;;  %v9427_v61 = vsel %vm15265_vm1, %v522_v45, %v554_v1  ;;  %v5931_v37 = vpack.i.bf16 %v9419_v9, %v9410_v11  ;;  %v9434_v7 = vsel %vm15265_vm1, %v519_v18, %v551_v52 }
 0x128   : >> { %5922 = vrot.lane.b32.xlu0 %v5921_v31, %s8382_s29  ;;  %15292 = vst [vmem:[#allocation68_spill] sm:$0xff] %v9434_v7  ;;  %v9438_v55 = vsel %vm15265_vm1, %v520_v6, %v552_v5  ;;  %v5946_v41 = vpack.i.bf16 %v9427_v61, %v9423_v50 }
 0x129   : >> { %15293 = vst [vmem:[#allocation64_spill] sm:$0xff] %v9438_v55  ;;  %5937 = vrot.lane.b32.xlu1 %v5936_v49, %s8382_s29  ;;  %v5941_v54 = vpack.i.bf16 %v9438_v55, %v9434_v7  ;;  %v15295_v55 = vld [vmem:[#allocation11_spill] sm:$0xff] }
 0x12a   : >> { %vm15296_vm0 = vcmp.eq.s32.totalorder %v15295_v55, 0 }
 0x12b   : >> { %vm15297_vm1 = vmmov %vm15296_vm0 }
 0x12c   : >> { %5932 = vrot.lane.b32.xlu0 %v5931_v37, %s8382_s29  ;;  %vm15298_vm2 = vmmov %vm15296_vm0 }
 0x12d   : >> { %5947 = vrot.lane.b32.xlu1 %v5946_v41, %s8382_s29  ;;  %vm15299_vm5 = vmmov %vm15296_vm0 }
 0x130   : >> { %5942 = vrot.lane.b32.xlu0 %v5941_v54, %s8382_s29 }
 0x131   : >> { %5957 = vrot.lane.b32.xlu1 %v9131_v26, %s8383_s30 }
 0x134   : >> { %5952 = vrot.lane.b32.xlu0 %v9143_v0, %s8383_s30 }
 0x135   : >> { %5967 = vrot.lane.b32.xlu1 %v9187_v42, %s8383_s30 }
 0x138   : >> { %5962 = vrot.lane.b32.xlu0 %v9197_v48, %s8383_s30 }
 0x139   : >> { %5977 = vrot.lane.b32.xlu1 %v9223_v4, %s8383_s30 }
 0x13c   : >> { %5972 = vrot.lane.b32.xlu0 %v9253_v23, %s8383_s30 }
 0x13d   : >> { %5987 = vrot.lane.b32.xlu1 %v9295_v13, %s8383_s30 }
 0x140   : >> { %5982 = vrot.lane.b32.xlu0 %v9305_v47, %s8383_s30 }
 0x141   : >> { %5997 = vrot.lane.b32.xlu1 %v9329_v46, %s8383_s30 }
 0x144   : >> { %5992 = vrot.lane.b32.xlu0 %v5911_v57, %s8383_s30 }
 0x145   : >> { %6007 = vrot.lane.b32.xlu1 %v5926_v10, %s8383_s30 }
 0x148   : >> { %6002 = vrot.lane.b32.xlu0 %v5921_v31, %s8383_s30 }
 0x149   : >> { %6017 = vrot.lane.b32.xlu1 %v5936_v49, %s8383_s30 }
 0x14c   : >> { %6012 = vrot.lane.b32.xlu0 %v5931_v37, %s8383_s30 }
 0x14d   : >> { %6027 = vrot.lane.b32.xlu1 %v5946_v41, %s8383_s30 }
 0x150   : >> { %6022 = vrot.lane.b32.xlu0 %v5941_v54, %s8383_s30 }
 0x177   : >> { %v5878_v26 = vpop.permute.xlu1 %5877 }
 0x178   : >> { %v5880_v20 = vunpack.i.h.bf16 %v5878_v26  ;;  %v5879_v59 = vunpack.i.l.bf16 %v5878_v26 }
 0x179   : >> { %v9473_v0 = vpop.permute.xlu0 %5872 }
 0x17a   : >> { %v5875_v39 = vunpack.i.h.bf16 %v9473_v0  ;;  %v5874_v62 = vunpack.i.l.bf16 %v9473_v0 }
 0x17f   : >> { %v9475_v42 = vpop.permute.xlu1 %5887 }
 0x180   : >> { %v9477_v48 = vpop.permute.xlu0 %5882  ;;  %v5890_v17 = vunpack.i.h.bf16 %v9475_v42  ;;  %v5889_v18 = vunpack.i.l.bf16 %v9475_v42 }
 0x181   : >> { %v5885_v25 = vunpack.i.h.bf16 %v9477_v48  ;;  %v5884_v6 = vunpack.i.l.bf16 %v9477_v48 }
 0x183   : >> { %v9479_v4 = vpop.permute.xlu1 %5897 }
 0x186   : >> { %v9481_v23 = vpop.permute.xlu0 %5892 }
 0x18c   : >> { %v9483_v13 = vpop.permute.xlu1 %5907 }
 0x18d   : >> { %v9485_v47 = vpop.permute.xlu0 %5902 }
 0x190   : >> { %v9487_v46 = vpop.permute.xlu1 %5917 }
 0x193   : >> { %v9489_v38 = vpop.permute.xlu0 %5912 }
 0x197   : >> { %v9491_v57 = vpop.permute.xlu1 %5927 }
 0x19a   : >> { %v9493_v45 = vpop.permute.xlu0 %5922 }
 0x19b   : >> { %v9495_v1 = vpop.permute.xlu1 %5937 }
 0x19e   : >> { %v9497_v36 = vpop.permute.xlu0 %5932 }
 0x19f   : >> { %v9507_v10 = vpop.permute.xlu1 %5947 }
 0x1a2   : >> { %v9517_v48 = vpop.permute.xlu0 %5942 }
 0x1a3   : >> { %15294 = vst [vmem:[#allocation66_spill] sm:$0xff] %v9517_v48  ;;  %v5958_v5 = vpop.permute.xlu1 %5957 }
 0x1a4   : >> { %v5960_v52 = vunpack.i.h.bf16 %v5958_v5  ;;  %v5959_v3 = vunpack.i.l.bf16 %v5958_v5 }
 0x1a6   : >> { %v5953_v54 = vpop.permute.xlu0 %5952  ;;  %v721_v26 = vsel %vm15296_vm0, %v5879_v59, %v5959_v3  ;;  %v722_v0 = vsel %vm15297_vm1, %v5880_v20, %v5960_v52  ;;  %vm15300_vm1 = vmmov %vm15296_vm0 }
 0x1a7   : >> { %v5955_v42 = vunpack.i.h.bf16 %v5953_v54  ;;  %v5954_v7 = vunpack.i.l.bf16 %v5953_v54  ;;  %v753_v19 = vmin.f32 %v9115_v44, %v721_v26  ;;  %v754_v5 = vmin.f32 %v9119_v43, %v722_v0  ;;  %v5968_v37 = vpop.permute.xlu1 %5967 }
 0x1a8   : >> { %v785_v31 = vmax.f32 %v9115_v44, %v721_v26  ;;  %v786_v49 = vmax.f32 %v9119_v43, %v722_v0  ;;  %v5970_v59 = vunpack.i.h.bf16 %v5968_v37  ;;  %v5969_v50 = vunpack.i.l.bf16 %v5968_v37 }
 0x1a9   : >> { %v719_v41 = vsel %vm15298_vm2, %v5874_v62, %v5954_v7  ;;  %v720_v3 = vsel %vm15299_vm5, %v5875_v39, %v5955_v42  ;;  %vm15301_vm2 = vmmov %vm15296_vm0 }
 0x1aa   : >> { %v751_v20 = vmin.f32 %v9135_v24, %v719_v41  ;;  %v752_v52 = vmin.f32 %v9139_v16, %v720_v3  ;;  %v783_v54 = vmax.f32 %v9135_v24, %v719_v41  ;;  %v784_v48 = vmax.f32 %v9139_v16, %v720_v3  ;;  %v5963_v44 = vpop.permute.xlu0 %5962  ;;  %vm15302_vm5 = vmmov %vm15296_vm0 }
 0x1ab   : >> { %v725_v43 = vsel %vm15296_vm0, %v5889_v18, %v5969_v50  ;;  %v726_v7 = vsel %vm15300_vm1, %v5890_v17, %v5970_v59  ;;  %v5965_v62 = vunpack.i.h.bf16 %v5963_v44  ;;  %v5964_v26 = vunpack.i.l.bf16 %v5963_v44  ;;  %v5978_v24 = vpop.permute.xlu1 %5977  ;;  %vm15305_vm1 = vmmov %vm15296_vm0 }
 0x1ac   : >> { %v757_v39 = vmin.f32 %v9153_v30, %v725_v43  ;;  %v758_v37 = vmin.f32 %v9157_v63, %v726_v7  ;;  %v789_v0 = vmax.f32 %v9153_v30, %v725_v43  ;;  %v790_v42 = vmax.f32 %v9157_v63, %v726_v7 }
 0x1ad   : >> { %v723_v16 = vsel %vm15301_vm2, %v5884_v6, %v5964_v26  ;;  %v724_v50 = vsel %vm15302_vm5, %v5885_v25, %v5965_v62  ;;  %v5980_v18 = vunpack.i.h.bf16 %v5978_v24  ;;  %v5979_v41 = vunpack.i.l.bf16 %v5978_v24  ;;  %vm15307_vm2 = vmmov %vm15296_vm0 }
 0x1ae   : >> { %v755_v17 = vmin.f32 %v9161_v34, %v723_v16  ;;  %v756_v3 = vmin.f32 %v9191_v28, %v724_v50  ;;  %v787_v59 = vmax.f32 %v9161_v34, %v723_v16  ;;  %v788_v44 = vmax.f32 %v9191_v28, %v724_v50  ;;  %v5973_v30 = vpop.permute.xlu0 %5972  ;;  %vm15309_vm5 = vmmov %vm15296_vm0 }
 0x1af   : >> { %v15303_v63 = vunpack.i.l.bf16 %v9479_v4  ;;  %v15304_v6 = vunpack.i.h.bf16 %v9479_v4  ;;  %v5975_v7 = vunpack.i.h.bf16 %v5973_v30  ;;  %v5974_v62 = vunpack.i.l.bf16 %v5973_v30  ;;  %v5988_v16 = vpop.permute.xlu1 %5987  ;;  %v15310_v30 = vld [vmem:[#allocation19_spill] sm:$0xff] }
 0x1b0   : >> { %v15306_v50 = vunpack.i.l.bf16 %v9481_v23  ;;  %v15308_v4 = vunpack.i.h.bf16 %v9481_v23  ;;  %vm15311_vm3 = vnez %v15310_v30 }
 0x1b1   : >> { %v729_v43 = vsel %vm15296_vm0, %v15303_v63, %v5979_v41  ;;  %v730_v25 = vsel %vm15305_vm1, %v15304_v6, %v5980_v18  ;;  %v9589_v63 = vsel %vm15311_vm3, %v753_v19, %v785_v31  ;;  %v9607_v19 = vsel %vm15311_vm3, %v751_v20, %v783_v54  ;;  %vm15314_vm1 = vmmov %vm15296_vm0 }
 0x1b2   : >> { %v761_v26 = vmin.f32 %v9201_v27, %v729_v43  ;;  %v762_v24 = vmin.f32 %v9205_v22, %v730_v25  ;;  %v793_v34 = vmax.f32 %v9201_v27, %v729_v43  ;;  %v794_v28 = vmax.f32 %v9205_v22, %v730_v25  ;;  %v5983_v25 = vpop.permute.xlu0 %5982 }
 0x1b3   : >> { %v727_v41 = vsel %vm15307_vm2, %v15306_v50, %v5974_v62  ;;  %v9585_v18 = vsel %vm15309_vm5, %v15308_v4, %v5975_v7  ;;  %v9593_v27 = vsel %vm15311_vm3, %v754_v5, %v786_v49  ;;  %v9611_v31 = vsel %vm15311_vm3, %v752_v52, %v784_v48  ;;  %v5998_v50 = vpop.permute.xlu1 %5997  ;;  %vm15316_vm2 = vmmov %vm15296_vm0 }
 0x1b4   : >> { %v759_v22 = vmin.f32 %v9241_v29, %v727_v41  ;;  %v760_v43 = vmin.f32 %v9249_v14, %v9585_v18  ;;  %v791_v6 = vmax.f32 %v9241_v29, %v727_v41  ;;  %v792_v23 = vmax.f32 %v9249_v14, %v9585_v18  ;;  %vm15318_vm5 = vmmov %vm15296_vm0 }
 0x1b5   : >> { %v9603_v7 = vpack.i.bf16 %v9593_v27, %v9589_v63  ;;  %v5990_v49 = vunpack.i.h.bf16 %v5988_v16  ;;  %v9615_v29 = vpack.i.bf16 %v9611_v31, %v9607_v19  ;;  %v5989_v5 = vunpack.i.l.bf16 %v5988_v16 }
 0x1b6   : >> { %v5985_v14 = vunpack.i.h.bf16 %v5983_v25  ;;  %v5984_v62 = vunpack.i.l.bf16 %v5983_v25  ;;  %v15312_v41 = vunpack.i.h.bf16 %v9483_v13  ;;  %v9625_v48 = vsel %vm15311_vm3, %v757_v39, %v789_v0 }
 0x1b7   : >> { %6037 = vrot.lane.b32.xlu1 %v9603_v7, %s8380_s14  ;;  %v9629_v52 = vsel %vm15311_vm3, %v758_v37, %v790_v42  ;;  %v9633_v54 = vsel %vm15311_vm3, %v755_v17, %v787_v59  ;;  %6032 = vrot.lane.b32.xlu0 %v9615_v29, %s8380_s14  ;;  %v15313_v16 = vunpack.i.l.bf16 %v9483_v13  ;;  %v15315_v0 = vunpack.i.l.bf16 %v9485_v47  ;;  %v5993_v42 = vpop.permute.xlu0 %5992 }
 0x1b8   : >> { %v734_v20 = vsel %vm15296_vm0, %v15312_v41, %v5990_v49  ;;  %v15317_v25 = vunpack.i.h.bf16 %v9485_v47  ;;  %v6000_v47 = vunpack.i.h.bf16 %v5998_v50 }
 0x1b9   : >> { %v733_v4 = vsel %vm15314_vm1, %v15313_v16, %v5989_v5  ;;  %v766_v18 = vmin.f32 %v9265_v15, %v734_v20  ;;  %v798_v39 = vmax.f32 %v9265_v15, %v734_v20  ;;  %v731_v37 = vsel %vm15316_vm2, %v15315_v0, %v5984_v62  ;;  %vm15321_vm1 = vmmov %vm15296_vm0 }
 0x1ba   : >> { %v765_v17 = vmin.f32 %v9261_v35, %v733_v4  ;;  %v797_v59 = vmax.f32 %v9261_v35, %v733_v4  ;;  %v732_v13 = vsel %vm15318_vm5, %v15317_v25, %v5985_v14  ;;  %v763_v49 = vmin.f32 %v9269_v33, %v731_v37  ;;  %vm15323_vm2 = vmmov %vm15296_vm0 }
 0x1bb   : >> { %v764_v5 = vmin.f32 %v9299_v60, %v732_v13  ;;  %v795_v15 = vmax.f32 %v9269_v33, %v731_v37  ;;  %v796_v41 = vmax.f32 %v9299_v60, %v732_v13  ;;  %v9659_v62 = vpack.i.bf16 %v9629_v52, %v9625_v48  ;;  %vm15325_vm5 = vmmov %vm15296_vm0 }
 0x1bc   : >> { %v9663_v35 = vsel %vm15311_vm3, %v756_v3, %v788_v44  ;;  %v5999_v20 = vunpack.i.l.bf16 %v5998_v50  ;;  %v5995_v16 = vunpack.i.h.bf16 %v5993_v42  ;;  %v5994_v33 = vunpack.i.l.bf16 %v5993_v42  ;;  %v6008_v3 = vpop.permute.xlu1 %6007 }
 0x1bd   : >> { %6047 = vrot.lane.b32.xlu1 %v9659_v62, %s8380_s14  ;;  %v9669_v14 = vpack.i.bf16 %v9663_v35, %v9633_v54  ;;  %v9673_v60 = vsel %vm15311_vm3, %v761_v26, %v793_v34  ;;  %v9677_v4 = vsel %vm15311_vm3, %v762_v24, %v794_v28  ;;  %v15319_v44 = vunpack.i.l.bf16 %v9487_v46  ;;  %v6003_v34 = vpop.permute.xlu0 %6002 }
 0x1be   : >> { %v15320_v0 = vunpack.i.h.bf16 %v9487_v46  ;;  %v15322_v42 = vunpack.i.h.bf16 %v9489_v38  ;;  %v9695_v24 = vpack.i.bf16 %v9677_v4, %v9673_v60 }
 0x1bf   : >> { %v737_v50 = vsel %vm15296_vm0, %v15319_v44, %v5999_v20  ;;  %6042 = vrot.lane.b32.xlu0 %v9669_v14, %s8380_s14 }
 0x1c0   : >> { %v738_v37 = vsel %vm15321_vm1, %v15320_v0, %v6000_v47  ;;  %v9691_v26 = vsel %vm15323_vm2, %v15322_v42, %v5995_v16  ;;  %v769_v28 = vmin.f32 %v9309_v58, %v737_v50  ;;  %v801_v25 = vmax.f32 %v9309_v58, %v737_v50  ;;  %vm15328_vm1 = vmmov %vm15296_vm0 }
 0x1c1   : >> { %v770_v46 = vmin.f32 %v9313_v2, %v738_v37  ;;  %v802_v13 = vmax.f32 %v9313_v2, %v738_v37  ;;  %v15324_v47 = vunpack.i.l.bf16 %v9489_v38  ;;  %v768_v16 = vmin.f32 %v9353_v53, %v9691_v26  ;;  %6057 = vrot.lane.b32.xlu1 %v9695_v24, %s8380_s14  ;;  %vm15330_vm2 = vmmov %vm15296_vm0 }
 0x1c2   : >> { %v800_v44 = vmax.f32 %v9353_v53, %v9691_v26  ;;  %v9713_v0 = vsel %vm15311_vm3, %v759_v22, %v791_v6  ;;  %v9721_v2 = vsel %vm15311_vm3, %v760_v43, %v792_v23  ;;  %v6010_v38 = vunpack.i.h.bf16 %v6008_v3 }
 0x1c3   : >> { %v735_v20 = vsel %vm15325_vm5, %v15324_v47, %v5994_v33  ;;  %v9725_v33 = vpack.i.bf16 %v9721_v2, %v9713_v0  ;;  %v6009_v53 = vunpack.i.l.bf16 %v6008_v3  ;;  %v6005_v50 = vunpack.i.h.bf16 %v6003_v34  ;;  %v6018_v3 = vpop.permute.xlu1 %6017  ;;  %vm15332_vm5 = vmmov %vm15296_vm0 }
 0x1c4   : >> { %v767_v42 = vmin.f32 %v9345_v56, %v735_v20  ;;  %v799_v58 = vmax.f32 %v9345_v56, %v735_v20  ;;  %v6004_v22 = vunpack.i.l.bf16 %v6003_v34  ;;  %v15326_v6 = vunpack.i.h.bf16 %v9491_v57 }
 0x1c5   : >> { %v9733_v37 = vsel %vm15311_vm3, %v765_v17, %v797_v59  ;;  %v9737_v43 = vsel %vm15311_vm3, %v766_v18, %v798_v39  ;;  %v9741_v23 = vsel %vm15311_vm3, %v763_v49, %v795_v15  ;;  %6052 = vrot.lane.b32.xlu0 %v9725_v33, %s8380_s14  ;;  %v15327_v26 = vunpack.i.l.bf16 %v9491_v57  ;;  %v6013_v49 = vpop.permute.xlu0 %6012 }
 0x1c6   : >> { %v742_v56 = vsel %vm15296_vm0, %v15326_v6, %v6010_v38  ;;  %v15329_v18 = vunpack.i.l.bf16 %v9493_v45  ;;  %v15331_v20 = vunpack.i.h.bf16 %v9493_v45  ;;  %v6020_v45 = vunpack.i.h.bf16 %v6018_v3 }
 0x1c7   : >> { %v741_v34 = vsel %vm15328_vm1, %v15327_v26, %v6009_v53  ;;  %v774_v17 = vmin.f32 %v9367_v12, %v742_v56  ;;  %v806_v59 = vmax.f32 %v9367_v12, %v742_v56  ;;  %v6019_v56 = vunpack.i.l.bf16 %v6018_v3  ;;  %vm15335_vm1 = vmmov %vm15296_vm0 }
 0x1c8   : >> { %v739_v39 = vsel %vm15330_vm2, %v15329_v18, %v6004_v22  ;;  %v773_v15 = vmin.f32 %v9363_v51, %v741_v34  ;;  %v805_v47 = vmax.f32 %v9363_v51, %v741_v34  ;;  %v740_v57 = vsel %vm15332_vm5, %v15331_v20, %v6005_v50  ;;  %vm15337_vm2 = vmmov %vm15296_vm0 }
 0x1c9   : >> { %v771_v38 = vmin.f32 %v9371_v21, %v739_v39  ;;  %v772_v53 = vmin.f32 %v9398_v40, %v740_v57  ;;  %v803_v12 = vmax.f32 %v9371_v21, %v739_v39  ;;  %v804_v6 = vmax.f32 %v9398_v40, %v740_v57  ;;  %v6023_v57 = vpop.permute.xlu0 %6022  ;;  %vm15339_vm5 = vmmov %vm15296_vm0 }
 0x1ca   : >> { %v9767_v22 = vpack.i.bf16 %v9737_v43, %v9733_v37  ;;  %v9771_v51 = vsel %vm15311_vm3, %v764_v5, %v796_v41  ;;  %v6015_v26 = vunpack.i.h.bf16 %v6013_v49  ;;  %v6014_v21 = vunpack.i.l.bf16 %v6013_v49 }
 0x1cb   : >> { %v9777_v50 = vpack.i.bf16 %v9771_v51, %v9741_v23  ;;  %v9781_v40 = vsel %vm15311_vm3, %v769_v28, %v801_v25  ;;  %v9785_v34 = vsel %vm15311_vm3, %v770_v46, %v802_v13  ;;  %v15333_v5 = vunpack.i.l.bf16 %v9495_v1  ;;  %v6028_v46 = vpop.permute.xlu1 %6027 }
 0x1cc   : >> { %6067 = vrot.lane.b32.xlu1 %v9767_v22, %s8380_s14  ;;  %v15334_v3 = vunpack.i.h.bf16 %v9495_v1  ;;  %v15336_v39 = vunpack.i.h.bf16 %v9497_v36  ;;  %v9801_v25 = vpack.i.bf16 %v9785_v34, %v9781_v40 }
 0x1cd   : >> { %v745_v41 = vsel %vm15296_vm0, %v15333_v5, %v6019_v56  ;;  %6062 = vrot.lane.b32.xlu0 %v9777_v50, %s8380_s14 }
 0x1ce   : >> { %v746_v18 = vsel %vm15335_vm1, %v15334_v3, %v6020_v45  ;;  %v744_v28 = vsel %vm15337_vm2, %v15336_v39, %v6015_v26  ;;  %v777_v13 = vmin.f32 %v9402_v32, %v745_v41  ;;  %v809_v49 = vmax.f32 %v9402_v32, %v745_v41  ;;  %vm15342_vm1 = vmmov %vm15296_vm0 }
 0x1cf   : >> { %v778_v1 = vmin.f32 %v9406_v8, %v746_v18  ;;  %v810_v20 = vmax.f32 %v9406_v8, %v746_v18  ;;  %v15338_v45 = vunpack.i.l.bf16 %v9497_v36  ;;  %v776_v26 = vmin.f32 %v9419_v9, %v744_v28  ;;  %vm15345_vm2 = vmmov %vm15296_vm0 }
 0x1d0   : >> { %v808_v5 = vmax.f32 %v9419_v9, %v744_v28  ;;  %v9817_v3 = vsel %vm15311_vm3, %v767_v42, %v799_v58  ;;  %6077 = vrot.lane.b32.xlu1 %v9801_v25, %s8380_s14  ;;  %v9825_v8 = vsel %vm15311_vm3, %v768_v16, %v800_v44  ;;  %v6030_v36 = vunpack.i.h.bf16 %v6028_v46 }
 0x1d1   : >> { %v743_v56 = vsel %vm15339_vm5, %v15338_v45, %v6014_v21  ;;  %v6071_v21 = vpack.i.bf16 %v9825_v8, %v9817_v3  ;;  %v6029_v9 = vunpack.i.l.bf16 %v6028_v46  ;;  %v6025_v41 = vunpack.i.h.bf16 %v6023_v57  ;;  %vm15348_vm5 = vmmov %vm15296_vm0 }
 0x1d2   : >> { %v775_v39 = vmin.f32 %v9410_v11, %v743_v56  ;;  %v807_v32 = vmax.f32 %v9410_v11, %v743_v56  ;;  %v6024_v18 = vunpack.i.l.bf16 %v6023_v57  ;;  %v15340_v42 = vunpack.i.h.bf16 %v9507_v10 }
 0x1d3   : >> { %v9835_v11 = vsel %vm15311_vm3, %v773_v15, %v805_v47  ;;  %v9839_v16 = vsel %vm15311_vm3, %v774_v17, %v806_v59  ;;  %v9843_v44 = vsel %vm15311_vm3, %v771_v38, %v803_v12  ;;  %6072 = vrot.lane.b32.xlu0 %v6071_v21, %s8380_s14  ;;  %v15341_v28 = vunpack.i.l.bf16 %v9507_v10  ;;  %v15343_v47 = vld [vmem:[#allocation66_spill] sm:$0xff]  ;;  %v15346_v59 = vld [vmem:[#allocation65_spill] sm:$0xff] }
 0x1d4   : >> { %v750_v58 = vsel %vm15296_vm0, %v15340_v42, %v6030_v36  ;;  %v15344_v45 = vunpack.i.l.bf16 %v15343_v47  ;;  %v15347_v12 = vunpack.i.h.bf16 %v15343_v47  ;;  %v15349_v36 = vld [vmem:[#allocation68_spill] sm:$0xff]  ;;  %v9882_v47 = vsel %vm15311_vm3, %v775_v39, %v807_v32 }
 0x1d5   : >> { %v749_v46 = vsel %vm15342_vm1, %v15341_v28, %v6029_v9  ;;  %v782_v57 = vmin.f32 %v9427_v61, %v750_v58  ;;  %v814_v15 = vmax.f32 %v9427_v61, %v750_v58  ;;  %v15350_v42 = vld [vmem:[#allocation64_spill] sm:$0xff] }
 0x1d6   : >> { %v747_v17 = vsel %vm15345_vm2, %v15344_v45, %v6024_v18  ;;  %v781_v56 = vmin.f32 %v15346_v59, %v749_v46  ;;  %v813_v38 = vmax.f32 %v15346_v59, %v749_v46  ;;  %v748_v10 = vsel %vm15348_vm5, %v15347_v12, %v6025_v41 }
 0x1d7   : >> { %v779_v9 = vmin.f32 %v15349_v36, %v747_v17  ;;  %v780_v28 = vmin.f32 %v15350_v42, %v748_v10  ;;  %v811_v61 = vmax.f32 %v15349_v36, %v747_v17  ;;  %v812_v58 = vmax.f32 %v15350_v42, %v748_v10 }
 0x1d8   : >> { %v6086_v18 = vpack.i.bf16 %v9839_v16, %v9835_v11  ;;  %v9870_v45 = vsel %vm15311_vm3, %v772_v53, %v804_v6  ;;  %v9874_v46 = vsel %vm15311_vm3, %v777_v13, %v809_v49  ;;  %v9878_v41 = vsel %vm15311_vm3, %v778_v1, %v810_v20 }
 0x1d9   : >> { %v6081_v17 = vpack.i.bf16 %v9870_v45, %v9843_v44  ;;  %v6096_v53 = vpack.i.bf16 %v9878_v41, %v9874_v46  ;;  %v9891_v6 = vsel %vm15311_vm3, %v776_v26, %v808_v5  ;;  %v9895_v13 = vsel %vm15311_vm3, %v781_v56, %v813_v38 }
 0x1da   : >> { %6087 = vrot.lane.b32.xlu1 %v6086_v18, %s8380_s14  ;;  %v9899_v1 = vsel %vm15311_vm3, %v782_v57, %v814_v15  ;;  %v6091_v49 = vpack.i.bf16 %v9891_v6, %v9882_v47  ;;  %v9906_v20 = vsel %vm15311_vm3, %v779_v9, %v811_v61  ;;  %v9910_v26 = vsel %vm15311_vm3, %v780_v28, %v812_v58 }
 0x1db   : >> { %15351 = vst [vmem:[#allocation67_spill] sm:$0xff] %v9899_v1  ;;  %6082 = vrot.lane.b32.xlu0 %v6081_v17, %s8380_s14  ;;  %15352 = vst [vmem:[#allocation66_spill] sm:$0xff] %v9906_v20  ;;  %v6106_v5 = vpack.i.bf16 %v9899_v1, %v9895_v13  ;;  %v6101_v39 = vpack.i.bf16 %v9910_v26, %v9906_v20 }
 0x1dc   : >> { %15353 = vst [vmem:[#allocation65_spill] sm:$0xff] %v9910_v26  ;;  %v15355_v26 = vld [vmem:[#allocation8_spill] sm:$0xff] }
 0x1dd   : >> { %vm15356_vm0 = vcmp.eq.s32.totalorder %v15355_v26, 0 }
 0x1de   : >> { %6097 = vrot.lane.b32.xlu1 %v6096_v53, %s8380_s14  ;;  %vm15357_vm1 = vmmov %vm15356_vm0 }
 0x1df   : >> { %6092 = vrot.lane.b32.xlu0 %v6091_v49, %s8380_s14  ;;  %vm15358_vm2 = vmmov %vm15356_vm0 }
 0x1e0   : >> { %vm15359_vm5 = vmmov %vm15356_vm0 }
 0x1e2   : >> { %6107 = vrot.lane.b32.xlu1 %v6106_v5, %s8380_s14 }
 0x1e3   : >> { %6102 = vrot.lane.b32.xlu0 %v6101_v39, %s8380_s14 }
 0x1e6   : >> { %6117 = vrot.lane.b32.xlu1 %v9603_v7, %s8381_s25 }
 0x1e7   : >> { %6112 = vrot.lane.b32.xlu0 %v9615_v29, %s8381_s25 }
 0x1ea   : >> { %6127 = vrot.lane.b32.xlu1 %v9659_v62, %s8381_s25 }
 0x1eb   : >> { %6122 = vrot.lane.b32.xlu0 %v9669_v14, %s8381_s25 }
 0x1ee   : >> { %6137 = vrot.lane.b32.xlu1 %v9695_v24, %s8381_s25 }
 0x1ef   : >> { %6132 = vrot.lane.b32.xlu0 %v9725_v33, %s8381_s25 }
 0x1f2   : >> { %6147 = vrot.lane.b32.xlu1 %v9767_v22, %s8381_s25 }
 0x1f3   : >> { %6142 = vrot.lane.b32.xlu0 %v9777_v50, %s8381_s25 }
 0x1f6   : >> { %6157 = vrot.lane.b32.xlu1 %v9801_v25, %s8381_s25 }
 0x1f7   : >> { %6152 = vrot.lane.b32.xlu0 %v6071_v21, %s8381_s25 }
 0x1fa   : >> { %6167 = vrot.lane.b32.xlu1 %v6086_v18, %s8381_s25 }
 0x1fb   : >> { %6162 = vrot.lane.b32.xlu0 %v6081_v17, %s8381_s25 }
 0x1fe   : >> { %6177 = vrot.lane.b32.xlu1 %v6096_v53, %s8381_s25 }
 0x1ff   : >> { %6172 = vrot.lane.b32.xlu0 %v6091_v49, %s8381_s25 }
 0x202   : >> { %6187 = vrot.lane.b32.xlu1 %v6106_v5, %s8381_s25 }
 0x203   : >> { %6182 = vrot.lane.b32.xlu0 %v6101_v39, %s8381_s25 }
 0x229   : >> { %v6038_v7 = vpop.permute.xlu1 %6037  ;;  %v9945_v29 = vpop.permute.xlu0 %6032 }
 0x22a   : >> { %v6040_v59 = vunpack.i.h.bf16 %v6038_v7  ;;  %v6039_v56 = vunpack.i.l.bf16 %v6038_v7  ;;  %v6035_v12 = vunpack.i.h.bf16 %v9945_v29  ;;  %v6034_v10 = vunpack.i.l.bf16 %v9945_v29 }
 0x22f   : >> { %v9947_v62 = vpop.permute.xlu1 %6047 }
 0x230   : >> { %v6050_v36 = vunpack.i.h.bf16 %v9947_v62  ;;  %v6049_v9 = vunpack.i.l.bf16 %v9947_v62 }
 0x231   : >> { %v9949_v14 = vpop.permute.xlu0 %6042 }
 0x232   : >> { %v6045_v42 = vunpack.i.h.bf16 %v9949_v14  ;;  %v6044_v28 = vunpack.i.l.bf16 %v9949_v14 }
 0x233   : >> { %v9951_v24 = vpop.permute.xlu1 %6057 }
 0x237   : >> { %v9953_v33 = vpop.permute.xlu0 %6052 }
 0x23e   : >> { %v9955_v22 = vpop.permute.xlu1 %6067 }
 0x23f   : >> { %v9957_v50 = vpop.permute.xlu0 %6062 }
 0x242   : >> { %v9959_v25 = vpop.permute.xlu1 %6077 }
 0x245   : >> { %v9961_v32 = vpop.permute.xlu0 %6072 }
 0x24c   : >> { %v9963_v21 = vpop.permute.xlu1 %6087 }
 0x24d   : >> { %v9965_v57 = vpop.permute.xlu0 %6082 }
 0x250   : >> { %v9967_v15 = vpop.permute.xlu1 %6097 }
 0x251   : >> { %v9969_v38 = vpop.permute.xlu0 %6092 }
 0x254   : >> { %v9979_v18 = vpop.permute.xlu1 %6107 }
 0x255   : >> { %v9989_v14 = vpop.permute.xlu0 %6102 }
 0x256   : >> { %15354 = vst [vmem:[#allocation68_spill] sm:$0xff] %v9989_v14 }
 0x258   : >> { %v6118_v58 = vpop.permute.xlu1 %6117 }
 0x259   : >> { %v6120_v61 = vunpack.i.h.bf16 %v6118_v58  ;;  %v6119_v55 = vunpack.i.l.bf16 %v6118_v58  ;;  %v6113_v39 = vpop.permute.xlu0 %6112 }
 0x25a   : >> { %v6115_v62 = vunpack.i.h.bf16 %v6113_v39  ;;  %v6114_v20 = vunpack.i.l.bf16 %v6113_v39 }
 0x25b   : >> { %v979_v7 = vsel %vm15356_vm0, %v6039_v56, %v6119_v55  ;;  %v980_v29 = vsel %vm15357_vm1, %v6040_v59, %v6120_v61  ;;  %vm15360_vm1 = vmmov %vm15356_vm0 }
 0x25c   : >> { %v1011_v30 = vmin.f32 %v9589_v63, %v979_v7  ;;  %v1012_v58 = vmin.f32 %v9593_v27, %v980_v29  ;;  %v1043_v17 = vmax.f32 %v9589_v63, %v979_v7  ;;  %v1044_v53 = vmax.f32 %v9593_v27, %v980_v29  ;;  %v6128_v49 = vpop.permute.xlu1 %6127 }
 0x25d   : >> { %v977_v5 = vsel %vm15358_vm2, %v6034_v10, %v6114_v20  ;;  %v978_v55 = vsel %vm15359_vm5, %v6035_v12, %v6115_v62  ;;  %v6130_v56 = vunpack.i.h.bf16 %v6128_v49  ;;  %v6129_v14 = vunpack.i.l.bf16 %v6128_v49  ;;  %v6123_v63 = vpop.permute.xlu0 %6122  ;;  %vm15361_vm2 = vmmov %vm15356_vm0 }
 0x25e   : >> { %v1009_v59 = vmin.f32 %v9607_v19, %v977_v5  ;;  %v1010_v61 = vmin.f32 %v9611_v31, %v978_v55  ;;  %v1041_v39 = vmax.f32 %v9607_v19, %v977_v5  ;;  %v1042_v1 = vmax.f32 %v9611_v31, %v978_v55  ;;  %vm15362_vm5 = vmmov %vm15356_vm0 }
 0x25f   : >> { %v983_v27 = vsel %vm15356_vm0, %v6049_v9, %v6129_v14  ;;  %v984_v20 = vsel %vm15360_vm1, %v6050_v36, %v6130_v56  ;;  %v6125_v10 = vunpack.i.h.bf16 %v6123_v63  ;;  %v6124_v7 = vunpack.i.l.bf16 %v6123_v63  ;;  %vm15366_vm1 = vmmov %vm15356_vm0 }
 0x260   : >> { %v1015_v12 = vmin.f32 %v9625_v48, %v983_v27  ;;  %v1016_v49 = vmin.f32 %v9629_v52, %v984_v20  ;;  %v1047_v29 = vmax.f32 %v9625_v48, %v983_v27  ;;  %v1048_v62 = vmax.f32 %v9629_v52, %v984_v20  ;;  %v6138_v19 = vpop.permute.xlu1 %6137 }
 0x261   : >> { %v981_v31 = vsel %vm15361_vm2, %v6044_v28, %v6124_v7  ;;  %v982_v9 = vsel %vm15362_vm5, %v6045_v42, %v6125_v10  ;;  %v6140_v5 = vunpack.i.h.bf16 %v6138_v19  ;;  %v6139_v14 = vunpack.i.l.bf16 %v6138_v19  ;;  %v6133_v63 = vpop.permute.xlu0 %6132  ;;  %vm15368_vm2 = vmmov %vm15356_vm0 }
 0x262   : >> { %v10035_v55 = vsel %vm8585_vm4, %v1015_v12, %v1047_v29  ;;  %v10039_v56 = vsel %vm8585_vm4, %v1016_v49, %v1048_v62  ;;  %v1013_v48 = vmin.f32 %v9633_v54, %v981_v31  ;;  %v1014_v52 = vmin.f32 %v9663_v35, %v982_v9  ;;  %vm15370_vm5 = vmmov %vm15356_vm0 }
 0x263   : >> { %v1045_v28 = vmax.f32 %v9633_v54, %v981_v31  ;;  %v1046_v27 = vmax.f32 %v9663_v35, %v982_v9  ;;  %v15364_v42 = vunpack.i.l.bf16 %v9951_v24  ;;  %v15365_v10 = vunpack.i.h.bf16 %v9951_v24 }
 0x264   : >> { %v6148_v62 = vpop.permute.xlu1 %6147  ;;  %v6135_v24 = vunpack.i.h.bf16 %v6133_v63  ;;  %v6134_v31 = vunpack.i.l.bf16 %v6133_v63  ;;  %v15369_v63 = vunpack.i.h.bf16 %v9953_v33 }
 0x265   : >> { %v987_v20 = vsel %vm15356_vm0, %v15364_v42, %v6139_v14  ;;  %v988_v7 = vsel %vm15366_vm1, %v15365_v10, %v6140_v5  ;;  %v10059_v35 = vsel %vm8585_vm4, %v1013_v48, %v1045_v28  ;;  %v10063_v19 = vsel %vm8585_vm4, %v1014_v52, %v1046_v27  ;;  %v6143_v14 = vpop.permute.xlu0 %6142  ;;  %vm15373_vm1 = vmmov %vm15356_vm0 }
 0x266   : >> { %v1019_v12 = vmin.f32 %v9673_v60, %v987_v20  ;;  %v1020_v49 = vmin.f32 %v9677_v4, %v988_v7  ;;  %v1051_v29 = vmax.f32 %v9673_v60, %v987_v20  ;;  %v1052_v54 = vmax.f32 %v9677_v4, %v988_v7 }
 0x267   : >> { %v10075_v4 = vsel %vm8585_vm4, %v1011_v30, %v1043_v17  ;;  %v10079_v5 = vsel %vm8585_vm4, %v1012_v58, %v1044_v53  ;;  %v15367_v48 = vunpack.i.l.bf16 %v9953_v33  ;;  %v986_v28 = vsel %vm15370_vm5, %v15369_v63, %v6135_v24  ;;  %vm15377_vm5 = vmmov %vm15356_vm0 }
 0x268   : >> { %v10067_v9 = vsel %vm8585_vm4, %v1019_v12, %v1051_v29  ;;  %v10071_v60 = vsel %vm8585_vm4, %v1020_v49, %v1052_v54  ;;  %v10091_v27 = vpack.i.bf16 %v10079_v5, %v10075_v4  ;;  %v10095_v30 = vsel %vm8585_vm4, %v1009_v59, %v1041_v39  ;;  %v6158_v33 = vpop.permute.xlu1 %6157 }
 0x269   : >> { %v985_v52 = vsel %vm15368_vm2, %v15367_v48, %v6134_v31  ;;  %v1018_v53 = vmin.f32 %v9721_v2, %v986_v28  ;;  %v1050_v42 = vmax.f32 %v9721_v2, %v986_v28  ;;  %v10105_v20 = vsel %vm8585_vm4, %v1010_v61, %v1042_v1  ;;  %vm15375_vm2 = vmmov %vm15356_vm0  ;;  %v6153_v31 = vpop.permute.xlu0 %6152 }
 0x26a   : >> { %v1017_v17 = vmin.f32 %v9713_v0, %v985_v52  ;;  %v1049_v58 = vmax.f32 %v9713_v0, %v985_v52  ;;  %6197 = vrot.lane.b32.xlu1 %v10091_v27, %s8384_s5  ;;  %v6150_v10 = vunpack.i.h.bf16 %v6148_v62  ;;  %v6149_v59 = vunpack.i.l.bf16 %v6148_v62 }
 0x26b   : >> { %v6145_v39 = vunpack.i.h.bf16 %v6143_v14  ;;  %v10113_v0 = vsel %vm8585_vm4, %v1018_v53, %v1050_v42  ;;  %v10117_v2 = vpack.i.bf16 %v10105_v20, %v10095_v30  ;;  %v6144_v12 = vunpack.i.l.bf16 %v6143_v14 }
 0x26c   : >> { %v10109_v7 = vsel %vm8585_vm4, %v1017_v17, %v1049_v58  ;;  %v15371_v49 = vunpack.i.l.bf16 %v9955_v22  ;;  %v15372_v61 = vunpack.i.h.bf16 %v9955_v22  ;;  %v15374_v54 = vunpack.i.h.bf16 %v9957_v50 }
 0x26d   : >> { %v10133_v24 = vpack.i.bf16 %v10039_v56, %v10035_v55  ;;  %6192 = vrot.lane.b32.xlu0 %v10117_v2, %s8384_s5  ;;  %v15376_v63 = vunpack.i.l.bf16 %v9957_v50  ;;  %v10151_v58 = vpack.i.bf16 %v10063_v19, %v10059_v35 }
 0x26e   : >> { %v991_v1 = vsel %vm15356_vm0, %v15371_v49, %v6149_v59  ;;  %v992_v29 = vsel %vm15373_vm1, %v15372_v61, %v6150_v10  ;;  %v990_v62 = vsel %vm15375_vm2, %v15374_v54, %v6145_v39  ;;  %v6160_v59 = vunpack.i.h.bf16 %v6158_v33  ;;  %vm15380_vm1 = vmmov %vm15356_vm0 }
 0x26f   : >> { %v1023_v14 = vmin.f32 %v9733_v37, %v991_v1  ;;  %v1024_v22 = vmin.f32 %v9737_v43, %v992_v29  ;;  %v1055_v48 = vmax.f32 %v9733_v37, %v991_v1  ;;  %v1056_v52 = vmax.f32 %v9737_v43, %v992_v29  ;;  %6207 = vrot.lane.b32.xlu1 %v10133_v24, %s8384_s5  ;;  %vm15382_vm2 = vmmov %vm15356_vm0 }
 0x270   : >> { %v989_v28 = vsel %vm15377_vm5, %v15376_v63, %v6144_v12  ;;  %v1022_v17 = vmin.f32 %v9771_v51, %v990_v62  ;;  %v1054_v53 = vmax.f32 %v9771_v51, %v990_v62  ;;  %v6168_v51 = vpop.permute.xlu1 %6167  ;;  %v6159_v39 = vunpack.i.l.bf16 %v6158_v33  ;;  %vm15384_vm5 = vmmov %vm15356_vm0 }
 0x271   : >> { %v10155_v37 = vsel %vm8585_vm4, %v1023_v14, %v1055_v48  ;;  %v10159_v43 = vsel %vm8585_vm4, %v1024_v22, %v1056_v52  ;;  %v1021_v50 = vmin.f32 %v9741_v23, %v989_v28  ;;  %v1053_v42 = vmax.f32 %v9741_v23, %v989_v28  ;;  %6202 = vrot.lane.b32.xlu0 %v10151_v58, %s8384_s5  ;;  %v6163_v48 = vpop.permute.xlu0 %6162 }
 0x272   : >> { %v10165_v10 = vsel %vm8585_vm4, %v1022_v17, %v1054_v53  ;;  %v6155_v12 = vunpack.i.h.bf16 %v6153_v31  ;;  %v6154_v1 = vunpack.i.l.bf16 %v6153_v31  ;;  %v10175_v61 = vpack.i.bf16 %v10071_v60, %v10067_v9 }
 0x273   : >> { %v10169_v49 = vsel %vm8585_vm4, %v1021_v50, %v1053_v42  ;;  %v10179_v23 = vpack.i.bf16 %v10113_v0, %v10109_v7  ;;  %v15378_v29 = vunpack.i.l.bf16 %v9959_v25  ;;  %v15379_v54 = vunpack.i.h.bf16 %v9959_v25 }
 0x274   : >> { %v15381_v31 = vunpack.i.h.bf16 %v9961_v32  ;;  %v6170_v22 = vunpack.i.h.bf16 %v6168_v51  ;;  %6217 = vrot.lane.b32.xlu1 %v10175_v61, %s8384_s5  ;;  %v15383_v25 = vunpack.i.l.bf16 %v9961_v32 }
 0x275   : >> { %v995_v33 = vsel %vm15356_vm0, %v15378_v29, %v6159_v39  ;;  %v996_v62 = vsel %vm15380_vm1, %v15379_v54, %v6160_v59  ;;  %v6169_v59 = vunpack.i.l.bf16 %v6168_v51  ;;  %6212 = vrot.lane.b32.xlu0 %v10179_v23, %s8384_s5  ;;  %vm15387_vm1 = vmmov %vm15356_vm0 }
 0x276   : >> { %v994_v14 = vsel %vm15382_vm2, %v15381_v31, %v6155_v12  ;;  %v1027_v52 = vmin.f32 %v9781_v40, %v995_v33  ;;  %v1028_v63 = vmin.f32 %v9785_v34, %v996_v62  ;;  %v1059_v28 = vmax.f32 %v9781_v40, %v995_v33  ;;  %vm15389_vm2 = vmmov %vm15356_vm0 }
 0x277   : >> { %v1060_v17 = vmax.f32 %v9785_v34, %v996_v62  ;;  %v993_v53 = vsel %vm15384_vm5, %v15383_v25, %v6154_v1  ;;  %v1026_v50 = vmin.f32 %v9825_v8, %v994_v14  ;;  %v1058_v42 = vmax.f32 %v9825_v8, %v994_v14  ;;  %v6178_v14 = vpop.permute.xlu1 %6177  ;;  %vm15391_vm5 = vmmov %vm15356_vm0 }
 0x278   : >> { %v10207_v39 = vsel %vm8585_vm4, %v1027_v52, %v1059_v28  ;;  %v1025_v34 = vmin.f32 %v9817_v3, %v993_v53  ;;  %v1057_v32 = vmax.f32 %v9817_v3, %v993_v53  ;;  %v15385_v8 = vunpack.i.l.bf16 %v9963_v21 }
 0x279   : >> { %v10211_v40 = vsel %vm8585_vm4, %v1028_v63, %v1060_v17  ;;  %v10219_v12 = vsel %vm8585_vm4, %v1026_v50, %v1058_v42  ;;  %v15386_v1 = vunpack.i.h.bf16 %v9963_v21  ;;  %v6165_v33 = vunpack.i.h.bf16 %v6163_v48  ;;  %v6173_v17 = vpop.permute.xlu0 %6172 }
 0x27a   : >> { %v999_v51 = vsel %vm15356_vm0, %v15385_v8, %v6169_v59  ;;  %v10231_v3 = vsel %vm8585_vm4, %v1025_v34, %v1057_v32  ;;  %v6164_v63 = vunpack.i.l.bf16 %v6163_v48  ;;  %v15388_v21 = vunpack.i.h.bf16 %v9965_v57 }
 0x27b   : >> { %v1000_v29 = vsel %vm15387_vm1, %v15386_v1, %v6170_v22  ;;  %v1031_v54 = vmin.f32 %v9835_v11, %v999_v51  ;;  %v1063_v31 = vmax.f32 %v9835_v11, %v999_v51  ;;  %v10243_v28 = vpack.i.bf16 %v10159_v43, %v10155_v37  ;;  %vm15394_vm1 = vmmov %vm15356_vm0 }
 0x27c   : >> { %v1032_v62 = vmin.f32 %v9839_v16, %v1000_v29  ;;  %v1064_v52 = vmax.f32 %v9839_v16, %v1000_v29  ;;  %v998_v22 = vsel %vm15389_vm2, %v15388_v21, %v6165_v33  ;;  %v10253_v16 = vpack.i.bf16 %v10165_v10, %v10169_v49  ;;  %vm15396_vm2 = vmmov %vm15356_vm0 }
 0x27d   : >> { %v10247_v25 = vsel %vm8585_vm4, %v1031_v54, %v1063_v31  ;;  %v1030_v11 = vmin.f32 %v9870_v45, %v998_v22  ;;  %v1062_v53 = vmax.f32 %v9870_v45, %v998_v22  ;;  %v15390_v50 = vunpack.i.l.bf16 %v9965_v57  ;;  %6227 = vrot.lane.b32.xlu1 %v10243_v28, %s8384_s5 }
 0x27e   : >> { %v10257_v48 = vsel %vm8585_vm4, %v1032_v62, %v1064_v52  ;;  %v6180_v59 = vunpack.i.h.bf16 %v6178_v14  ;;  %v6179_v34 = vunpack.i.l.bf16 %v6178_v14  ;;  %6222 = vrot.lane.b32.xlu0 %v10253_v16, %s8384_s5  ;;  %v6175_v57 = vunpack.i.h.bf16 %v6173_v17 }
 0x27f   : >> { %v997_v42 = vsel %vm15391_vm5, %v15390_v50, %v6164_v63  ;;  %v10269_v8 = vsel %vm8585_vm4, %v1030_v11, %v1062_v53  ;;  %v15392_v51 = vunpack.i.l.bf16 %v9967_v15  ;;  %v15393_v29 = vunpack.i.h.bf16 %v9967_v15  ;;  %v6188_v63 = vpop.permute.xlu1 %6187  ;;  %vm15398_vm5 = vmmov %vm15356_vm0  ;;  %v6183_v50 = vpop.permute.xlu0 %6182 }
 0x280   : >> { %v1029_v45 = vmin.f32 %v9843_v44, %v997_v42  ;;  %v1061_v32 = vmax.f32 %v9843_v44, %v997_v42  ;;  %v6174_v54 = vunpack.i.l.bf16 %v6173_v17  ;;  %v6236_v44 = vpack.i.bf16 %v10211_v40, %v10207_v39 }
 0x281   : >> { %v1003_v1 = vsel %vm15356_vm0, %v15392_v51, %v6179_v34  ;;  %v1004_v33 = vsel %vm15394_vm1, %v15393_v29, %v6180_v59  ;;  %v15395_v21 = vunpack.i.l.bf16 %v9969_v38  ;;  %v15397_v17 = vunpack.i.h.bf16 %v9969_v38  ;;  %vm15401_vm1 = vmmov %vm15356_vm0 }
 0x282   : >> { %v10285_v62 = vsel %vm8585_vm4, %v1029_v45, %v1061_v32  ;;  %v1035_v31 = vmin.f32 %v9874_v46, %v1003_v1  ;;  %v1036_v14 = vmin.f32 %v9878_v41, %v1004_v33  ;;  %v1067_v52 = vmax.f32 %v9874_v46, %v1003_v1  ;;  %6237 = vrot.lane.b32.xlu1 %v6236_v44, %s8384_s5 }
 0x283   : >> { %v1068_v15 = vmax.f32 %v9878_v41, %v1004_v33  ;;  %v1001_v22 = vsel %vm15396_vm2, %v15395_v21, %v6174_v54  ;;  %v1002_v11 = vsel %vm15398_vm5, %v15397_v17, %v6175_v57  ;;  %v6231_v53 = vpack.i.bf16 %v10219_v12, %v10231_v3  ;;  %v15403_v17 = vld [vmem:[#allocation68_spill] sm:$0xff]  ;;  %vm15405_vm2 = vmmov %vm15356_vm0 }
 0x284   : >> { %v10304_v46 = vsel %vm8585_vm4, %v1035_v31, %v1067_v52  ;;  %v1033_v41 = vmin.f32 %v9882_v47, %v1001_v22  ;;  %v1034_v42 = vmin.f32 %v9891_v6, %v1002_v11  ;;  %v1065_v59 = vmax.f32 %v9882_v47, %v1001_v22  ;;  %vm15407_vm5 = vmmov %vm15356_vm0 }
 0x285   : >> { %v10311_v38 = vsel %vm8585_vm4, %v1036_v14, %v1068_v15  ;;  %v1066_v34 = vmax.f32 %v9891_v6, %v1002_v11  ;;  %6232 = vrot.lane.b32.xlu0 %v6231_v53, %s8384_s5  ;;  %v6190_v45 = vunpack.i.h.bf16 %v6188_v63  ;;  %v6189_v32 = vunpack.i.l.bf16 %v6188_v63  ;;  %v15402_v63 = vld [vmem:[#allocation67_spill] sm:$0xff] }
 0x286   : >> { %v10317_v57 = vsel %vm8585_vm4, %v1033_v41, %v1065_v59  ;;  %v6185_v51 = vunpack.i.h.bf16 %v6183_v50  ;;  %v6184_v1 = vunpack.i.l.bf16 %v6183_v50  ;;  %v6246_v29 = vpack.i.bf16 %v10257_v48, %v10247_v25 }
 0x287   : >> { %v10323_v47 = vsel %vm8585_vm4, %v1034_v42, %v1066_v34  ;;  %v15399_v33 = vunpack.i.l.bf16 %v9979_v18  ;;  %v15400_v54 = vunpack.i.h.bf16 %v9979_v18  ;;  %v6241_v14 = vpack.i.bf16 %v10269_v8, %v10285_v62 }
 0x288   : >> { %6247 = vrot.lane.b32.xlu1 %v6246_v29, %s8384_s5  ;;  %v15404_v11 = vunpack.i.l.bf16 %v15403_v17  ;;  %v15406_v50 = vunpack.i.h.bf16 %v15403_v17  ;;  %v6256_v42 = vpack.i.bf16 %v10311_v38, %v10304_v46 }
 0x289   : >> { %v1007_v6 = vsel %vm15356_vm0, %v15399_v33, %v6189_v32  ;;  %v1008_v31 = vsel %vm15401_vm1, %v15400_v54, %v6190_v45  ;;  %6242 = vrot.lane.b32.xlu0 %v6241_v14, %s8384_s5  ;;  %v15408_v45 = vld [vmem:[#allocation66_spill] sm:$0xff] }
 0x28a   : >> { %v1039_v52 = vmin.f32 %v9895_v13, %v1007_v6  ;;  %v1040_v15 = vmin.f32 %v15402_v63, %v1008_v31  ;;  %v1071_v21 = vmax.f32 %v9895_v13, %v1007_v6  ;;  %v1072_v22 = vmax.f32 %v15402_v63, %v1008_v31 }
 0x28b   : >> { %v1005_v18 = vsel %vm15405_vm2, %v15404_v11, %v6184_v1  ;;  %v1006_v41 = vsel %vm15407_vm5, %v15406_v50, %v6185_v51  ;;  %v6251_v13 = vpack.i.bf16 %v10323_v47, %v10317_v57  ;;  %v15409_v1 = vld [vmem:[#allocation65_spill] sm:$0xff] }
 0x28c   : >> { %v10355_v59 = vsel %vm8585_vm4, %v1039_v52, %v1071_v21  ;;  %v10359_v34 = vsel %vm8585_vm4, %v1040_v15, %v1072_v22  ;;  %v1037_v32 = vmin.f32 %v15408_v45, %v1005_v18  ;;  %v1038_v51 = vmin.f32 %v15409_v1, %v1006_v41  ;;  %6257 = vrot.lane.b32.xlu1 %v6256_v42, %s8384_s5 }
 0x28d   : >> { %v1069_v33 = vmax.f32 %v15408_v45, %v1005_v18  ;;  %v1070_v6 = vmax.f32 %v15409_v1, %v1006_v41  ;;  %v6266_v54 = vpack.i.bf16 %v10359_v34, %v10355_v59  ;;  %6252 = vrot.lane.b32.xlu0 %v6251_v13, %s8384_s5 }
 0x28f   : >> { %v10370_v31 = vsel %vm8585_vm4, %v1037_v32, %v1069_v33  ;;  %v10374_v52 = vsel %vm8585_vm4, %v1038_v51, %v1070_v6 }
 0x290   : >> { %15410 = vst [vmem:[#allocation64_spill] sm:$0xff] %v10370_v31  ;;  %15411 = vst [vmem:[#allocation67_spill] sm:$0xff] %v10374_v52  ;;  %v6261_v63 = vpack.i.bf16 %v10374_v52, %v10370_v31  ;;  %6267 = vrot.lane.b32.xlu1 %v6266_v54, %s8384_s5  ;;  %v15413_v52 = vld [vmem:[#allocation12_spill] sm:$0xff] }
 0x291   : >> { %vm15414_vm0 = vcmp.eq.s32.totalorder %v15413_v52, 0 }
 0x292   : >> { %6262 = vrot.lane.b32.xlu0 %v6261_v63, %s8384_s5  ;;  %vm15415_vm1 = vmmov %vm15414_vm0 }
 0x293   : >> { %vm15416_vm2 = vmmov %vm15414_vm0 }
 0x294   : >> { %6277 = vrot.lane.b32.xlu1 %v10091_v27, %s8385_s6  ;;  %vm15417_vm5 = vmmov %vm15414_vm0 }
 0x296   : >> { %6272 = vrot.lane.b32.xlu0 %v10117_v2, %s8385_s6 }
 0x298   : >> { %6287 = vrot.lane.b32.xlu1 %v10133_v24, %s8385_s6 }
 0x29a   : >> { %6282 = vrot.lane.b32.xlu0 %v10151_v58, %s8385_s6 }
 0x29c   : >> { %6297 = vrot.lane.b32.xlu1 %v10175_v61, %s8385_s6 }
 0x29e   : >> { %6292 = vrot.lane.b32.xlu0 %v10179_v23, %s8385_s6 }
 0x2a0   : >> { %6307 = vrot.lane.b32.xlu1 %v10243_v28, %s8385_s6 }
 0x2a2   : >> { %6302 = vrot.lane.b32.xlu0 %v10253_v16, %s8385_s6 }
 0x2a4   : >> { %6317 = vrot.lane.b32.xlu1 %v6236_v44, %s8385_s6 }
 0x2a6   : >> { %6312 = vrot.lane.b32.xlu0 %v6231_v53, %s8385_s6 }
 0x2a8   : >> { %6327 = vrot.lane.b32.xlu1 %v6246_v29, %s8385_s6 }
 0x2aa   : >> { %6322 = vrot.lane.b32.xlu0 %v6241_v14, %s8385_s6 }
 0x2ac   : >> { %6337 = vrot.lane.b32.xlu1 %v6256_v42, %s8385_s6 }
 0x2ae   : >> { %6332 = vrot.lane.b32.xlu0 %v6251_v13, %s8385_s6 }
 0x2b0   : >> { %6347 = vrot.lane.b32.xlu1 %v6266_v54, %s8385_s6 }
 0x2b2   : >> { %6342 = vrot.lane.b32.xlu0 %v6261_v63, %s8385_s6 }
 0x2dc   : >> { %v6198_v27 = vpop.permute.xlu1 %6197 }
 0x2dd   : >> { %v6200_v22 = vunpack.i.h.bf16 %v6198_v27  ;;  %v6199_v17 = vunpack.i.l.bf16 %v6198_v27 }
 0x2df   : >> { %v10405_v2 = vpop.permute.xlu0 %6192 }
 0x2e0   : >> { %v6195_v11 = vunpack.i.h.bf16 %v10405_v2  ;;  %v6194_v18 = vunpack.i.l.bf16 %v10405_v2 }
 0x2e1   : >> { %v10407_v24 = vpop.permute.xlu1 %6207 }
 0x2e2   : >> { %v6210_v50 = vunpack.i.h.bf16 %v10407_v24  ;;  %v6209_v41 = vunpack.i.l.bf16 %v10407_v24 }
 0x2e3   : >> { %v10409_v58 = vpop.permute.xlu0 %6202 }
 0x2e6   : >> { %v10411_v61 = vpop.permute.xlu1 %6217 }
 0x2e7   : >> { %v10413_v23 = vpop.permute.xlu0 %6212 }
 0x2ef   : >> { %v10415_v28 = vpop.permute.xlu1 %6227 }
 0x2f0   : >> { %v10417_v16 = vpop.permute.xlu0 %6222 }
 0x2f4   : >> { %v10419_v44 = vpop.permute.xlu1 %6237 }
 0x2f7   : >> { %v10421_v53 = vpop.permute.xlu0 %6232 }
 0x2fa   : >> { %v10423_v29 = vpop.permute.xlu1 %6247 }
 0x2fb   : >> { %v10425_v14 = vpop.permute.xlu0 %6242 }
 0x2fe   : >> { %v10427_v15 = vpop.permute.xlu1 %6257 }
 0x2ff   : >> { %v10429_v21 = vpop.permute.xlu0 %6252 }
 0x302   : >> { %v10439_v1 = vpop.permute.xlu1 %6267 }
 0x304   : >> { %v10445_v63 = vpop.permute.xlu0 %6262 }
 0x305   : >> { %15412 = vst [vmem:[#allocation68_spill] sm:$0xff] %v10445_v63 }
 0x306   : >> { %v6278_v13 = vpop.permute.xlu1 %6277 }
 0x307   : >> { %v6280_v32 = vunpack.i.h.bf16 %v6278_v13  ;;  %v6279_v36 = vunpack.i.l.bf16 %v6278_v13 }
 0x308   : >> { %v6273_v51 = vpop.permute.xlu0 %6272 }
 0x309   : >> { %v6275_v26 = vunpack.i.h.bf16 %v6273_v51  ;;  %v6274_v54 = vunpack.i.l.bf16 %v6273_v51  ;;  %v1239_v2 = vsel %vm15414_vm0, %v6199_v17, %v6279_v36  ;;  %v1240_v24 = vsel %vm15415_vm1, %v6200_v22, %v6280_v32  ;;  %vm15419_vm1 = vmmov %vm15414_vm0 }
 0x30a   : >> { %v1271_v45 = vmin.f32 %v10075_v4, %v1239_v2  ;;  %v1272_v13 = vmin.f32 %v10079_v5, %v1240_v24  ;;  %v1303_v33 = vmax.f32 %v10075_v4, %v1239_v2  ;;  %v1304_v6 = vmax.f32 %v10079_v5, %v1240_v24  ;;  %v6288_v31 = vpop.permute.xlu1 %6287 }
 0x30b   : >> { %v1237_v51 = vsel %vm15416_vm2, %v6194_v18, %v6274_v54  ;;  %v1238_v42 = vsel %vm15417_vm5, %v6195_v11, %v6275_v26  ;;  %v6290_v27 = vunpack.i.h.bf16 %v6288_v31  ;;  %v6289_v36 = vunpack.i.l.bf16 %v6288_v31  ;;  %vm15421_vm2 = vmmov %vm15414_vm0 }
 0x30c   : >> { %v6283_v17 = vpop.permute.xlu0 %6282  ;;  %v10479_v22 = vsel %vm8602_vm6, %v1271_v45, %v1303_v33  ;;  %v10483_v32 = vsel %vm8602_vm6, %v1272_v13, %v1304_v6  ;;  %v1269_v4 = vmin.f32 %v10095_v30, %v1237_v51  ;;  %v1270_v5 = vmin.f32 %v10105_v20, %v1238_v42  ;;  %vm15423_vm5 = vmmov %vm15414_vm0 }
 0x30d   : >> { %v1301_v18 = vmax.f32 %v10095_v30, %v1237_v51  ;;  %v1302_v54 = vmax.f32 %v10105_v20, %v1238_v42  ;;  %v1243_v26 = vsel %vm15414_vm0, %v6209_v41, %v6289_v36  ;;  %v1244_v31 = vsel %vm15419_vm1, %v6210_v50, %v6290_v27  ;;  %vm15426_vm1 = vmmov %vm15414_vm0 }
 0x30e   : >> { %v1275_v11 = vmin.f32 %v10035_v55, %v1243_v26  ;;  %v1276_v45 = vmin.f32 %v10039_v56, %v1244_v31  ;;  %v1307_v33 = vmax.f32 %v10035_v55, %v1243_v26  ;;  %v1308_v6 = vmax.f32 %v10039_v56, %v1244_v31  ;;  %v6298_v2 = vpop.permute.xlu1 %6297 }
 0x30f   : >> { %v10499_v30 = vsel %vm8602_vm6, %v1269_v4, %v1301_v18  ;;  %v10503_v20 = vsel %vm8602_vm6, %v1270_v5, %v1302_v54  ;;  %v6285_v41 = vunpack.i.h.bf16 %v6283_v17  ;;  %v6284_v42 = vunpack.i.l.bf16 %v6283_v17 }
 0x310   : >> { %v6293_v50 = vpop.permute.xlu0 %6292  ;;  %v10507_v27 = vsel %vm8602_vm6, %v1275_v11, %v1307_v33  ;;  %v10511_v55 = vsel %vm8602_vm6, %v1276_v45, %v1308_v6  ;;  %v6300_v56 = vunpack.i.h.bf16 %v6298_v2  ;;  %v6299_v24 = vunpack.i.l.bf16 %v6298_v2 }
 0x311   : >> { %v15420_v13 = vunpack.i.l.bf16 %v10409_v58  ;;  %v15422_v36 = vunpack.i.h.bf16 %v10409_v58  ;;  %v6295_v4 = vunpack.i.h.bf16 %v6293_v50  ;;  %v6294_v5 = vunpack.i.l.bf16 %v6293_v50 }
 0x312   : >> { %v6308_v11 = vpop.permute.xlu1 %6307  ;;  %v15424_v45 = vunpack.i.l.bf16 %v10411_v61  ;;  %v15425_v58 = vunpack.i.h.bf16 %v10411_v61  ;;  %v15427_v2 = vunpack.i.l.bf16 %v10413_v23 }
 0x313   : >> { %v1241_v51 = vsel %vm15421_vm2, %v15420_v13, %v6284_v42  ;;  %v1242_v17 = vsel %vm15423_vm5, %v15422_v36, %v6285_v41  ;;  %vm15428_vm2 = vmmov %vm15414_vm0 }
 0x314   : >> { %v1273_v18 = vmin.f32 %v10059_v35, %v1241_v51  ;;  %v1274_v54 = vmin.f32 %v10063_v19, %v1242_v17  ;;  %v1305_v26 = vmax.f32 %v10059_v35, %v1241_v51  ;;  %v1306_v31 = vmax.f32 %v10063_v19, %v1242_v17  ;;  %vm15430_vm5 = vmmov %vm15414_vm0 }
 0x315   : >> { %v1247_v33 = vsel %vm15414_vm0, %v15424_v45, %v6299_v24  ;;  %v1248_v6 = vsel %vm15426_vm1, %v15425_v58, %v6300_v56  ;;  %v1245_v41 = vsel %vm15428_vm2, %v15427_v2, %v6294_v5  ;;  %v15429_v35 = vunpack.i.h.bf16 %v10413_v23  ;;  %v6303_v24 = vpop.permute.xlu0 %6302  ;;  %vm15433_vm1 = vmmov %vm15414_vm0 }
 0x316   : >> { %v10543_v42 = vsel %vm8602_vm6, %v1273_v18, %v1305_v26  ;;  %v10547_v61 = vsel %vm8602_vm6, %v1274_v54, %v1306_v31  ;;  %v1279_v50 = vmin.f32 %v10067_v9, %v1247_v33  ;;  %v1280_v56 = vmin.f32 %v10071_v60, %v1248_v6  ;;  %v6318_v54 = vpop.permute.xlu1 %6317  ;;  %vm15435_vm2 = vmmov %vm15414_vm0 }
 0x317   : >> { %v1246_v19 = vsel %vm15430_vm5, %v15429_v35, %v6295_v4  ;;  %v1311_v13 = vmax.f32 %v10067_v9, %v1247_v33  ;;  %v1312_v23 = vmax.f32 %v10071_v60, %v1248_v6  ;;  %v1277_v51 = vmin.f32 %v10109_v7, %v1245_v41  ;;  %vm15437_vm5 = vmmov %vm15414_vm0 }
 0x318   : >> { %v1278_v36 = vmin.f32 %v10113_v0, %v1246_v19  ;;  %v1309_v17 = vmax.f32 %v10109_v7, %v1245_v41  ;;  %v1310_v4 = vmax.f32 %v10113_v0, %v1246_v19  ;;  %v10559_v5 = vpack.i.bf16 %v10483_v32, %v10479_v22 }
 0x319   : >> { %v10563_v18 = vpack.i.bf16 %v10503_v20, %v10499_v30  ;;  %v10567_v9 = vsel %vm8602_vm6, %v1279_v50, %v1311_v13  ;;  %v10571_v60 = vsel %vm8602_vm6, %v1280_v56, %v1312_v23  ;;  %v6310_v7 = vunpack.i.h.bf16 %v6308_v11 }
 0x31a   : >> { %v6309_v26 = vunpack.i.l.bf16 %v6308_v11  ;;  %v10575_v0 = vsel %vm8602_vm6, %v1277_v51, %v1309_v17  ;;  %v10579_v31 = vsel %vm8602_vm6, %v1278_v36, %v1310_v4  ;;  %6357 = vrot.lane.b32.xlu1 %v10559_v5, %s8382_s29  ;;  %v6305_v45 = vunpack.i.h.bf16 %v6303_v24 }
 0x31b   : >> { %6352 = vrot.lane.b32.xlu0 %v10563_v18, %s8382_s29  ;;  %v6304_v33 = vunpack.i.l.bf16 %v6303_v24  ;;  %v15431_v58 = vunpack.i.l.bf16 %v10415_v28  ;;  %v15432_v6 = vunpack.i.h.bf16 %v10415_v28  ;;  %v10595_v41 = vpack.i.bf16 %v10511_v55, %v10507_v27  ;;  %v6313_v28 = vpop.permute.xlu0 %6312 }
 0x31c   : >> { %v10599_v35 = vpack.i.bf16 %v10547_v61, %v10543_v42  ;;  %v15434_v13 = vunpack.i.l.bf16 %v10417_v16  ;;  %v15436_v51 = vunpack.i.h.bf16 %v10417_v16  ;;  %v6320_v17 = vunpack.i.h.bf16 %v6318_v54 }
 0x31d   : >> { %v1251_v11 = vsel %vm15414_vm0, %v15431_v58, %v6309_v26  ;;  %v1252_v2 = vsel %vm15433_vm1, %v15432_v6, %v6310_v7  ;;  %v6319_v4 = vunpack.i.l.bf16 %v6318_v54  ;;  %v6328_v7 = vpop.permute.xlu1 %6327  ;;  %vm15440_vm1 = vmmov %vm15414_vm0 }
 0x31e   : >> { %v1283_v19 = vmin.f32 %v10155_v37, %v1251_v11  ;;  %v1284_v50 = vmin.f32 %v10159_v43, %v1252_v2  ;;  %v1315_v56 = vmax.f32 %v10155_v37, %v1251_v11  ;;  %v1316_v24 = vmax.f32 %v10159_v43, %v1252_v2  ;;  %6367 = vrot.lane.b32.xlu1 %v10595_v41, %s8382_s29 }
 0x31f   : >> { %v1249_v23 = vsel %vm15435_vm2, %v15434_v13, %v6304_v33  ;;  %v1250_v36 = vsel %vm15437_vm5, %v15436_v51, %v6305_v45  ;;  %6362 = vrot.lane.b32.xlu0 %v10599_v35, %s8382_s29  ;;  %v15438_v45 = vunpack.i.l.bf16 %v10419_v44  ;;  %v15439_v11 = vunpack.i.h.bf16 %v10419_v44  ;;  %v6323_v51 = vpop.permute.xlu0 %6322  ;;  %vm15442_vm2 = vmmov %vm15414_vm0 }
 0x320   : >> { %v10615_v26 = vsel %vm8602_vm6, %v1283_v19, %v1315_v56  ;;  %v10619_v37 = vsel %vm8602_vm6, %v1284_v50, %v1316_v24  ;;  %v1281_v43 = vmin.f32 %v10169_v49, %v1249_v23  ;;  %v1282_v33 = vmin.f32 %v10165_v10, %v1250_v36  ;;  %vm15444_vm5 = vmmov %vm15414_vm0 }
 0x321   : >> { %v1313_v16 = vmax.f32 %v10169_v49, %v1249_v23  ;;  %v1314_v54 = vmax.f32 %v10165_v10, %v1250_v36  ;;  %v1255_v58 = vsel %vm15414_vm0, %v15438_v45, %v6319_v4  ;;  %v1256_v6 = vsel %vm15440_vm1, %v15439_v11, %v6320_v17  ;;  %vm15447_vm1 = vmmov %vm15414_vm0 }
 0x322   : >> { %v1287_v2 = vmin.f32 %v10207_v39, %v1255_v58  ;;  %v1288_v19 = vmin.f32 %v10211_v40, %v1256_v6  ;;  %v1319_v49 = vmax.f32 %v10207_v39, %v1255_v58  ;;  %v1320_v10 = vmax.f32 %v10211_v40, %v1256_v6 }
 0x323   : >> { %v10643_v50 = vsel %vm8602_vm6, %v1281_v43, %v1313_v16  ;;  %v10647_v56 = vsel %vm8602_vm6, %v1282_v33, %v1314_v54  ;;  %v6315_v44 = vunpack.i.h.bf16 %v6313_v28  ;;  %v6314_v24 = vunpack.i.l.bf16 %v6313_v28  ;;  %v6338_v16 = vpop.permute.xlu1 %6337 }
 0x324   : >> { %v10651_v13 = vsel %vm8602_vm6, %v1287_v2, %v1319_v49  ;;  %v10655_v23 = vsel %vm8602_vm6, %v1288_v19, %v1320_v10  ;;  %v10659_v39 = vpack.i.bf16 %v10571_v60, %v10567_v9  ;;  %v10663_v40 = vpack.i.bf16 %v10579_v31, %v10575_v0 }
 0x325   : >> { %v15441_v36 = vunpack.i.l.bf16 %v10421_v53  ;;  %v15443_v17 = vunpack.i.h.bf16 %v10421_v53  ;;  %v6330_v43 = vunpack.i.h.bf16 %v6328_v7  ;;  %v6329_v33 = vunpack.i.l.bf16 %v6328_v7 }
 0x326   : >> { %6377 = vrot.lane.b32.xlu1 %v10659_v39, %s8382_s29  ;;  %6372 = vrot.lane.b32.xlu0 %v10663_v40, %s8382_s29  ;;  %v15445_v53 = vunpack.i.l.bf16 %v10423_v29  ;;  %v15446_v6 = vunpack.i.h.bf16 %v10423_v29  ;;  %v6325_v19 = vunpack.i.h.bf16 %v6323_v51 }
 0x327   : >> { %v1253_v28 = vsel %vm15442_vm2, %v15441_v36, %v6314_v24  ;;  %v1254_v4 = vsel %vm15444_vm5, %v15443_v17, %v6315_v44  ;;  %v15448_v36 = vunpack.i.l.bf16 %v10425_v14  ;;  %vm15449_vm2 = vmmov %vm15414_vm0 }
 0x328   : >> { %v1285_v54 = vmin.f32 %v10231_v3, %v1253_v28  ;;  %v1286_v45 = vmin.f32 %v10219_v12, %v1254_v4  ;;  %v1317_v58 = vmax.f32 %v10231_v3, %v1253_v28  ;;  %v1318_v11 = vmax.f32 %v10219_v12, %v1254_v4  ;;  %vm15451_vm5 = vmmov %vm15414_vm0 }
 0x329   : >> { %v1259_v7 = vsel %vm15414_vm0, %v15445_v53, %v6329_v33  ;;  %v1260_v2 = vsel %vm15447_vm1, %v15446_v6, %v6330_v43  ;;  %v6324_v3 = vunpack.i.l.bf16 %v6323_v51  ;;  %v15450_v28 = vunpack.i.h.bf16 %v10425_v14  ;;  %vm15454_vm1 = vmmov %vm15414_vm0 }
 0x32a   : >> { %v10691_v12 = vsel %vm8602_vm6, %v1285_v54, %v1317_v58  ;;  %v10695_v49 = vsel %vm8602_vm6, %v1286_v45, %v1318_v11  ;;  %v1291_v10 = vmin.f32 %v10247_v25, %v1259_v7  ;;  %v1292_v44 = vmin.f32 %v10257_v48, %v1260_v2  ;;  %v6333_v54 = vpop.permute.xlu0 %6332 }
 0x32b   : >> { %v1323_v24 = vmax.f32 %v10247_v25, %v1259_v7  ;;  %v1324_v29 = vmax.f32 %v10257_v48, %v1260_v2  ;;  %v1257_v51 = vsel %vm15449_vm2, %v15448_v36, %v6324_v3  ;;  %v1258_v17 = vsel %vm15451_vm5, %v15450_v28, %v6325_v19  ;;  %vm15456_vm2 = vmmov %vm15414_vm0 }
 0x32c   : >> { %v1289_v4 = vmin.f32 %v10285_v62, %v1257_v51  ;;  %v1290_v43 = vmin.f32 %v10269_v8, %v1258_v17  ;;  %v1321_v33 = vmax.f32 %v10285_v62, %v1257_v51  ;;  %v1322_v25 = vmax.f32 %v10269_v8, %v1258_v17  ;;  %v6348_v62 = vpop.permute.xlu1 %6347  ;;  %vm15458_vm5 = vmmov %vm15414_vm0 }
 0x32d   : >> { %v10715_v48 = vsel %vm8602_vm6, %v1291_v10, %v1323_v24  ;;  %v10719_v45 = vsel %vm8602_vm6, %v1292_v44, %v1324_v29  ;;  %v10723_v14 = vpack.i.bf16 %v10619_v37, %v10615_v26  ;;  %v10727_v58 = vpack.i.bf16 %v10647_v56, %v10643_v50 }
 0x32e   : >> { %v10731_v8 = vsel %vm8602_vm6, %v1289_v4, %v1321_v33  ;;  %v10735_v11 = vsel %vm8602_vm6, %v1290_v43, %v1322_v25  ;;  %v6340_v53 = vunpack.i.h.bf16 %v6338_v16  ;;  %v6339_v7 = vunpack.i.l.bf16 %v6338_v16 }
 0x32f   : >> { %6387 = vrot.lane.b32.xlu1 %v10723_v14, %s8382_s29  ;;  %6382 = vrot.lane.b32.xlu0 %v10727_v58, %s8382_s29  ;;  %v6335_v6 = vunpack.i.h.bf16 %v6333_v54  ;;  %v6334_v2 = vunpack.i.l.bf16 %v6333_v54  ;;  %v6396_v19 = vpack.i.bf16 %v10655_v23, %v10651_v13  ;;  %v6391_v3 = vpack.i.bf16 %v10695_v49, %v10691_v12 }
 0x330   : >> { %v15452_v10 = vunpack.i.l.bf16 %v10427_v15  ;;  %v15453_v16 = vunpack.i.h.bf16 %v10427_v15  ;;  %v6350_v29 = vunpack.i.h.bf16 %v6348_v62  ;;  %v6349_v36 = vunpack.i.l.bf16 %v6348_v62 }
 0x331   : >> { %v15455_v43 = vunpack.i.l.bf16 %v10429_v21  ;;  %v15457_v15 = vunpack.i.h.bf16 %v10429_v21  ;;  %v15459_v54 = vunpack.i.l.bf16 %v10439_v1 }
 0x332   : >> { %v1263_v44 = vsel %vm15414_vm0, %v15452_v10, %v6339_v7  ;;  %v1264_v24 = vsel %vm15454_vm1, %v15453_v16, %v6340_v53  ;;  %v15460_v53 = vunpack.i.h.bf16 %v10439_v1  ;;  %vm15461_vm1 = vmmov %vm15414_vm0 }
 0x333   : >> { %v1295_v51 = vmin.f32 %v10304_v46, %v1263_v44  ;;  %v1296_v28 = vmin.f32 %v10311_v38, %v1264_v24  ;;  %v1327_v17 = vmax.f32 %v10304_v46, %v1263_v44  ;;  %v1328_v4 = vmax.f32 %v10311_v38, %v1264_v24  ;;  %v6343_v38 = vpop.permute.xlu0 %6342  ;;  %6397 = vrot.lane.b32.xlu1 %v6396_v19, %s8382_s29 }
 0x334   : >> { %v1261_v33 = vsel %vm15456_vm2, %v15455_v43, %v6334_v2  ;;  %v1262_v25 = vsel %vm15458_vm5, %v15457_v15, %v6335_v6  ;;  %v1267_v62 = vsel %vm15414_vm0, %v15459_v54, %v6349_v36  ;;  %v1268_v46 = vsel %vm15461_vm1, %v15460_v53, %v6350_v29  ;;  %6392 = vrot.lane.b32.xlu0 %v6391_v3, %s8382_s29  ;;  %vm15464_vm2 = vmmov %vm15414_vm0  ;;  %v15467_v15 = vld [vmem:[#allocation64_spill] sm:$0xff]  ;;  %v15468_v54 = vld [vmem:[#allocation67_spill] sm:$0xff] }
 0x335   : >> { %v10775_v7 = vsel %vm8602_vm6, %v1295_v51, %v1327_v17  ;;  %v10779_v21 = vsel %vm8602_vm6, %v1296_v28, %v1328_v4  ;;  %v1293_v6 = vmin.f32 %v10317_v57, %v1261_v33  ;;  %v1294_v2 = vmin.f32 %v10323_v47, %v1262_v25  ;;  %v15462_v4 = vld [vmem:[#allocation68_spill] sm:$0xff]  ;;  %vm15466_vm5 = vmmov %vm15414_vm0 }
 0x336   : >> { %v1325_v1 = vmax.f32 %v10317_v57, %v1261_v33  ;;  %v1326_v10 = vmax.f32 %v10323_v47, %v1262_v25  ;;  %v1299_v44 = vmin.f32 %v10355_v59, %v1267_v62  ;;  %v1300_v16 = vmin.f32 %v10359_v34, %v1268_v46 }
 0x337   : >> { %v1331_v24 = vmax.f32 %v10355_v59, %v1267_v62  ;;  %v1332_v29 = vmax.f32 %v10359_v34, %v1268_v46  ;;  %v6345_v36 = vunpack.i.h.bf16 %v6343_v38  ;;  %v6344_v51 = vunpack.i.l.bf16 %v6343_v38 }
 0x338   : >> { %v10793_v28 = vsel %vm8602_vm6, %v1293_v6, %v1325_v1  ;;  %v10797_v57 = vsel %vm8602_vm6, %v1294_v2, %v1326_v10  ;;  %v6406_v47 = vpack.i.bf16 %v10719_v45, %v10715_v48  ;;  %v6401_v17 = vpack.i.bf16 %v10735_v11, %v10731_v8 }
 0x339   : >> { %v15463_v59 = vunpack.i.l.bf16 %v15462_v4  ;;  %v15465_v43 = vunpack.i.h.bf16 %v15462_v4  ;;  %v10818_v38 = vsel %vm8602_vm6, %v1299_v44, %v1331_v24  ;;  %v10822_v6 = vsel %vm8602_vm6, %v1300_v16, %v1332_v29 }
 0x33a   : >> { %6407 = vrot.lane.b32.xlu1 %v6406_v47, %s8382_s29  ;;  %6402 = vrot.lane.b32.xlu0 %v6401_v17, %s8382_s29  ;;  %v6416_v2 = vpack.i.bf16 %v10779_v21, %v10775_v7  ;;  %v6411_v1 = vpack.i.bf16 %v10797_v57, %v10793_v28  ;;  %v6426_v16 = vpack.i.bf16 %v10822_v6, %v10818_v38 }
 0x33b   : >> { %v1265_v34 = vsel %vm15464_vm2, %v15463_v59, %v6344_v51  ;;  %v1266_v33 = vsel %vm15466_vm5, %v15465_v43, %v6345_v36 }
 0x33c   : >> { %v1297_v25 = vmin.f32 %v15467_v15, %v1265_v34  ;;  %v1298_v62 = vmin.f32 %v15468_v54, %v1266_v33  ;;  %v1329_v53 = vmax.f32 %v15467_v15, %v1265_v34  ;;  %v1330_v46 = vmax.f32 %v15468_v54, %v1266_v33 }
 0x33e   : >> { %v10831_v10 = vsel %vm8602_vm6, %v1297_v25, %v1329_v53  ;;  %v10835_v44 = vsel %vm8602_vm6, %v1298_v62, %v1330_v46  ;;  %6417 = vrot.lane.b32.xlu1 %v6416_v2, %s8382_s29  ;;  %6412 = vrot.lane.b32.xlu0 %v6411_v1, %s8382_s29 }
 0x33f   : >> { %15469 = vst [vmem:[#allocation66_spill] sm:$0xff] %v10831_v10  ;;  %15470 = vst [vmem:[#allocation65_spill] sm:$0xff] %v10835_v44  ;;  %v6421_v24 = vpack.i.bf16 %v10835_v44, %v10831_v10  ;;  %v15472_v44 = vld [vmem:[#allocation11_spill] sm:$0xff] }
 0x340   : >> { %vm15473_vm0 = vcmp.eq.s32.totalorder %v15472_v44, 0 }
 0x341   : >> { %vm15474_vm1 = vmmov %vm15473_vm0 }
 0x342   : >> { %6427 = vrot.lane.b32.xlu1 %v6426_v16, %s8382_s29  ;;  %6422 = vrot.lane.b32.xlu0 %v6421_v24, %s8382_s29  ;;  %vm15475_vm2 = vmmov %vm15473_vm0 }
 0x343   : >> { %vm15476_vm5 = vmmov %vm15473_vm0 }
 0x346   : >> { %6437 = vrot.lane.b32.xlu1 %v10559_v5, %s8383_s30  ;;  %6432 = vrot.lane.b32.xlu0 %v10563_v18, %s8383_s30 }
 0x34a   : >> { %6447 = vrot.lane.b32.xlu1 %v10595_v41, %s8383_s30  ;;  %6442 = vrot.lane.b32.xlu0 %v10599_v35, %s8383_s30 }
 0x34e   : >> { %6457 = vrot.lane.b32.xlu1 %v10659_v39, %s8383_s30  ;;  %6452 = vrot.lane.b32.xlu0 %v10663_v40, %s8383_s30 }
 0x352   : >> { %6467 = vrot.lane.b32.xlu1 %v10723_v14, %s8383_s30  ;;  %6462 = vrot.lane.b32.xlu0 %v10727_v58, %s8383_s30 }
 0x356   : >> { %6477 = vrot.lane.b32.xlu1 %v6396_v19, %s8383_s30  ;;  %6472 = vrot.lane.b32.xlu0 %v6391_v3, %s8383_s30 }
 0x35a   : >> { %6487 = vrot.lane.b32.xlu1 %v6406_v47, %s8383_s30  ;;  %6482 = vrot.lane.b32.xlu0 %v6401_v17, %s8383_s30 }
 0x35e   : >> { %6497 = vrot.lane.b32.xlu1 %v6416_v2, %s8383_s30  ;;  %6492 = vrot.lane.b32.xlu0 %v6411_v1, %s8383_s30 }
 0x362   : >> { %6507 = vrot.lane.b32.xlu1 %v6426_v16, %s8383_s30  ;;  %6502 = vrot.lane.b32.xlu0 %v6421_v24, %s8383_s30 }
 0x38c   : >> { %v6358_v5 = vpop.permute.xlu1 %6357 }
 0x38d   : >> { %v10869_v18 = vpop.permute.xlu0 %6352  ;;  %v6360_v17 = vunpack.i.h.bf16 %v6358_v5  ;;  %v6359_v4 = vunpack.i.l.bf16 %v6358_v5 }
 0x38e   : >> { %v6355_v59 = vunpack.i.h.bf16 %v10869_v18  ;;  %v6354_v34 = vunpack.i.l.bf16 %v10869_v18 }
 0x390   : >> { %v10871_v41 = vpop.permute.xlu1 %6367 }
 0x391   : >> { %v10873_v35 = vpop.permute.xlu0 %6362  ;;  %v6370_v43 = vunpack.i.h.bf16 %v10871_v41  ;;  %v6369_v33 = vunpack.i.l.bf16 %v10871_v41 }
 0x398   : >> { %v10875_v39 = vpop.permute.xlu1 %6377  ;;  %v10877_v40 = vpop.permute.xlu0 %6372 }
 0x3a1   : >> { %v10879_v14 = vpop.permute.xlu1 %6387  ;;  %v10881_v58 = vpop.permute.xlu0 %6382 }
 0x3a5   : >> { %v10883_v19 = vpop.permute.xlu1 %6397 }
 0x3a6   : >> { %v10885_v3 = vpop.permute.xlu0 %6392 }
 0x3ac   : >> { %v10887_v29 = vpop.permute.xlu1 %6407  ;;  %v10889_v36 = vpop.permute.xlu0 %6402 }
 0x3b0   : >> { %v10891_v51 = vpop.permute.xlu1 %6417  ;;  %v10893_v47 = vpop.permute.xlu0 %6412 }
 0x3b4   : >> { %v10903_v53 = vpop.permute.xlu1 %6427  ;;  %v10909_v24 = vpop.permute.xlu0 %6422 }
 0x3b5   : >> { %15471 = vst [vmem:[#allocation68_spill] sm:$0xff] %v10909_v24 }
 0x3b8   : >> { %v6438_v25 = vpop.permute.xlu1 %6437  ;;  %v6433_v46 = vpop.permute.xlu0 %6432 }
 0x3b9   : >> { %v6440_v62 = vunpack.i.h.bf16 %v6438_v25  ;;  %v6439_v63 = vunpack.i.l.bf16 %v6438_v25  ;;  %v6435_v52 = vunpack.i.h.bf16 %v6433_v46  ;;  %v6434_v16 = vunpack.i.l.bf16 %v6433_v46 }
 0x3bb   : >> { %v1497_v18 = vsel %vm15473_vm0, %v6359_v4, %v6439_v63  ;;  %v1498_v41 = vsel %vm15474_vm1, %v6360_v17, %v6440_v62  ;;  %v1495_v46 = vsel %vm15475_vm2, %v6354_v34, %v6434_v16  ;;  %v1496_v15 = vsel %vm15476_vm5, %v6355_v59, %v6435_v52  ;;  %vm15478_vm1 = vmmov %vm15473_vm0 }
 0x3bc   : >> { %v1529_v54 = vmin.f32 %v10479_v22, %v1497_v18  ;;  %v1530_v25 = vmin.f32 %v10483_v32, %v1498_v41  ;;  %v1561_v2 = vmax.f32 %v10479_v22, %v1497_v18  ;;  %v1562_v1 = vmax.f32 %v10483_v32, %v1498_v41  ;;  %v6448_v10 = vpop.permute.xlu1 %6447  ;;  %v6443_v4 = vpop.permute.xlu0 %6442  ;;  %vm15480_vm2 = vmmov %vm15473_vm0 }
 0x3bd   : >> { %v6450_v5 = vunpack.i.h.bf16 %v6448_v10  ;;  %v6449_v63 = vunpack.i.l.bf16 %v6448_v10  ;;  %v1527_v22 = vmin.f32 %v10499_v30, %v1495_v46  ;;  %v1528_v32 = vmin.f32 %v10503_v20, %v1496_v15  ;;  %vm15482_vm5 = vmmov %vm15473_vm0 }
 0x3be   : >> { %v10943_v17 = vsel %vm8608_vm7, %v1529_v54, %v1561_v2  ;;  %v10947_v62 = vsel %vm8608_vm7, %v1530_v25, %v1562_v1  ;;  %v1559_v34 = vmax.f32 %v10499_v30, %v1495_v46  ;;  %v1560_v16 = vmax.f32 %v10503_v20, %v1496_v15 }
 0x3bf   : >> { %v1501_v52 = vsel %vm15473_vm0, %v6369_v33, %v6449_v63  ;;  %v1502_v10 = vsel %vm15478_vm1, %v6370_v43, %v6450_v5  ;;  %v6445_v33 = vunpack.i.h.bf16 %v6443_v4  ;;  %v6444_v15 = vunpack.i.l.bf16 %v6443_v4  ;;  %vm15485_vm1 = vmmov %vm15473_vm0 }
 0x3c0   : >> { %v1533_v59 = vmin.f32 %v10507_v27, %v1501_v52  ;;  %v1534_v54 = vmin.f32 %v10511_v55, %v1502_v10  ;;  %v1565_v2 = vmax.f32 %v10507_v27, %v1501_v52  ;;  %v1566_v1 = vmax.f32 %v10511_v55, %v1502_v10  ;;  %v6458_v18 = vpop.permute.xlu1 %6457  ;;  %v6453_v43 = vpop.permute.xlu0 %6452 }
 0x3c1   : >> { %v10963_v30 = vsel %vm8608_vm7, %v1527_v22, %v1559_v34  ;;  %v10967_v20 = vsel %vm8608_vm7, %v1528_v32, %v1560_v16  ;;  %v6460_v55 = vunpack.i.h.bf16 %v6458_v18  ;;  %v6459_v41 = vunpack.i.l.bf16 %v6458_v18 }
 0x3c2   : >> { %v10971_v5 = vsel %vm8608_vm7, %v1533_v59, %v1565_v2  ;;  %v10975_v27 = vsel %vm8608_vm7, %v1534_v54, %v1566_v1  ;;  %v15479_v25 = vunpack.i.l.bf16 %v10873_v35  ;;  %v15481_v63 = vunpack.i.h.bf16 %v10873_v35 }
 0x3c3   : >> { %v6455_v22 = vunpack.i.h.bf16 %v6453_v43  ;;  %v6454_v32 = vunpack.i.l.bf16 %v6453_v43  ;;  %v15483_v54 = vunpack.i.l.bf16 %v10875_v39  ;;  %v15484_v35 = vunpack.i.h.bf16 %v10875_v39 }
 0x3c4   : >> { %v1499_v46 = vsel %vm15480_vm2, %v15479_v25, %v6444_v15  ;;  %v1500_v4 = vsel %vm15482_vm5, %v15481_v63, %v6445_v33  ;;  %v6468_v59 = vpop.permute.xlu1 %6467  ;;  %v15486_v18 = vunpack.i.l.bf16 %v10877_v40  ;;  %vm15487_vm2 = vmmov %vm15473_vm0 }
 0x3c5   : >> { %v1531_v34 = vmin.f32 %v10543_v42, %v1499_v46  ;;  %v1532_v16 = vmin.f32 %v10547_v61, %v1500_v4  ;;  %v1563_v52 = vmax.f32 %v10543_v42, %v1499_v46  ;;  %v1564_v10 = vmax.f32 %v10547_v61, %v1500_v4  ;;  %vm15489_vm5 = vmmov %vm15473_vm0 }
 0x3c6   : >> { %v1505_v2 = vsel %vm15473_vm0, %v15483_v54, %v6459_v41  ;;  %v1506_v1 = vsel %vm15485_vm1, %v15484_v35, %v6460_v55  ;;  %v1503_v33 = vsel %vm15487_vm2, %v15486_v18, %v6454_v32  ;;  %v15488_v42 = vunpack.i.h.bf16 %v10877_v40  ;;  %v6463_v41 = vpop.permute.xlu0 %6462  ;;  %vm15492_vm1 = vmmov %vm15473_vm0 }
 0x3c7   : >> { %v11007_v15 = vsel %vm8608_vm7, %v1531_v34, %v1563_v52  ;;  %v11011_v39 = vsel %vm8608_vm7, %v1532_v16, %v1564_v10  ;;  %v1537_v43 = vmin.f32 %v10567_v9, %v1505_v2  ;;  %v1538_v55 = vmin.f32 %v10571_v60, %v1506_v1  ;;  %vm15494_vm2 = vmmov %vm15473_vm0 }
 0x3c8   : >> { %v1504_v61 = vsel %vm15489_vm5, %v15488_v42, %v6455_v22  ;;  %v1569_v25 = vmax.f32 %v10567_v9, %v1505_v2  ;;  %v1570_v40 = vmax.f32 %v10571_v60, %v1506_v1  ;;  %v1535_v46 = vmin.f32 %v10575_v0, %v1503_v33  ;;  %v6478_v16 = vpop.permute.xlu1 %6477  ;;  %vm15496_vm5 = vmmov %vm15473_vm0 }
 0x3c9   : >> { %v1536_v63 = vmin.f32 %v10579_v31, %v1504_v61  ;;  %v1567_v4 = vmax.f32 %v10575_v0, %v1503_v33  ;;  %v1568_v22 = vmax.f32 %v10579_v31, %v1504_v61  ;;  %v11023_v32 = vpack.i.bf16 %v10947_v62, %v10943_v17 }
 0x3ca   : >> { %v11027_v34 = vpack.i.bf16 %v10967_v20, %v10963_v30  ;;  %v11031_v9 = vsel %vm8608_vm7, %v1537_v43, %v1569_v25  ;;  %v11035_v60 = vsel %vm8608_vm7, %v1538_v55, %v1570_v40  ;;  %v6470_v0 = vunpack.i.h.bf16 %v6468_v59 }
 0x3cb   : >> { %v6469_v52 = vunpack.i.l.bf16 %v6468_v59  ;;  %v11039_v31 = vsel %vm8608_vm7, %v1535_v46, %v1567_v4  ;;  %v11043_v10 = vsel %vm8608_vm7, %v1536_v63, %v1568_v22  ;;  %6517 = vrot.lane.b32.xlu1 %v11023_v32, %s8380_s14  ;;  %v6465_v54 = vunpack.i.h.bf16 %v6463_v41 }
 0x3cc   : >> { %6512 = vrot.lane.b32.xlu0 %v11027_v34, %s8380_s14  ;;  %v6464_v2 = vunpack.i.l.bf16 %v6463_v41  ;;  %v15490_v35 = vunpack.i.l.bf16 %v10879_v14  ;;  %v15491_v1 = vunpack.i.h.bf16 %v10879_v14  ;;  %v11059_v33 = vpack.i.bf16 %v10975_v27, %v10971_v5  ;;  %v6473_v14 = vpop.permute.xlu0 %6472 }
 0x3cd   : >> { %v11063_v42 = vpack.i.bf16 %v11011_v39, %v11007_v15  ;;  %v15493_v25 = vunpack.i.l.bf16 %v10881_v58  ;;  %v15495_v46 = vunpack.i.h.bf16 %v10881_v58  ;;  %v6480_v4 = vunpack.i.h.bf16 %v6478_v16 }
 0x3ce   : >> { %v1509_v59 = vsel %vm15473_vm0, %v15490_v35, %v6469_v52  ;;  %v1510_v18 = vsel %vm15492_vm1, %v15491_v1, %v6470_v0  ;;  %v6479_v22 = vunpack.i.l.bf16 %v6478_v16  ;;  %v6488_v0 = vpop.permute.xlu1 %6487  ;;  %vm15499_vm1 = vmmov %vm15473_vm0 }
 0x3cf   : >> { %v1541_v61 = vmin.f32 %v10615_v26, %v1509_v59  ;;  %v1542_v43 = vmin.f32 %v10619_v37, %v1510_v18  ;;  %v1573_v55 = vmax.f32 %v10615_v26, %v1509_v59  ;;  %v1574_v41 = vmax.f32 %v10619_v37, %v1510_v18  ;;  %6527 = vrot.lane.b32.xlu1 %v11059_v33, %s8380_s14 }
 0x3d0   : >> { %v1507_v40 = vsel %vm15494_vm2, %v15493_v25, %v6464_v2  ;;  %v1508_v63 = vsel %vm15496_vm5, %v15495_v46, %v6465_v54  ;;  %6522 = vrot.lane.b32.xlu0 %v11063_v42, %s8380_s14  ;;  %v15497_v54 = vunpack.i.l.bf16 %v10883_v19  ;;  %v15498_v59 = vunpack.i.h.bf16 %v10883_v19  ;;  %v6483_v46 = vpop.permute.xlu0 %6482  ;;  %vm15501_vm2 = vmmov %vm15473_vm0 }
 0x3d1   : >> { %v11079_v52 = vsel %vm8608_vm7, %v1541_v61, %v1573_v55  ;;  %v11083_v26 = vsel %vm8608_vm7, %v1542_v43, %v1574_v41  ;;  %v1539_v37 = vmin.f32 %v10643_v50, %v1507_v40  ;;  %v1540_v2 = vmin.f32 %v10647_v56, %v1508_v63  ;;  %vm15503_vm5 = vmmov %vm15473_vm0 }
 0x3d2   : >> { %v1571_v58 = vmax.f32 %v10643_v50, %v1507_v40  ;;  %v1572_v16 = vmax.f32 %v10647_v56, %v1508_v63  ;;  %v1513_v35 = vsel %vm15473_vm0, %v15497_v54, %v6479_v22  ;;  %v1514_v1 = vsel %vm15499_vm1, %v15498_v59, %v6480_v4  ;;  %vm15506_vm1 = vmmov %vm15473_vm0 }
 0x3d3   : >> { %v1545_v18 = vmin.f32 %v10651_v13, %v1513_v35  ;;  %v1546_v61 = vmin.f32 %v10655_v23, %v1514_v1  ;;  %v1577_v50 = vmax.f32 %v10651_v13, %v1513_v35  ;;  %v1578_v56 = vmax.f32 %v10655_v23, %v1514_v1 }
 0x3d4   : >> { %v11107_v43 = vsel %vm8608_vm7, %v1539_v37, %v1571_v58  ;;  %v11111_v55 = vsel %vm8608_vm7, %v1540_v2, %v1572_v16  ;;  %v6475_v19 = vunpack.i.h.bf16 %v6473_v14  ;;  %v6474_v41 = vunpack.i.l.bf16 %v6473_v14  ;;  %v6498_v58 = vpop.permute.xlu1 %6497 }
 0x3d5   : >> { %v11115_v25 = vsel %vm8608_vm7, %v1545_v18, %v1577_v50  ;;  %v11119_v40 = vsel %vm8608_vm7, %v1546_v61, %v1578_v56  ;;  %v11123_v13 = vpack.i.bf16 %v11035_v60, %v11031_v9  ;;  %v11127_v23 = vpack.i.bf16 %v11043_v10, %v11039_v31 }
 0x3d6   : >> { %v15500_v63 = vunpack.i.l.bf16 %v10885_v3  ;;  %v15502_v4 = vunpack.i.h.bf16 %v10885_v3  ;;  %v6490_v37 = vunpack.i.h.bf16 %v6488_v0  ;;  %v6489_v2 = vunpack.i.l.bf16 %v6488_v0 }
 0x3d7   : >> { %6537 = vrot.lane.b32.xlu1 %v11123_v13, %s8380_s14  ;;  %6532 = vrot.lane.b32.xlu0 %v11127_v23, %s8380_s14  ;;  %v15504_v3 = vunpack.i.l.bf16 %v10887_v29  ;;  %v15505_v1 = vunpack.i.h.bf16 %v10887_v29  ;;  %v6485_v61 = vunpack.i.h.bf16 %v6483_v46 }
 0x3d8   : >> { %v1511_v14 = vsel %vm15501_vm2, %v15500_v63, %v6474_v41  ;;  %v1512_v22 = vsel %vm15503_vm5, %v15502_v4, %v6475_v19  ;;  %v15507_v63 = vunpack.i.l.bf16 %v10889_v36  ;;  %vm15508_vm2 = vmmov %vm15473_vm0 }
 0x3d9   : >> { %v1543_v16 = vmin.f32 %v10691_v12, %v1511_v14  ;;  %v1544_v54 = vmin.f32 %v10695_v49, %v1512_v22  ;;  %v1575_v35 = vmax.f32 %v10691_v12, %v1511_v14  ;;  %v1576_v59 = vmax.f32 %v10695_v49, %v1512_v22  ;;  %vm15510_vm5 = vmmov %vm15473_vm0 }
 0x3da   : >> { %v1517_v0 = vsel %vm15473_vm0, %v15504_v3, %v6489_v2  ;;  %v1518_v18 = vsel %vm15506_vm1, %v15505_v1, %v6490_v37  ;;  %v6484_v12 = vunpack.i.l.bf16 %v6483_v46  ;;  %v15509_v14 = vunpack.i.h.bf16 %v10889_v36  ;;  %vm15513_vm1 = vmmov %vm15473_vm0 }
 0x3db   : >> { %v11155_v49 = vsel %vm8608_vm7, %v1543_v16, %v1575_v35  ;;  %v11159_v50 = vsel %vm8608_vm7, %v1544_v54, %v1576_v59  ;;  %v1549_v56 = vmin.f32 %v10715_v48, %v1517_v0  ;;  %v1550_v19 = vmin.f32 %v10719_v45, %v1518_v18  ;;  %v6493_v16 = vpop.permute.xlu0 %6492 }
 0x3dc   : >> { %v1581_v41 = vmax.f32 %v10715_v48, %v1517_v0  ;;  %v1582_v29 = vmax.f32 %v10719_v45, %v1518_v18  ;;  %v1515_v46 = vsel %vm15508_vm2, %v15507_v63, %v6484_v12  ;;  %v1516_v4 = vsel %vm15510_vm5, %v15509_v14, %v6485_v61  ;;  %vm15515_vm2 = vmmov %vm15473_vm0 }
 0x3dd   : >> { %v1547_v22 = vmin.f32 %v10731_v8, %v1515_v46  ;;  %v1548_v37 = vmin.f32 %v10735_v11, %v1516_v4  ;;  %v1579_v2 = vmax.f32 %v10731_v8, %v1515_v46  ;;  %v1580_v48 = vmax.f32 %v10735_v11, %v1516_v4  ;;  %v6508_v8 = vpop.permute.xlu1 %6507  ;;  %vm15517_vm5 = vmmov %vm15473_vm0 }
 0x3de   : >> { %v11179_v45 = vsel %vm8608_vm7, %v1549_v56, %v1581_v41  ;;  %v11183_v54 = vsel %vm8608_vm7, %v1550_v19, %v1582_v29  ;;  %v11187_v36 = vpack.i.bf16 %v11083_v26, %v11079_v52  ;;  %v11191_v35 = vpack.i.bf16 %v11111_v55, %v11107_v43 }
 0x3df   : >> { %v11195_v11 = vsel %vm8608_vm7, %v1547_v22, %v1579_v2  ;;  %v11199_v59 = vsel %vm8608_vm7, %v1548_v37, %v1580_v48  ;;  %v6500_v3 = vunpack.i.h.bf16 %v6498_v58  ;;  %v6499_v0 = vunpack.i.l.bf16 %v6498_v58 }
 0x3e0   : >> { %6547 = vrot.lane.b32.xlu1 %v11187_v36, %s8380_s14  ;;  %6542 = vrot.lane.b32.xlu0 %v11191_v35, %s8380_s14  ;;  %v6495_v1 = vunpack.i.h.bf16 %v6493_v16  ;;  %v6494_v18 = vunpack.i.l.bf16 %v6493_v16  ;;  %v6556_v61 = vpack.i.bf16 %v11119_v40, %v11115_v25  ;;  %v6551_v12 = vpack.i.bf16 %v11159_v50, %v11155_v49 }
 0x3e1   : >> { %v15511_v56 = vunpack.i.l.bf16 %v10891_v51  ;;  %v15512_v58 = vunpack.i.h.bf16 %v10891_v51  ;;  %v6510_v29 = vunpack.i.h.bf16 %v6508_v8  ;;  %v6509_v63 = vunpack.i.l.bf16 %v6508_v8 }
 0x3e2   : >> { %v15514_v37 = vunpack.i.l.bf16 %v10893_v47  ;;  %v15516_v51 = vunpack.i.h.bf16 %v10893_v47  ;;  %v15518_v16 = vunpack.i.l.bf16 %v10903_v53 }
 0x3e3   : >> { %v1521_v19 = vsel %vm15473_vm0, %v15511_v56, %v6499_v0  ;;  %v1522_v41 = vsel %vm15513_vm1, %v15512_v58, %v6500_v3  ;;  %v15519_v3 = vunpack.i.h.bf16 %v10903_v53  ;;  %vm15520_vm1 = vmmov %vm15473_vm0 }
 0x3e4   : >> { %v1553_v46 = vmin.f32 %v10775_v7, %v1521_v19  ;;  %v1554_v14 = vmin.f32 %v10779_v21, %v1522_v41  ;;  %v1585_v4 = vmax.f32 %v10775_v7, %v1521_v19  ;;  %v1586_v22 = vmax.f32 %v10779_v21, %v1522_v41  ;;  %v6503_v21 = vpop.permute.xlu0 %6502  ;;  %6557 = vrot.lane.b32.xlu1 %v6556_v61, %s8380_s14 }
 0x3e5   : >> { %v1519_v2 = vsel %vm15515_vm2, %v15514_v37, %v6494_v18  ;;  %v1520_v48 = vsel %vm15517_vm5, %v15516_v51, %v6495_v1  ;;  %v1525_v8 = vsel %vm15473_vm0, %v15518_v16, %v6509_v63  ;;  %v1526_v7 = vsel %vm15520_vm1, %v15519_v3, %v6510_v29  ;;  %6552 = vrot.lane.b32.xlu0 %v6551_v12, %s8380_s14  ;;  %vm15526_vm2 = vmmov %vm15473_vm0  ;;  %v15529_v51 = vld [vmem:[#allocation66_spill] sm:$0xff]  ;;  %v15530_v16 = vld [vmem:[#allocation65_spill] sm:$0xff] }
 0x3e6   : >> { %v11239_v0 = vsel %vm8608_vm7, %v1553_v46, %v1585_v4  ;;  %v11243_v47 = vsel %vm8608_vm7, %v1554_v14, %v1586_v22  ;;  %v1551_v1 = vmin.f32 %v10793_v28, %v1519_v2  ;;  %v1552_v18 = vmin.f32 %v10797_v57, %v1520_v48  ;;  %v15524_v22 = vld [vmem:[#allocation68_spill] sm:$0xff]  ;;  %vm15528_vm5 = vmmov %vm15473_vm0 }
 0x3e7   : >> { %15521 = vst [vmem:[#allocation64_spill] sm:$0xff] %v11243_v47  ;;  %v1583_v53 = vmax.f32 %v10793_v28, %v1519_v2  ;;  %v1584_v56 = vmax.f32 %v10797_v57, %v1520_v48  ;;  %v1557_v19 = vmin.f32 %v10818_v38, %v1525_v8  ;;  %v1558_v58 = vmin.f32 %v10822_v6, %v1526_v7 }
 0x3e8   : >> { %v1589_v41 = vmax.f32 %v10818_v38, %v1525_v8  ;;  %v1590_v29 = vmax.f32 %v10822_v6, %v1526_v7  ;;  %v6505_v63 = vunpack.i.h.bf16 %v6503_v21  ;;  %v6504_v46 = vunpack.i.l.bf16 %v6503_v21 }
 0x3e9   : >> { %v11257_v14 = vsel %vm8608_vm7, %v1551_v1, %v1583_v53  ;;  %v11261_v28 = vsel %vm8608_vm7, %v1552_v18, %v1584_v56  ;;  %v6566_v57 = vpack.i.bf16 %v11183_v54, %v11179_v45  ;;  %v6561_v4 = vpack.i.bf16 %v11199_v59, %v11195_v11 }
 0x3ea   : >> { %15522 = vst [vmem:[#allocation67_spill] sm:$0xff] %v11257_v14  ;;  %15523 = vst [vmem:[#allocation69_spill] sm:$0xff] %v11261_v28  ;;  %v15525_v38 = vunpack.i.l.bf16 %v15524_v22  ;;  %v15527_v37 = vunpack.i.h.bf16 %v15524_v22  ;;  %v11282_v21 = vsel %vm8608_vm7, %v1557_v19, %v1589_v41  ;;  %v11286_v1 = vsel %vm8608_vm7, %v1558_v58, %v1590_v29 }
 0x3eb   : >> { %6567 = vrot.lane.b32.xlu1 %v6566_v57, %s8380_s14  ;;  %15531 = vst [vmem:[#allocation68_spill] sm:$0xff] %v11282_v21  ;;  %15532 = vst [vmem:[#allocation66_spill] sm:$0xff] %v11286_v1  ;;  %6562 = vrot.lane.b32.xlu0 %v6561_v4, %s8380_s14  ;;  %v6576_v18 = vpack.i.bf16 %v11243_v47, %v11239_v0  ;;  %v6571_v53 = vpack.i.bf16 %v11261_v28, %v11257_v14 }
 0x3ec   : >> { %v1523_v6 = vsel %vm15526_vm2, %v15525_v38, %v6504_v46  ;;  %v1524_v2 = vsel %vm15528_vm5, %v15527_v37, %v6505_v63  ;;  %v6586_v58 = vpack.i.bf16 %v11286_v1, %v11282_v21 }
 0x3ed   : >> { %v1555_v48 = vmin.f32 %v15529_v51, %v1523_v6  ;;  %v1556_v8 = vmin.f32 %v15530_v16, %v1524_v2  ;;  %v1587_v3 = vmax.f32 %v15529_v51, %v1523_v6  ;;  %v1588_v7 = vmax.f32 %v15530_v16, %v1524_v2 }
 0x3ef   : >> { %v11295_v56 = vsel %vm8608_vm7, %v1555_v48, %v1587_v3  ;;  %v11299_v19 = vsel %vm8608_vm7, %v1556_v8, %v1588_v7  ;;  %6577 = vrot.lane.b32.xlu1 %v6576_v18, %s8380_s14  ;;  %6572 = vrot.lane.b32.xlu0 %v6571_v53, %s8380_s14 }
 0x3f0   : >> { %15533 = vst [vmem:[#allocation65_spill] sm:$0xff] %v11295_v56  ;;  %15534 = vst [vmem:[#allocation70_spill] sm:$0xff] %v11299_v19  ;;  %v6581_v41 = vpack.i.bf16 %v11299_v19, %v11295_v56  ;;  %v15535_v19 = vld [vmem:[#allocation8_spill] sm:$0xff] }
 0x3f1   : >> { %vm15536_vm0 = vcmp.eq.s32.totalorder %v15535_v19, 0 }
 0x3f2   : >> { %vm15537_vm1 = vmmov %vm15536_vm0 }
 0x3f3   : >> { %6587 = vrot.lane.b32.xlu1 %v6586_v58, %s8380_s14  ;;  %6582 = vrot.lane.b32.xlu0 %v6581_v41, %s8380_s14  ;;  %vm15538_vm2 = vmmov %vm15536_vm0 }
 0x3f4   : >> { %vm15539_vm5 = vmmov %vm15536_vm0 }
 0x3f7   : >> { %6597 = vrot.lane.b32.xlu1 %v11023_v32, %s8381_s25  ;;  %6592 = vrot.lane.b32.xlu0 %v11027_v34, %s8381_s25 }
 0x3fb   : >> { %6607 = vrot.lane.b32.xlu1 %v11059_v33, %s8381_s25  ;;  %6602 = vrot.lane.b32.xlu0 %v11063_v42, %s8381_s25 }
 0x3ff   : >> { %6617 = vrot.lane.b32.xlu1 %v11123_v13, %s8381_s25  ;;  %6612 = vrot.lane.b32.xlu0 %v11127_v23, %s8381_s25 }
 0x403   : >> { %6627 = vrot.lane.b32.xlu1 %v11187_v36, %s8381_s25  ;;  %6622 = vrot.lane.b32.xlu0 %v11191_v35, %s8381_s25 }
 0x407   : >> { %6637 = vrot.lane.b32.xlu1 %v6556_v61, %s8381_s25  ;;  %6632 = vrot.lane.b32.xlu0 %v6551_v12, %s8381_s25 }
 0x40b   : >> { %6647 = vrot.lane.b32.xlu1 %v6566_v57, %s8381_s25  ;;  %6642 = vrot.lane.b32.xlu0 %v6561_v4, %s8381_s25 }
 0x40f   : >> { %6657 = vrot.lane.b32.xlu1 %v6576_v18, %s8381_s25  ;;  %6652 = vrot.lane.b32.xlu0 %v6571_v53, %s8381_s25 }
 0x413   : >> { %6667 = vrot.lane.b32.xlu1 %v6586_v58, %s8381_s25  ;;  %6662 = vrot.lane.b32.xlu0 %v6581_v41, %s8381_s25 }
 0x43d   : >> { %v6518_v32 = vpop.permute.xlu1 %6517 }
 0x43e   : >> { %v6513_v34 = vpop.permute.xlu0 %6512  ;;  %v6520_v38 = vunpack.i.h.bf16 %v6518_v32  ;;  %v6519_v6 = vunpack.i.l.bf16 %v6518_v32 }
 0x43f   : >> { %v6515_v37 = vunpack.i.h.bf16 %v6513_v34  ;;  %v6514_v2 = vunpack.i.l.bf16 %v6513_v34 }
 0x441   : >> { %v6528_v33 = vpop.permute.xlu1 %6527 }
 0x442   : >> { %v11333_v42 = vpop.permute.xlu0 %6522  ;;  %v6530_v48 = vunpack.i.h.bf16 %v6528_v33  ;;  %v6529_v16 = vunpack.i.l.bf16 %v6528_v33 }
 0x443   : >> { %v6525_v18 = vunpack.i.h.bf16 %v11333_v42  ;;  %v6524_v53 = vunpack.i.l.bf16 %v11333_v42 }
 0x449   : >> { %v11335_v13 = vpop.permute.xlu1 %6537  ;;  %v11337_v23 = vpop.permute.xlu0 %6532 }
 0x44a   : >> { %v6540_v24 = vunpack.i.h.bf16 %v11335_v13  ;;  %v6539_v44 = vunpack.i.l.bf16 %v11335_v13 }
 0x452   : >> { %v11339_v36 = vpop.permute.xlu1 %6547  ;;  %v11341_v35 = vpop.permute.xlu0 %6542 }
 0x456   : >> { %v11343_v61 = vpop.permute.xlu1 %6557 }
 0x457   : >> { %v11345_v12 = vpop.permute.xlu0 %6552 }
 0x45d   : >> { %v11347_v29 = vpop.permute.xlu1 %6567  ;;  %v11349_v63 = vpop.permute.xlu0 %6562 }
 0x461   : >> { %v11351_v46 = vpop.permute.xlu1 %6577  ;;  %v11353_v57 = vpop.permute.xlu0 %6572 }
 0x465   : >> { %v11355_v4 = vpop.permute.xlu1 %6587  ;;  %v11357_v22 = vpop.permute.xlu0 %6582 }
 0x469   : >> { %v6598_v51 = vpop.permute.xlu1 %6597  ;;  %v6593_v7 = vpop.permute.xlu0 %6592 }
 0x46a   : >> { %v6600_v8 = vunpack.i.h.bf16 %v6598_v51  ;;  %v6599_v3 = vunpack.i.l.bf16 %v6598_v51  ;;  %v6595_v58 = vunpack.i.h.bf16 %v6593_v7  ;;  %v6594_v41 = vunpack.i.l.bf16 %v6593_v7 }
 0x46c   : >> { %v1755_v32 = vsel %vm15536_vm0, %v6519_v6, %v6599_v3  ;;  %v1756_v34 = vsel %vm15537_vm1, %v6520_v38, %v6600_v8  ;;  %v1753_v7 = vsel %vm15538_vm2, %v6514_v2, %v6594_v41  ;;  %v1754_v13 = vsel %vm15539_vm5, %v6515_v37, %v6595_v58  ;;  %vm15541_vm1 = vmmov %vm15536_vm0 }
 0x46d   : >> { %v1787_v33 = vmin.f32 %v10943_v17, %v1755_v32  ;;  %v1788_v51 = vmin.f32 %v10947_v62, %v1756_v34  ;;  %v1819_v56 = vmax.f32 %v10943_v17, %v1755_v32  ;;  %v1820_v42 = vmax.f32 %v10947_v62, %v1756_v34  ;;  %v6608_v1 = vpop.permute.xlu1 %6607  ;;  %v6603_v3 = vpop.permute.xlu0 %6602  ;;  %vm15542_vm2 = vmmov %vm15536_vm0 }
 0x46e   : >> { %v6610_v21 = vunpack.i.h.bf16 %v6608_v1  ;;  %v6609_v6 = vunpack.i.l.bf16 %v6608_v1  ;;  %v6535_v38 = vunpack.i.h.bf16 %v11337_v23  ;;  %v6534_v8 = vunpack.i.l.bf16 %v11337_v23  ;;  %vm15543_vm5 = vmmov %vm15536_vm0 }
 0x46f   : >> { %v11381_v62 = vsel %vm8614_vm8, %v1787_v33, %v1819_v56  ;;  %v11385_v2 = vsel %vm8614_vm8, %v1788_v51, %v1820_v42  ;;  %v1785_v23 = vmin.f32 %v10963_v30, %v1753_v7  ;;  %v1786_v58 = vmin.f32 %v10967_v20, %v1754_v13 }
 0x470   : >> { %v1759_v1 = vsel %vm15536_vm0, %v6529_v16, %v6609_v6  ;;  %v1760_v37 = vsel %vm15541_vm1, %v6530_v48, %v6610_v21  ;;  %v1817_v41 = vmax.f32 %v10963_v30, %v1753_v7  ;;  %v1818_v34 = vmax.f32 %v10967_v20, %v1754_v13  ;;  %vm15544_vm1 = vmmov %vm15536_vm0 }
 0x471   : >> { %v6618_v56 = vpop.permute.xlu1 %6617  ;;  %v1791_v33 = vmin.f32 %v10971_v5, %v1759_v1  ;;  %v1792_v51 = vmin.f32 %v10975_v27, %v1760_v37  ;;  %v6605_v42 = vunpack.i.h.bf16 %v6603_v3  ;;  %v6604_v28 = vunpack.i.l.bf16 %v6603_v3  ;;  %v6613_v17 = vpop.permute.xlu0 %6612 }
 0x472   : >> { %v1823_v16 = vmax.f32 %v10971_v5, %v1759_v1  ;;  %v1824_v21 = vmax.f32 %v10975_v27, %v1760_v37  ;;  %v6620_v48 = vunpack.i.h.bf16 %v6618_v56  ;;  %v6619_v6 = vunpack.i.l.bf16 %v6618_v56 }
 0x473   : >> { %v1757_v14 = vsel %vm15542_vm2, %v6524_v53, %v6604_v28  ;;  %v1758_v30 = vsel %vm15543_vm5, %v6525_v18, %v6605_v42  ;;  %v6615_v20 = vunpack.i.h.bf16 %v6613_v17  ;;  %v6614_v7 = vunpack.i.l.bf16 %v6613_v17  ;;  %vm15545_vm2 = vmmov %vm15536_vm0 }
 0x474   : >> { %v1789_v13 = vmin.f32 %v11007_v15, %v1757_v14  ;;  %v1790_v47 = vmin.f32 %v11011_v39, %v1758_v30  ;;  %v1821_v3 = vmax.f32 %v11007_v15, %v1757_v14  ;;  %v1822_v5 = vmax.f32 %v11011_v39, %v1758_v30  ;;  %vm15546_vm5 = vmmov %vm15536_vm0 }
 0x475   : >> { %v6628_v1 = vpop.permute.xlu1 %6627  ;;  %v11409_v27 = vsel %vm8614_vm8, %v1785_v23, %v1817_v41  ;;  %v11413_v28 = vsel %vm8614_vm8, %v1786_v58, %v1818_v34  ;;  %v1763_v18 = vsel %vm15536_vm0, %v6539_v44, %v6619_v6  ;;  %v1764_v53 = vsel %vm15544_vm1, %v6540_v24, %v6620_v48  ;;  %v6623_v23 = vpop.permute.xlu0 %6622  ;;  %vm15549_vm1 = vmmov %vm15536_vm0 }
 0x476   : >> { %v6545_v17 = vunpack.i.h.bf16 %v11341_v35  ;;  %v6544_v15 = vunpack.i.l.bf16 %v11341_v35  ;;  %v11423_v39 = vsel %vm8614_vm8, %v1791_v33, %v1823_v16  ;;  %v11427_v14 = vsel %vm8614_vm8, %v1792_v51, %v1824_v21 }
 0x477   : >> { %v11431_v37 = vsel %vm8614_vm8, %v1789_v13, %v1821_v3  ;;  %v11435_v44 = vsel %vm8614_vm8, %v1790_v47, %v1822_v5  ;;  %v1761_v24 = vsel %vm15545_vm2, %v6534_v8, %v6614_v7  ;;  %v1762_v35 = vsel %vm15546_vm5, %v6535_v38, %v6615_v20  ;;  %vm15550_vm2 = vmmov %vm15536_vm0 }
 0x478   : >> { %v1795_v58 = vmin.f32 %v11031_v9, %v1763_v18  ;;  %v1796_v41 = vmin.f32 %v11035_v60, %v1764_v53  ;;  %v11445_v34 = vpack.i.bf16 %v11385_v2, %v11381_v62  ;;  %v11449_v56 = vpack.i.bf16 %v11413_v28, %v11409_v27  ;;  %vm15551_vm5 = vmmov %vm15536_vm0 }
 0x479   : >> { %v1827_v47 = vmax.f32 %v11031_v9, %v1763_v18  ;;  %v1828_v8 = vmax.f32 %v11035_v60, %v1764_v53  ;;  %v6630_v33 = vunpack.i.h.bf16 %v6628_v1  ;;  %v6629_v51 = vunpack.i.l.bf16 %v6628_v1  ;;  %v6638_v48 = vpop.permute.xlu1 %6637 }
 0x47a   : >> { %v1793_v38 = vmin.f32 %v11039_v31, %v1761_v24  ;;  %v1794_v42 = vmin.f32 %v11043_v10, %v1762_v35  ;;  %6677 = vrot.lane.b32.xlu1 %v11445_v34, %s8386_s7  ;;  %6672 = vrot.lane.b32.xlu0 %v11449_v56, %s8386_s7  ;;  %v6625_v16 = vunpack.i.h.bf16 %v6623_v23  ;;  %v6624_v21 = vunpack.i.l.bf16 %v6623_v23 }
 0x47b   : >> { %v1825_v9 = vmax.f32 %v11039_v31, %v1761_v24  ;;  %v1826_v60 = vmax.f32 %v11043_v10, %v1762_v35  ;;  %v11463_v6 = vpack.i.bf16 %v11427_v14, %v11423_v39  ;;  %v11467_v30 = vpack.i.bf16 %v11435_v44, %v11431_v37 }
 0x47c   : >> { %v6560_v20 = vunpack.i.h.bf16 %v11343_v61  ;;  %v6559_v7 = vunpack.i.l.bf16 %v11343_v61  ;;  %v15547_v13 = vunpack.i.l.bf16 %v11339_v36  ;;  %v15548_v31 = vunpack.i.h.bf16 %v11339_v36 }
 0x47d   : >> { %v1765_v5 = vsel %vm15550_vm2, %v6544_v15, %v6624_v21  ;;  %v1766_v1 = vsel %vm15551_vm5, %v6545_v17, %v6625_v16  ;;  %v6640_v18 = vunpack.i.h.bf16 %v6638_v48  ;;  %v6639_v53 = vunpack.i.l.bf16 %v6638_v48  ;;  %v6633_v15 = vpop.permute.xlu0 %6632  ;;  %vm15553_vm2 = vmmov %vm15536_vm0 }
 0x47e   : >> { %v1767_v3 = vsel %vm15536_vm0, %v15547_v13, %v6629_v51  ;;  %v1768_v10 = vsel %vm15549_vm1, %v15548_v31, %v6630_v33  ;;  %v6555_v61 = vunpack.i.h.bf16 %v11345_v12  ;;  %v6554_v24 = vunpack.i.l.bf16 %v11345_v12  ;;  %6687 = vrot.lane.b32.xlu1 %v11463_v6, %s8386_s7  ;;  %6682 = vrot.lane.b32.xlu0 %v11467_v30, %s8386_s7  ;;  %vm15552_vm1 = vmmov %vm15536_vm0 }
 0x47f   : >> { %v11487_v35 = vsel %vm8614_vm8, %v1795_v58, %v1827_v47  ;;  %v11491_v36 = vsel %vm8614_vm8, %v1796_v41, %v1828_v8  ;;  %v11497_v17 = vsel %vm8614_vm8, %v1793_v38, %v1825_v9  ;;  %v11501_v23 = vsel %vm8614_vm8, %v1794_v42, %v1826_v60  ;;  %vm15554_vm5 = vmmov %vm15536_vm0 }
 0x480   : >> { %v1799_v12 = vmin.f32 %v11079_v52, %v1767_v3  ;;  %v1800_v58 = vmin.f32 %v11083_v26, %v1768_v10  ;;  %v1831_v41 = vmax.f32 %v11079_v52, %v1767_v3  ;;  %v1832_v47 = vmax.f32 %v11083_v26, %v1768_v10 }
 0x481   : >> { %v1797_v8 = vmin.f32 %v11107_v43, %v1765_v5  ;;  %v1798_v33 = vmin.f32 %v11111_v55, %v1766_v1  ;;  %v1771_v51 = vsel %vm15536_vm0, %v6559_v7, %v6639_v53  ;;  %v1772_v38 = vsel %vm15552_vm1, %v6560_v20, %v6640_v18  ;;  %vm15555_vm1 = vmmov %vm15536_vm0 }
 0x482   : >> { %v6635_v42 = vunpack.i.h.bf16 %v6633_v15  ;;  %v6634_v16 = vunpack.i.l.bf16 %v6633_v15  ;;  %v1829_v21 = vmax.f32 %v11107_v43, %v1765_v5  ;;  %v1830_v48 = vmax.f32 %v11111_v55, %v1766_v1  ;;  %v6648_v15 = vpop.permute.xlu1 %6647 }
 0x483   : >> { %v11519_v52 = vpack.i.bf16 %v11491_v36, %v11487_v35  ;;  %v11523_v26 = vpack.i.bf16 %v11501_v23, %v11497_v17  ;;  %v1803_v20 = vmin.f32 %v11115_v25, %v1771_v51  ;;  %v1804_v43 = vmin.f32 %v11119_v40, %v1772_v38 }
 0x484   : >> { %v1769_v9 = vsel %vm15553_vm2, %v6554_v24, %v6634_v16  ;;  %v1770_v60 = vsel %vm15554_vm5, %v6555_v61, %v6635_v42  ;;  %v1835_v55 = vmax.f32 %v11115_v25, %v1771_v51  ;;  %v1836_v7 = vmax.f32 %v11119_v40, %v1772_v38  ;;  %vm15556_vm2 = vmmov %vm15536_vm0 }
 0x485   : >> { %6697 = vrot.lane.b32.xlu1 %v11519_v52, %s8386_s7  ;;  %v1801_v13 = vmin.f32 %v11155_v49, %v1769_v9  ;;  %v1802_v3 = vmin.f32 %v11159_v50, %v1770_v60  ;;  %v1833_v31 = vmax.f32 %v11155_v49, %v1769_v9  ;;  %v1834_v10 = vmax.f32 %v11159_v50, %v1770_v60  ;;  %vm15557_vm5 = vmmov %vm15536_vm0 }
 0x486   : >> { %6692 = vrot.lane.b32.xlu0 %v11523_v26, %s8386_s7  ;;  %v11543_v5 = vsel %vm8614_vm8, %v1799_v12, %v1831_v41  ;;  %v11547_v25 = vsel %vm8614_vm8, %v1800_v58, %v1832_v47  ;;  %v11551_v40 = vsel %vm8614_vm8, %v1797_v8, %v1829_v21  ;;  %v11555_v49 = vsel %vm8614_vm8, %v1798_v33, %v1830_v48  ;;  %v6643_v41 = vpop.permute.xlu0 %6642  ;;  %v6658_v38 = vpop.permute.xlu1 %6657 }
 0x487   : >> { %v11559_v50 = vsel %vm8614_vm8, %v1803_v20, %v1835_v55  ;;  %v11563_v1 = vsel %vm8614_vm8, %v1804_v43, %v1836_v7  ;;  %v11567_v18 = vsel %vm8614_vm8, %v1801_v13, %v1833_v31  ;;  %v11571_v53 = vsel %vm8614_vm8, %v1802_v3, %v1834_v10 }
 0x488   : >> { %v11575_v61 = vpack.i.bf16 %v11547_v25, %v11543_v5  ;;  %v11579_v24 = vpack.i.bf16 %v11555_v49, %v11551_v40  ;;  %v11587_v12 = vpack.i.bf16 %v11563_v1, %v11559_v50  ;;  %v11591_v58 = vpack.i.bf16 %v11571_v53, %v11567_v18 }
 0x489   : >> { %v6649_v47 = vunpack.i.l.bf16 %v6648_v15  ;;  %v6570_v8 = vunpack.i.h.bf16 %v11347_v29  ;;  %v6569_v33 = vunpack.i.l.bf16 %v11347_v29  ;;  %v6650_v51 = vunpack.i.h.bf16 %v6648_v15 }
 0x48a   : >> { %6707 = vrot.lane.b32.xlu1 %v11575_v61, %s8386_s7  ;;  %6702 = vrot.lane.b32.xlu0 %v11579_v24, %s8386_s7  ;;  %v6565_v42 = vunpack.i.h.bf16 %v11349_v63  ;;  %v6645_v16 = vunpack.i.h.bf16 %v6643_v41  ;;  %v6644_v21 = vunpack.i.l.bf16 %v6643_v41  ;;  %v6564_v48 = vunpack.i.l.bf16 %v11349_v63  ;;  %v6653_v7 = vpop.permute.xlu0 %6652  ;;  %v6668_v41 = vpop.permute.xlu1 %6667 }
 0x48b   : >> { %v6580_v9 = vunpack.i.h.bf16 %v11351_v46  ;;  %v6579_v60 = vunpack.i.l.bf16 %v11351_v46  ;;  %v6575_v20 = vunpack.i.h.bf16 %v11353_v57  ;;  %v6574_v43 = vunpack.i.l.bf16 %v11353_v57 }
 0x48c   : >> { %v6590_v55 = vunpack.i.h.bf16 %v11355_v4  ;;  %v1775_v29 = vsel %vm15536_vm0, %v6569_v33, %v6649_v47  ;;  %v6589_v63 = vunpack.i.l.bf16 %v11355_v4  ;;  %v1776_v13 = vsel %vm15555_vm1, %v6570_v8, %v6650_v51  ;;  %vm15558_vm1 = vmmov %vm15536_vm0 }
 0x48d   : >> { %v6660_v46 = vunpack.i.h.bf16 %v6658_v38  ;;  %v6659_v3 = vunpack.i.l.bf16 %v6658_v38  ;;  %v6585_v57 = vunpack.i.h.bf16 %v11357_v22  ;;  %v1773_v31 = vsel %vm15556_vm2, %v6564_v48, %v6644_v21  ;;  %vm15559_vm2 = vmmov %vm15536_vm0 }
 0x48e   : >> { %6717 = vrot.lane.b32.xlu1 %v11587_v12, %s8386_s7  ;;  %6712 = vrot.lane.b32.xlu0 %v11591_v58, %s8386_s7  ;;  %v1774_v10 = vsel %vm15557_vm5, %v6565_v42, %v6645_v16  ;;  %v1839_v4 = vmax.f32 %v11179_v45, %v1775_v29  ;;  %v6654_v15 = vunpack.i.l.bf16 %v6653_v7  ;;  %v6584_v47 = vunpack.i.l.bf16 %v11357_v22  ;;  %v6663_v21 = vpop.permute.xlu0 %6662  ;;  %vm15561_vm5 = vmmov %vm15536_vm0 }
 0x48f   : >> { %v1808_v8 = vmin.f32 %v11183_v54, %v1776_v13  ;;  %v6655_v33 = vunpack.i.h.bf16 %v6653_v7  ;;  %v1805_v51 = vmin.f32 %v11195_v11, %v1773_v31  ;;  %v1806_v38 = vmin.f32 %v11199_v59, %v1774_v10 }
 0x490   : >> { %v1779_v42 = vsel %vm15536_vm0, %v6579_v60, %v6659_v3  ;;  %v1837_v22 = vmax.f32 %v11195_v11, %v1773_v31  ;;  %v6669_v16 = vunpack.i.l.bf16 %v6668_v41  ;;  %v1838_v48 = vmax.f32 %v11199_v59, %v1774_v10  ;;  %v15562_v3 = vld [vmem:[#allocation67_spill] sm:$0xff] }
 0x491   : >> { %v1777_v60 = vsel %vm15559_vm2, %v6574_v43, %v6654_v15  ;;  %v1778_v7 = vsel %vm15561_vm5, %v6575_v20, %v6655_v33  ;;  %v6664_v43 = vunpack.i.l.bf16 %v6663_v21  ;;  %vm15565_vm2 = vmmov %vm15536_vm0 }
 0x492   : >> { %6727 = vrot.lane.b32.xlu1 %v11445_v34, %s8387_s9  ;;  %6722 = vrot.lane.b32.xlu0 %v11449_v56, %s8387_s9  ;;  %v1807_v34 = vmin.f32 %v11179_v45, %v1775_v29  ;;  %v1840_v56 = vmax.f32 %v11183_v54, %v1776_v13  ;;  %v1780_v45 = vsel %vm15558_vm1, %v6580_v9, %v6660_v46  ;;  %v6670_v54 = vunpack.i.h.bf16 %v6668_v41  ;;  %v15560_v29 = vld [vmem:[#allocation64_spill] sm:$0xff]  ;;  %vm15563_vm1 = vmmov %vm15536_vm0 }
 0x493   : >> { %v1812_v11 = vmin.f32 %v15560_v29, %v1780_v45  ;;  %v1843_v13 = vmax.f32 %v11239_v0, %v1779_v42  ;;  %v1844_v59 = vmax.f32 %v15560_v29, %v1780_v45  ;;  %v6665_v46 = vunpack.i.h.bf16 %v6663_v21  ;;  %vm15566_vm5 = vmmov %vm15536_vm0 }
 0x494   : >> { %v11645_v9 = vsel %vm8614_vm8, %v1808_v8, %v1840_v56  ;;  %v1809_v31 = vmin.f32 %v15562_v3, %v1777_v60  ;;  %v1783_v10 = vsel %vm15536_vm0, %v6589_v63, %v6669_v16  ;;  %v1784_v20 = vsel %vm15563_vm1, %v6590_v55, %v6670_v54  ;;  %v15567_v56 = vld [vmem:[#allocation68_spill] sm:$0xff]  ;;  %v15570_v16 = vld [vmem:[#allocation70_spill] sm:$0xff] }
 0x495   : >> { %v11667_v15 = vsel %vm8614_vm8, %v1805_v51, %v1837_v22  ;;  %v11681_v63 = vsel %vm8614_vm8, %v1812_v11, %v1844_v59  ;;  %v1781_v41 = vsel %vm15565_vm2, %v6584_v47, %v6664_v43  ;;  %v1782_v8 = vsel %vm15566_vm5, %v6585_v57, %v6665_v46  ;;  %v15569_v22 = vld [vmem:[#allocation65_spill] sm:$0xff] }
 0x496   : >> { %6737 = vrot.lane.b32.xlu1 %v11463_v6, %s8387_s9  ;;  %6732 = vrot.lane.b32.xlu0 %v11467_v30, %s8387_s9  ;;  %v11638_v6 = vsel %vm8614_vm8, %v1807_v34, %v1839_v4  ;;  %v1811_v30 = vmin.f32 %v11239_v0, %v1779_v42  ;;  %v15564_v34 = vld [vmem:[#allocation69_spill] sm:$0xff]  ;;  %v1815_v33 = vmin.f32 %v15567_v56, %v1783_v10 }
 0x497   : >> { %v1810_v4 = vmin.f32 %v15564_v34, %v1778_v7  ;;  %v1842_v0 = vmax.f32 %v15564_v34, %v1778_v7  ;;  %v6766_v42 = vpack.i.bf16 %v11645_v9, %v11638_v6  ;;  %v1813_v54 = vmin.f32 %v15569_v22, %v1781_v41 }
 0x498   : >> { %v11677_v55 = vsel %vm8614_vm8, %v1811_v30, %v1843_v13  ;;  %v1814_v21 = vmin.f32 %v15570_v16, %v1782_v8 }
 0x499   : >> { %v11700_v47 = vsel %vm8614_vm8, %v1810_v4, %v1842_v0  ;;  %v6776_v30 = vpack.i.bf16 %v11681_v63, %v11677_v55 }
 0x49a   : >> { %6747 = vrot.lane.b32.xlu1 %v11519_v52, %s8387_s9  ;;  %6742 = vrot.lane.b32.xlu0 %v11523_v26, %s8387_s9  ;;  %v1841_v52 = vmax.f32 %v15562_v3, %v1777_v60  ;;  %v11671_v26 = vsel %vm8614_vm8, %v1806_v38, %v1838_v48  ;;  %v1847_v38 = vmax.f32 %v15567_v56, %v1783_v10 }
 0x49b   : >> { %v1845_v48 = vmax.f32 %v15569_v22, %v1781_v41  ;;  %v1846_v60 = vmax.f32 %v15570_v16, %v1782_v8  ;;  %v15572_v16 = vld [vmem:[#allocation13_spill] sm:$0xff] }
 0x49c   : >> { %v11696_v45 = vsel %vm8614_vm8, %v1809_v31, %v1841_v52  ;;  %v11715_v29 = vsel %vm8614_vm8, %v1815_v33, %v1847_v38  ;;  %vm15573_vm0 = vcmp.eq.s32.totalorder %v15572_v16, 0 }
 0x49d   : >> { %v6771_v7 = vpack.i.bf16 %v11700_v47, %v11696_v45  ;;  %v11725_v13 = vsel %vm8614_vm8, %v1813_v54, %v1845_v48  ;;  %v11729_v59 = vsel %vm8614_vm8, %v1814_v21, %v1846_v60  ;;  %vm15574_vm1 = vmmov %vm15573_vm0 }
 0x49e   : >> { %6757 = vrot.lane.b32.xlu1 %v11575_v61, %s8387_s9  ;;  %6752 = vrot.lane.b32.xlu0 %v11579_v24, %s8387_s9  ;;  %v15568_v61 = vld [vmem:[#allocation66_spill] sm:$0xff]  ;;  %v6761_v24 = vpack.i.bf16 %v11671_v26, %v11667_v15  ;;  %v6781_v43 = vpack.i.bf16 %v11729_v59, %v11725_v13  ;;  %vm15575_vm2 = vmmov %vm15573_vm0 }
 0x49f   : >> { %v1816_v51 = vmin.f32 %v15568_v61, %v1784_v20  ;;  %v1848_v57 = vmax.f32 %v15568_v61, %v1784_v20  ;;  %vm15576_vm5 = vmmov %vm15573_vm0 }
 0x4a1   : >> { %v11719_v11 = vsel %vm8614_vm8, %v1816_v51, %v1848_v57 }
 0x4a2   : >> { %6767 = vrot.lane.b32.xlu1 %v6766_v42, %s8386_s7  ;;  %6762 = vrot.lane.b32.xlu0 %v6761_v24, %s8386_s7  ;;  %15571 = vst [vmem:[#allocation64_spill] sm:$0xff] %v11719_v11  ;;  %v6786_v46 = vpack.i.bf16 %v11719_v11, %v11715_v29 }
 0x4a6   : >> { %6777 = vrot.lane.b32.xlu1 %v6776_v30, %s8386_s7  ;;  %6772 = vrot.lane.b32.xlu0 %v6771_v7, %s8386_s7 }
 0x4aa   : >> { %6787 = vrot.lane.b32.xlu1 %v6786_v46, %s8386_s7  ;;  %6782 = vrot.lane.b32.xlu0 %v6781_v43, %s8386_s7 }
 0x4ae   : >> { %6797 = vrot.lane.b32.xlu1 %v11587_v12, %s8387_s9  ;;  %6792 = vrot.lane.b32.xlu0 %v11591_v58, %s8387_s9 }
 0x4b2   : >> { %6807 = vrot.lane.b32.xlu1 %v6766_v42, %s8387_s9  ;;  %6802 = vrot.lane.b32.xlu0 %v6761_v24, %s8387_s9 }
 0x4b6   : >> { %6817 = vrot.lane.b32.xlu1 %v6776_v30, %s8387_s9  ;;  %6812 = vrot.lane.b32.xlu0 %v6771_v7, %s8387_s9 }
 0x4ba   : >> { %6827 = vrot.lane.b32.xlu1 %v6786_v46, %s8387_s9  ;;  %6822 = vrot.lane.b32.xlu0 %v6781_v43, %s8387_s9 }
 0x4ec   : >> { %v6678_v3 = vpop.permute.xlu1 %6677  ;;  %v6673_v31 = vpop.permute.xlu0 %6672 }
 0x4ed   : >> { %v6675_v38 = vunpack.i.h.bf16 %v6673_v31  ;;  %v6674_v42 = vunpack.i.l.bf16 %v6673_v31  ;;  %v6680_v24 = vunpack.i.h.bf16 %v6678_v3  ;;  %v6679_v22 = vunpack.i.l.bf16 %v6678_v3 }
 0x4f0   : >> { %v6688_v10 = vpop.permute.xlu1 %6687  ;;  %v6683_v20 = vpop.permute.xlu0 %6682 }
 0x4f1   : >> { %v6684_v32 = vunpack.i.l.bf16 %v6683_v20 }
 0x4f7   : >> { %v11749_v12 = vpop.permute.xlu1 %6697 }
 0x4f8   : >> { %v11751_v34 = vpop.permute.xlu0 %6692 }
 0x4fc   : >> { %v11753_v58 = vpop.permute.xlu1 %6707  ;;  %v11755_v4 = vpop.permute.xlu0 %6702 }
 0x500   : >> { %v11757_v52 = vpop.permute.xlu1 %6717  ;;  %v11759_v0 = vpop.permute.xlu0 %6712 }
 0x504   : >> { %v6728_v41 = vpop.permute.xlu1 %6727  ;;  %v6723_v8 = vpop.permute.xlu0 %6722 }
 0x505   : >> { %v6725_v56 = vunpack.i.h.bf16 %v6723_v8  ;;  %v6724_v33 = vunpack.i.l.bf16 %v6723_v8  ;;  %v6730_v61 = vunpack.i.h.bf16 %v6728_v41  ;;  %v6729_v51 = vunpack.i.l.bf16 %v6728_v41 }
 0x507   : >> { %v2013_v21 = vsel %vm15573_vm0, %v6674_v42, %v6724_v33  ;;  %v2014_v48 = vsel %vm15574_vm1, %v6675_v38, %v6725_v56  ;;  %v2015_v60 = vsel %vm15575_vm2, %v6679_v22, %v6729_v51  ;;  %v2016_v30 = vsel %vm15576_vm5, %v6680_v24, %v6730_v61  ;;  %vm15578_vm1 = vmmov %vm15573_vm0 }
 0x508   : >> { %v6738_v57 = vpop.permute.xlu1 %6737  ;;  %v6733_v54 = vpop.permute.xlu0 %6732  ;;  %v2045_v46 = vmin.f32 %v11409_v27, %v2013_v21  ;;  %v2046_v43 = vmin.f32 %v11413_v28, %v2014_v48  ;;  %v2077_v3 = vmax.f32 %v11409_v27, %v2013_v21  ;;  %v2078_v31 = vmax.f32 %v11413_v28, %v2014_v48  ;;  %vm15579_vm2 = vmmov %vm15573_vm0 }
 0x509   : >> { %v2047_v8 = vmin.f32 %v11381_v62, %v2015_v60  ;;  %v2048_v56 = vmin.f32 %v11385_v2, %v2016_v30  ;;  %v6735_v33 = vunpack.i.h.bf16 %v6733_v54  ;;  %v6734_v38 = vunpack.i.l.bf16 %v6733_v54  ;;  %vm15580_vm5 = vmmov %vm15573_vm0 }
 0x50a   : >> { %v2079_v51 = vmax.f32 %v11381_v62, %v2015_v60  ;;  %v2080_v61 = vmax.f32 %v11385_v2, %v2016_v30  ;;  %v6740_v42 = vunpack.i.h.bf16 %v6738_v57  ;;  %v6739_v24 = vunpack.i.l.bf16 %v6738_v57 }
 0x50b   : >> { %v6685_v22 = vunpack.i.h.bf16 %v6683_v20  ;;  %v6690_v27 = vunpack.i.h.bf16 %v6688_v10  ;;  %v6689_v21 = vunpack.i.l.bf16 %v6688_v10  ;;  %v11781_v48 = vsel %vm8631_vm10, %v2045_v46, %v2077_v3 }
 0x50c   : >> { %v6748_v7 = vpop.permute.xlu1 %6747  ;;  %v6743_v41 = vpop.permute.xlu0 %6742  ;;  %v11785_v11 = vsel %vm8631_vm10, %v2046_v43, %v2078_v31  ;;  %v2017_v62 = vsel %vm15573_vm0, %v6684_v32, %v6734_v38  ;;  %v11795_v20 = vsel %vm8631_vm10, %v2047_v8, %v2079_v51  ;;  %v11799_v10 = vsel %vm8631_vm10, %v2048_v56, %v2080_v61 }
 0x50d   : >> { %v2018_v2 = vsel %vm15578_vm1, %v6685_v22, %v6735_v33  ;;  %v2019_v57 = vsel %vm15579_vm2, %v6689_v21, %v6739_v24  ;;  %v2020_v60 = vsel %vm15580_vm5, %v6690_v27, %v6740_v42  ;;  %v6745_v30 = vunpack.i.h.bf16 %v6743_v41  ;;  %vm15581_vm1 = vmmov %vm15573_vm0 }
 0x50e   : >> { %v6744_v46 = vunpack.i.l.bf16 %v6743_v41  ;;  %v6836_v32 = vpack.i.bf16 %v11785_v11, %v11781_v48  ;;  %v2049_v3 = vmin.f32 %v11431_v37, %v2017_v62  ;;  %v2050_v31 = vmin.f32 %v11435_v44, %v2018_v2  ;;  %vm15582_vm2 = vmmov %vm15573_vm0 }
 0x50f   : >> { %v2081_v8 = vmax.f32 %v11431_v37, %v2017_v62  ;;  %v2082_v56 = vmax.f32 %v11435_v44, %v2018_v2  ;;  %v6695_v38 = vunpack.i.h.bf16 %v11751_v34  ;;  %v6694_v51 = vunpack.i.l.bf16 %v11751_v34  ;;  %vm15583_vm5 = vmmov %vm15573_vm0 }
 0x510   : >> { %v11777_v19 = vpop.permute.xlu1 %6757  ;;  %v11787_v54 = vpop.permute.xlu0 %6752  ;;  %v2051_v41 = vmin.f32 %v11423_v39, %v2019_v57  ;;  %v2052_v61 = vmin.f32 %v11427_v14, %v2020_v60  ;;  %6837 = vrot.lane.b32.xlu1 %v6836_v32, %s8385_s6  ;;  %6832 = vrot.lane.b32.xlu0 %v6836_v32, %s8384_s5  ;;  %v2083_v42 = vmax.f32 %v11423_v39, %v2019_v57  ;;  %v6750_v24 = vunpack.i.h.bf16 %v6748_v7 }
 0x511   : >> { %v2084_v37 = vmax.f32 %v11427_v14, %v2020_v60  ;;  %v6749_v44 = vunpack.i.l.bf16 %v6748_v7  ;;  %v6700_v22 = vunpack.i.h.bf16 %v11749_v12  ;;  %v6699_v27 = vunpack.i.l.bf16 %v11749_v12 }
 0x512   : >> { %v2021_v34 = vsel %vm15573_vm0, %v6694_v51, %v6744_v46  ;;  %v6846_v21 = vpack.i.bf16 %v11799_v10, %v11795_v20  ;;  %v11833_v2 = vsel %vm8631_vm10, %v2049_v3, %v2081_v8  ;;  %v11837_v39 = vsel %vm8631_vm10, %v2050_v31, %v2082_v56 }
 0x513   : >> { %v2022_v14 = vsel %vm15581_vm1, %v6695_v38, %v6745_v30  ;;  %v11846_v7 = vsel %vm8631_vm10, %v2051_v41, %v2083_v42  ;;  %v11850_v57 = vsel %vm8631_vm10, %v2052_v61, %v2084_v37  ;;  %v2023_v60 = vsel %vm15582_vm2, %v6699_v27, %v6749_v44  ;;  %vm15584_vm1 = vmmov %vm15573_vm0 }
 0x514   : >> { %v11807_v43 = vpop.permute.xlu1 %6767  ;;  %v11813_v33 = vpop.permute.xlu0 %6762  ;;  %6847 = vrot.lane.b32.xlu1 %v6846_v21, %s8385_s6  ;;  %v2024_v46 = vsel %vm15583_vm5, %v6700_v22, %v6750_v24  ;;  %6842 = vrot.lane.b32.xlu0 %v6846_v21, %s8384_s5  ;;  %v2053_v30 = vmin.f32 %v11497_v17, %v2021_v34  ;;  %v2054_v32 = vmin.f32 %v11501_v23, %v2022_v14  ;;  %v6755_v56 = vunpack.i.h.bf16 %v11787_v54  ;;  %vm15585_vm2 = vmmov %vm15573_vm0 }
 0x515   : >> { %v2085_v3 = vmax.f32 %v11497_v17, %v2021_v34  ;;  %v6856_v31 = vpack.i.bf16 %v11837_v39, %v11833_v2  ;;  %v2086_v8 = vmax.f32 %v11501_v23, %v2022_v14  ;;  %v6754_v38 = vunpack.i.l.bf16 %v11787_v54  ;;  %vm15586_vm5 = vmmov %vm15573_vm0 }
 0x516   : >> { %v6705_v41 = vunpack.i.h.bf16 %v11755_v4  ;;  %v6704_v61 = vunpack.i.l.bf16 %v11755_v4  ;;  %v2055_v42 = vmin.f32 %v11487_v35, %v2023_v60  ;;  %v2056_v37 = vmin.f32 %v11491_v36, %v2024_v46 }
 0x517   : >> { %v2087_v23 = vmax.f32 %v11487_v35, %v2023_v60  ;;  %v2088_v24 = vmax.f32 %v11491_v36, %v2024_v46  ;;  %v6759_v54 = vunpack.i.l.bf16 %v11777_v19  ;;  %v6709_v44 = vunpack.i.l.bf16 %v11753_v58 }
 0x518   : >> { %v11829_v62 = vpop.permute.xlu1 %6777  ;;  %v11841_v12 = vpop.permute.xlu0 %6772  ;;  %6857 = vrot.lane.b32.xlu1 %v6856_v31, %s8385_s6  ;;  %6852 = vrot.lane.b32.xlu0 %v6856_v31, %s8384_s5  ;;  %v11881_v4 = vsel %vm8631_vm10, %v2053_v30, %v2085_v3  ;;  %v6760_v22 = vunpack.i.h.bf16 %v11777_v19  ;;  %v6866_v27 = vpack.i.bf16 %v11850_v57, %v11846_v7  ;;  %v11888_v35 = vsel %vm8631_vm10, %v2054_v32, %v2086_v8 }
 0x519   : >> { %v2025_v36 = vsel %vm15573_vm0, %v6704_v61, %v6754_v38  ;;  %v2026_v34 = vsel %vm15584_vm1, %v6705_v41, %v6755_v56  ;;  %v6710_v21 = vunpack.i.h.bf16 %v11753_v58  ;;  %v11898_v19 = vsel %vm8631_vm10, %v2055_v42, %v2087_v23  ;;  %vm15587_vm1 = vmmov %vm15573_vm0 }
 0x51a   : >> { %v11902_v60 = vsel %vm8631_vm10, %v2056_v37, %v2088_v24  ;;  %v2027_v46 = vsel %vm15585_vm2, %v6709_v44, %v6759_v54  ;;  %v2057_v58 = vmin.f32 %v11551_v40, %v2025_v36  ;;  %v2058_v32 = vmin.f32 %v11555_v49, %v2026_v34  ;;  %vm15588_vm2 = vmmov %vm15573_vm0 }
 0x51b   : >> { %v2028_v30 = vsel %vm15586_vm5, %v6710_v21, %v6760_v22  ;;  %v6876_v3 = vpack.i.bf16 %v11888_v35, %v11881_v4  ;;  %v2089_v8 = vmax.f32 %v11551_v40, %v2025_v36  ;;  %v2090_v56 = vmax.f32 %v11555_v49, %v2026_v34  ;;  %vm15589_vm5 = vmmov %vm15573_vm0 }
 0x51c   : >> { %v11865_v51 = vpop.permute.xlu0 %6782  ;;  %v11871_v17 = vpop.permute.xlu1 %6787  ;;  %6867 = vrot.lane.b32.xlu1 %v6866_v27, %s8385_s6  ;;  %6862 = vrot.lane.b32.xlu0 %v6866_v27, %s8384_s5  ;;  %v6720_v41 = vunpack.i.h.bf16 %v11757_v52  ;;  %v6719_v61 = vunpack.i.l.bf16 %v11757_v52  ;;  %v6714_v42 = vunpack.i.l.bf16 %v11759_v0  ;;  %v2059_v23 = vmin.f32 %v11543_v5, %v2027_v46 }
 0x51d   : >> { %v2091_v24 = vmax.f32 %v11543_v5, %v2027_v46  ;;  %v6715_v49 = vunpack.i.h.bf16 %v11759_v0  ;;  %v2060_v44 = vmin.f32 %v11547_v25, %v2028_v30  ;;  %v2092_v22 = vmax.f32 %v11547_v25, %v2028_v30 }
 0x51e   : >> { %v6886_v52 = vpack.i.bf16 %v11902_v60, %v11898_v19  ;;  %v11929_v27 = vsel %vm8631_vm10, %v2057_v58, %v2089_v8  ;;  %v11933_v5 = vsel %vm8631_vm10, %v2058_v32, %v2090_v56 }
 0x51f   : >> { %v11942_v34 = vsel %vm8631_vm10, %v2059_v23, %v2091_v24  ;;  %v11951_v46 = vsel %vm8631_vm10, %v2060_v44, %v2092_v22  ;;  %v6896_v32 = vpack.i.bf16 %v11933_v5, %v11929_v27 }
 0x520   : >> { %v6793_v14 = vpop.permute.xlu0 %6792  ;;  %v6798_v31 = vpop.permute.xlu1 %6797  ;;  %6877 = vrot.lane.b32.xlu1 %v6876_v3, %s8385_s6  ;;  %6872 = vrot.lane.b32.xlu0 %v6876_v3, %s8384_s5 }
 0x521   : >> { %v6794_v38 = vunpack.i.l.bf16 %v6793_v14  ;;  %v6795_v37 = vunpack.i.h.bf16 %v6793_v14  ;;  %v6800_v54 = vunpack.i.h.bf16 %v6798_v31  ;;  %v6799_v40 = vunpack.i.l.bf16 %v6798_v31 }
 0x523   : >> { %v2029_v36 = vsel %vm15573_vm0, %v6714_v42, %v6794_v38  ;;  %v2030_v0 = vsel %vm15587_vm1, %v6715_v49, %v6795_v37  ;;  %v2031_v21 = vsel %vm15588_vm2, %v6719_v61, %v6799_v40  ;;  %v2032_v14 = vsel %vm15589_vm5, %v6720_v41, %v6800_v54  ;;  %vm15590_vm1 = vmmov %vm15573_vm0 }
 0x524   : >> { %6887 = vrot.lane.b32.xlu1 %v6886_v52, %s8385_s6  ;;  %v6803_v25 = vpop.permute.xlu0 %6802  ;;  %6882 = vrot.lane.b32.xlu0 %v6886_v52, %s8384_s5  ;;  %v2061_v30 = vmin.f32 %v11567_v18, %v2029_v36  ;;  %v6808_v58 = vpop.permute.xlu1 %6807  ;;  %v2062_v3 = vmin.f32 %v11571_v53, %v2030_v0  ;;  %v2093_v31 = vmax.f32 %v11567_v18, %v2029_v36  ;;  %v6764_v38 = vunpack.i.l.bf16 %v11813_v33  ;;  %vm15591_vm2 = vmmov %vm15573_vm0 }
 0x525   : >> { %v2094_v8 = vmax.f32 %v11571_v53, %v2030_v0  ;;  %v6804_v56 = vunpack.i.l.bf16 %v6803_v25  ;;  %v2063_v41 = vmin.f32 %v11559_v50, %v2031_v21  ;;  %v2064_v61 = vmin.f32 %v11563_v1, %v2032_v14  ;;  %vm15592_vm5 = vmmov %vm15573_vm0 }
 0x526   : >> { %v6805_v42 = vunpack.i.h.bf16 %v6803_v25  ;;  %v2095_v37 = vmax.f32 %v11559_v50, %v2031_v21  ;;  %v2096_v23 = vmax.f32 %v11563_v1, %v2032_v14  ;;  %v6810_v24 = vunpack.i.h.bf16 %v6808_v58 }
 0x527   : >> { %v6809_v54 = vunpack.i.l.bf16 %v6808_v58  ;;  %v6770_v18 = vunpack.i.h.bf16 %v11807_v43  ;;  %v6769_v53 = vunpack.i.l.bf16 %v11807_v43  ;;  %v6765_v40 = vunpack.i.h.bf16 %v11813_v33 }
 0x528   : >> { %6897 = vrot.lane.b32.xlu1 %v6896_v32, %s8385_s6  ;;  %6892 = vrot.lane.b32.xlu0 %v6896_v32, %s8384_s5  ;;  %v6906_v49 = vpack.i.bf16 %v11951_v46, %v11942_v34  ;;  %v11973_v44 = vsel %vm8631_vm10, %v2061_v30, %v2093_v31  ;;  %v11977_v50 = vsel %vm8631_vm10, %v2062_v3, %v2094_v8  ;;  %v6813_v22 = vpop.permute.xlu0 %6812  ;;  %v6818_v21 = vpop.permute.xlu1 %6817  ;;  %v6775_v8 = vunpack.i.h.bf16 %v11841_v12 }
 0x529   : >> { %v2033_v1 = vsel %vm15573_vm0, %v6764_v38, %v6804_v56  ;;  %v2034_v43 = vsel %vm15590_vm1, %v6765_v40, %v6805_v42  ;;  %v11986_v33 = vsel %vm8631_vm10, %v2063_v41, %v2095_v37  ;;  %v11990_v52 = vsel %vm8631_vm10, %v2064_v61, %v2096_v23  ;;  %vm15593_vm1 = vmmov %vm15573_vm0 }
 0x52a   : >> { %v2035_v36 = vsel %vm15591_vm2, %v6769_v53, %v6809_v54  ;;  %v2036_v0 = vsel %vm15592_vm5, %v6770_v18, %v6810_v24  ;;  %v2065_v25 = vmin.f32 %v11667_v15, %v2033_v1  ;;  %v6815_v14 = vunpack.i.h.bf16 %v6813_v22  ;;  %vm15594_vm2 = vmmov %vm15573_vm0 }
 0x52b   : >> { %v6814_v30 = vunpack.i.l.bf16 %v6813_v22  ;;  %v6916_v58 = vpack.i.bf16 %v11977_v50, %v11973_v44  ;;  %v2066_v32 = vmin.f32 %v11671_v26, %v2034_v43  ;;  %v2097_v3 = vmax.f32 %v11667_v15, %v2033_v1  ;;  %vm15595_vm5 = vmmov %vm15573_vm0 }
 0x52c   : >> { %6907 = vrot.lane.b32.xlu1 %v6906_v49, %s8385_s6  ;;  %6902 = vrot.lane.b32.xlu0 %v6906_v49, %s8384_s5  ;;  %v2098_v31 = vmax.f32 %v11671_v26, %v2034_v43  ;;  %v6774_v56 = vunpack.i.l.bf16 %v11841_v12  ;;  %v2067_v38 = vmin.f32 %v11638_v6, %v2035_v36  ;;  %v2068_v41 = vmin.f32 %v11645_v9, %v2036_v0  ;;  %v6823_v18 = vpop.permute.xlu0 %6822 }
 0x52d   : >> { %v2099_v61 = vmax.f32 %v11638_v6, %v2035_v36  ;;  %v2100_v42 = vmax.f32 %v11645_v9, %v2036_v0  ;;  %v6819_v37 = vunpack.i.l.bf16 %v6818_v21  ;;  %v6779_v15 = vunpack.i.l.bf16 %v11829_v62 }
 0x52e   : >> { %v6820_v26 = vunpack.i.h.bf16 %v6818_v21  ;;  %v2037_v23 = vsel %vm15573_vm0, %v6774_v56, %v6814_v30  ;;  %v6926_v12 = vpack.i.bf16 %v11990_v52, %v11986_v33  ;;  %v12018_v24 = vsel %vm8631_vm10, %v2065_v25, %v2097_v3  ;;  %v6828_v25 = vpop.permute.xlu1 %6827 }
 0x52f   : >> { %v12022_v6 = vsel %vm8631_vm10, %v2066_v32, %v2098_v31  ;;  %v2038_v9 = vsel %vm15593_vm1, %v6775_v8, %v6815_v14  ;;  %v6780_v54 = vunpack.i.h.bf16 %v11829_v62  ;;  %v12030_v53 = vsel %vm8631_vm10, %v2067_v38, %v2099_v61  ;;  %vm15596_vm1 = vmmov %vm15573_vm0 }
 0x530   : >> { %6917 = vrot.lane.b32.xlu1 %v6916_v58, %s8385_s6  ;;  %6912 = vrot.lane.b32.xlu0 %v6916_v58, %s8384_s5  ;;  %v12034_v40 = vsel %vm8631_vm10, %v2068_v41, %v2100_v42  ;;  %v2039_v49 = vsel %vm15594_vm2, %v6779_v15, %v6819_v37  ;;  %v2069_v62 = vmin.f32 %v11696_v45, %v2037_v23  ;;  %v6824_v21 = vunpack.i.l.bf16 %v6823_v18  ;;  %vm15597_vm2 = vmmov %vm15573_vm0 }
 0x531   : >> { %v2040_v1 = vsel %vm15595_vm5, %v6780_v54, %v6820_v26  ;;  %v2070_v22 = vmin.f32 %v11700_v47, %v2038_v9  ;;  %v6936_v43 = vpack.i.bf16 %v12022_v6, %v12018_v24  ;;  %v2101_v36 = vmax.f32 %v11696_v45, %v2037_v23  ;;  %vm15598_vm5 = vmmov %vm15573_vm0 }
 0x532   : >> { %v2102_v0 = vmax.f32 %v11700_v47, %v2038_v9  ;;  %v6784_v14 = vunpack.i.l.bf16 %v11865_v51  ;;  %v6825_v30 = vunpack.i.h.bf16 %v6823_v18  ;;  %v2071_v58 = vmin.f32 %v11677_v55, %v2039_v49 }
 0x533   : >> { %v2072_v32 = vmin.f32 %v11681_v63, %v2040_v1  ;;  %v2103_v3 = vmax.f32 %v11677_v55, %v2039_v49  ;;  %v2104_v31 = vmax.f32 %v11681_v63, %v2040_v1  ;;  %v6785_v45 = vunpack.i.h.bf16 %v11865_v51  ;;  %v15599_v49 = vld [vmem:[#allocation64_spill] sm:$0xff] }
 0x534   : >> { %6927 = vrot.lane.b32.xlu1 %v6926_v12, %s8385_s6  ;;  %6922 = vrot.lane.b32.xlu0 %v6926_v12, %s8384_s5  ;;  %v6830_v47 = vunpack.i.h.bf16 %v6828_v25  ;;  %v6829_v8 = vunpack.i.l.bf16 %v6828_v25  ;;  %v6946_v56 = vpack.i.bf16 %v12034_v40, %v12030_v53  ;;  %v12059_v38 = vsel %vm8631_vm10, %v2069_v62, %v2101_v36 }
 0x535   : >> { %v12063_v41 = vsel %vm8631_vm10, %v2070_v22, %v2102_v0  ;;  %v2041_v55 = vsel %vm15573_vm0, %v6784_v14, %v6824_v21  ;;  %v6790_v63 = vunpack.i.h.bf16 %v11871_v17  ;;  %v6789_v51 = vunpack.i.l.bf16 %v11871_v17 }
 0x536   : >> { %v2042_v61 = vsel %vm15596_vm1, %v6785_v45, %v6825_v30  ;;  %v12074_v42 = vsel %vm8631_vm10, %v2071_v58, %v2103_v3  ;;  %v12078_v37 = vsel %vm8631_vm10, %v2072_v32, %v2104_v31  ;;  %v2073_v26 = vmin.f32 %v11725_v13, %v2041_v55  ;;  %v15600_v31 = vld [vmem:[#allocation12_spill] sm:$0xff] }
 0x537   : >> { %v2043_v15 = vsel %vm15597_vm2, %v6789_v51, %v6829_v8  ;;  %v2044_v17 = vsel %vm15598_vm5, %v6790_v63, %v6830_v47  ;;  %v6956_v23 = vpack.i.bf16 %v12063_v41, %v12059_v38  ;;  %v2074_v12 = vmin.f32 %v11729_v59, %v2042_v61 }
 0x538   : >> { %6937 = vrot.lane.b32.xlu1 %v6936_v43, %s8385_s6  ;;  %6932 = vrot.lane.b32.xlu0 %v6936_v43, %s8384_s5  ;;  %v2105_v9 = vmax.f32 %v11725_v13, %v2041_v55  ;;  %v2106_v54 = vmax.f32 %v11729_v59, %v2042_v61  ;;  %v2075_v18 = vmin.f32 %v11715_v29, %v2043_v15  ;;  %vm15601_vm0 = vcmp.eq.s32.totalorder %v15600_v31, 0 }
 0x539   : >> { %v2076_v1 = vmin.f32 %v15599_v49, %v2044_v17  ;;  %v2107_v62 = vmax.f32 %v11715_v29, %v2043_v15  ;;  %v6966_v22 = vpack.i.bf16 %v12078_v37, %v12074_v42  ;;  %v2108_v43 = vmax.f32 %v15599_v49, %v2044_v17  ;;  %vm15602_vm1 = vmmov %vm15601_vm0 }
 0x53a   : >> { %v12101_v13 = vsel %vm8631_vm10, %v2073_v26, %v2105_v9  ;;  %v12105_v59 = vsel %vm8631_vm10, %v2074_v12, %v2106_v54  ;;  %vm15604_vm2 = vmmov %vm15601_vm0 }
 0x53b   : >> { %v6976_v29 = vpack.i.bf16 %v12105_v59, %v12101_v13  ;;  %v12113_v36 = vsel %vm8631_vm10, %v2075_v18, %v2107_v62  ;;  %v12117_v0 = vsel %vm8631_vm10, %v2076_v1, %v2108_v43  ;;  %vm15605_vm5 = vmmov %vm15601_vm0 }
 0x53c   : >> { %6947 = vrot.lane.b32.xlu1 %v6946_v56, %s8385_s6  ;;  %6942 = vrot.lane.b32.xlu0 %v6946_v56, %s8384_s5  ;;  %v6986_v25 = vpack.i.bf16 %v12117_v0, %v12113_v36 }
 0x540   : >> { %6957 = vrot.lane.b32.xlu1 %v6956_v23, %s8385_s6  ;;  %6952 = vrot.lane.b32.xlu0 %v6956_v23, %s8384_s5 }
 0x544   : >> { %6967 = vrot.lane.b32.xlu1 %v6966_v22, %s8385_s6  ;;  %6962 = vrot.lane.b32.xlu0 %v6966_v22, %s8384_s5 }
 0x548   : >> { %6977 = vrot.lane.b32.xlu1 %v6976_v29, %s8385_s6  ;;  %6972 = vrot.lane.b32.xlu0 %v6976_v29, %s8384_s5 }
 0x54c   : >> { %6987 = vrot.lane.b32.xlu1 %v6986_v25, %s8385_s6  ;;  %6982 = vrot.lane.b32.xlu0 %v6986_v25, %s8384_s5 }
 0x582   : >> { %v6838_v21 = vpop.permute.xlu1 %6837  ;;  %v6833_v14 = vpop.permute.xlu0 %6832 }
 0x583   : >> { %v6840_v30 = vunpack.i.h.bf16 %v6838_v21  ;;  %v6839_v58 = vunpack.i.l.bf16 %v6838_v21  ;;  %v6835_v32 = vunpack.i.h.bf16 %v6833_v14  ;;  %v6834_v3 = vunpack.i.l.bf16 %v6833_v14 }
 0x585   : >> { %v2272_v45 = vsel %vm15601_vm0, %v6835_v32, %v6840_v30  ;;  %v2271_v47 = vsel %vm15602_vm1, %v6834_v3, %v6839_v58  ;;  %vm15606_vm1 = vmmov %vm15601_vm0 }
 0x586   : >> { %v2304_v8 = vmin.f32 %v11785_v11, %v2272_v45  ;;  %v2336_v56 = vmax.f32 %v11785_v11, %v2272_v45  ;;  %v2303_v55 = vmin.f32 %v11781_v48, %v2271_v47  ;;  %v2335_v63 = vmax.f32 %v11781_v48, %v2271_v47  ;;  %v6848_v51 = vpop.permute.xlu1 %6847  ;;  %v6843_v17 = vpop.permute.xlu0 %6842 }
 0x587   : >> { %v6850_v61 = vunpack.i.h.bf16 %v6848_v51  ;;  %v6849_v15 = vunpack.i.l.bf16 %v6848_v51  ;;  %v6845_v9 = vunpack.i.h.bf16 %v6843_v17  ;;  %v6844_v54 = vunpack.i.l.bf16 %v6843_v17 }
 0x588   : >> { %v12135_v23 = vsel %vm8637_vm11, %v2304_v8, %v2336_v56  ;;  %v12139_v12 = vsel %vm8637_vm11, %v2303_v55, %v2335_v63 }
 0x589   : >> { %v6996_v11 = vpack.i.bf16 %v12135_v23, %v12139_v12  ;;  %v2274_v48 = vsel %vm15604_vm2, %v6845_v9, %v6850_v61  ;;  %v2273_v18 = vsel %vm15605_vm5, %v6844_v54, %v6849_v15  ;;  %vm15607_vm2 = vmmov %vm15601_vm0 }
 0x58a   : >> { %v6858_v49 = vpop.permute.xlu1 %6857  ;;  %v2306_v1 = vmin.f32 %v11799_v10, %v2274_v48  ;;  %v2338_v62 = vmax.f32 %v11799_v10, %v2274_v48  ;;  %v2305_v22 = vmin.f32 %v11795_v20, %v2273_v18  ;;  %v2337_v43 = vmax.f32 %v11795_v20, %v2273_v18  ;;  %v6853_v29 = vpop.permute.xlu0 %6852  ;;  %vm15608_vm5 = vmmov %vm15601_vm0 }
 0x58b   : >> { %6997 = vrot.lane.b32.xlu1 %v6996_v11, %s8383_s30  ;;  %v6860_v25 = vunpack.i.h.bf16 %v6858_v49  ;;  %v6859_v21 = vunpack.i.l.bf16 %v6858_v49  ;;  %v6855_v14 = vunpack.i.h.bf16 %v6853_v29  ;;  %v6854_v30 = vunpack.i.l.bf16 %v6853_v29  ;;  %6992 = vrot.lane.b32.xlu0 %v6996_v11, %s8382_s29 }
 0x58c   : >> { %v12155_v58 = vsel %vm8637_vm11, %v2306_v1, %v2338_v62  ;;  %v12159_v10 = vsel %vm8637_vm11, %v2305_v22, %v2337_v43 }
 0x58d   : >> { %v2276_v20 = vsel %vm15601_vm0, %v6855_v14, %v6860_v25  ;;  %v2275_v32 = vsel %vm15606_vm1, %v6854_v30, %v6859_v21  ;;  %v7006_v45 = vpack.i.bf16 %v12155_v58, %v12159_v10  ;;  %vm15609_vm1 = vmmov %vm15601_vm0 }
 0x58e   : >> { %v6868_v3 = vpop.permute.xlu1 %6867  ;;  %v2308_v47 = vmin.f32 %v11837_v39, %v2276_v20  ;;  %v2340_v8 = vmax.f32 %v11837_v39, %v2276_v20  ;;  %v2307_v56 = vmin.f32 %v11833_v2, %v2275_v32  ;;  %v2339_v55 = vmax.f32 %v11833_v2, %v2275_v32  ;;  %v6863_v63 = vpop.permute.xlu0 %6862 }
 0x58f   : >> { %v6870_v51 = vunpack.i.h.bf16 %v6868_v3  ;;  %v6869_v61 = vunpack.i.l.bf16 %v6868_v3  ;;  %v6865_v15 = vunpack.i.h.bf16 %v6863_v63  ;;  %v6864_v17 = vunpack.i.l.bf16 %v6863_v63  ;;  %7007 = vrot.lane.b32.xlu1 %v7006_v45, %s8383_s30  ;;  %7002 = vrot.lane.b32.xlu0 %v7006_v45, %s8382_s29 }
 0x590   : >> { %v12175_v9 = vsel %vm8637_vm11, %v2308_v47, %v2340_v8  ;;  %v12179_v39 = vsel %vm8637_vm11, %v2307_v56, %v2339_v55 }
 0x591   : >> { %v2278_v2 = vsel %vm15607_vm2, %v6865_v15, %v6870_v51  ;;  %v2277_v54 = vsel %vm15608_vm5, %v6864_v17, %v6869_v61  ;;  %v7016_v48 = vpack.i.bf16 %v12175_v9, %v12179_v39  ;;  %vm15610_vm2 = vmmov %vm15601_vm0 }
 0x592   : >> { %v6878_v11 = vpop.permute.xlu1 %6877  ;;  %v2310_v18 = vmin.f32 %v11850_v57, %v2278_v2  ;;  %v2342_v49 = vmax.f32 %v11850_v57, %v2278_v2  ;;  %v2309_v1 = vmin.f32 %v11846_v7, %v2277_v54  ;;  %v2341_v62 = vmax.f32 %v11846_v7, %v2277_v54  ;;  %v6873_v22 = vpop.permute.xlu0 %6872  ;;  %vm15611_vm5 = vmmov %vm15601_vm0 }
 0x593   : >> { %v6880_v43 = vunpack.i.h.bf16 %v6878_v11  ;;  %v6879_v29 = vunpack.i.l.bf16 %v6878_v11  ;;  %v6875_v25 = vunpack.i.h.bf16 %v6873_v22  ;;  %v6874_v21 = vunpack.i.l.bf16 %v6873_v22  ;;  %7017 = vrot.lane.b32.xlu1 %v7016_v48, %s8383_s30  ;;  %7012 = vrot.lane.b32.xlu0 %v7016_v48, %s8382_s29 }
 0x594   : >> { %v12195_v14 = vsel %vm8637_vm11, %v2310_v18, %v2342_v49  ;;  %v12199_v57 = vsel %vm8637_vm11, %v2309_v1, %v2341_v62 }
 0x595   : >> { %v2280_v7 = vsel %vm15601_vm0, %v6875_v25, %v6880_v43  ;;  %v2279_v30 = vsel %vm15609_vm1, %v6874_v21, %v6879_v29  ;;  %v7026_v32 = vpack.i.bf16 %v12195_v14, %v12199_v57  ;;  %vm15612_vm1 = vmmov %vm15601_vm0 }
 0x596   : >> { %v6888_v20 = vpop.permute.xlu1 %6887  ;;  %v2312_v3 = vmin.f32 %v11888_v35, %v2280_v7  ;;  %v2344_v45 = vmax.f32 %v11888_v35, %v2280_v7  ;;  %v2311_v47 = vmin.f32 %v11881_v4, %v2279_v30  ;;  %v2343_v8 = vmax.f32 %v11881_v4, %v2279_v30  ;;  %v6883_v56 = vpop.permute.xlu0 %6882 }
 0x597   : >> { %v6890_v55 = vunpack.i.h.bf16 %v6888_v20  ;;  %v6889_v63 = vunpack.i.l.bf16 %v6888_v20  ;;  %v6885_v51 = vunpack.i.h.bf16 %v6883_v56  ;;  %v6884_v61 = vunpack.i.l.bf16 %v6883_v56  ;;  %7027 = vrot.lane.b32.xlu1 %v7026_v32, %s8383_s30  ;;  %7022 = vrot.lane.b32.xlu0 %v7026_v32, %s8382_s29 }
 0x598   : >> { %v12215_v15 = vsel %vm8637_vm11, %v2312_v3, %v2344_v45  ;;  %v12219_v35 = vsel %vm8637_vm11, %v2311_v47, %v2343_v8 }
 0x599   : >> { %v2282_v4 = vsel %vm15610_vm2, %v6885_v51, %v6890_v55  ;;  %v2281_v17 = vsel %vm15611_vm5, %v6884_v61, %v6889_v63  ;;  %v7036_v54 = vpack.i.bf16 %v12215_v15, %v12219_v35  ;;  %vm15613_vm2 = vmmov %vm15601_vm0 }
 0x59a   : >> { %v6898_v2 = vpop.permute.xlu1 %6897  ;;  %v2314_v11 = vmin.f32 %v11902_v60, %v2282_v4  ;;  %v2346_v48 = vmax.f32 %v11902_v60, %v2282_v4  ;;  %v2313_v18 = vmin.f32 %v11898_v19, %v2281_v17  ;;  %v2345_v49 = vmax.f32 %v11898_v19, %v2281_v17  ;;  %v6893_v1 = vpop.permute.xlu0 %6892  ;;  %vm15614_vm5 = vmmov %vm15601_vm0 }
 0x59b   : >> { %v6900_v62 = vunpack.i.h.bf16 %v6898_v2  ;;  %v6899_v22 = vunpack.i.l.bf16 %v6898_v2  ;;  %v6895_v43 = vunpack.i.h.bf16 %v6893_v1  ;;  %v6894_v29 = vunpack.i.l.bf16 %v6893_v1  ;;  %7037 = vrot.lane.b32.xlu1 %v7036_v54, %s8383_s30  ;;  %7032 = vrot.lane.b32.xlu0 %v7036_v54, %s8382_s29 }
 0x59c   : >> { %v12235_v25 = vsel %vm8637_vm11, %v2314_v11, %v2346_v48  ;;  %v12239_v60 = vsel %vm8637_vm11, %v2313_v18, %v2345_v49 }
 0x59d   : >> { %v2284_v19 = vsel %vm15601_vm0, %v6895_v43, %v6900_v62  ;;  %v2283_v21 = vsel %vm15612_vm1, %v6894_v29, %v6899_v22  ;;  %v7046_v30 = vpack.i.bf16 %v12235_v25, %v12239_v60  ;;  %vm15615_vm1 = vmmov %vm15601_vm0 }
 0x59e   : >> { %v6908_v7 = vpop.permute.xlu1 %6907  ;;  %v2316_v20 = vmin.f32 %v11933_v5, %v2284_v19  ;;  %v2348_v32 = vmax.f32 %v11933_v5, %v2284_v19  ;;  %v2315_v3 = vmin.f32 %v11929_v27, %v2283_v21  ;;  %v2347_v45 = vmax.f32 %v11929_v27, %v2283_v21  ;;  %v6903_v47 = vpop.permute.xlu0 %6902 }
 0x59f   : >> { %v6910_v8 = vunpack.i.h.bf16 %v6908_v7  ;;  %v6909_v56 = vunpack.i.l.bf16 %v6908_v7  ;;  %v6905_v55 = vunpack.i.h.bf16 %v6903_v47  ;;  %v6904_v63 = vunpack.i.l.bf16 %v6903_v47  ;;  %7047 = vrot.lane.b32.xlu1 %v7046_v30, %s8383_s30  ;;  %7042 = vrot.lane.b32.xlu0 %v7046_v30, %s8382_s29 }
 0x5a0   : >> { %v12255_v51 = vsel %vm8637_vm11, %v2316_v20, %v2348_v32  ;;  %v12259_v5 = vsel %vm8637_vm11, %v2315_v3, %v2347_v45 }
 0x5a1   : >> { %v2286_v27 = vsel %vm15613_vm2, %v6905_v55, %v6910_v8  ;;  %v2285_v61 = vsel %vm15614_vm5, %v6904_v63, %v6909_v56  ;;  %v7056_v17 = vpack.i.bf16 %v12255_v51, %v12259_v5  ;;  %vm15616_vm2 = vmmov %vm15601_vm0 }
 0x5a2   : >> { %v6918_v4 = vpop.permute.xlu1 %6917  ;;  %v2318_v2 = vmin.f32 %v11951_v46, %v2286_v27  ;;  %v2350_v54 = vmax.f32 %v11951_v46, %v2286_v27  ;;  %v2317_v11 = vmin.f32 %v11942_v34, %v2285_v61  ;;  %v2349_v48 = vmax.f32 %v11942_v34, %v2285_v61  ;;  %v6913_v18 = vpop.permute.xlu0 %6912  ;;  %vm15617_vm5 = vmmov %vm15601_vm0 }
 0x5a3   : >> { %v6920_v49 = vunpack.i.h.bf16 %v6918_v4  ;;  %v6919_v1 = vunpack.i.l.bf16 %v6918_v4  ;;  %v6915_v62 = vunpack.i.h.bf16 %v6913_v18  ;;  %v6914_v22 = vunpack.i.l.bf16 %v6913_v18  ;;  %7057 = vrot.lane.b32.xlu1 %v7056_v17, %s8383_s30  ;;  %7052 = vrot.lane.b32.xlu0 %v7056_v17, %s8382_s29 }
 0x5a4   : >> { %v12275_v43 = vsel %vm8637_vm11, %v2318_v2, %v2350_v54  ;;  %v12279_v46 = vsel %vm8637_vm11, %v2317_v11, %v2349_v48 }
 0x5a5   : >> { %v2288_v34 = vsel %vm15601_vm0, %v6915_v62, %v6920_v49  ;;  %v2287_v29 = vsel %vm15615_vm1, %v6914_v22, %v6919_v1  ;;  %v7066_v21 = vpack.i.bf16 %v12275_v43, %v12279_v46  ;;  %vm15618_vm1 = vmmov %vm15601_vm0 }
 0x5a6   : >> { %v6928_v19 = vpop.permute.xlu1 %6927  ;;  %v2320_v7 = vmin.f32 %v11977_v50, %v2288_v34  ;;  %v2352_v30 = vmax.f32 %v11977_v50, %v2288_v34  ;;  %v2319_v20 = vmin.f32 %v11973_v44, %v2287_v29  ;;  %v2351_v32 = vmax.f32 %v11973_v44, %v2287_v29  ;;  %v6923_v3 = vpop.permute.xlu0 %6922 }
 0x5a7   : >> { %v6930_v45 = vunpack.i.h.bf16 %v6928_v19  ;;  %v6929_v47 = vunpack.i.l.bf16 %v6928_v19  ;;  %v6925_v8 = vunpack.i.h.bf16 %v6923_v3  ;;  %v6924_v56 = vunpack.i.l.bf16 %v6923_v3  ;;  %7067 = vrot.lane.b32.xlu1 %v7066_v21, %s8383_s30  ;;  %7062 = vrot.lane.b32.xlu0 %v7066_v21, %s8382_s29 }
 0x5a8   : >> { %v12295_v55 = vsel %vm8637_vm11, %v2320_v7, %v2352_v30  ;;  %v12299_v50 = vsel %vm8637_vm11, %v2319_v20, %v2351_v32 }
 0x5a9   : >> { %v2290_v44 = vsel %vm15616_vm2, %v6925_v8, %v6930_v45  ;;  %v2289_v63 = vsel %vm15617_vm5, %v6924_v56, %v6929_v47  ;;  %v7076_v61 = vpack.i.bf16 %v12295_v55, %v12299_v50  ;;  %vm15619_vm2 = vmmov %vm15601_vm0 }
 0x5aa   : >> { %v6938_v27 = vpop.permute.xlu1 %6937  ;;  %v2322_v4 = vmin.f32 %v11990_v52, %v2290_v44  ;;  %v2354_v17 = vmax.f32 %v11990_v52, %v2290_v44  ;;  %v2321_v2 = vmin.f32 %v11986_v33, %v2289_v63  ;;  %v2353_v54 = vmax.f32 %v11986_v33, %v2289_v63  ;;  %v6933_v11 = vpop.permute.xlu0 %6932  ;;  %vm15620_vm5 = vmmov %vm15601_vm0 }
 0x5ab   : >> { %v6940_v48 = vunpack.i.h.bf16 %v6938_v27  ;;  %v6939_v18 = vunpack.i.l.bf16 %v6938_v27  ;;  %v6935_v49 = vunpack.i.h.bf16 %v6933_v11  ;;  %v6934_v1 = vunpack.i.l.bf16 %v6933_v11  ;;  %7077 = vrot.lane.b32.xlu1 %v7076_v61, %s8383_s30  ;;  %7072 = vrot.lane.b32.xlu0 %v7076_v61, %s8382_s29 }
 0x5ac   : >> { %v12315_v62 = vsel %vm8637_vm11, %v2322_v4, %v2354_v17  ;;  %v12319_v52 = vsel %vm8637_vm11, %v2321_v2, %v2353_v54 }
 0x5ad   : >> { %v2292_v33 = vsel %vm15601_vm0, %v6935_v49, %v6940_v48  ;;  %v2291_v22 = vsel %vm15618_vm1, %v6934_v1, %v6939_v18  ;;  %v7086_v29 = vpack.i.bf16 %v12315_v62, %v12319_v52  ;;  %vm15621_vm1 = vmmov %vm15601_vm0 }
 0x5ae   : >> { %v6948_v34 = vpop.permute.xlu1 %6947  ;;  %v2324_v19 = vmin.f32 %v12022_v6, %v2292_v33  ;;  %v2356_v21 = vmax.f32 %v12022_v6, %v2292_v33  ;;  %v2323_v7 = vmin.f32 %v12018_v24, %v2291_v22  ;;  %v2355_v30 = vmax.f32 %v12018_v24, %v2291_v22  ;;  %v6943_v20 = vpop.permute.xlu0 %6942 }
 0x5af   : >> { %v6950_v32 = vunpack.i.h.bf16 %v6948_v34  ;;  %v6949_v3 = vunpack.i.l.bf16 %v6948_v34  ;;  %v6945_v45 = vunpack.i.h.bf16 %v6943_v20  ;;  %v6944_v47 = vunpack.i.l.bf16 %v6943_v20  ;;  %7087 = vrot.lane.b32.xlu1 %v7086_v29, %s8383_s30  ;;  %7082 = vrot.lane.b32.xlu0 %v7086_v29, %s8382_s29 }
 0x5b0   : >> { %v12335_v8 = vsel %vm8637_vm11, %v2324_v19, %v2356_v21  ;;  %v12339_v6 = vsel %vm8637_vm11, %v2323_v7, %v2355_v30 }
 0x5b1   : >> { %v2294_v24 = vsel %vm15619_vm2, %v6945_v45, %v6950_v32  ;;  %v2293_v56 = vsel %vm15620_vm5, %v6944_v47, %v6949_v3  ;;  %v7096_v63 = vpack.i.bf16 %v12335_v8, %v12339_v6  ;;  %vm15622_vm2 = vmmov %vm15601_vm0 }
 0x5b2   : >> { %v6958_v44 = vpop.permute.xlu1 %6957  ;;  %v2326_v27 = vmin.f32 %v12034_v40, %v2294_v24  ;;  %v2358_v61 = vmax.f32 %v12034_v40, %v2294_v24  ;;  %v2325_v4 = vmin.f32 %v12030_v53, %v2293_v56  ;;  %v2357_v17 = vmax.f32 %v12030_v53, %v2293_v56  ;;  %v6953_v2 = vpop.permute.xlu0 %6952  ;;  %vm15623_vm5 = vmmov %vm15601_vm0 }
 0x5b3   : >> { %v6960_v54 = vunpack.i.h.bf16 %v6958_v44  ;;  %v6959_v11 = vunpack.i.l.bf16 %v6958_v44  ;;  %v6955_v48 = vunpack.i.h.bf16 %v6953_v2  ;;  %v6954_v18 = vunpack.i.l.bf16 %v6953_v2  ;;  %7097 = vrot.lane.b32.xlu1 %v7096_v63, %s8383_s30  ;;  %7092 = vrot.lane.b32.xlu0 %v7096_v63, %s8382_s29 }
 0x5b4   : >> { %v12355_v49 = vsel %vm8637_vm11, %v2326_v27, %v2358_v61  ;;  %v12359_v40 = vsel %vm8637_vm11, %v2325_v4, %v2357_v17 }
 0x5b5   : >> { %v2296_v53 = vsel %vm15601_vm0, %v6955_v48, %v6960_v54  ;;  %v2295_v1 = vsel %vm15621_vm1, %v6954_v18, %v6959_v11  ;;  %v7106_v22 = vpack.i.bf16 %v12355_v49, %v12359_v40  ;;  %vm15624_vm1 = vmmov %vm15601_vm0 }
 0x5b6   : >> { %v6968_v33 = vpop.permute.xlu1 %6967  ;;  %v2328_v34 = vmin.f32 %v12063_v41, %v2296_v53  ;;  %v2360_v29 = vmax.f32 %v12063_v41, %v2296_v53  ;;  %v2327_v19 = vmin.f32 %v12059_v38, %v2295_v1  ;;  %v2359_v21 = vmax.f32 %v12059_v38, %v2295_v1  ;;  %v6963_v7 = vpop.permute.xlu0 %6962 }
 0x5b7   : >> { %v6970_v30 = vunpack.i.h.bf16 %v6968_v33  ;;  %v6969_v20 = vunpack.i.l.bf16 %v6968_v33  ;;  %v6965_v32 = vunpack.i.h.bf16 %v6963_v7  ;;  %v6964_v3 = vunpack.i.l.bf16 %v6963_v7  ;;  %7107 = vrot.lane.b32.xlu1 %v7106_v22, %s8383_s30  ;;  %7102 = vrot.lane.b32.xlu0 %v7106_v22, %s8382_s29 }
 0x5b8   : >> { %v12375_v45 = vsel %vm8637_vm11, %v2328_v34, %v2360_v29  ;;  %v12379_v41 = vsel %vm8637_vm11, %v2327_v19, %v2359_v21 }
 0x5b9   : >> { %v2298_v38 = vsel %vm15622_vm2, %v6965_v32, %v6970_v30  ;;  %v2297_v47 = vsel %vm15623_vm5, %v6964_v3, %v6969_v20  ;;  %v7116_v56 = vpack.i.bf16 %v12375_v45, %v12379_v41  ;;  %vm15625_vm2 = vmmov %vm15601_vm0 }
 0x5ba   : >> { %v6978_v24 = vpop.permute.xlu1 %6977  ;;  %v2330_v44 = vmin.f32 %v12078_v37, %v2298_v38  ;;  %v2362_v63 = vmax.f32 %v12078_v37, %v2298_v38  ;;  %v2329_v27 = vmin.f32 %v12074_v42, %v2297_v47  ;;  %v2361_v61 = vmax.f32 %v12074_v42, %v2297_v47  ;;  %v6973_v4 = vpop.permute.xlu0 %6972  ;;  %vm15626_vm5 = vmmov %vm15601_vm0 }
 0x5bb   : >> { %v6980_v17 = vunpack.i.h.bf16 %v6978_v24  ;;  %v6979_v2 = vunpack.i.l.bf16 %v6978_v24  ;;  %v6975_v54 = vunpack.i.h.bf16 %v6973_v4  ;;  %v6974_v11 = vunpack.i.l.bf16 %v6973_v4  ;;  %7117 = vrot.lane.b32.xlu1 %v7116_v56, %s8383_s30  ;;  %7112 = vrot.lane.b32.xlu0 %v7116_v56, %s8382_s29 }
 0x5bc   : >> { %v12395_v48 = vsel %vm8637_vm11, %v2330_v44, %v2362_v63  ;;  %v12399_v37 = vsel %vm8637_vm11, %v2329_v27, %v2361_v61 }
 0x5bd   : >> { %v2300_v42 = vsel %vm15601_vm0, %v6975_v54, %v6980_v17  ;;  %v2299_v18 = vsel %vm15624_vm1, %v6974_v11, %v6979_v2  ;;  %v7126_v1 = vpack.i.bf16 %v12395_v48, %v12399_v37  ;;  %v15627_v11 = vld [vmem:[#allocation11_spill] sm:$0xff] }
 0x5be   : >> { %v6988_v53 = vpop.permute.xlu1 %6987  ;;  %v2332_v33 = vmin.f32 %v12105_v59, %v2300_v42  ;;  %v2364_v22 = vmax.f32 %v12105_v59, %v2300_v42  ;;  %v2331_v34 = vmin.f32 %v12101_v13, %v2299_v18  ;;  %v2363_v29 = vmax.f32 %v12101_v13, %v2299_v18  ;;  %v6983_v19 = vpop.permute.xlu0 %6982 }
 0x5bf   : >> { %v6990_v21 = vunpack.i.h.bf16 %v6988_v53  ;;  %v6989_v7 = vunpack.i.l.bf16 %v6988_v53  ;;  %v6985_v30 = vunpack.i.h.bf16 %v6983_v19  ;;  %v6984_v20 = vunpack.i.l.bf16 %v6983_v19  ;;  %7127 = vrot.lane.b32.xlu1 %v7126_v1, %s8383_s30  ;;  %7122 = vrot.lane.b32.xlu0 %v7126_v1, %s8382_s29 }
 0x5c0   : >> { %v12415_v32 = vsel %vm8637_vm11, %v2332_v33, %v2364_v22  ;;  %v12419_v59 = vsel %vm8637_vm11, %v2331_v34, %v2363_v29  ;;  %vm15628_vm0 = vcmp.eq.s32.totalorder %v15627_v11, 0 }
 0x5c1   : >> { %v2302_v13 = vsel %vm15625_vm2, %v6985_v30, %v6990_v21  ;;  %v2301_v3 = vsel %vm15626_vm5, %v6984_v20, %v6989_v7  ;;  %v7136_v38 = vpack.i.bf16 %v12415_v32, %v12419_v59  ;;  %vm15629_vm1 = vmmov %vm15628_vm0 }
 0x5c2   : >> { %v2334_v47 = vmin.f32 %v12117_v0, %v2302_v13  ;;  %v2366_v24 = vmax.f32 %v12117_v0, %v2302_v13  ;;  %v2333_v56 = vmin.f32 %v12113_v36, %v2301_v3  ;;  %v2365_v44 = vmax.f32 %v12113_v36, %v2301_v3  ;;  %vm15631_vm2 = vmmov %vm15628_vm0 }
 0x5c3   : >> { %7137 = vrot.lane.b32.xlu1 %v7136_v38, %s8383_s30  ;;  %7132 = vrot.lane.b32.xlu0 %v7136_v38, %s8382_s29  ;;  %vm15632_vm5 = vmmov %vm15628_vm0 }
 0x5c4   : >> { %v12435_v63 = vsel %vm8637_vm11, %v2334_v47, %v2366_v24  ;;  %v12439_v27 = vsel %vm8637_vm11, %v2333_v56, %v2365_v44 }
 0x5c5   : >> { %v7146_v61 = vpack.i.bf16 %v12435_v63, %v12439_v27 }
 0x5c7   : >> { %7147 = vrot.lane.b32.xlu1 %v7146_v61, %s8383_s30  ;;  %7142 = vrot.lane.b32.xlu0 %v7146_v61, %s8382_s29 }
 0x5fd   : >> { %v6998_v36 = vpop.permute.xlu1 %6997  ;;  %v6993_v17 = vpop.permute.xlu0 %6992 }
 0x5fe   : >> { %v7000_v0 = vunpack.i.h.bf16 %v6998_v36  ;;  %v6999_v4 = vunpack.i.l.bf16 %v6998_v36  ;;  %v6995_v2 = vunpack.i.h.bf16 %v6993_v17  ;;  %v6994_v54 = vunpack.i.l.bf16 %v6993_v17 }
 0x600   : >> { %v2530_v42 = vsel %vm15628_vm0, %v6995_v2, %v7000_v0  ;;  %v2529_v18 = vsel %vm15629_vm1, %v6994_v54, %v6999_v4  ;;  %vm15633_vm1 = vmmov %vm15628_vm0 }
 0x601   : >> { %v2562_v53 = vmin.f32 %v12135_v23, %v2530_v42  ;;  %v2594_v1 = vmax.f32 %v12135_v23, %v2530_v42  ;;  %v2561_v33 = vmin.f32 %v12139_v12, %v2529_v18  ;;  %v2593_v22 = vmax.f32 %v12139_v12, %v2529_v18  ;;  %v7008_v34 = vpop.permute.xlu1 %7007  ;;  %v7003_v29 = vpop.permute.xlu0 %7002 }
 0x602   : >> { %v7010_v19 = vunpack.i.h.bf16 %v7008_v34  ;;  %v7009_v21 = vunpack.i.l.bf16 %v7008_v34  ;;  %v7005_v7 = vunpack.i.h.bf16 %v7003_v29  ;;  %v7004_v30 = vunpack.i.l.bf16 %v7003_v29 }
 0x603   : >> { %v12455_v13 = vsel %vm8643_vm12, %v2562_v53, %v2594_v1  ;;  %v12459_v3 = vsel %vm8643_vm12, %v2561_v33, %v2593_v22 }
 0x604   : >> { %v2532_v23 = vsel %vm15631_vm2, %v7005_v7, %v7010_v19  ;;  %v2531_v12 = vsel %vm15632_vm5, %v7004_v30, %v7009_v21  ;;  %v7156_v38 = vpack.i.bf16 %v12455_v13, %v12459_v3  ;;  %vm15634_vm2 = vmmov %vm15628_vm0 }
 0x605   : >> { %v2564_v47 = vmin.f32 %v12155_v58, %v2532_v23  ;;  %v2596_v24 = vmax.f32 %v12155_v58, %v2532_v23  ;;  %v2563_v56 = vmin.f32 %v12159_v10, %v2531_v12  ;;  %v2595_v44 = vmax.f32 %v12159_v10, %v2531_v12  ;;  %v7018_v61 = vpop.permute.xlu1 %7017  ;;  %v7013_v36 = vpop.permute.xlu0 %7012  ;;  %vm15635_vm5 = vmmov %vm15628_vm0 }
 0x606   : >> { %v7020_v0 = vunpack.i.h.bf16 %v7018_v61  ;;  %v7019_v4 = vunpack.i.l.bf16 %v7018_v61  ;;  %v7015_v17 = vunpack.i.h.bf16 %v7013_v36  ;;  %v7014_v2 = vunpack.i.l.bf16 %v7013_v36  ;;  %7157 = vrot.lane.b32.xlu1 %v7156_v38, %s8381_s25  ;;  %7152 = vrot.lane.b32.xlu0 %v7156_v38, %s8380_s14 }
 0x607   : >> { %v12475_v54 = vsel %vm8643_vm12, %v2564_v47, %v2596_v24  ;;  %v12479_v58 = vsel %vm8643_vm12, %v2563_v56, %v2595_v44 }
 0x608   : >> { %v2534_v10 = vsel %vm15628_vm0, %v7015_v17, %v7020_v0  ;;  %v2533_v42 = vsel %vm15633_vm1, %v7014_v2, %v7019_v4  ;;  %v7166_v18 = vpack.i.bf16 %v12475_v54, %v12479_v58  ;;  %vm15636_vm1 = vmmov %vm15628_vm0 }
 0x609   : >> { %v2566_v53 = vmin.f32 %v12175_v9, %v2534_v10  ;;  %v2598_v1 = vmax.f32 %v12175_v9, %v2534_v10  ;;  %v2565_v33 = vmin.f32 %v12179_v39, %v2533_v42  ;;  %v2597_v22 = vmax.f32 %v12179_v39, %v2533_v42  ;;  %v7028_v34 = vpop.permute.xlu1 %7027  ;;  %v7023_v29 = vpop.permute.xlu0 %7022 }
 0x60a   : >> { %v7030_v19 = vunpack.i.h.bf16 %v7028_v34  ;;  %v7029_v21 = vunpack.i.l.bf16 %v7028_v34  ;;  %v7025_v7 = vunpack.i.h.bf16 %v7023_v29  ;;  %v7024_v30 = vunpack.i.l.bf16 %v7023_v29  ;;  %7167 = vrot.lane.b32.xlu1 %v7166_v18, %s8381_s25  ;;  %7162 = vrot.lane.b32.xlu0 %v7166_v18, %s8380_s14 }
 0x60b   : >> { %v12495_v23 = vsel %vm8643_vm12, %v2566_v53, %v2598_v1  ;;  %v12499_v9 = vsel %vm8643_vm12, %v2565_v33, %v2597_v22 }
 0x60c   : >> { %v2536_v39 = vsel %vm15634_vm2, %v7025_v7, %v7030_v19  ;;  %v2535_v12 = vsel %vm15635_vm5, %v7024_v30, %v7029_v21  ;;  %v7176_v38 = vpack.i.bf16 %v12495_v23, %v12499_v9  ;;  %vm15637_vm2 = vmmov %vm15628_vm0 }
 0x60d   : >> { %v2568_v47 = vmin.f32 %v12195_v14, %v2536_v39  ;;  %v2600_v24 = vmax.f32 %v12195_v14, %v2536_v39  ;;  %v2567_v56 = vmin.f32 %v12199_v57, %v2535_v12  ;;  %v2599_v44 = vmax.f32 %v12199_v57, %v2535_v12  ;;  %v7038_v61 = vpop.permute.xlu1 %7037  ;;  %v7033_v36 = vpop.permute.xlu0 %7032  ;;  %vm15638_vm5 = vmmov %vm15628_vm0 }
 0x60e   : >> { %v7040_v0 = vunpack.i.h.bf16 %v7038_v61  ;;  %v7039_v4 = vunpack.i.l.bf16 %v7038_v61  ;;  %v7035_v17 = vunpack.i.h.bf16 %v7033_v36  ;;  %v7034_v2 = vunpack.i.l.bf16 %v7033_v36  ;;  %7177 = vrot.lane.b32.xlu1 %v7176_v38, %s8381_s25  ;;  %7172 = vrot.lane.b32.xlu0 %v7176_v38, %s8380_s14 }
 0x60f   : >> { %v12515_v10 = vsel %vm8643_vm12, %v2568_v47, %v2600_v24  ;;  %v12519_v14 = vsel %vm8643_vm12, %v2567_v56, %v2599_v44 }
 0x610   : >> { %v2538_v57 = vsel %vm15628_vm0, %v7035_v17, %v7040_v0  ;;  %v2537_v42 = vsel %vm15636_vm1, %v7034_v2, %v7039_v4  ;;  %v7186_v18 = vpack.i.bf16 %v12515_v10, %v12519_v14  ;;  %vm15639_vm1 = vmmov %vm15628_vm0 }
 0x611   : >> { %v2570_v53 = vmin.f32 %v12215_v15, %v2538_v57  ;;  %v2602_v1 = vmax.f32 %v12215_v15, %v2538_v57  ;;  %v2569_v33 = vmin.f32 %v12219_v35, %v2537_v42  ;;  %v2601_v22 = vmax.f32 %v12219_v35, %v2537_v42  ;;  %v7048_v34 = vpop.permute.xlu1 %7047  ;;  %v7043_v29 = vpop.permute.xlu0 %7042 }
 0x612   : >> { %v7050_v19 = vunpack.i.h.bf16 %v7048_v34  ;;  %v7049_v21 = vunpack.i.l.bf16 %v7048_v34  ;;  %v7045_v7 = vunpack.i.h.bf16 %v7043_v29  ;;  %v7044_v30 = vunpack.i.l.bf16 %v7043_v29  ;;  %7187 = vrot.lane.b32.xlu1 %v7186_v18, %s8381_s25  ;;  %7182 = vrot.lane.b32.xlu0 %v7186_v18, %s8380_s14 }
 0x613   : >> { %v12535_v39 = vsel %vm8643_vm12, %v2570_v53, %v2602_v1  ;;  %v12539_v15 = vsel %vm8643_vm12, %v2569_v33, %v2601_v22 }
 0x614   : >> { %v2540_v35 = vsel %vm15637_vm2, %v7045_v7, %v7050_v19  ;;  %v2539_v12 = vsel %vm15638_vm5, %v7044_v30, %v7049_v21  ;;  %v7196_v38 = vpack.i.bf16 %v12535_v39, %v12539_v15  ;;  %vm15640_vm2 = vmmov %vm15628_vm0 }
 0x615   : >> { %v2572_v47 = vmin.f32 %v12235_v25, %v2540_v35  ;;  %v2604_v24 = vmax.f32 %v12235_v25, %v2540_v35  ;;  %v2571_v56 = vmin.f32 %v12239_v60, %v2539_v12  ;;  %v2603_v44 = vmax.f32 %v12239_v60, %v2539_v12  ;;  %v7058_v61 = vpop.permute.xlu1 %7057  ;;  %v7053_v36 = vpop.permute.xlu0 %7052  ;;  %vm15641_vm5 = vmmov %vm15628_vm0 }
 0x616   : >> { %v7060_v0 = vunpack.i.h.bf16 %v7058_v61  ;;  %v7059_v4 = vunpack.i.l.bf16 %v7058_v61  ;;  %v7055_v17 = vunpack.i.h.bf16 %v7053_v36  ;;  %v7054_v2 = vunpack.i.l.bf16 %v7053_v36  ;;  %7197 = vrot.lane.b32.xlu1 %v7196_v38, %s8381_s25  ;;  %7192 = vrot.lane.b32.xlu0 %v7196_v38, %s8380_s14 }
 0x617   : >> { %v12555_v57 = vsel %vm8643_vm12, %v2572_v47, %v2604_v24  ;;  %v12559_v25 = vsel %vm8643_vm12, %v2571_v56, %v2603_v44 }
 0x618   : >> { %v2542_v60 = vsel %vm15628_vm0, %v7055_v17, %v7060_v0  ;;  %v2541_v42 = vsel %vm15639_vm1, %v7054_v2, %v7059_v4  ;;  %v7206_v18 = vpack.i.bf16 %v12555_v57, %v12559_v25  ;;  %vm15642_vm1 = vmmov %vm15628_vm0 }
 0x619   : >> { %v2574_v53 = vmin.f32 %v12255_v51, %v2542_v60  ;;  %v2606_v1 = vmax.f32 %v12255_v51, %v2542_v60  ;;  %v2573_v33 = vmin.f32 %v12259_v5, %v2541_v42  ;;  %v2605_v22 = vmax.f32 %v12259_v5, %v2541_v42  ;;  %v7068_v34 = vpop.permute.xlu1 %7067  ;;  %v7063_v29 = vpop.permute.xlu0 %7062 }
 0x61a   : >> { %v7070_v19 = vunpack.i.h.bf16 %v7068_v34  ;;  %v7069_v21 = vunpack.i.l.bf16 %v7068_v34  ;;  %v7065_v7 = vunpack.i.h.bf16 %v7063_v29  ;;  %v7064_v30 = vunpack.i.l.bf16 %v7063_v29  ;;  %7207 = vrot.lane.b32.xlu1 %v7206_v18, %s8381_s25  ;;  %7202 = vrot.lane.b32.xlu0 %v7206_v18, %s8380_s14 }
 0x61b   : >> { %v12575_v35 = vsel %vm8643_vm12, %v2574_v53, %v2606_v1  ;;  %v12579_v51 = vsel %vm8643_vm12, %v2573_v33, %v2605_v22 }
 0x61c   : >> { %v2544_v5 = vsel %vm15640_vm2, %v7065_v7, %v7070_v19  ;;  %v2543_v12 = vsel %vm15641_vm5, %v7064_v30, %v7069_v21  ;;  %v7216_v38 = vpack.i.bf16 %v12575_v35, %v12579_v51  ;;  %vm15643_vm2 = vmmov %vm15628_vm0 }
 0x61d   : >> { %v2576_v47 = vmin.f32 %v12275_v43, %v2544_v5  ;;  %v2608_v24 = vmax.f32 %v12275_v43, %v2544_v5  ;;  %v2575_v56 = vmin.f32 %v12279_v46, %v2543_v12  ;;  %v2607_v44 = vmax.f32 %v12279_v46, %v2543_v12  ;;  %v7078_v61 = vpop.permute.xlu1 %7077  ;;  %v7073_v36 = vpop.permute.xlu0 %7072  ;;  %vm15644_vm5 = vmmov %vm15628_vm0 }
 0x61e   : >> { %v7080_v0 = vunpack.i.h.bf16 %v7078_v61  ;;  %v7079_v4 = vunpack.i.l.bf16 %v7078_v61  ;;  %v7075_v17 = vunpack.i.h.bf16 %v7073_v36  ;;  %v7074_v2 = vunpack.i.l.bf16 %v7073_v36  ;;  %7217 = vrot.lane.b32.xlu1 %v7216_v38, %s8381_s25  ;;  %7212 = vrot.lane.b32.xlu0 %v7216_v38, %s8380_s14 }
 0x61f   : >> { %v12595_v60 = vsel %vm8643_vm12, %v2576_v47, %v2608_v24  ;;  %v12599_v43 = vsel %vm8643_vm12, %v2575_v56, %v2607_v44 }
 0x620   : >> { %v2546_v46 = vsel %vm15628_vm0, %v7075_v17, %v7080_v0  ;;  %v2545_v42 = vsel %vm15642_vm1, %v7074_v2, %v7079_v4  ;;  %v7226_v18 = vpack.i.bf16 %v12595_v60, %v12599_v43  ;;  %vm15645_vm1 = vmmov %vm15628_vm0 }
 0x621   : >> { %v2578_v53 = vmin.f32 %v12295_v55, %v2546_v46  ;;  %v2610_v1 = vmax.f32 %v12295_v55, %v2546_v46  ;;  %v2577_v33 = vmin.f32 %v12299_v50, %v2545_v42  ;;  %v2609_v22 = vmax.f32 %v12299_v50, %v2545_v42  ;;  %v7088_v34 = vpop.permute.xlu1 %7087  ;;  %v7083_v29 = vpop.permute.xlu0 %7082 }
 0x622   : >> { %v7090_v19 = vunpack.i.h.bf16 %v7088_v34  ;;  %v7089_v21 = vunpack.i.l.bf16 %v7088_v34  ;;  %v7085_v7 = vunpack.i.h.bf16 %v7083_v29  ;;  %v7084_v30 = vunpack.i.l.bf16 %v7083_v29  ;;  %7227 = vrot.lane.b32.xlu1 %v7226_v18, %s8381_s25  ;;  %7222 = vrot.lane.b32.xlu0 %v7226_v18, %s8380_s14 }
 0x623   : >> { %v12615_v5 = vsel %vm8643_vm12, %v2578_v53, %v2610_v1  ;;  %v12619_v55 = vsel %vm8643_vm12, %v2577_v33, %v2609_v22 }
 0x624   : >> { %v2548_v50 = vsel %vm15643_vm2, %v7085_v7, %v7090_v19  ;;  %v2547_v12 = vsel %vm15644_vm5, %v7084_v30, %v7089_v21  ;;  %v7236_v38 = vpack.i.bf16 %v12615_v5, %v12619_v55  ;;  %vm15646_vm2 = vmmov %vm15628_vm0 }
 0x625   : >> { %v2580_v47 = vmin.f32 %v12315_v62, %v2548_v50  ;;  %v2612_v24 = vmax.f32 %v12315_v62, %v2548_v50  ;;  %v2579_v56 = vmin.f32 %v12319_v52, %v2547_v12  ;;  %v2611_v44 = vmax.f32 %v12319_v52, %v2547_v12  ;;  %v7098_v61 = vpop.permute.xlu1 %7097  ;;  %v7093_v36 = vpop.permute.xlu0 %7092  ;;  %vm15647_vm5 = vmmov %vm15628_vm0 }
 0x626   : >> { %v7100_v0 = vunpack.i.h.bf16 %v7098_v61  ;;  %v7099_v4 = vunpack.i.l.bf16 %v7098_v61  ;;  %v7095_v17 = vunpack.i.h.bf16 %v7093_v36  ;;  %v7094_v2 = vunpack.i.l.bf16 %v7093_v36  ;;  %7237 = vrot.lane.b32.xlu1 %v7236_v38, %s8381_s25  ;;  %7232 = vrot.lane.b32.xlu0 %v7236_v38, %s8380_s14 }
 0x627   : >> { %v12635_v46 = vsel %vm8643_vm12, %v2580_v47, %v2612_v24  ;;  %v12639_v62 = vsel %vm8643_vm12, %v2579_v56, %v2611_v44 }
 0x628   : >> { %v2550_v52 = vsel %vm15628_vm0, %v7095_v17, %v7100_v0  ;;  %v2549_v42 = vsel %vm15645_vm1, %v7094_v2, %v7099_v4  ;;  %v7246_v18 = vpack.i.bf16 %v12635_v46, %v12639_v62  ;;  %vm15648_vm1 = vmmov %vm15628_vm0 }
 0x629   : >> { %v2582_v53 = vmin.f32 %v12335_v8, %v2550_v52  ;;  %v2614_v1 = vmax.f32 %v12335_v8, %v2550_v52  ;;  %v2581_v33 = vmin.f32 %v12339_v6, %v2549_v42  ;;  %v2613_v22 = vmax.f32 %v12339_v6, %v2549_v42  ;;  %v7108_v34 = vpop.permute.xlu1 %7107  ;;  %v7103_v29 = vpop.permute.xlu0 %7102 }
 0x62a   : >> { %v7110_v19 = vunpack.i.h.bf16 %v7108_v34  ;;  %v7109_v21 = vunpack.i.l.bf16 %v7108_v34  ;;  %v7105_v7 = vunpack.i.h.bf16 %v7103_v29  ;;  %v7104_v30 = vunpack.i.l.bf16 %v7103_v29  ;;  %7247 = vrot.lane.b32.xlu1 %v7246_v18, %s8381_s25  ;;  %7242 = vrot.lane.b32.xlu0 %v7246_v18, %s8380_s14 }
 0x62b   : >> { %v12655_v50 = vsel %vm8643_vm12, %v2582_v53, %v2614_v1  ;;  %v12659_v8 = vsel %vm8643_vm12, %v2581_v33, %v2613_v22 }
 0x62c   : >> { %v2552_v6 = vsel %vm15646_vm2, %v7105_v7, %v7110_v19  ;;  %v2551_v12 = vsel %vm15647_vm5, %v7104_v30, %v7109_v21  ;;  %v7256_v38 = vpack.i.bf16 %v12655_v50, %v12659_v8  ;;  %vm15649_vm2 = vmmov %vm15628_vm0 }
 0x62d   : >> { %v2584_v47 = vmin.f32 %v12355_v49, %v2552_v6  ;;  %v2616_v24 = vmax.f32 %v12355_v49, %v2552_v6  ;;  %v2583_v56 = vmin.f32 %v12359_v40, %v2551_v12  ;;  %v2615_v44 = vmax.f32 %v12359_v40, %v2551_v12  ;;  %v7118_v61 = vpop.permute.xlu1 %7117  ;;  %v7113_v36 = vpop.permute.xlu0 %7112  ;;  %vm15650_vm5 = vmmov %vm15628_vm0 }
 0x62e   : >> { %v7120_v0 = vunpack.i.h.bf16 %v7118_v61  ;;  %v7119_v4 = vunpack.i.l.bf16 %v7118_v61  ;;  %v7115_v17 = vunpack.i.h.bf16 %v7113_v36  ;;  %v7114_v2 = vunpack.i.l.bf16 %v7113_v36  ;;  %7257 = vrot.lane.b32.xlu1 %v7256_v38, %s8381_s25  ;;  %7252 = vrot.lane.b32.xlu0 %v7256_v38, %s8380_s14 }
 0x62f   : >> { %v12675_v52 = vsel %vm8643_vm12, %v2584_v47, %v2616_v24  ;;  %v12679_v49 = vsel %vm8643_vm12, %v2583_v56, %v2615_v44 }
 0x630   : >> { %v2554_v40 = vsel %vm15628_vm0, %v7115_v17, %v7120_v0  ;;  %v2553_v42 = vsel %vm15648_vm1, %v7114_v2, %v7119_v4  ;;  %v7266_v18 = vpack.i.bf16 %v12675_v52, %v12679_v49  ;;  %vm15651_vm1 = vmmov %vm15628_vm0 }
 0x631   : >> { %v2586_v53 = vmin.f32 %v12375_v45, %v2554_v40  ;;  %v2618_v1 = vmax.f32 %v12375_v45, %v2554_v40  ;;  %v2585_v33 = vmin.f32 %v12379_v41, %v2553_v42  ;;  %v2617_v22 = vmax.f32 %v12379_v41, %v2553_v42  ;;  %v7128_v34 = vpop.permute.xlu1 %7127  ;;  %v7123_v29 = vpop.permute.xlu0 %7122 }
 0x632   : >> { %v7130_v19 = vunpack.i.h.bf16 %v7128_v34  ;;  %v7129_v21 = vunpack.i.l.bf16 %v7128_v34  ;;  %v7125_v7 = vunpack.i.h.bf16 %v7123_v29  ;;  %v7124_v30 = vunpack.i.l.bf16 %v7123_v29  ;;  %7267 = vrot.lane.b32.xlu1 %v7266_v18, %s8381_s25  ;;  %7262 = vrot.lane.b32.xlu0 %v7266_v18, %s8380_s14 }
 0x633   : >> { %v12695_v6 = vsel %vm8643_vm12, %v2586_v53, %v2618_v1  ;;  %v12699_v45 = vsel %vm8643_vm12, %v2585_v33, %v2617_v22 }
 0x634   : >> { %v2556_v41 = vsel %vm15649_vm2, %v7125_v7, %v7130_v19  ;;  %v2555_v12 = vsel %vm15650_vm5, %v7124_v30, %v7129_v21  ;;  %v7276_v38 = vpack.i.bf16 %v12695_v6, %v12699_v45  ;;  %vm15652_vm2 = vmmov %vm15628_vm0 }
 0x635   : >> { %v2588_v47 = vmin.f32 %v12395_v48, %v2556_v41  ;;  %v2620_v24 = vmax.f32 %v12395_v48, %v2556_v41  ;;  %v2587_v56 = vmin.f32 %v12399_v37, %v2555_v12  ;;  %v2619_v44 = vmax.f32 %v12399_v37, %v2555_v12  ;;  %v7138_v61 = vpop.permute.xlu1 %7137  ;;  %v7133_v36 = vpop.permute.xlu0 %7132  ;;  %vm15653_vm5 = vmmov %vm15628_vm0 }
 0x636   : >> { %v7140_v0 = vunpack.i.h.bf16 %v7138_v61  ;;  %v7139_v4 = vunpack.i.l.bf16 %v7138_v61  ;;  %v7135_v17 = vunpack.i.h.bf16 %v7133_v36  ;;  %v7134_v2 = vunpack.i.l.bf16 %v7133_v36  ;;  %7277 = vrot.lane.b32.xlu1 %v7276_v38, %s8381_s25  ;;  %7272 = vrot.lane.b32.xlu0 %v7276_v38, %s8380_s14 }
 0x637   : >> { %v12715_v40 = vsel %vm8643_vm12, %v2588_v47, %v2620_v24  ;;  %v12719_v48 = vsel %vm8643_vm12, %v2587_v56, %v2619_v44 }
 0x638   : >> { %v2558_v37 = vsel %vm15628_vm0, %v7135_v17, %v7140_v0  ;;  %v2557_v42 = vsel %vm15651_vm1, %v7134_v2, %v7139_v4  ;;  %v7286_v18 = vpack.i.bf16 %v12715_v40, %v12719_v48 }
 0x639   : >> { %v2590_v53 = vmin.f32 %v12415_v32, %v2558_v37  ;;  %v2622_v1 = vmax.f32 %v12415_v32, %v2558_v37  ;;  %v2589_v33 = vmin.f32 %v12419_v59, %v2557_v42  ;;  %v2621_v22 = vmax.f32 %v12419_v59, %v2557_v42  ;;  %v7148_v34 = vpop.permute.xlu1 %7147  ;;  %v7143_v29 = vpop.permute.xlu0 %7142  ;;  %v15654_v42 = vld [vmem:[#allocation8_spill] sm:$0xff] }
 0x63a   : >> { %v7150_v19 = vunpack.i.h.bf16 %v7148_v34  ;;  %v7149_v21 = vunpack.i.l.bf16 %v7148_v34  ;;  %v7145_v7 = vunpack.i.h.bf16 %v7143_v29  ;;  %v7144_v30 = vunpack.i.l.bf16 %v7143_v29  ;;  %7287 = vrot.lane.b32.xlu1 %v7286_v18, %s8381_s25  ;;  %7282 = vrot.lane.b32.xlu0 %v7286_v18, %s8380_s14 }
 0x63b   : >> { %v12735_v41 = vsel %vm8643_vm12, %v2590_v53, %v2622_v1  ;;  %v12739_v32 = vsel %vm8643_vm12, %v2589_v33, %v2621_v22  ;;  %vm15655_vm0 = vcmp.eq.s32.totalorder %v15654_v42, 0 }
 0x63c   : >> { %v2560_v59 = vsel %vm15652_vm2, %v7145_v7, %v7150_v19  ;;  %v2559_v12 = vsel %vm15653_vm5, %v7144_v30, %v7149_v21  ;;  %v7296_v38 = vpack.i.bf16 %v12735_v41, %v12739_v32  ;;  %vm15656_vm1 = vmmov %vm15655_vm0 }
 0x63d   : >> { %v2592_v47 = vmin.f32 %v12435_v63, %v2560_v59  ;;  %v2624_v24 = vmax.f32 %v12435_v63, %v2560_v59  ;;  %v2591_v56 = vmin.f32 %v12439_v27, %v2559_v12  ;;  %v2623_v44 = vmax.f32 %v12439_v27, %v2559_v12  ;;  %vm15658_vm2 = vmmov %vm15655_vm0 }
 0x63e   : >> { %7297 = vrot.lane.b32.xlu1 %v7296_v38, %s8381_s25  ;;  %7292 = vrot.lane.b32.xlu0 %v7296_v38, %s8380_s14  ;;  %vm15659_vm5 = vmmov %vm15655_vm0 }
 0x63f   : >> { %v12755_v61 = vsel %vm8643_vm12, %v2592_v47, %v2624_v24  ;;  %v12759_v36 = vsel %vm8643_vm12, %v2591_v56, %v2623_v44 }
 0x640   : >> { %v7306_v0 = vpack.i.bf16 %v12755_v61, %v12759_v36 }
 0x642   : >> { %7307 = vrot.lane.b32.xlu1 %v7306_v0, %s8381_s25  ;;  %7302 = vrot.lane.b32.xlu0 %v7306_v0, %s8380_s14 }
 0x678   : >> { %v7158_v63 = vpop.permute.xlu1 %7157  ;;  %v7153_v27 = vpop.permute.xlu0 %7152 }
 0x679   : >> { %v7160_v4 = vunpack.i.h.bf16 %v7158_v63  ;;  %v7159_v17 = vunpack.i.l.bf16 %v7158_v63  ;;  %v7155_v2 = vunpack.i.h.bf16 %v7153_v27  ;;  %v7154_v37 = vunpack.i.l.bf16 %v7153_v27 }
 0x67b   : >> { %v2788_v18 = vsel %vm15655_vm0, %v7155_v2, %v7160_v4  ;;  %v2787_v53 = vsel %vm15656_vm1, %v7154_v37, %v7159_v17  ;;  %vm15660_vm1 = vmmov %vm15655_vm0 }
 0x67c   : >> { %v2820_v1 = vmin.f32 %v12455_v13, %v2788_v18  ;;  %v2852_v33 = vmax.f32 %v12455_v13, %v2788_v18  ;;  %v2819_v22 = vmin.f32 %v12459_v3, %v2787_v53  ;;  %v2851_v34 = vmax.f32 %v12459_v3, %v2787_v53  ;;  %v7168_v29 = vpop.permute.xlu1 %7167  ;;  %v7163_v19 = vpop.permute.xlu0 %7162 }
 0x67d   : >> { %v7170_v21 = vunpack.i.h.bf16 %v7168_v29  ;;  %v7169_v7 = vunpack.i.l.bf16 %v7168_v29  ;;  %v7165_v30 = vunpack.i.h.bf16 %v7163_v19  ;;  %v7164_v59 = vunpack.i.l.bf16 %v7163_v19 }
 0x67e   : >> { %v12775_v38 = vsel %vm8659_vm13, %v2820_v1, %v2852_v33  ;;  %v12779_v47 = vsel %vm8659_vm13, %v2819_v22, %v2851_v34 }
 0x67f   : >> { %v2790_v13 = vsel %vm15658_vm2, %v7165_v30, %v7170_v21  ;;  %v2789_v3 = vsel %vm15659_vm5, %v7164_v59, %v7169_v7  ;;  %v7316_v24 = vpack.i.bf16 %v12775_v38, %v12779_v47  ;;  %vm15661_vm2 = vmmov %vm15655_vm0 }
 0x680   : >> { %v2822_v56 = vmin.f32 %v12475_v54, %v2790_v13  ;;  %v2854_v44 = vmax.f32 %v12475_v54, %v2790_v13  ;;  %v2821_v0 = vmin.f32 %v12479_v58, %v2789_v3  ;;  %v2853_v63 = vmax.f32 %v12479_v58, %v2789_v3  ;;  %v7178_v27 = vpop.permute.xlu1 %7177  ;;  %v7173_v4 = vpop.permute.xlu0 %7172  ;;  %vm15662_vm5 = vmmov %vm15655_vm0 }
 0x681   : >> { %v7180_v17 = vunpack.i.h.bf16 %v7178_v27  ;;  %v7179_v2 = vunpack.i.l.bf16 %v7178_v27  ;;  %v7175_v37 = vunpack.i.h.bf16 %v7173_v4  ;;  %v7174_v18 = vunpack.i.l.bf16 %v7173_v4  ;;  %7317 = vrot.lane.b32.xlu1 %v7316_v24, %s8388_s20  ;;  %7312 = vrot.lane.b32.xlu0 %v7316_v24, %s8389_s8 }
 0x682   : >> { %v12795_v53 = vsel %vm8659_vm13, %v2822_v56, %v2854_v44  ;;  %v12799_v54 = vsel %vm8659_vm13, %v2821_v0, %v2853_v63 }
 0x683   : >> { %v2792_v58 = vsel %vm15655_vm0, %v7175_v37, %v7180_v17  ;;  %v2791_v1 = vsel %vm15660_vm1, %v7174_v18, %v7179_v2  ;;  %v7326_v33 = vpack.i.bf16 %v12795_v53, %v12799_v54  ;;  %vm15663_vm1 = vmmov %vm15655_vm0 }
 0x684   : >> { %v2824_v22 = vmin.f32 %v12495_v23, %v2792_v58  ;;  %v2856_v34 = vmax.f32 %v12495_v23, %v2792_v58  ;;  %v2823_v29 = vmin.f32 %v12499_v9, %v2791_v1  ;;  %v2855_v19 = vmax.f32 %v12499_v9, %v2791_v1  ;;  %v7188_v21 = vpop.permute.xlu1 %7187  ;;  %v7183_v7 = vpop.permute.xlu0 %7182 }
 0x685   : >> { %v7190_v30 = vunpack.i.h.bf16 %v7188_v21  ;;  %v7189_v59 = vunpack.i.l.bf16 %v7188_v21  ;;  %v7185_v13 = vunpack.i.h.bf16 %v7183_v7  ;;  %v7184_v3 = vunpack.i.l.bf16 %v7183_v7  ;;  %7327 = vrot.lane.b32.xlu1 %v7326_v33, %s8388_s20  ;;  %7322 = vrot.lane.b32.xlu0 %v7326_v33, %s8389_s8 }
 0x686   : >> { %v12815_v24 = vsel %vm8659_vm13, %v2824_v22, %v2856_v34  ;;  %v12819_v23 = vsel %vm8659_vm13, %v2823_v29, %v2855_v19 }
 0x687   : >> { %v2794_v9 = vsel %vm15661_vm2, %v7185_v13, %v7190_v30  ;;  %v2793_v56 = vsel %vm15662_vm5, %v7184_v3, %v7189_v59  ;;  %v7336_v44 = vpack.i.bf16 %v12815_v24, %v12819_v23  ;;  %vm15664_vm2 = vmmov %vm15655_vm0 }
 0x688   : >> { %v2826_v0 = vmin.f32 %v12515_v10, %v2794_v9  ;;  %v2858_v63 = vmax.f32 %v12515_v10, %v2794_v9  ;;  %v2825_v27 = vmin.f32 %v12519_v14, %v2793_v56  ;;  %v2857_v4 = vmax.f32 %v12519_v14, %v2793_v56  ;;  %v7198_v17 = vpop.permute.xlu1 %7197  ;;  %v7193_v2 = vpop.permute.xlu0 %7192  ;;  %vm15665_vm5 = vmmov %vm15655_vm0 }
 0x689   : >> { %v7200_v37 = vunpack.i.h.bf16 %v7198_v17  ;;  %v7199_v18 = vunpack.i.l.bf16 %v7198_v17  ;;  %v7195_v58 = vunpack.i.h.bf16 %v7193_v2  ;;  %v7194_v1 = vunpack.i.l.bf16 %v7193_v2  ;;  %7337 = vrot.lane.b32.xlu1 %v7336_v44, %s8388_s20  ;;  %7332 = vrot.lane.b32.xlu0 %v7336_v44, %s8389_s8 }
 0x68a   : >> { %v12835_v33 = vsel %vm8659_vm13, %v2826_v0, %v2858_v63  ;;  %v12839_v10 = vsel %vm8659_vm13, %v2825_v27, %v2857_v4 }
 0x68b   : >> { %v2796_v14 = vsel %vm15655_vm0, %v7195_v58, %v7200_v37  ;;  %v2795_v22 = vsel %vm15663_vm1, %v7194_v1, %v7199_v18  ;;  %v7346_v34 = vpack.i.bf16 %v12835_v33, %v12839_v10  ;;  %vm15666_vm1 = vmmov %vm15655_vm0 }
 0x68c   : >> { %v2828_v29 = vmin.f32 %v12535_v39, %v2796_v14  ;;  %v2860_v19 = vmax.f32 %v12535_v39, %v2796_v14  ;;  %v2827_v21 = vmin.f32 %v12539_v15, %v2795_v22  ;;  %v2859_v7 = vmax.f32 %v12539_v15, %v2795_v22  ;;  %v7208_v30 = vpop.permute.xlu1 %7207  ;;  %v7203_v59 = vpop.permute.xlu0 %7202 }
 0x68d   : >> { %v7210_v13 = vunpack.i.h.bf16 %v7208_v30  ;;  %v7209_v3 = vunpack.i.l.bf16 %v7208_v30  ;;  %v7205_v9 = vunpack.i.h.bf16 %v7203_v59  ;;  %v7204_v56 = vunpack.i.l.bf16 %v7203_v59  ;;  %7347 = vrot.lane.b32.xlu1 %v7346_v34, %s8388_s20  ;;  %7342 = vrot.lane.b32.xlu0 %v7346_v34, %s8389_s8 }
 0x68e   : >> { %v12855_v44 = vsel %vm8659_vm13, %v2828_v29, %v2860_v19  ;;  %v12859_v39 = vsel %vm8659_vm13, %v2827_v21, %v2859_v7 }
 0x68f   : >> { %v2798_v15 = vsel %vm15664_vm2, %v7205_v9, %v7210_v13  ;;  %v2797_v0 = vsel %vm15665_vm5, %v7204_v56, %v7209_v3  ;;  %v7356_v63 = vpack.i.bf16 %v12855_v44, %v12859_v39  ;;  %vm15667_vm2 = vmmov %vm15655_vm0 }
 0x690   : >> { %v2830_v27 = vmin.f32 %v12555_v57, %v2798_v15  ;;  %v2862_v4 = vmax.f32 %v12555_v57, %v2798_v15  ;;  %v2829_v17 = vmin.f32 %v12559_v25, %v2797_v0  ;;  %v2861_v2 = vmax.f32 %v12559_v25, %v2797_v0  ;;  %v7218_v37 = vpop.permute.xlu1 %7217  ;;  %v7213_v18 = vpop.permute.xlu0 %7212  ;;  %vm15668_vm5 = vmmov %vm15655_vm0 }
 0x691   : >> { %v7220_v58 = vunpack.i.h.bf16 %v7218_v37  ;;  %v7219_v1 = vunpack.i.l.bf16 %v7218_v37  ;;  %v7215_v14 = vunpack.i.h.bf16 %v7213_v18  ;;  %v7214_v22 = vunpack.i.l.bf16 %v7213_v18  ;;  %7357 = vrot.lane.b32.xlu1 %v7356_v63, %s8388_s20  ;;  %7352 = vrot.lane.b32.xlu0 %v7356_v63, %s8389_s8 }
 0x692   : >> { %v12875_v34 = vsel %vm8659_vm13, %v2830_v27, %v2862_v4  ;;  %v12879_v57 = vsel %vm8659_vm13, %v2829_v17, %v2861_v2 }
 0x693   : >> { %v2800_v25 = vsel %vm15655_vm0, %v7215_v14, %v7220_v58  ;;  %v2799_v29 = vsel %vm15666_vm1, %v7214_v22, %v7219_v1  ;;  %v7366_v19 = vpack.i.bf16 %v12875_v34, %v12879_v57  ;;  %vm15669_vm1 = vmmov %vm15655_vm0 }
 0x694   : >> { %v2832_v21 = vmin.f32 %v12575_v35, %v2800_v25  ;;  %v2864_v7 = vmax.f32 %v12575_v35, %v2800_v25  ;;  %v2831_v30 = vmin.f32 %v12579_v51, %v2799_v29  ;;  %v2863_v59 = vmax.f32 %v12579_v51, %v2799_v29  ;;  %v7228_v13 = vpop.permute.xlu1 %7227  ;;  %v7223_v3 = vpop.permute.xlu0 %7222 }
 0x695   : >> { %v7230_v9 = vunpack.i.h.bf16 %v7228_v13  ;;  %v7229_v56 = vunpack.i.l.bf16 %v7228_v13  ;;  %v7225_v15 = vunpack.i.h.bf16 %v7223_v3  ;;  %v7224_v0 = vunpack.i.l.bf16 %v7223_v3  ;;  %7367 = vrot.lane.b32.xlu1 %v7366_v19, %s8388_s20  ;;  %7362 = vrot.lane.b32.xlu0 %v7366_v19, %s8389_s8 }
 0x696   : >> { %v12895_v63 = vsel %vm8659_vm13, %v2832_v21, %v2864_v7  ;;  %v12899_v35 = vsel %vm8659_vm13, %v2831_v30, %v2863_v59 }
 0x697   : >> { %v2802_v51 = vsel %vm15667_vm2, %v7225_v15, %v7230_v9  ;;  %v2801_v27 = vsel %vm15668_vm5, %v7224_v0, %v7229_v56  ;;  %v7376_v4 = vpack.i.bf16 %v12895_v63, %v12899_v35  ;;  %vm15670_vm2 = vmmov %vm15655_vm0 }
 0x698   : >> { %v2834_v17 = vmin.f32 %v12595_v60, %v2802_v51  ;;  %v2866_v2 = vmax.f32 %v12595_v60, %v2802_v51  ;;  %v2833_v37 = vmin.f32 %v12599_v43, %v2801_v27  ;;  %v2865_v18 = vmax.f32 %v12599_v43, %v2801_v27  ;;  %v7238_v58 = vpop.permute.xlu1 %7237  ;;  %v7233_v1 = vpop.permute.xlu0 %7232  ;;  %vm15671_vm5 = vmmov %vm15655_vm0 }
 0x699   : >> { %v7240_v14 = vunpack.i.h.bf16 %v7238_v58  ;;  %v7239_v22 = vunpack.i.l.bf16 %v7238_v58  ;;  %v7235_v25 = vunpack.i.h.bf16 %v7233_v1  ;;  %v7234_v29 = vunpack.i.l.bf16 %v7233_v1  ;;  %7377 = vrot.lane.b32.xlu1 %v7376_v4, %s8388_s20  ;;  %7372 = vrot.lane.b32.xlu0 %v7376_v4, %s8389_s8 }
 0x69a   : >> { %v12915_v19 = vsel %vm8659_vm13, %v2834_v17, %v2866_v2  ;;  %v12919_v60 = vsel %vm8659_vm13, %v2833_v37, %v2865_v18 }
 0x69b   : >> { %v2804_v43 = vsel %vm15655_vm0, %v7235_v25, %v7240_v14  ;;  %v2803_v21 = vsel %vm15669_vm1, %v7234_v29, %v7239_v22  ;;  %v7386_v7 = vpack.i.bf16 %v12915_v19, %v12919_v60  ;;  %vm15672_vm1 = vmmov %vm15655_vm0 }
 0x69c   : >> { %v2836_v30 = vmin.f32 %v12615_v5, %v2804_v43  ;;  %v2868_v59 = vmax.f32 %v12615_v5, %v2804_v43  ;;  %v2835_v13 = vmin.f32 %v12619_v55, %v2803_v21  ;;  %v2867_v3 = vmax.f32 %v12619_v55, %v2803_v21  ;;  %v7248_v9 = vpop.permute.xlu1 %7247  ;;  %v7243_v56 = vpop.permute.xlu0 %7242 }
 0x69d   : >> { %v7250_v15 = vunpack.i.h.bf16 %v7248_v9  ;;  %v7249_v0 = vunpack.i.l.bf16 %v7248_v9  ;;  %v7245_v51 = vunpack.i.h.bf16 %v7243_v56  ;;  %v7244_v27 = vunpack.i.l.bf16 %v7243_v56  ;;  %7387 = vrot.lane.b32.xlu1 %v7386_v7, %s8388_s20  ;;  %7382 = vrot.lane.b32.xlu0 %v7386_v7, %s8389_s8 }
 0x69e   : >> { %v12935_v4 = vsel %vm8659_vm13, %v2836_v30, %v2868_v59  ;;  %v12939_v5 = vsel %vm8659_vm13, %v2835_v13, %v2867_v3 }
 0x69f   : >> { %v2806_v55 = vsel %vm15670_vm2, %v7245_v51, %v7250_v15  ;;  %v2805_v17 = vsel %vm15671_vm5, %v7244_v27, %v7249_v0  ;;  %v7396_v2 = vpack.i.bf16 %v12935_v4, %v12939_v5  ;;  %vm15673_vm2 = vmmov %vm15655_vm0 }
 0x6a0   : >> { %v2838_v37 = vmin.f32 %v12635_v46, %v2806_v55  ;;  %v2870_v18 = vmax.f32 %v12635_v46, %v2806_v55  ;;  %v2837_v58 = vmin.f32 %v12639_v62, %v2805_v17  ;;  %v2869_v1 = vmax.f32 %v12639_v62, %v2805_v17  ;;  %v7258_v14 = vpop.permute.xlu1 %7257  ;;  %v7253_v22 = vpop.permute.xlu0 %7252  ;;  %vm15674_vm5 = vmmov %vm15655_vm0 }
 0x6a1   : >> { %v7260_v25 = vunpack.i.h.bf16 %v7258_v14  ;;  %v7259_v29 = vunpack.i.l.bf16 %v7258_v14  ;;  %v7255_v43 = vunpack.i.h.bf16 %v7253_v22  ;;  %v7254_v21 = vunpack.i.l.bf16 %v7253_v22  ;;  %7397 = vrot.lane.b32.xlu1 %v7396_v2, %s8388_s20  ;;  %7392 = vrot.lane.b32.xlu0 %v7396_v2, %s8389_s8 }
 0x6a2   : >> { %v12955_v7 = vsel %vm8659_vm13, %v2838_v37, %v2870_v18  ;;  %v12959_v46 = vsel %vm8659_vm13, %v2837_v58, %v2869_v1 }
 0x6a3   : >> { %v2808_v62 = vsel %vm15655_vm0, %v7255_v43, %v7260_v25  ;;  %v2807_v30 = vsel %vm15672_vm1, %v7254_v21, %v7259_v29  ;;  %v7406_v59 = vpack.i.bf16 %v12955_v7, %v12959_v46  ;;  %vm15675_vm1 = vmmov %vm15655_vm0 }
 0x6a4   : >> { %v2840_v13 = vmin.f32 %v12655_v50, %v2808_v62  ;;  %v2872_v3 = vmax.f32 %v12655_v50, %v2808_v62  ;;  %v2839_v9 = vmin.f32 %v12659_v8, %v2807_v30  ;;  %v2871_v56 = vmax.f32 %v12659_v8, %v2807_v30  ;;  %v7268_v15 = vpop.permute.xlu1 %7267  ;;  %v7263_v0 = vpop.permute.xlu0 %7262 }
 0x6a5   : >> { %v7270_v51 = vunpack.i.h.bf16 %v7268_v15  ;;  %v7269_v27 = vunpack.i.l.bf16 %v7268_v15  ;;  %v7265_v55 = vunpack.i.h.bf16 %v7263_v0  ;;  %v7264_v17 = vunpack.i.l.bf16 %v7263_v0  ;;  %7407 = vrot.lane.b32.xlu1 %v7406_v59, %s8388_s20  ;;  %7402 = vrot.lane.b32.xlu0 %v7406_v59, %s8389_s8 }
 0x6a6   : >> { %v12975_v2 = vsel %vm8659_vm13, %v2840_v13, %v2872_v3  ;;  %v12979_v50 = vsel %vm8659_vm13, %v2839_v9, %v2871_v56 }
 0x6a7   : >> { %v2810_v8 = vsel %vm15673_vm2, %v7265_v55, %v7270_v51  ;;  %v2809_v37 = vsel %vm15674_vm5, %v7264_v17, %v7269_v27  ;;  %v7416_v18 = vpack.i.bf16 %v12975_v2, %v12979_v50  ;;  %vm15676_vm2 = vmmov %vm15655_vm0 }
 0x6a8   : >> { %v2842_v58 = vmin.f32 %v12675_v52, %v2810_v8  ;;  %v2874_v1 = vmax.f32 %v12675_v52, %v2810_v8  ;;  %v2841_v14 = vmin.f32 %v12679_v49, %v2809_v37  ;;  %v2873_v22 = vmax.f32 %v12679_v49, %v2809_v37  ;;  %v7278_v25 = vpop.permute.xlu1 %7277  ;;  %v7273_v29 = vpop.permute.xlu0 %7272  ;;  %vm15677_vm5 = vmmov %vm15655_vm0 }
 0x6a9   : >> { %v7280_v43 = vunpack.i.h.bf16 %v7278_v25  ;;  %v7279_v21 = vunpack.i.l.bf16 %v7278_v25  ;;  %v7275_v62 = vunpack.i.h.bf16 %v7273_v29  ;;  %v7274_v30 = vunpack.i.l.bf16 %v7273_v29  ;;  %7417 = vrot.lane.b32.xlu1 %v7416_v18, %s8388_s20  ;;  %7412 = vrot.lane.b32.xlu0 %v7416_v18, %s8389_s8 }
 0x6aa   : >> { %v12995_v59 = vsel %vm8659_vm13, %v2842_v58, %v2874_v1  ;;  %v12999_v52 = vsel %vm8659_vm13, %v2841_v14, %v2873_v22 }
 0x6ab   : >> { %v2812_v49 = vsel %vm15655_vm0, %v7275_v62, %v7280_v43  ;;  %v2811_v13 = vsel %vm15675_vm1, %v7274_v30, %v7279_v21  ;;  %v7426_v3 = vpack.i.bf16 %v12995_v59, %v12999_v52  ;;  %vm15678_vm1 = vmmov %vm15655_vm0 }
 0x6ac   : >> { %v2844_v9 = vmin.f32 %v12695_v6, %v2812_v49  ;;  %v2876_v56 = vmax.f32 %v12695_v6, %v2812_v49  ;;  %v2843_v15 = vmin.f32 %v12699_v45, %v2811_v13  ;;  %v2875_v0 = vmax.f32 %v12699_v45, %v2811_v13  ;;  %v7288_v51 = vpop.permute.xlu1 %7287  ;;  %v7283_v27 = vpop.permute.xlu0 %7282 }
 0x6ad   : >> { %v7290_v55 = vunpack.i.h.bf16 %v7288_v51  ;;  %v7289_v17 = vunpack.i.l.bf16 %v7288_v51  ;;  %v7285_v8 = vunpack.i.h.bf16 %v7283_v27  ;;  %v7284_v37 = vunpack.i.l.bf16 %v7283_v27  ;;  %7427 = vrot.lane.b32.xlu1 %v7426_v3, %s8388_s20  ;;  %7422 = vrot.lane.b32.xlu0 %v7426_v3, %s8389_s8 }
 0x6ae   : >> { %v13015_v18 = vsel %vm8659_vm13, %v2844_v9, %v2876_v56  ;;  %v13019_v6 = vsel %vm8659_vm13, %v2843_v15, %v2875_v0 }
 0x6af   : >> { %v2814_v45 = vsel %vm15676_vm2, %v7285_v8, %v7290_v55  ;;  %v2813_v58 = vsel %vm15677_vm5, %v7284_v37, %v7289_v17  ;;  %v7436_v1 = vpack.i.bf16 %v13015_v18, %v13019_v6  ;;  %vm15679_vm2 = vmmov %vm15655_vm0 }
 0x6b0   : >> { %v2846_v14 = vmin.f32 %v12715_v40, %v2814_v45  ;;  %v2878_v22 = vmax.f32 %v12715_v40, %v2814_v45  ;;  %v2845_v25 = vmin.f32 %v12719_v48, %v2813_v58  ;;  %v2877_v29 = vmax.f32 %v12719_v48, %v2813_v58  ;;  %v7298_v43 = vpop.permute.xlu1 %7297  ;;  %v7293_v21 = vpop.permute.xlu0 %7292  ;;  %vm15680_vm5 = vmmov %vm15655_vm0 }
 0x6b1   : >> { %v7300_v62 = vunpack.i.h.bf16 %v7298_v43  ;;  %v7299_v30 = vunpack.i.l.bf16 %v7298_v43  ;;  %v7295_v49 = vunpack.i.h.bf16 %v7293_v21  ;;  %v7294_v13 = vunpack.i.l.bf16 %v7293_v21  ;;  %7437 = vrot.lane.b32.xlu1 %v7436_v1, %s8388_s20  ;;  %7432 = vrot.lane.b32.xlu0 %v7436_v1, %s8389_s8 }
 0x6b2   : >> { %v13035_v3 = vsel %vm8659_vm13, %v2846_v14, %v2878_v22  ;;  %v13039_v40 = vsel %vm8659_vm13, %v2845_v25, %v2877_v29 }
 0x6b3   : >> { %v2816_v48 = vsel %vm15655_vm0, %v7295_v49, %v7300_v62  ;;  %v2815_v9 = vsel %vm15678_vm1, %v7294_v13, %v7299_v30  ;;  %v7446_v56 = vpack.i.bf16 %v13035_v3, %v13039_v40 }
 0x6b4   : >> { %v2848_v15 = vmin.f32 %v12735_v41, %v2816_v48  ;;  %v2880_v0 = vmax.f32 %v12735_v41, %v2816_v48  ;;  %v2847_v51 = vmin.f32 %v12739_v32, %v2815_v9  ;;  %v2879_v27 = vmax.f32 %v12739_v32, %v2815_v9  ;;  %v7308_v55 = vpop.permute.xlu1 %7307  ;;  %v7303_v17 = vpop.permute.xlu0 %7302 }
 0x6b5   : >> { %v7310_v8 = vunpack.i.h.bf16 %v7308_v55  ;;  %v7309_v37 = vunpack.i.l.bf16 %v7308_v55  ;;  %v7305_v45 = vunpack.i.h.bf16 %v7303_v17  ;;  %v7304_v58 = vunpack.i.l.bf16 %v7303_v17  ;;  %7447 = vrot.lane.b32.xlu1 %v7446_v56, %s8388_s20  ;;  %7442 = vrot.lane.b32.xlu0 %v7446_v56, %s8389_s8 }
 0x6b6   : >> { %v13055_v1 = vsel %vm8659_vm13, %v2848_v15, %v2880_v0  ;;  %v13059_v41 = vsel %vm8659_vm13, %v2847_v51, %v2879_v27  ;;  %v15681_v15 = vld [vmem:[#allocation15_spill] sm:$0xff] }
 0x6b7   : >> { %v2818_v32 = vsel %vm15679_vm2, %v7305_v45, %v7310_v8  ;;  %v2817_v14 = vsel %vm15680_vm5, %v7304_v58, %v7309_v37  ;;  %v7456_v22 = vpack.i.bf16 %v13055_v1, %v13059_v41  ;;  %vm15682_vm0 = vcmp.eq.s32.totalorder %v15681_v15, 0 }
 0x6b8   : >> { %v2850_v25 = vmin.f32 %v12755_v61, %v2818_v32  ;;  %v2882_v29 = vmax.f32 %v12755_v61, %v2818_v32  ;;  %v2849_v43 = vmin.f32 %v12759_v36, %v2817_v14  ;;  %v2881_v21 = vmax.f32 %v12759_v36, %v2817_v14  ;;  %vm15683_vm1 = vmmov %vm15682_vm0 }
 0x6b9   : >> { %7457 = vrot.lane.b32.xlu1 %v7456_v22, %s8388_s20  ;;  %7452 = vrot.lane.b32.xlu0 %v7456_v22, %s8389_s8  ;;  %vm15685_vm2 = vmmov %vm15682_vm0 }
 0x6ba   : >> { %v13075_v62 = vsel %vm8659_vm13, %v2850_v25, %v2882_v29  ;;  %v13079_v30 = vsel %vm8659_vm13, %v2849_v43, %v2881_v21  ;;  %vm15686_vm5 = vmmov %vm15682_vm0 }
 0x6bb   : >> { %v7466_v49 = vpack.i.bf16 %v13075_v62, %v13079_v30 }
 0x6bd   : >> { %7467 = vrot.lane.b32.xlu1 %v7466_v49, %s8388_s20  ;;  %7462 = vrot.lane.b32.xlu0 %v7466_v49, %s8389_s8 }
 0x6f3   : >> { %v7318_v61 = vpop.permute.xlu1 %7317  ;;  %v7313_v36 = vpop.permute.xlu0 %7312 }
 0x6f4   : >> { %v7320_v13 = vunpack.i.h.bf16 %v7318_v61  ;;  %v7319_v48 = vunpack.i.l.bf16 %v7318_v61  ;;  %v7315_v9 = vunpack.i.h.bf16 %v7313_v36  ;;  %v7314_v56 = vunpack.i.l.bf16 %v7313_v36 }
 0x6f6   : >> { %v3048_v0 = vsel %vm15682_vm0, %v7315_v9, %v7320_v13  ;;  %v3047_v51 = vsel %vm15683_vm1, %v7314_v56, %v7319_v48  ;;  %vm15687_vm1 = vmmov %vm15682_vm0 }
 0x6f7   : >> { %v3080_v27 = vmin.f32 %v12775_v38, %v3048_v0  ;;  %v3112_v55 = vmax.f32 %v12775_v38, %v3048_v0  ;;  %v3079_v17 = vmin.f32 %v12779_v47, %v3047_v51  ;;  %v3111_v8 = vmax.f32 %v12779_v47, %v3047_v51  ;;  %v7328_v37 = vpop.permute.xlu1 %7327  ;;  %v7323_v45 = vpop.permute.xlu0 %7322 }
 0x6f8   : >> { %v7330_v58 = vunpack.i.h.bf16 %v7328_v37  ;;  %v7329_v32 = vunpack.i.l.bf16 %v7328_v37  ;;  %v7325_v14 = vunpack.i.h.bf16 %v7323_v45  ;;  %v7324_v22 = vunpack.i.l.bf16 %v7323_v45 }
 0x6f9   : >> { %v13095_v29 = vsel %vm8665_vm15, %v3080_v27, %v3112_v55  ;;  %v13099_v43 = vsel %vm8665_vm15, %v3079_v17, %v3111_v8 }
 0x6fa   : >> { %v3050_v38 = vsel %vm15685_vm2, %v7325_v14, %v7330_v58  ;;  %v3049_v47 = vsel %vm15686_vm5, %v7324_v22, %v7329_v32  ;;  %v7476_v21 = vpack.i.bf16 %v13095_v29, %v13099_v43  ;;  %vm15688_vm2 = vmmov %vm15682_vm0 }
 0x6fb   : >> { %v3082_v49 = vmin.f32 %v12795_v53, %v3050_v38  ;;  %v3114_v61 = vmax.f32 %v12795_v53, %v3050_v38  ;;  %v3081_v36 = vmin.f32 %v12799_v54, %v3049_v47  ;;  %v3113_v13 = vmax.f32 %v12799_v54, %v3049_v47  ;;  %v7338_v48 = vpop.permute.xlu1 %7337  ;;  %v7333_v9 = vpop.permute.xlu0 %7332  ;;  %vm15689_vm5 = vmmov %vm15682_vm0 }
 0x6fc   : >> { %v7340_v56 = vunpack.i.h.bf16 %v7338_v48  ;;  %v7339_v0 = vunpack.i.l.bf16 %v7338_v48  ;;  %v7335_v51 = vunpack.i.h.bf16 %v7333_v9  ;;  %v7334_v27 = vunpack.i.l.bf16 %v7333_v9  ;;  %7477 = vrot.lane.b32.xlu1 %v7476_v21, %s8387_s9  ;;  %7472 = vrot.lane.b32.xlu0 %v7476_v21, %s8386_s7 }
 0x6fd   : >> { %v13115_v55 = vsel %vm8665_vm15, %v3082_v49, %v3114_v61  ;;  %v13119_v53 = vsel %vm8665_vm15, %v3081_v36, %v3113_v13 }
 0x6fe   : >> { %v3052_v54 = vsel %vm15682_vm0, %v7335_v51, %v7340_v56  ;;  %v3051_v17 = vsel %vm15687_vm1, %v7334_v27, %v7339_v0  ;;  %v7486_v8 = vpack.i.bf16 %v13115_v55, %v13119_v53  ;;  %vm15690_vm1 = vmmov %vm15682_vm0 }
 0x6ff   : >> { %v3084_v37 = vmin.f32 %v12815_v24, %v3052_v54  ;;  %v3116_v45 = vmax.f32 %v12815_v24, %v3052_v54  ;;  %v3083_v58 = vmin.f32 %v12819_v23, %v3051_v17  ;;  %v3115_v32 = vmax.f32 %v12819_v23, %v3051_v17  ;;  %v7348_v14 = vpop.permute.xlu1 %7347  ;;  %v7343_v22 = vpop.permute.xlu0 %7342 }
 0x700   : >> { %v7350_v38 = vunpack.i.h.bf16 %v7348_v14  ;;  %v7349_v47 = vunpack.i.l.bf16 %v7348_v14  ;;  %v7345_v21 = vunpack.i.h.bf16 %v7343_v22  ;;  %v7344_v49 = vunpack.i.l.bf16 %v7343_v22  ;;  %7487 = vrot.lane.b32.xlu1 %v7486_v8, %s8387_s9  ;;  %7482 = vrot.lane.b32.xlu0 %v7486_v8, %s8386_s7 }
 0x701   : >> { %v13135_v61 = vsel %vm8665_vm15, %v3084_v37, %v3116_v45  ;;  %v13139_v24 = vsel %vm8665_vm15, %v3083_v58, %v3115_v32 }
 0x702   : >> { %v3054_v23 = vsel %vm15688_vm2, %v7345_v21, %v7350_v38  ;;  %v3053_v36 = vsel %vm15689_vm5, %v7344_v49, %v7349_v47  ;;  %v7496_v13 = vpack.i.bf16 %v13135_v61, %v13139_v24  ;;  %vm15691_vm2 = vmmov %vm15682_vm0 }
 0x703   : >> { %v3086_v48 = vmin.f32 %v12835_v33, %v3054_v23  ;;  %v3118_v9 = vmax.f32 %v12835_v33, %v3054_v23  ;;  %v3085_v56 = vmin.f32 %v12839_v10, %v3053_v36  ;;  %v3117_v0 = vmax.f32 %v12839_v10, %v3053_v36  ;;  %v7358_v51 = vpop.permute.xlu1 %7357  ;;  %v7353_v27 = vpop.permute.xlu0 %7352  ;;  %vm15692_vm5 = vmmov %vm15682_vm0 }
 0x704   : >> { %v7360_v54 = vunpack.i.h.bf16 %v7358_v51  ;;  %v7359_v17 = vunpack.i.l.bf16 %v7358_v51  ;;  %v7355_v8 = vunpack.i.h.bf16 %v7353_v27  ;;  %v7354_v37 = vunpack.i.l.bf16 %v7353_v27  ;;  %7497 = vrot.lane.b32.xlu1 %v7496_v13, %s8387_s9  ;;  %7492 = vrot.lane.b32.xlu0 %v7496_v13, %s8386_s7 }
 0x705   : >> { %v13155_v45 = vsel %vm8665_vm15, %v3086_v48, %v3118_v9  ;;  %v13159_v33 = vsel %vm8665_vm15, %v3085_v56, %v3117_v0 }
 0x706   : >> { %v3056_v10 = vsel %vm15682_vm0, %v7355_v8, %v7360_v54  ;;  %v3055_v58 = vsel %vm15690_vm1, %v7354_v37, %v7359_v17  ;;  %v7506_v32 = vpack.i.bf16 %v13155_v45, %v13159_v33  ;;  %vm15693_vm1 = vmmov %vm15682_vm0 }
 0x707   : >> { %v3088_v14 = vmin.f32 %v12855_v44, %v3056_v10  ;;  %v3120_v22 = vmax.f32 %v12855_v44, %v3056_v10  ;;  %v3087_v38 = vmin.f32 %v12859_v39, %v3055_v58  ;;  %v3119_v47 = vmax.f32 %v12859_v39, %v3055_v58  ;;  %v7368_v21 = vpop.permute.xlu1 %7367  ;;  %v7363_v49 = vpop.permute.xlu0 %7362 }
 0x708   : >> { %v7370_v23 = vunpack.i.h.bf16 %v7368_v21  ;;  %v7369_v36 = vunpack.i.l.bf16 %v7368_v21  ;;  %v7365_v13 = vunpack.i.h.bf16 %v7363_v49  ;;  %v7364_v48 = vunpack.i.l.bf16 %v7363_v49  ;;  %7507 = vrot.lane.b32.xlu1 %v7506_v32, %s8387_s9  ;;  %7502 = vrot.lane.b32.xlu0 %v7506_v32, %s8386_s7 }
 0x709   : >> { %v13175_v9 = vsel %vm8665_vm15, %v3088_v14, %v3120_v22  ;;  %v13179_v44 = vsel %vm8665_vm15, %v3087_v38, %v3119_v47 }
 0x70a   : >> { %v3058_v39 = vsel %vm15691_vm2, %v7365_v13, %v7370_v23  ;;  %v3057_v56 = vsel %vm15692_vm5, %v7364_v48, %v7369_v36  ;;  %v7516_v0 = vpack.i.bf16 %v13175_v9, %v13179_v44  ;;  %vm15694_vm2 = vmmov %vm15682_vm0 }
 0x70b   : >> { %v3090_v51 = vmin.f32 %v12875_v34, %v3058_v39  ;;  %v3122_v27 = vmax.f32 %v12875_v34, %v3058_v39  ;;  %v3089_v54 = vmin.f32 %v12879_v57, %v3057_v56  ;;  %v3121_v17 = vmax.f32 %v12879_v57, %v3057_v56  ;;  %v7378_v8 = vpop.permute.xlu1 %7377  ;;  %v7373_v37 = vpop.permute.xlu0 %7372  ;;  %vm15695_vm5 = vmmov %vm15682_vm0 }
 0x70c   : >> { %v7380_v10 = vunpack.i.h.bf16 %v7378_v8  ;;  %v7379_v58 = vunpack.i.l.bf16 %v7378_v8  ;;  %v7375_v32 = vunpack.i.h.bf16 %v7373_v37  ;;  %v7374_v14 = vunpack.i.l.bf16 %v7373_v37  ;;  %7517 = vrot.lane.b32.xlu1 %v7516_v0, %s8387_s9  ;;  %7512 = vrot.lane.b32.xlu0 %v7516_v0, %s8386_s7 }
 0x70d   : >> { %v13195_v22 = vsel %vm8665_vm15, %v3090_v51, %v3122_v27  ;;  %v13199_v34 = vsel %vm8665_vm15, %v3089_v54, %v3121_v17 }
 0x70e   : >> { %v3060_v57 = vsel %vm15682_vm0, %v7375_v32, %v7380_v10  ;;  %v3059_v38 = vsel %vm15693_vm1, %v7374_v14, %v7379_v58  ;;  %v7526_v47 = vpack.i.bf16 %v13195_v22, %v13199_v34  ;;  %vm15696_vm1 = vmmov %vm15682_vm0 }
 0x70f   : >> { %v3092_v21 = vmin.f32 %v12895_v63, %v3060_v57  ;;  %v3124_v49 = vmax.f32 %v12895_v63, %v3060_v57  ;;  %v3091_v23 = vmin.f32 %v12899_v35, %v3059_v38  ;;  %v3123_v36 = vmax.f32 %v12899_v35, %v3059_v38  ;;  %v7388_v13 = vpop.permute.xlu1 %7387  ;;  %v7383_v48 = vpop.permute.xlu0 %7382 }
 0x710   : >> { %v7390_v39 = vunpack.i.h.bf16 %v7388_v13  ;;  %v7389_v56 = vunpack.i.l.bf16 %v7388_v13  ;;  %v7385_v0 = vunpack.i.h.bf16 %v7383_v48  ;;  %v7384_v51 = vunpack.i.l.bf16 %v7383_v48  ;;  %7527 = vrot.lane.b32.xlu1 %v7526_v47, %s8387_s9  ;;  %7522 = vrot.lane.b32.xlu0 %v7526_v47, %s8386_s7 }
 0x711   : >> { %v13215_v27 = vsel %vm8665_vm15, %v3092_v21, %v3124_v49  ;;  %v13219_v63 = vsel %vm8665_vm15, %v3091_v23, %v3123_v36 }
 0x712   : >> { %v3062_v35 = vsel %vm15694_vm2, %v7385_v0, %v7390_v39  ;;  %v3061_v54 = vsel %vm15695_vm5, %v7384_v51, %v7389_v56  ;;  %v7536_v17 = vpack.i.bf16 %v13215_v27, %v13219_v63  ;;  %vm15697_vm2 = vmmov %vm15682_vm0 }
 0x713   : >> { %v3094_v8 = vmin.f32 %v12915_v19, %v3062_v35  ;;  %v3126_v37 = vmax.f32 %v12915_v19, %v3062_v35  ;;  %v3093_v10 = vmin.f32 %v12919_v60, %v3061_v54  ;;  %v3125_v58 = vmax.f32 %v12919_v60, %v3061_v54  ;;  %v7398_v32 = vpop.permute.xlu1 %7397  ;;  %v7393_v14 = vpop.permute.xlu0 %7392  ;;  %vm15698_vm5 = vmmov %vm15682_vm0 }
 0x714   : >> { %v7400_v57 = vunpack.i.h.bf16 %v7398_v32  ;;  %v7399_v38 = vunpack.i.l.bf16 %v7398_v32  ;;  %v7395_v47 = vunpack.i.h.bf16 %v7393_v14  ;;  %v7394_v21 = vunpack.i.l.bf16 %v7393_v14  ;;  %7537 = vrot.lane.b32.xlu1 %v7536_v17, %s8387_s9  ;;  %7532 = vrot.lane.b32.xlu0 %v7536_v17, %s8386_s7 }
 0x715   : >> { %v13235_v49 = vsel %vm8665_vm15, %v3094_v8, %v3126_v37  ;;  %v13239_v19 = vsel %vm8665_vm15, %v3093_v10, %v3125_v58 }
 0x716   : >> { %v3064_v60 = vsel %vm15682_vm0, %v7395_v47, %v7400_v57  ;;  %v3063_v23 = vsel %vm15696_vm1, %v7394_v21, %v7399_v38  ;;  %v7546_v36 = vpack.i.bf16 %v13235_v49, %v13239_v19  ;;  %vm15699_vm1 = vmmov %vm15682_vm0 }
 0x717   : >> { %v3096_v13 = vmin.f32 %v12935_v4, %v3064_v60  ;;  %v3128_v48 = vmax.f32 %v12935_v4, %v3064_v60  ;;  %v3095_v39 = vmin.f32 %v12939_v5, %v3063_v23  ;;  %v3127_v56 = vmax.f32 %v12939_v5, %v3063_v23  ;;  %v7408_v0 = vpop.permute.xlu1 %7407  ;;  %v7403_v51 = vpop.permute.xlu0 %7402 }
 0x718   : >> { %v7410_v35 = vunpack.i.h.bf16 %v7408_v0  ;;  %v7409_v54 = vunpack.i.l.bf16 %v7408_v0  ;;  %v7405_v17 = vunpack.i.h.bf16 %v7403_v51  ;;  %v7404_v8 = vunpack.i.l.bf16 %v7403_v51  ;;  %7547 = vrot.lane.b32.xlu1 %v7546_v36, %s8387_s9  ;;  %7542 = vrot.lane.b32.xlu0 %v7546_v36, %s8386_s7 }
 0x719   : >> { %v13255_v37 = vsel %vm8665_vm15, %v3096_v13, %v3128_v48  ;;  %v13259_v4 = vsel %vm8665_vm15, %v3095_v39, %v3127_v56 }
 0x71a   : >> { %v3066_v5 = vsel %vm15697_vm2, %v7405_v17, %v7410_v35  ;;  %v3065_v10 = vsel %vm15698_vm5, %v7404_v8, %v7409_v54  ;;  %v7556_v58 = vpack.i.bf16 %v13255_v37, %v13259_v4  ;;  %vm15700_vm2 = vmmov %vm15682_vm0 }
 0x71b   : >> { %v3098_v32 = vmin.f32 %v12955_v7, %v3066_v5  ;;  %v3130_v14 = vmax.f32 %v12955_v7, %v3066_v5  ;;  %v3097_v57 = vmin.f32 %v12959_v46, %v3065_v10  ;;  %v3129_v38 = vmax.f32 %v12959_v46, %v3065_v10  ;;  %v7418_v47 = vpop.permute.xlu1 %7417  ;;  %v7413_v21 = vpop.permute.xlu0 %7412  ;;  %vm15701_vm5 = vmmov %vm15682_vm0 }
 0x71c   : >> { %v7420_v60 = vunpack.i.h.bf16 %v7418_v47  ;;  %v7419_v23 = vunpack.i.l.bf16 %v7418_v47  ;;  %v7415_v36 = vunpack.i.h.bf16 %v7413_v21  ;;  %v7414_v13 = vunpack.i.l.bf16 %v7413_v21  ;;  %7557 = vrot.lane.b32.xlu1 %v7556_v58, %s8387_s9  ;;  %7552 = vrot.lane.b32.xlu0 %v7556_v58, %s8386_s7 }
 0x71d   : >> { %v13275_v48 = vsel %vm8665_vm15, %v3098_v32, %v3130_v14  ;;  %v13279_v7 = vsel %vm8665_vm15, %v3097_v57, %v3129_v38 }
 0x71e   : >> { %v3068_v46 = vsel %vm15682_vm0, %v7415_v36, %v7420_v60  ;;  %v3067_v39 = vsel %vm15699_vm1, %v7414_v13, %v7419_v23  ;;  %v7566_v56 = vpack.i.bf16 %v13275_v48, %v13279_v7  ;;  %vm15702_vm1 = vmmov %vm15682_vm0 }
 0x71f   : >> { %v3100_v0 = vmin.f32 %v12975_v2, %v3068_v46  ;;  %v3132_v51 = vmax.f32 %v12975_v2, %v3068_v46  ;;  %v3099_v35 = vmin.f32 %v12979_v50, %v3067_v39  ;;  %v3131_v54 = vmax.f32 %v12979_v50, %v3067_v39  ;;  %v7428_v17 = vpop.permute.xlu1 %7427  ;;  %v7423_v8 = vpop.permute.xlu0 %7422 }
 0x720   : >> { %v7430_v5 = vunpack.i.h.bf16 %v7428_v17  ;;  %v7429_v10 = vunpack.i.l.bf16 %v7428_v17  ;;  %v7425_v58 = vunpack.i.h.bf16 %v7423_v8  ;;  %v7424_v32 = vunpack.i.l.bf16 %v7423_v8  ;;  %7567 = vrot.lane.b32.xlu1 %v7566_v56, %s8387_s9  ;;  %7562 = vrot.lane.b32.xlu0 %v7566_v56, %s8386_s7 }
 0x721   : >> { %v13295_v14 = vsel %vm8665_vm15, %v3100_v0, %v3132_v51  ;;  %v13299_v2 = vsel %vm8665_vm15, %v3099_v35, %v3131_v54 }
 0x722   : >> { %v3070_v50 = vsel %vm15700_vm2, %v7425_v58, %v7430_v5  ;;  %v3069_v57 = vsel %vm15701_vm5, %v7424_v32, %v7429_v10  ;;  %v7576_v38 = vpack.i.bf16 %v13295_v14, %v13299_v2  ;;  %vm15703_vm2 = vmmov %vm15682_vm0 }
 0x723   : >> { %v3102_v47 = vmin.f32 %v12995_v59, %v3070_v50  ;;  %v3134_v21 = vmax.f32 %v12995_v59, %v3070_v50  ;;  %v3101_v60 = vmin.f32 %v12999_v52, %v3069_v57  ;;  %v3133_v23 = vmax.f32 %v12999_v52, %v3069_v57  ;;  %v7438_v36 = vpop.permute.xlu1 %7437  ;;  %v7433_v13 = vpop.permute.xlu0 %7432  ;;  %vm15704_vm5 = vmmov %vm15682_vm0 }
 0x724   : >> { %v7440_v46 = vunpack.i.h.bf16 %v7438_v36  ;;  %v7439_v39 = vunpack.i.l.bf16 %v7438_v36  ;;  %v7435_v56 = vunpack.i.h.bf16 %v7433_v13  ;;  %v7434_v0 = vunpack.i.l.bf16 %v7433_v13  ;;  %7577 = vrot.lane.b32.xlu1 %v7576_v38, %s8387_s9  ;;  %7572 = vrot.lane.b32.xlu0 %v7576_v38, %s8386_s7 }
 0x725   : >> { %v13315_v51 = vsel %vm8665_vm15, %v3102_v47, %v3134_v21  ;;  %v13319_v59 = vsel %vm8665_vm15, %v3101_v60, %v3133_v23 }
 0x726   : >> { %v3072_v52 = vsel %vm15682_vm0, %v7435_v56, %v7440_v46  ;;  %v3071_v35 = vsel %vm15702_vm1, %v7434_v0, %v7439_v39  ;;  %v7586_v54 = vpack.i.bf16 %v13315_v51, %v13319_v59  ;;  %vm15705_vm1 = vmmov %vm15682_vm0 }
 0x727   : >> { %v3104_v17 = vmin.f32 %v13015_v18, %v3072_v52  ;;  %v3136_v8 = vmax.f32 %v13015_v18, %v3072_v52  ;;  %v3103_v5 = vmin.f32 %v13019_v6, %v3071_v35  ;;  %v3135_v10 = vmax.f32 %v13019_v6, %v3071_v35  ;;  %v7448_v58 = vpop.permute.xlu1 %7447  ;;  %v7443_v32 = vpop.permute.xlu0 %7442 }
 0x728   : >> { %v7450_v50 = vunpack.i.h.bf16 %v7448_v58  ;;  %v7449_v57 = vunpack.i.l.bf16 %v7448_v58  ;;  %v7445_v38 = vunpack.i.h.bf16 %v7443_v32  ;;  %v7444_v47 = vunpack.i.l.bf16 %v7443_v32  ;;  %7587 = vrot.lane.b32.xlu1 %v7586_v54, %s8387_s9  ;;  %7582 = vrot.lane.b32.xlu0 %v7586_v54, %s8386_s7 }
 0x729   : >> { %v13335_v21 = vsel %vm8665_vm15, %v3104_v17, %v3136_v8  ;;  %v13339_v18 = vsel %vm8665_vm15, %v3103_v5, %v3135_v10 }
 0x72a   : >> { %v3074_v6 = vsel %vm15703_vm2, %v7445_v38, %v7450_v50  ;;  %v3073_v60 = vsel %vm15704_vm5, %v7444_v47, %v7449_v57  ;;  %v7596_v23 = vpack.i.bf16 %v13335_v21, %v13339_v18  ;;  %vm15706_vm2 = vmmov %vm15682_vm0 }
 0x72b   : >> { %v3106_v36 = vmin.f32 %v13035_v3, %v3074_v6  ;;  %v3138_v13 = vmax.f32 %v13035_v3, %v3074_v6  ;;  %v3105_v46 = vmin.f32 %v13039_v40, %v3073_v60  ;;  %v3137_v39 = vmax.f32 %v13039_v40, %v3073_v60  ;;  %v7458_v56 = vpop.permute.xlu1 %7457  ;;  %v7453_v0 = vpop.permute.xlu0 %7452  ;;  %vm15707_vm5 = vmmov %vm15682_vm0 }
 0x72c   : >> { %v7460_v52 = vunpack.i.h.bf16 %v7458_v56  ;;  %v7459_v35 = vunpack.i.l.bf16 %v7458_v56  ;;  %v7455_v54 = vunpack.i.h.bf16 %v7453_v0  ;;  %v7454_v17 = vunpack.i.l.bf16 %v7453_v0  ;;  %7597 = vrot.lane.b32.xlu1 %v7596_v23, %s8387_s9  ;;  %7592 = vrot.lane.b32.xlu0 %v7596_v23, %s8386_s7 }
 0x72d   : >> { %v13355_v8 = vsel %vm8665_vm15, %v3106_v36, %v3138_v13  ;;  %v13359_v3 = vsel %vm8665_vm15, %v3105_v46, %v3137_v39 }
 0x72e   : >> { %v3076_v40 = vsel %vm15682_vm0, %v7455_v54, %v7460_v52  ;;  %v3075_v5 = vsel %vm15705_vm1, %v7454_v17, %v7459_v35  ;;  %v7606_v10 = vpack.i.bf16 %v13355_v8, %v13359_v3  ;;  %vm15708_vm0 = vcmp.eq.s32.totalorder %v15572_v16, 0 }
 0x72f   : >> { %v3108_v58 = vmin.f32 %v13055_v1, %v3076_v40  ;;  %v3140_v32 = vmax.f32 %v13055_v1, %v3076_v40  ;;  %v3107_v50 = vmin.f32 %v13059_v41, %v3075_v5  ;;  %v3139_v57 = vmax.f32 %v13059_v41, %v3075_v5  ;;  %v7468_v38 = vpop.permute.xlu1 %7467  ;;  %v7463_v47 = vpop.permute.xlu0 %7462  ;;  %vm15709_vm1 = vmmov %vm15708_vm0 }
 0x730   : >> { %v7470_v6 = vunpack.i.h.bf16 %v7468_v38  ;;  %v7469_v60 = vunpack.i.l.bf16 %v7468_v38  ;;  %v7465_v23 = vunpack.i.h.bf16 %v7463_v47  ;;  %v7464_v36 = vunpack.i.l.bf16 %v7463_v47  ;;  %7607 = vrot.lane.b32.xlu1 %v7606_v10, %s8387_s9  ;;  %7602 = vrot.lane.b32.xlu0 %v7606_v10, %s8386_s7 }
 0x731   : >> { %v13375_v13 = vsel %vm8665_vm15, %v3108_v58, %v3140_v32  ;;  %v13379_v1 = vsel %vm8665_vm15, %v3107_v50, %v3139_v57 }
 0x732   : >> { %v3078_v41 = vsel %vm15706_vm2, %v7465_v23, %v7470_v6  ;;  %v3077_v46 = vsel %vm15707_vm5, %v7464_v36, %v7469_v60  ;;  %v7616_v39 = vpack.i.bf16 %v13375_v13, %v13379_v1  ;;  %vm15711_vm2 = vmmov %vm15708_vm0 }
 0x733   : >> { %v3110_v56 = vmin.f32 %v13075_v62, %v3078_v41  ;;  %v3142_v0 = vmax.f32 %v13075_v62, %v3078_v41  ;;  %v3109_v52 = vmin.f32 %v13079_v30, %v3077_v46  ;;  %v3141_v35 = vmax.f32 %v13079_v30, %v3077_v46  ;;  %vm15712_vm5 = vmmov %vm15708_vm0 }
 0x734   : >> { %7617 = vrot.lane.b32.xlu1 %v7616_v39, %s8387_s9  ;;  %7612 = vrot.lane.b32.xlu0 %v7616_v39, %s8386_s7 }
 0x735   : >> { %v13395_v54 = vsel %vm8665_vm15, %v3110_v56, %v3142_v0  ;;  %v13399_v17 = vsel %vm8665_vm15, %v3109_v52, %v3141_v35 }
 0x736   : >> { %v7626_v40 = vpack.i.bf16 %v13395_v54, %v13399_v17 }
 0x738   : >> { %7627 = vrot.lane.b32.xlu1 %v7626_v40, %s8387_s9  ;;  %7622 = vrot.lane.b32.xlu0 %v7626_v40, %s8386_s7 }
 0x76e   : >> { %v7478_v62 = vpop.permute.xlu1 %7477  ;;  %v7473_v30 = vpop.permute.xlu0 %7472 }
 0x76f   : >> { %v7480_v5 = vunpack.i.h.bf16 %v7478_v62  ;;  %v7479_v10 = vunpack.i.l.bf16 %v7478_v62  ;;  %v7475_v58 = vunpack.i.h.bf16 %v7473_v30  ;;  %v7474_v32 = vunpack.i.l.bf16 %v7473_v30 }
 0x771   : >> { %v3306_v50 = vsel %vm15708_vm0, %v7475_v58, %v7480_v5  ;;  %v3305_v57 = vsel %vm15709_vm1, %v7474_v32, %v7479_v10  ;;  %vm15713_vm1 = vmmov %vm15708_vm0 }
 0x772   : >> { %v3338_v38 = vmin.f32 %v13095_v29, %v3306_v50  ;;  %v3370_v47 = vmax.f32 %v13095_v29, %v3306_v50  ;;  %v3337_v6 = vmin.f32 %v13099_v43, %v3305_v57  ;;  %v3369_v60 = vmax.f32 %v13099_v43, %v3305_v57  ;;  %v7488_v23 = vpop.permute.xlu1 %7487  ;;  %v7483_v36 = vpop.permute.xlu0 %7482 }
 0x773   : >> { %v7490_v41 = vunpack.i.h.bf16 %v7488_v23  ;;  %v7489_v46 = vunpack.i.l.bf16 %v7488_v23  ;;  %v7485_v39 = vunpack.i.h.bf16 %v7483_v36  ;;  %v7484_v56 = vunpack.i.l.bf16 %v7483_v36 }
 0x774   : >> { %v13415_v52 = vsel %vm8670_vm9, %v3338_v38, %v3370_v47  ;;  %v13419_v35 = vsel %vm8670_vm9, %v3337_v6, %v3369_v60 }
 0x775   : >> { %v3308_v29 = vsel %vm15711_vm2, %v7485_v39, %v7490_v41  ;;  %v3307_v43 = vsel %vm15712_vm5, %v7484_v56, %v7489_v46  ;;  %v7636_v40 = vpack.i.bf16 %v13415_v52, %v13419_v35  ;;  %vm15714_vm2 = vmmov %vm15708_vm0 }
 0x776   : >> { %v3340_v62 = vmin.f32 %v13115_v55, %v3308_v29  ;;  %v3372_v30 = vmax.f32 %v13115_v55, %v3308_v29  ;;  %v3339_v5 = vmin.f32 %v13119_v53, %v3307_v43  ;;  %v3371_v10 = vmax.f32 %v13119_v53, %v3307_v43  ;;  %v7498_v58 = vpop.permute.xlu1 %7497  ;;  %v7493_v32 = vpop.permute.xlu0 %7492  ;;  %vm15715_vm5 = vmmov %vm15708_vm0 }
 0x777   : >> { %v7500_v50 = vunpack.i.h.bf16 %v7498_v58  ;;  %v7499_v57 = vunpack.i.l.bf16 %v7498_v58  ;;  %v7495_v38 = vunpack.i.h.bf16 %v7493_v32  ;;  %v7494_v47 = vunpack.i.l.bf16 %v7493_v32  ;;  %7637 = vrot.lane.b32.xlu1 %v7636_v40, %s8385_s6  ;;  %7632 = vrot.lane.b32.xlu0 %v7636_v40, %s8384_s5 }
 0x778   : >> { %v13435_v6 = vsel %vm8670_vm9, %v3340_v62, %v3372_v30  ;;  %v13439_v55 = vsel %vm8670_vm9, %v3339_v5, %v3371_v10 }
 0x779   : >> { %v3310_v53 = vsel %vm15708_vm0, %v7495_v38, %v7500_v50  ;;  %v3309_v60 = vsel %vm15713_vm1, %v7494_v47, %v7499_v57  ;;  %v7646_v23 = vpack.i.bf16 %v13435_v6, %v13439_v55  ;;  %vm15716_vm1 = vmmov %vm15708_vm0 }
 0x77a   : >> { %v3342_v36 = vmin.f32 %v13135_v61, %v3310_v53  ;;  %v3374_v41 = vmax.f32 %v13135_v61, %v3310_v53  ;;  %v3341_v46 = vmin.f32 %v13139_v24, %v3309_v60  ;;  %v3373_v39 = vmax.f32 %v13139_v24, %v3309_v60  ;;  %v7508_v56 = vpop.permute.xlu1 %7507  ;;  %v7503_v29 = vpop.permute.xlu0 %7502 }
 0x77b   : >> { %v7510_v43 = vunpack.i.h.bf16 %v7508_v56  ;;  %v7509_v40 = vunpack.i.l.bf16 %v7508_v56  ;;  %v7505_v62 = vunpack.i.h.bf16 %v7503_v29  ;;  %v7504_v30 = vunpack.i.l.bf16 %v7503_v29  ;;  %7647 = vrot.lane.b32.xlu1 %v7646_v23, %s8385_s6  ;;  %7642 = vrot.lane.b32.xlu0 %v7646_v23, %s8384_s5 }
 0x77c   : >> { %v13455_v5 = vsel %vm8670_vm9, %v3342_v36, %v3374_v41  ;;  %v13459_v61 = vsel %vm8670_vm9, %v3341_v46, %v3373_v39 }
 0x77d   : >> { %v3312_v24 = vsel %vm15714_vm2, %v7505_v62, %v7510_v43  ;;  %v3311_v10 = vsel %vm15715_vm5, %v7504_v30, %v7509_v40  ;;  %v7656_v58 = vpack.i.bf16 %v13455_v5, %v13459_v61  ;;  %vm15717_vm2 = vmmov %vm15708_vm0 }
 0x77e   : >> { %v3344_v32 = vmin.f32 %v13155_v45, %v3312_v24  ;;  %v3376_v50 = vmax.f32 %v13155_v45, %v3312_v24  ;;  %v3343_v57 = vmin.f32 %v13159_v33, %v3311_v10  ;;  %v3375_v38 = vmax.f32 %v13159_v33, %v3311_v10  ;;  %v7518_v47 = vpop.permute.xlu1 %7517  ;;  %v7513_v53 = vpop.permute.xlu0 %7512  ;;  %vm15718_vm5 = vmmov %vm15708_vm0 }
 0x77f   : >> { %v7520_v60 = vunpack.i.h.bf16 %v7518_v47  ;;  %v7519_v23 = vunpack.i.l.bf16 %v7518_v47  ;;  %v7515_v36 = vunpack.i.h.bf16 %v7513_v53  ;;  %v7514_v41 = vunpack.i.l.bf16 %v7513_v53  ;;  %7657 = vrot.lane.b32.xlu1 %v7656_v58, %s8385_s6  ;;  %7652 = vrot.lane.b32.xlu0 %v7656_v58, %s8384_s5 }
 0x780   : >> { %v13475_v46 = vsel %vm8670_vm9, %v3344_v32, %v3376_v50  ;;  %v13479_v45 = vsel %vm8670_vm9, %v3343_v57, %v3375_v38 }
 0x781   : >> { %v3314_v33 = vsel %vm15708_vm0, %v7515_v36, %v7520_v60  ;;  %v3313_v39 = vsel %vm15716_vm1, %v7514_v41, %v7519_v23  ;;  %v7666_v56 = vpack.i.bf16 %v13475_v46, %v13479_v45  ;;  %vm15719_vm1 = vmmov %vm15708_vm0 }
 0x782   : >> { %v3346_v29 = vmin.f32 %v13175_v9, %v3314_v33  ;;  %v3378_v43 = vmax.f32 %v13175_v9, %v3314_v33  ;;  %v3345_v40 = vmin.f32 %v13179_v44, %v3313_v39  ;;  %v3377_v62 = vmax.f32 %v13179_v44, %v3313_v39  ;;  %v7528_v30 = vpop.permute.xlu1 %7527  ;;  %v7523_v24 = vpop.permute.xlu0 %7522 }
 0x783   : >> { %v7530_v10 = vunpack.i.h.bf16 %v7528_v30  ;;  %v7529_v58 = vunpack.i.l.bf16 %v7528_v30  ;;  %v7525_v32 = vunpack.i.h.bf16 %v7523_v24  ;;  %v7524_v50 = vunpack.i.l.bf16 %v7523_v24  ;;  %7667 = vrot.lane.b32.xlu1 %v7666_v56, %s8385_s6  ;;  %7662 = vrot.lane.b32.xlu0 %v7666_v56, %s8384_s5 }
 0x784   : >> { %v13495_v57 = vsel %vm8670_vm9, %v3346_v29, %v3378_v43  ;;  %v13499_v9 = vsel %vm8670_vm9, %v3345_v40, %v3377_v62 }
 0x785   : >> { %v3316_v44 = vsel %vm15717_vm2, %v7525_v32, %v7530_v10  ;;  %v3315_v38 = vsel %vm15718_vm5, %v7524_v50, %v7529_v58  ;;  %v7676_v47 = vpack.i.bf16 %v13495_v57, %v13499_v9  ;;  %vm15720_vm2 = vmmov %vm15708_vm0 }
 0x786   : >> { %v3348_v53 = vmin.f32 %v13195_v22, %v3316_v44  ;;  %v3380_v60 = vmax.f32 %v13195_v22, %v3316_v44  ;;  %v3347_v23 = vmin.f32 %v13199_v34, %v3315_v38  ;;  %v3379_v36 = vmax.f32 %v13199_v34, %v3315_v38  ;;  %v7538_v41 = vpop.permute.xlu1 %7537  ;;  %v7533_v33 = vpop.permute.xlu0 %7532  ;;  %vm15721_vm5 = vmmov %vm15708_vm0 }
 0x787   : >> { %v7540_v39 = vunpack.i.h.bf16 %v7538_v41  ;;  %v7539_v56 = vunpack.i.l.bf16 %v7538_v41  ;;  %v7535_v29 = vunpack.i.h.bf16 %v7533_v33  ;;  %v7534_v43 = vunpack.i.l.bf16 %v7533_v33  ;;  %7677 = vrot.lane.b32.xlu1 %v7676_v47, %s8385_s6  ;;  %7672 = vrot.lane.b32.xlu0 %v7676_v47, %s8384_s5 }
 0x788   : >> { %v13515_v40 = vsel %vm8670_vm9, %v3348_v53, %v3380_v60  ;;  %v13519_v22 = vsel %vm8670_vm9, %v3347_v23, %v3379_v36 }
 0x789   : >> { %v3318_v34 = vsel %vm15708_vm0, %v7535_v29, %v7540_v39  ;;  %v3317_v62 = vsel %vm15719_vm1, %v7534_v43, %v7539_v56  ;;  %v7686_v30 = vpack.i.bf16 %v13515_v40, %v13519_v22  ;;  %vm15722_vm1 = vmmov %vm15708_vm0 }
 0x78a   : >> { %v3350_v24 = vmin.f32 %v13215_v27, %v3318_v34  ;;  %v3382_v10 = vmax.f32 %v13215_v27, %v3318_v34  ;;  %v3349_v58 = vmin.f32 %v13219_v63, %v3317_v62  ;;  %v3381_v32 = vmax.f32 %v13219_v63, %v3317_v62  ;;  %v7548_v50 = vpop.permute.xlu1 %7547  ;;  %v7543_v44 = vpop.permute.xlu0 %7542 }
 0x78b   : >> { %v7550_v38 = vunpack.i.h.bf16 %v7548_v50  ;;  %v7549_v47 = vunpack.i.l.bf16 %v7548_v50  ;;  %v7545_v53 = vunpack.i.h.bf16 %v7543_v44  ;;  %v7544_v60 = vunpack.i.l.bf16 %v7543_v44  ;;  %7687 = vrot.lane.b32.xlu1 %v7686_v30, %s8385_s6  ;;  %7682 = vrot.lane.b32.xlu0 %v7686_v30, %s8384_s5 }
 0x78c   : >> { %v13535_v23 = vsel %vm8670_vm9, %v3350_v24, %v3382_v10  ;;  %v13539_v27 = vsel %vm8670_vm9, %v3349_v58, %v3381_v32 }
 0x78d   : >> { %v3320_v63 = vsel %vm15720_vm2, %v7545_v53, %v7550_v38  ;;  %v3319_v36 = vsel %vm15721_vm5, %v7544_v60, %v7549_v47  ;;  %v7696_v41 = vpack.i.bf16 %v13535_v23, %v13539_v27  ;;  %vm15723_vm2 = vmmov %vm15708_vm0 }
 0x78e   : >> { %v3352_v33 = vmin.f32 %v13235_v49, %v3320_v63  ;;  %v3384_v39 = vmax.f32 %v13235_v49, %v3320_v63  ;;  %v3351_v56 = vmin.f32 %v13239_v19, %v3319_v36  ;;  %v3383_v29 = vmax.f32 %v13239_v19, %v3319_v36  ;;  %v7558_v43 = vpop.permute.xlu1 %7557  ;;  %v7553_v34 = vpop.permute.xlu0 %7552  ;;  %vm15724_vm5 = vmmov %vm15708_vm0 }
 0x78f   : >> { %v7560_v62 = vunpack.i.h.bf16 %v7558_v43  ;;  %v7559_v30 = vunpack.i.l.bf16 %v7558_v43  ;;  %v7555_v24 = vunpack.i.h.bf16 %v7553_v34  ;;  %v7554_v10 = vunpack.i.l.bf16 %v7553_v34  ;;  %7697 = vrot.lane.b32.xlu1 %v7696_v41, %s8385_s6  ;;  %7692 = vrot.lane.b32.xlu0 %v7696_v41, %s8384_s5 }
 0x790   : >> { %v13555_v58 = vsel %vm8670_vm9, %v3352_v33, %v3384_v39  ;;  %v13559_v49 = vsel %vm8670_vm9, %v3351_v56, %v3383_v29 }
 0x791   : >> { %v3322_v19 = vsel %vm15708_vm0, %v7555_v24, %v7560_v62  ;;  %v3321_v32 = vsel %vm15722_vm1, %v7554_v10, %v7559_v30  ;;  %v7706_v50 = vpack.i.bf16 %v13555_v58, %v13559_v49  ;;  %vm15725_vm1 = vmmov %vm15708_vm0 }
 0x792   : >> { %v3354_v44 = vmin.f32 %v13255_v37, %v3322_v19  ;;  %v3386_v38 = vmax.f32 %v13255_v37, %v3322_v19  ;;  %v3353_v47 = vmin.f32 %v13259_v4, %v3321_v32  ;;  %v3385_v53 = vmax.f32 %v13259_v4, %v3321_v32  ;;  %v7568_v60 = vpop.permute.xlu1 %7567  ;;  %v7563_v63 = vpop.permute.xlu0 %7562 }
 0x793   : >> { %v7570_v36 = vunpack.i.h.bf16 %v7568_v60  ;;  %v7569_v41 = vunpack.i.l.bf16 %v7568_v60  ;;  %v7565_v33 = vunpack.i.h.bf16 %v7563_v63  ;;  %v7564_v39 = vunpack.i.l.bf16 %v7563_v63  ;;  %7707 = vrot.lane.b32.xlu1 %v7706_v50, %s8385_s6  ;;  %7702 = vrot.lane.b32.xlu0 %v7706_v50, %s8384_s5 }
 0x794   : >> { %v13575_v56 = vsel %vm8670_vm9, %v3354_v44, %v3386_v38  ;;  %v13579_v37 = vsel %vm8670_vm9, %v3353_v47, %v3385_v53 }
 0x795   : >> { %v3324_v4 = vsel %vm15723_vm2, %v7565_v33, %v7570_v36  ;;  %v3323_v29 = vsel %vm15724_vm5, %v7564_v39, %v7569_v41  ;;  %v7716_v43 = vpack.i.bf16 %v13575_v56, %v13579_v37  ;;  %vm15726_vm2 = vmmov %vm15708_vm0 }
 0x796   : >> { %v3356_v34 = vmin.f32 %v13275_v48, %v3324_v4  ;;  %v3388_v62 = vmax.f32 %v13275_v48, %v3324_v4  ;;  %v3355_v30 = vmin.f32 %v13279_v7, %v3323_v29  ;;  %v3387_v24 = vmax.f32 %v13279_v7, %v3323_v29  ;;  %v7578_v10 = vpop.permute.xlu1 %7577  ;;  %v7573_v19 = vpop.permute.xlu0 %7572  ;;  %vm15727_vm5 = vmmov %vm15708_vm0 }
 0x797   : >> { %v7580_v32 = vunpack.i.h.bf16 %v7578_v10  ;;  %v7579_v50 = vunpack.i.l.bf16 %v7578_v10  ;;  %v7575_v44 = vunpack.i.h.bf16 %v7573_v19  ;;  %v7574_v38 = vunpack.i.l.bf16 %v7573_v19  ;;  %7717 = vrot.lane.b32.xlu1 %v7716_v43, %s8385_s6  ;;  %7712 = vrot.lane.b32.xlu0 %v7716_v43, %s8384_s5 }
 0x798   : >> { %v13595_v47 = vsel %vm8670_vm9, %v3356_v34, %v3388_v62  ;;  %v13599_v48 = vsel %vm8670_vm9, %v3355_v30, %v3387_v24 }
 0x799   : >> { %v3326_v7 = vsel %vm15708_vm0, %v7575_v44, %v7580_v32  ;;  %v3325_v53 = vsel %vm15725_vm1, %v7574_v38, %v7579_v50  ;;  %v7726_v60 = vpack.i.bf16 %v13595_v47, %v13599_v48  ;;  %vm15728_vm1 = vmmov %vm15708_vm0 }
 0x79a   : >> { %v3358_v63 = vmin.f32 %v13295_v14, %v3326_v7  ;;  %v3390_v36 = vmax.f32 %v13295_v14, %v3326_v7  ;;  %v3357_v41 = vmin.f32 %v13299_v2, %v3325_v53  ;;  %v3389_v33 = vmax.f32 %v13299_v2, %v3325_v53  ;;  %v7588_v39 = vpop.permute.xlu1 %7587  ;;  %v7583_v4 = vpop.permute.xlu0 %7582 }
 0x79b   : >> { %v7590_v29 = vunpack.i.h.bf16 %v7588_v39  ;;  %v7589_v43 = vunpack.i.l.bf16 %v7588_v39  ;;  %v7585_v34 = vunpack.i.h.bf16 %v7583_v4  ;;  %v7584_v62 = vunpack.i.l.bf16 %v7583_v4  ;;  %7727 = vrot.lane.b32.xlu1 %v7726_v60, %s8385_s6  ;;  %7722 = vrot.lane.b32.xlu0 %v7726_v60, %s8384_s5 }
 0x79c   : >> { %v13615_v30 = vsel %vm8670_vm9, %v3358_v63, %v3390_v36  ;;  %v13619_v14 = vsel %vm8670_vm9, %v3357_v41, %v3389_v33 }
 0x79d   : >> { %v3328_v2 = vsel %vm15726_vm2, %v7585_v34, %v7590_v29  ;;  %v3327_v24 = vsel %vm15727_vm5, %v7584_v62, %v7589_v43  ;;  %v7736_v10 = vpack.i.bf16 %v13615_v30, %v13619_v14  ;;  %vm15729_vm2 = vmmov %vm15708_vm0 }
 0x79e   : >> { %v3360_v19 = vmin.f32 %v13315_v51, %v3328_v2  ;;  %v3392_v32 = vmax.f32 %v13315_v51, %v3328_v2  ;;  %v3359_v50 = vmin.f32 %v13319_v59, %v3327_v24  ;;  %v3391_v44 = vmax.f32 %v13319_v59, %v3327_v24  ;;  %v7598_v38 = vpop.permute.xlu1 %7597  ;;  %v7593_v7 = vpop.permute.xlu0 %7592  ;;  %vm15730_vm5 = vmmov %vm15708_vm0 }
 0x79f   : >> { %v7600_v53 = vunpack.i.h.bf16 %v7598_v38  ;;  %v7599_v60 = vunpack.i.l.bf16 %v7598_v38  ;;  %v7595_v63 = vunpack.i.h.bf16 %v7593_v7  ;;  %v7594_v36 = vunpack.i.l.bf16 %v7593_v7  ;;  %7737 = vrot.lane.b32.xlu1 %v7736_v10, %s8385_s6  ;;  %7732 = vrot.lane.b32.xlu0 %v7736_v10, %s8384_s5 }
 0x7a0   : >> { %v13635_v41 = vsel %vm8670_vm9, %v3360_v19, %v3392_v32  ;;  %v13639_v51 = vsel %vm8670_vm9, %v3359_v50, %v3391_v44 }
 0x7a1   : >> { %v3330_v59 = vsel %vm15708_vm0, %v7595_v63, %v7600_v53  ;;  %v3329_v33 = vsel %vm15728_vm1, %v7594_v36, %v7599_v60  ;;  %v7746_v39 = vpack.i.bf16 %v13635_v41, %v13639_v51  ;;  %vm15731_vm1 = vmmov %vm15708_vm0 }
 0x7a2   : >> { %v3362_v4 = vmin.f32 %v13335_v21, %v3330_v59  ;;  %v3394_v29 = vmax.f32 %v13335_v21, %v3330_v59  ;;  %v3361_v43 = vmin.f32 %v13339_v18, %v3329_v33  ;;  %v3393_v34 = vmax.f32 %v13339_v18, %v3329_v33  ;;  %v7608_v62 = vpop.permute.xlu1 %7607  ;;  %v7603_v2 = vpop.permute.xlu0 %7602 }
 0x7a3   : >> { %v7610_v24 = vunpack.i.h.bf16 %v7608_v62  ;;  %v7609_v10 = vunpack.i.l.bf16 %v7608_v62  ;;  %v7605_v19 = vunpack.i.h.bf16 %v7603_v2  ;;  %v7604_v32 = vunpack.i.l.bf16 %v7603_v2  ;;  %7747 = vrot.lane.b32.xlu1 %v7746_v39, %s8385_s6  ;;  %7742 = vrot.lane.b32.xlu0 %v7746_v39, %s8384_s5 }
 0x7a4   : >> { %v13655_v50 = vsel %vm8670_vm9, %v3362_v4, %v3394_v29  ;;  %v13659_v21 = vsel %vm8670_vm9, %v3361_v43, %v3393_v34 }
 0x7a5   : >> { %v3332_v18 = vsel %vm15729_vm2, %v7605_v19, %v7610_v24  ;;  %v3331_v44 = vsel %vm15730_vm5, %v7604_v32, %v7609_v10  ;;  %v7756_v38 = vpack.i.bf16 %v13655_v50, %v13659_v21  ;;  %vm15732_vm2 = vmmov %vm15708_vm0 }
 0x7a6   : >> { %v3364_v7 = vmin.f32 %v13355_v8, %v3332_v18  ;;  %v3396_v53 = vmax.f32 %v13355_v8, %v3332_v18  ;;  %v3363_v60 = vmin.f32 %v13359_v3, %v3331_v44  ;;  %v3395_v63 = vmax.f32 %v13359_v3, %v3331_v44  ;;  %v7618_v36 = vpop.permute.xlu1 %7617  ;;  %v7613_v59 = vpop.permute.xlu0 %7612  ;;  %vm15733_vm5 = vmmov %vm15708_vm0 }
 0x7a7   : >> { %v7620_v33 = vunpack.i.h.bf16 %v7618_v36  ;;  %v7619_v39 = vunpack.i.l.bf16 %v7618_v36  ;;  %v7615_v4 = vunpack.i.h.bf16 %v7613_v59  ;;  %v7614_v29 = vunpack.i.l.bf16 %v7613_v59  ;;  %7757 = vrot.lane.b32.xlu1 %v7756_v38, %s8385_s6  ;;  %7752 = vrot.lane.b32.xlu0 %v7756_v38, %s8384_s5 }
 0x7a8   : >> { %v13675_v43 = vsel %vm8670_vm9, %v3364_v7, %v3396_v53  ;;  %v13679_v8 = vsel %vm8670_vm9, %v3363_v60, %v3395_v63 }
 0x7a9   : >> { %v3334_v3 = vsel %vm15708_vm0, %v7615_v4, %v7620_v33  ;;  %v3333_v34 = vsel %vm15731_vm1, %v7614_v29, %v7619_v39  ;;  %v7766_v62 = vpack.i.bf16 %v13675_v43, %v13679_v8  ;;  %vm15734_vm0 = vcmp.eq.s32.totalorder %v15600_v31, 0 }
 0x7aa   : >> { %v3366_v2 = vmin.f32 %v13375_v13, %v3334_v3  ;;  %v3398_v24 = vmax.f32 %v13375_v13, %v3334_v3  ;;  %v3365_v10 = vmin.f32 %v13379_v1, %v3333_v34  ;;  %v3397_v19 = vmax.f32 %v13379_v1, %v3333_v34  ;;  %v7628_v32 = vpop.permute.xlu1 %7627  ;;  %v7623_v18 = vpop.permute.xlu0 %7622  ;;  %vm15735_vm1 = vmmov %vm15734_vm0 }
 0x7ab   : >> { %v7630_v44 = vunpack.i.h.bf16 %v7628_v32  ;;  %v7629_v38 = vunpack.i.l.bf16 %v7628_v32  ;;  %v7625_v7 = vunpack.i.h.bf16 %v7623_v18  ;;  %v7624_v53 = vunpack.i.l.bf16 %v7623_v18  ;;  %7767 = vrot.lane.b32.xlu1 %v7766_v62, %s8385_s6  ;;  %7762 = vrot.lane.b32.xlu0 %v7766_v62, %s8384_s5 }
 0x7ac   : >> { %v13695_v60 = vsel %vm8670_vm9, %v3366_v2, %v3398_v24  ;;  %v13699_v13 = vsel %vm8670_vm9, %v3365_v10, %v3397_v19 }
 0x7ad   : >> { %v3336_v1 = vsel %vm15732_vm2, %v7625_v7, %v7630_v44  ;;  %v3335_v63 = vsel %vm15733_vm5, %v7624_v53, %v7629_v38  ;;  %v7776_v36 = vpack.i.bf16 %v13695_v60, %v13699_v13  ;;  %vm15737_vm2 = vmmov %vm15734_vm0 }
 0x7ae   : >> { %v3368_v59 = vmin.f32 %v13395_v54, %v3336_v1  ;;  %v3400_v33 = vmax.f32 %v13395_v54, %v3336_v1  ;;  %v3367_v39 = vmin.f32 %v13399_v17, %v3335_v63  ;;  %v3399_v4 = vmax.f32 %v13399_v17, %v3335_v63  ;;  %vm15738_vm5 = vmmov %vm15734_vm0 }
 0x7af   : >> { %7777 = vrot.lane.b32.xlu1 %v7776_v36, %s8385_s6  ;;  %7772 = vrot.lane.b32.xlu0 %v7776_v36, %s8384_s5 }
 0x7b0   : >> { %v13715_v29 = vsel %vm8670_vm9, %v3368_v59, %v3400_v33  ;;  %v13719_v3 = vsel %vm8670_vm9, %v3367_v39, %v3399_v4 }
 0x7b1   : >> { %v7786_v34 = vpack.i.bf16 %v13715_v29, %v13719_v3 }
 0x7b3   : >> { %7787 = vrot.lane.b32.xlu1 %v7786_v34, %s8385_s6  ;;  %7782 = vrot.lane.b32.xlu0 %v7786_v34, %s8384_s5 }
 0x7e9   : >> { %v7638_v54 = vpop.permute.xlu1 %7637  ;;  %v7633_v17 = vpop.permute.xlu0 %7632 }
 0x7ea   : >> { %v7640_v62 = vunpack.i.h.bf16 %v7638_v54  ;;  %v7639_v2 = vunpack.i.l.bf16 %v7638_v54  ;;  %v7635_v24 = vunpack.i.h.bf16 %v7633_v17  ;;  %v7634_v10 = vunpack.i.l.bf16 %v7633_v17 }
 0x7ec   : >> { %v3564_v19 = vsel %vm15734_vm0, %v7635_v24, %v7640_v62  ;;  %v3563_v32 = vsel %vm15735_vm1, %v7634_v10, %v7639_v2  ;;  %vm15739_vm1 = vmmov %vm15734_vm0 }
 0x7ed   : >> { %v3596_v18 = vmin.f32 %v13415_v52, %v3564_v19  ;;  %v3628_v44 = vmax.f32 %v13415_v52, %v3564_v19  ;;  %v3595_v38 = vmin.f32 %v13419_v35, %v3563_v32  ;;  %v3627_v7 = vmax.f32 %v13419_v35, %v3563_v32  ;;  %v7648_v53 = vpop.permute.xlu1 %7647  ;;  %v7643_v1 = vpop.permute.xlu0 %7642 }
 0x7ee   : >> { %v7650_v63 = vunpack.i.h.bf16 %v7648_v53  ;;  %v7649_v36 = vunpack.i.l.bf16 %v7648_v53  ;;  %v7645_v59 = vunpack.i.h.bf16 %v7643_v1  ;;  %v7644_v33 = vunpack.i.l.bf16 %v7643_v1 }
 0x7ef   : >> { %v13735_v4 = vsel %vm8685_vm14, %v3596_v18, %v3628_v44  ;;  %v13739_v34 = vsel %vm8685_vm14, %v3595_v38, %v3627_v7 }
 0x7f0   : >> { %v3566_v52 = vsel %vm15737_vm2, %v7645_v59, %v7650_v63  ;;  %v3565_v35 = vsel %vm15738_vm5, %v7644_v33, %v7649_v36  ;;  %v7796_v54 = vpack.i.bf16 %v13735_v4, %v13739_v34  ;;  %vm15740_vm2 = vmmov %vm15734_vm0 }
 0x7f1   : >> { %v3598_v17 = vmin.f32 %v13435_v6, %v3566_v52  ;;  %v3630_v62 = vmax.f32 %v13435_v6, %v3566_v52  ;;  %v3597_v2 = vmin.f32 %v13439_v55, %v3565_v35  ;;  %v3629_v24 = vmax.f32 %v13439_v55, %v3565_v35  ;;  %v7658_v10 = vpop.permute.xlu1 %7657  ;;  %v7653_v19 = vpop.permute.xlu0 %7652  ;;  %vm15741_vm5 = vmmov %vm15734_vm0 }
 0x7f2   : >> { %v7660_v32 = vunpack.i.h.bf16 %v7658_v10  ;;  %v7659_v18 = vunpack.i.l.bf16 %v7658_v10  ;;  %v7655_v44 = vunpack.i.h.bf16 %v7653_v19  ;;  %v7654_v38 = vunpack.i.l.bf16 %v7653_v19  ;;  %7797 = vrot.lane.b32.xlu1 %v7796_v54, %s8383_s30  ;;  %7792 = vrot.lane.b32.xlu0 %v7796_v54, %s8382_s29 }
 0x7f3   : >> { %v13755_v7 = vsel %vm8685_vm14, %v3598_v17, %v3630_v62  ;;  %v13759_v6 = vsel %vm8685_vm14, %v3597_v2, %v3629_v24 }
 0x7f4   : >> { %v3568_v55 = vsel %vm15734_vm0, %v7655_v44, %v7660_v32  ;;  %v3567_v53 = vsel %vm15739_vm1, %v7654_v38, %v7659_v18  ;;  %v7806_v1 = vpack.i.bf16 %v13755_v7, %v13759_v6  ;;  %vm15742_vm1 = vmmov %vm15734_vm0 }
 0x7f5   : >> { %v3600_v63 = vmin.f32 %v13455_v5, %v3568_v55  ;;  %v3632_v36 = vmax.f32 %v13455_v5, %v3568_v55  ;;  %v3599_v59 = vmin.f32 %v13459_v61, %v3567_v53  ;;  %v3631_v33 = vmax.f32 %v13459_v61, %v3567_v53  ;;  %v7668_v52 = vpop.permute.xlu1 %7667  ;;  %v7663_v35 = vpop.permute.xlu0 %7662 }
 0x7f6   : >> { %v7670_v54 = vunpack.i.h.bf16 %v7668_v52  ;;  %v7669_v17 = vunpack.i.l.bf16 %v7668_v52  ;;  %v7665_v62 = vunpack.i.h.bf16 %v7663_v35  ;;  %v7664_v2 = vunpack.i.l.bf16 %v7663_v35  ;;  %7807 = vrot.lane.b32.xlu1 %v7806_v1, %s8383_s30  ;;  %7802 = vrot.lane.b32.xlu0 %v7806_v1, %s8382_s29 }
 0x7f7   : >> { %v13775_v24 = vsel %vm8685_vm14, %v3600_v63, %v3632_v36  ;;  %v13779_v5 = vsel %vm8685_vm14, %v3599_v59, %v3631_v33 }
 0x7f8   : >> { %v3570_v61 = vsel %vm15740_vm2, %v7665_v62, %v7670_v54  ;;  %v3569_v10 = vsel %vm15741_vm5, %v7664_v2, %v7669_v17  ;;  %v7816_v19 = vpack.i.bf16 %v13775_v24, %v13779_v5  ;;  %vm15743_vm2 = vmmov %vm15734_vm0 }
 0x7f9   : >> { %v3602_v32 = vmin.f32 %v13475_v46, %v3570_v61  ;;  %v3634_v18 = vmax.f32 %v13475_v46, %v3570_v61  ;;  %v3601_v44 = vmin.f32 %v13479_v45, %v3569_v10  ;;  %v3633_v38 = vmax.f32 %v13479_v45, %v3569_v10  ;;  %v7678_v55 = vpop.permute.xlu1 %7677  ;;  %v7673_v53 = vpop.permute.xlu0 %7672  ;;  %vm15744_vm5 = vmmov %vm15734_vm0 }
 0x7fa   : >> { %v7680_v1 = vunpack.i.h.bf16 %v7678_v55  ;;  %v7679_v63 = vunpack.i.l.bf16 %v7678_v55  ;;  %v7675_v36 = vunpack.i.h.bf16 %v7673_v53  ;;  %v7674_v59 = vunpack.i.l.bf16 %v7673_v53  ;;  %7817 = vrot.lane.b32.xlu1 %v7816_v19, %s8383_s30  ;;  %7812 = vrot.lane.b32.xlu0 %v7816_v19, %s8382_s29 }
 0x7fb   : >> { %v13795_v33 = vsel %vm8685_vm14, %v3602_v32, %v3634_v18  ;;  %v13799_v46 = vsel %vm8685_vm14, %v3601_v44, %v3633_v38 }
 0x7fc   : >> { %v3572_v45 = vsel %vm15734_vm0, %v7675_v36, %v7680_v1  ;;  %v3571_v52 = vsel %vm15742_vm1, %v7674_v59, %v7679_v63  ;;  %v7826_v35 = vpack.i.bf16 %v13795_v33, %v13799_v46  ;;  %vm15745_vm1 = vmmov %vm15734_vm0 }
 0x7fd   : >> { %v3604_v54 = vmin.f32 %v13495_v57, %v3572_v45  ;;  %v3636_v17 = vmax.f32 %v13495_v57, %v3572_v45  ;;  %v3603_v62 = vmin.f32 %v13499_v9, %v3571_v52  ;;  %v3635_v2 = vmax.f32 %v13499_v9, %v3571_v52  ;;  %v7688_v61 = vpop.permute.xlu1 %7687  ;;  %v7683_v10 = vpop.permute.xlu0 %7682 }
 0x7fe   : >> { %v7690_v19 = vunpack.i.h.bf16 %v7688_v61  ;;  %v7689_v32 = vunpack.i.l.bf16 %v7688_v61  ;;  %v7685_v18 = vunpack.i.h.bf16 %v7683_v10  ;;  %v7684_v44 = vunpack.i.l.bf16 %v7683_v10  ;;  %7827 = vrot.lane.b32.xlu1 %v7826_v35, %s8383_s30  ;;  %7822 = vrot.lane.b32.xlu0 %v7826_v35, %s8382_s29 }
 0x7ff   : >> { %v13815_v38 = vsel %vm8685_vm14, %v3604_v54, %v3636_v17  ;;  %v13819_v57 = vsel %vm8685_vm14, %v3603_v62, %v3635_v2 }
 0x800   : >> { %v3574_v9 = vsel %vm15743_vm2, %v7685_v18, %v7690_v19  ;;  %v3573_v55 = vsel %vm15744_vm5, %v7684_v44, %v7689_v32  ;;  %v7836_v53 = vpack.i.bf16 %v13815_v38, %v13819_v57  ;;  %vm15746_vm2 = vmmov %vm15734_vm0 }
 0x801   : >> { %v3606_v1 = vmin.f32 %v13515_v40, %v3574_v9  ;;  %v3638_v63 = vmax.f32 %v13515_v40, %v3574_v9  ;;  %v3605_v36 = vmin.f32 %v13519_v22, %v3573_v55  ;;  %v3637_v59 = vmax.f32 %v13519_v22, %v3573_v55  ;;  %v7698_v45 = vpop.permute.xlu1 %7697  ;;  %v7693_v52 = vpop.permute.xlu0 %7692  ;;  %vm15747_vm5 = vmmov %vm15734_vm0 }
 0x802   : >> { %v7700_v35 = vunpack.i.h.bf16 %v7698_v45  ;;  %v7699_v54 = vunpack.i.l.bf16 %v7698_v45  ;;  %v7695_v17 = vunpack.i.h.bf16 %v7693_v52  ;;  %v7694_v62 = vunpack.i.l.bf16 %v7693_v52  ;;  %7837 = vrot.lane.b32.xlu1 %v7836_v53, %s8383_s30  ;;  %7832 = vrot.lane.b32.xlu0 %v7836_v53, %s8382_s29 }
 0x803   : >> { %v13835_v2 = vsel %vm8685_vm14, %v3606_v1, %v3638_v63  ;;  %v13839_v40 = vsel %vm8685_vm14, %v3605_v36, %v3637_v59 }
 0x804   : >> { %v3576_v22 = vsel %vm15734_vm0, %v7695_v17, %v7700_v35  ;;  %v3575_v61 = vsel %vm15745_vm1, %v7694_v62, %v7699_v54  ;;  %v7846_v10 = vpack.i.bf16 %v13835_v2, %v13839_v40  ;;  %vm15748_vm1 = vmmov %vm15734_vm0 }
 0x805   : >> { %v3608_v19 = vmin.f32 %v13535_v23, %v3576_v22  ;;  %v3640_v32 = vmax.f32 %v13535_v23, %v3576_v22  ;;  %v3607_v18 = vmin.f32 %v13539_v27, %v3575_v61  ;;  %v3639_v44 = vmax.f32 %v13539_v27, %v3575_v61  ;;  %v7708_v9 = vpop.permute.xlu1 %7707  ;;  %v7703_v55 = vpop.permute.xlu0 %7702 }
 0x806   : >> { %v7710_v53 = vunpack.i.h.bf16 %v7708_v9  ;;  %v7709_v1 = vunpack.i.l.bf16 %v7708_v9  ;;  %v7705_v63 = vunpack.i.h.bf16 %v7703_v55  ;;  %v7704_v36 = vunpack.i.l.bf16 %v7703_v55  ;;  %7847 = vrot.lane.b32.xlu1 %v7846_v10, %s8383_s30  ;;  %7842 = vrot.lane.b32.xlu0 %v7846_v10, %s8382_s29 }
 0x807   : >> { %v13855_v59 = vsel %vm8685_vm14, %v3608_v19, %v3640_v32  ;;  %v13859_v23 = vsel %vm8685_vm14, %v3607_v18, %v3639_v44 }
 0x808   : >> { %v3578_v27 = vsel %vm15746_vm2, %v7705_v63, %v7710_v53  ;;  %v3577_v45 = vsel %vm15747_vm5, %v7704_v36, %v7709_v1  ;;  %v7856_v52 = vpack.i.bf16 %v13855_v59, %v13859_v23  ;;  %vm15749_vm2 = vmmov %vm15734_vm0 }
 0x809   : >> { %v3610_v35 = vmin.f32 %v13555_v58, %v3578_v27  ;;  %v3642_v54 = vmax.f32 %v13555_v58, %v3578_v27  ;;  %v3609_v17 = vmin.f32 %v13559_v49, %v3577_v45  ;;  %v3641_v62 = vmax.f32 %v13559_v49, %v3577_v45  ;;  %v7718_v22 = vpop.permute.xlu1 %7717  ;;  %v7713_v61 = vpop.permute.xlu0 %7712  ;;  %vm15750_vm5 = vmmov %vm15734_vm0 }
 0x80a   : >> { %v7720_v10 = vunpack.i.h.bf16 %v7718_v22  ;;  %v7719_v19 = vunpack.i.l.bf16 %v7718_v22  ;;  %v7715_v32 = vunpack.i.h.bf16 %v7713_v61  ;;  %v7714_v18 = vunpack.i.l.bf16 %v7713_v61  ;;  %7857 = vrot.lane.b32.xlu1 %v7856_v52, %s8383_s30  ;;  %7852 = vrot.lane.b32.xlu0 %v7856_v52, %s8382_s29 }
 0x80b   : >> { %v13875_v44 = vsel %vm8685_vm14, %v3610_v35, %v3642_v54  ;;  %v13879_v58 = vsel %vm8685_vm14, %v3609_v17, %v3641_v62 }
 0x80c   : >> { %v3580_v49 = vsel %vm15734_vm0, %v7715_v32, %v7720_v10  ;;  %v3579_v9 = vsel %vm15748_vm1, %v7714_v18, %v7719_v19  ;;  %v7866_v55 = vpack.i.bf16 %v13875_v44, %v13879_v58  ;;  %vm15751_vm1 = vmmov %vm15734_vm0 }
 0x80d   : >> { %v3612_v53 = vmin.f32 %v13575_v56, %v3580_v49  ;;  %v3644_v1 = vmax.f32 %v13575_v56, %v3580_v49  ;;  %v3611_v63 = vmin.f32 %v13579_v37, %v3579_v9  ;;  %v3643_v36 = vmax.f32 %v13579_v37, %v3579_v9  ;;  %v7728_v27 = vpop.permute.xlu1 %7727  ;;  %v7723_v45 = vpop.permute.xlu0 %7722 }
 0x80e   : >> { %v7730_v52 = vunpack.i.h.bf16 %v7728_v27  ;;  %v7729_v35 = vunpack.i.l.bf16 %v7728_v27  ;;  %v7725_v54 = vunpack.i.h.bf16 %v7723_v45  ;;  %v7724_v17 = vunpack.i.l.bf16 %v7723_v45  ;;  %7867 = vrot.lane.b32.xlu1 %v7866_v55, %s8383_s30  ;;  %7862 = vrot.lane.b32.xlu0 %v7866_v55, %s8382_s29 }
 0x80f   : >> { %v13895_v62 = vsel %vm8685_vm14, %v3612_v53, %v3644_v1  ;;  %v13899_v56 = vsel %vm8685_vm14, %v3611_v63, %v3643_v36 }
 0x810   : >> { %v3582_v37 = vsel %vm15749_vm2, %v7725_v54, %v7730_v52  ;;  %v3581_v22 = vsel %vm15750_vm5, %v7724_v17, %v7729_v35  ;;  %v7876_v61 = vpack.i.bf16 %v13895_v62, %v13899_v56  ;;  %vm15752_vm2 = vmmov %vm15734_vm0 }
 0x811   : >> { %v3614_v10 = vmin.f32 %v13595_v47, %v3582_v37  ;;  %v3646_v19 = vmax.f32 %v13595_v47, %v3582_v37  ;;  %v3613_v32 = vmin.f32 %v13599_v48, %v3581_v22  ;;  %v3645_v18 = vmax.f32 %v13599_v48, %v3581_v22  ;;  %v7738_v49 = vpop.permute.xlu1 %7737  ;;  %v7733_v9 = vpop.permute.xlu0 %7732  ;;  %vm15753_vm5 = vmmov %vm15734_vm0 }
 0x812   : >> { %v7740_v55 = vunpack.i.h.bf16 %v7738_v49  ;;  %v7739_v53 = vunpack.i.l.bf16 %v7738_v49  ;;  %v7735_v1 = vunpack.i.h.bf16 %v7733_v9  ;;  %v7734_v63 = vunpack.i.l.bf16 %v7733_v9  ;;  %7877 = vrot.lane.b32.xlu1 %v7876_v61, %s8383_s30  ;;  %7872 = vrot.lane.b32.xlu0 %v7876_v61, %s8382_s29 }
 0x813   : >> { %v13915_v36 = vsel %vm8685_vm14, %v3614_v10, %v3646_v19  ;;  %v13919_v47 = vsel %vm8685_vm14, %v3613_v32, %v3645_v18 }
 0x814   : >> { %v3584_v48 = vsel %vm15734_vm0, %v7735_v1, %v7740_v55  ;;  %v3583_v27 = vsel %vm15751_vm1, %v7734_v63, %v7739_v53  ;;  %v7886_v45 = vpack.i.bf16 %v13915_v36, %v13919_v47  ;;  %vm15754_vm1 = vmmov %vm15734_vm0 }
 0x815   : >> { %v3616_v52 = vmin.f32 %v13615_v30, %v3584_v48  ;;  %v3648_v35 = vmax.f32 %v13615_v30, %v3584_v48  ;;  %v3615_v54 = vmin.f32 %v13619_v14, %v3583_v27  ;;  %v3647_v17 = vmax.f32 %v13619_v14, %v3583_v27  ;;  %v7748_v37 = vpop.permute.xlu1 %7747  ;;  %v7743_v22 = vpop.permute.xlu0 %7742 }
 0x816   : >> { %v7750_v61 = vunpack.i.h.bf16 %v7748_v37  ;;  %v7749_v10 = vunpack.i.l.bf16 %v7748_v37  ;;  %v7745_v19 = vunpack.i.h.bf16 %v7743_v22  ;;  %v7744_v32 = vunpack.i.l.bf16 %v7743_v22  ;;  %7887 = vrot.lane.b32.xlu1 %v7886_v45, %s8383_s30  ;;  %7882 = vrot.lane.b32.xlu0 %v7886_v45, %s8382_s29 }
 0x817   : >> { %v13935_v18 = vsel %vm8685_vm14, %v3616_v52, %v3648_v35  ;;  %v13939_v30 = vsel %vm8685_vm14, %v3615_v54, %v3647_v17 }
 0x818   : >> { %v3586_v14 = vsel %vm15752_vm2, %v7745_v19, %v7750_v61  ;;  %v3585_v49 = vsel %vm15753_vm5, %v7744_v32, %v7749_v10  ;;  %v7896_v9 = vpack.i.bf16 %v13935_v18, %v13939_v30  ;;  %vm15755_vm2 = vmmov %vm15734_vm0 }
 0x819   : >> { %v3618_v55 = vmin.f32 %v13635_v41, %v3586_v14  ;;  %v3650_v53 = vmax.f32 %v13635_v41, %v3586_v14  ;;  %v3617_v1 = vmin.f32 %v13639_v51, %v3585_v49  ;;  %v3649_v63 = vmax.f32 %v13639_v51, %v3585_v49  ;;  %v7758_v48 = vpop.permute.xlu1 %7757  ;;  %v7753_v27 = vpop.permute.xlu0 %7752  ;;  %vm15756_vm5 = vmmov %vm15734_vm0 }
 0x81a   : >> { %v7760_v45 = vunpack.i.h.bf16 %v7758_v48  ;;  %v7759_v52 = vunpack.i.l.bf16 %v7758_v48  ;;  %v7755_v35 = vunpack.i.h.bf16 %v7753_v27  ;;  %v7754_v54 = vunpack.i.l.bf16 %v7753_v27  ;;  %7897 = vrot.lane.b32.xlu1 %v7896_v9, %s8383_s30  ;;  %7892 = vrot.lane.b32.xlu0 %v7896_v9, %s8382_s29 }
 0x81b   : >> { %v13955_v17 = vsel %vm8685_vm14, %v3618_v55, %v3650_v53  ;;  %v13959_v41 = vsel %vm8685_vm14, %v3617_v1, %v3649_v63 }
 0x81c   : >> { %v3588_v51 = vsel %vm15734_vm0, %v7755_v35, %v7760_v45  ;;  %v3587_v37 = vsel %vm15754_vm1, %v7754_v54, %v7759_v52  ;;  %v7906_v22 = vpack.i.bf16 %v13955_v17, %v13959_v41  ;;  %vm15757_vm1 = vmmov %vm15734_vm0 }
 0x81d   : >> { %v3620_v61 = vmin.f32 %v13655_v50, %v3588_v51  ;;  %v3652_v10 = vmax.f32 %v13655_v50, %v3588_v51  ;;  %v3619_v19 = vmin.f32 %v13659_v21, %v3587_v37  ;;  %v3651_v32 = vmax.f32 %v13659_v21, %v3587_v37  ;;  %v7768_v14 = vpop.permute.xlu1 %7767  ;;  %v7763_v49 = vpop.permute.xlu0 %7762 }
 0x81e   : >> { %v7770_v9 = vunpack.i.h.bf16 %v7768_v14  ;;  %v7769_v55 = vunpack.i.l.bf16 %v7768_v14  ;;  %v7765_v53 = vunpack.i.h.bf16 %v7763_v49  ;;  %v7764_v1 = vunpack.i.l.bf16 %v7763_v49  ;;  %7907 = vrot.lane.b32.xlu1 %v7906_v22, %s8383_s30  ;;  %7902 = vrot.lane.b32.xlu0 %v7906_v22, %s8382_s29 }
 0x81f   : >> { %v13975_v63 = vsel %vm8685_vm14, %v3620_v61, %v3652_v10  ;;  %v13979_v50 = vsel %vm8685_vm14, %v3619_v19, %v3651_v32 }
 0x820   : >> { %v3590_v21 = vsel %vm15755_vm2, %v7765_v53, %v7770_v9  ;;  %v3589_v48 = vsel %vm15756_vm5, %v7764_v1, %v7769_v55  ;;  %v7916_v27 = vpack.i.bf16 %v13975_v63, %v13979_v50  ;;  %vm15770_vm2 = vcmp.eq.s32.totalorder %v15627_v11, 0 }
 0x821   : >> { %v3622_v45 = vmin.f32 %v13675_v43, %v3590_v21  ;;  %v3654_v52 = vmax.f32 %v13675_v43, %v3590_v21  ;;  %v3621_v35 = vmin.f32 %v13679_v8, %v3589_v48  ;;  %v3653_v54 = vmax.f32 %v13679_v8, %v3589_v48  ;;  %v7778_v51 = vpop.permute.xlu1 %7777  ;;  %v7773_v37 = vpop.permute.xlu0 %7772  ;;  %vm15771_vm5 = vmmov %vm15770_vm2 }
 0x822   : >> { %v7780_v22 = vunpack.i.h.bf16 %v7778_v51  ;;  %v7779_v61 = vunpack.i.l.bf16 %v7778_v51  ;;  %v7775_v10 = vunpack.i.h.bf16 %v7773_v37  ;;  %v7774_v19 = vunpack.i.l.bf16 %v7773_v37  ;;  %7917 = vrot.lane.b32.xlu1 %v7916_v27, %s8383_s30  ;;  %7912 = vrot.lane.b32.xlu0 %v7916_v27, %s8382_s29  ;;  %v15762_v51 = vld [vmem:[#allocation49_spill] sm:$0xff]  ;;  %v15763_v37 = vld [vmem:[#allocation48_spill] sm:$0xff] }
 0x823   : >> { %v13995_v32 = vsel %vm8685_vm14, %v3622_v45, %v3654_v52  ;;  %v13999_v43 = vsel %vm8685_vm14, %v3621_v35, %v3653_v54  ;;  %v15760_v52 = vld [vmem:[#allocation47_spill] sm:$0xff]  ;;  %v15761_v35 = vld [vmem:[#allocation46_spill] sm:$0xff] }
 0x824   : >> { %v3592_v8 = vsel %vm15734_vm0, %v7775_v10, %v7780_v22  ;;  %v3591_v14 = vsel %vm15757_vm1, %v7774_v19, %v7779_v61  ;;  %v7926_v49 = vpack.i.bf16 %v13995_v32, %v13999_v43  ;;  %v5357_v54 = vcombine.low %v15761_v35, %v15760_v52  ;;  %v15764_v61 = vld [vmem:[#allocation51_spill] sm:$0xff]  ;;  %v15765_v10 = vld [vmem:[#allocation50_spill] sm:$0xff]  ;;  %vm15776_vm1 = vmmov %vm15770_vm2 }
 0x825   : >> { %v3624_v9 = vmin.f32 %v13695_v60, %v3592_v8  ;;  %v3656_v55 = vmax.f32 %v13695_v60, %v3592_v8  ;;  %v3623_v53 = vmin.f32 %v13699_v13, %v3591_v14  ;;  %v3655_v1 = vmax.f32 %v13699_v13, %v3591_v14  ;;  %v15758_v60 = vld [vmem:[#allocation45_spill] sm:$0xff]  ;;  %v15759_v13 = vld [vmem:[#allocation44_spill] sm:$0xff] }
 0x826   : >> { %7927 = vrot.lane.b32.xlu1 %v7926_v49, %s8383_s30  ;;  %7922 = vrot.lane.b32.xlu0 %v7926_v49, %s8382_s29  ;;  %v5356_v45 = vcombine.low %v15759_v13, %v15758_v60  ;;  %v5358_v22 = vcombine.low %v15763_v37, %v15762_v51  ;;  %v5359_v19 = vcombine.low %v15765_v10, %v15764_v61  ;;  %v15766_v8 = vld [vmem:[#allocation53_spill] sm:$0xff]  ;;  %v15767_v14 = vld [vmem:[#allocation52_spill] sm:$0xff] }
 0x827   : >> { %v14015_v21 = vsel %vm8685_vm14, %v3624_v9, %v3656_v55  ;;  %v14019_v48 = vsel %vm8685_vm14, %v3623_v53, %v3655_v1  ;;  %v5360_v49 = vcombine.low %v15767_v14, %v15766_v8  ;;  %v14035_v9 = vpop.permute.xlu1 %7787  ;;  %v14037_v55 = vpop.permute.xlu0 %7782  ;;  %v15768_v53 = vld [vmem:[#allocation55_spill] sm:$0xff]  ;;  %v15769_v1 = vld [vmem:[#allocation54_spill] sm:$0xff]  ;;  %v15773_v61 = vld [vmem:[#allocation56_spill] sm:$0xff] }
 0x828   : >> { %v7936_v27 = vpack.i.bf16 %v14015_v21, %v14019_v48  ;;  %5463 = vmatprep.subr.bf16.mxu0 %v5356_v45  ;;  %5595 = vmatprep.subr.bf16.mxu1 %v5356_v45 }
 0x829   : >> { %5464 = vmatpush3.bf16.msra.mxu0 %v5356_v45  ;;  %5603 = vmatpush3.bf16.msra.mxu1 %v5356_v45 }
 0x82a   : >> { %7937 = vrot.lane.b32.xlu1 %v7936_v27, %s8383_s30  ;;  %7932 = vrot.lane.b32.xlu0 %v7936_v27, %s8382_s29  ;;  %v5361_v27 = vcombine.low %v15769_v1, %v15768_v53 }
 0x82b   : >> { %5465 = vmatprep.subr.bf16.mxu0 %v5357_v54  ;;  %5596 = vmatprep.subr.bf16.mxu1 %v5357_v54 }
 0x82d   : >> { %5466 = vmatpush3.bf16.msra.mxu0 %v5357_v54  ;;  %5604 = vmatpush3.bf16.msra.mxu1 %v5357_v54 }
 0x82e   : >> { %5467 = vmatprep.subr.bf16.mxu0 %v5358_v22  ;;  %5597 = vmatprep.subr.bf16.mxu1 %v5358_v22 }
 0x831   : >> { %5468 = vmatpush3.bf16.msra.mxu0 %v5358_v22  ;;  %5605 = vmatpush3.bf16.msra.mxu1 %v5358_v22  ;;  %v15772_v22 = vld [vmem:[#allocation57_spill] sm:$0xff] }
 0x832   : >> { %5469 = vmatprep.subr.bf16.mxu0 %v5359_v19  ;;  %5598 = vmatprep.subr.bf16.mxu1 %v5359_v19  ;;  %v5362_v10 = vcombine.low %v15773_v61, %v15772_v22 }
 0x835   : >> { %5470 = vmatpush3.bf16.msra.mxu0 %v5359_v19  ;;  %5606 = vmatpush3.bf16.msra.mxu1 %v5359_v19 }
 0x836   : >> { %5471 = vmatprep.subr.bf16.mxu0 %v5360_v49  ;;  %5599 = vmatprep.subr.bf16.mxu1 %v5360_v49 }
 0x839   : >> { %5472 = vmatpush3.bf16.msra.mxu0 %v5360_v49  ;;  %5607 = vmatpush3.bf16.msra.mxu1 %v5360_v49 }
 0x83a   : >> { %5473 = vmatprep.subr.bf16.mxu0 %v5361_v27  ;;  %5600 = vmatprep.subr.bf16.mxu1 %v5361_v27 }
 0x83d   : >> { %5474 = vmatpush3.bf16.msra.mxu0 %v5361_v27  ;;  %5608 = vmatpush3.bf16.msra.mxu1 %v5361_v27 }
 0x83e   : >> { %5475 = vmatprep.subr.bf16.mxu0 %v5362_v10  ;;  %5601 = vmatprep.subr.bf16.mxu1 %v5362_v10 }
 0x841   : >> { %5476 = vmatpush3.bf16.msra.mxu0 %v5362_v10  ;;  %5609 = vmatpush3.bf16.msra.mxu1 %v5362_v10 }
 0x864   : >> { %v7798_v60 = vpop.permute.xlu1 %7797  ;;  %v7793_v13 = vpop.permute.xlu0 %7792 }
 0x865   : >> { %v7800_v45 = vunpack.i.h.bf16 %v7798_v60  ;;  %v7799_v52 = vunpack.i.l.bf16 %v7798_v60  ;;  %v7795_v35 = vunpack.i.h.bf16 %v7793_v13  ;;  %v7794_v54 = vunpack.i.l.bf16 %v7793_v13 }
 0x867   : >> { %v3822_v51 = vsel %vm15770_vm2, %v7795_v35, %v7800_v45  ;;  %v3821_v37 = vsel %vm15771_vm5, %v7794_v54, %v7799_v52  ;;  %v15774_v52 = vld [vmem:[#allocation39_spill] sm:$0xff]  ;;  %vm15777_vm2 = vmmov %vm15776_vm1 }
 0x868   : >> { %v3854_v19 = vmin.f32 %v13735_v4, %v3822_v51  ;;  %v3886_v8 = vmax.f32 %v13735_v4, %v3822_v51  ;;  %v3853_v14 = vmin.f32 %v13739_v34, %v3821_v37  ;;  %v3885_v49 = vmax.f32 %v13739_v34, %v3821_v37  ;;  %v7808_v53 = vpop.permute.xlu1 %7807  ;;  %v7803_v1 = vpop.permute.xlu0 %7802  ;;  %vm15780_vm5 = vmmov %vm15776_vm1 }
 0x869   : >> { %v7810_v27 = vunpack.i.h.bf16 %v7808_v53  ;;  %v7809_v60 = vunpack.i.l.bf16 %v7808_v53  ;;  %v7805_v13 = vunpack.i.h.bf16 %v7803_v1  ;;  %v7804_v45 = vunpack.i.l.bf16 %v7803_v1 }
 0x86a   : >> { %vm15775_vm0 = vnez %v15774_v52 }
 0x86b   : >> { %v14053_v35 = vsel %vm15775_vm0, %v3854_v19, %v3886_v8  ;;  %v14057_v54 = vsel %vm15775_vm0, %v3853_v14, %v3885_v49  ;;  %v3824_v4 = vsel %vm15776_vm1, %v7805_v13, %v7810_v27  ;;  %v3823_v34 = vsel %vm15777_vm2, %v7804_v45, %v7809_v60  ;;  %v15779_v13 = vld [vmem:[#allocation58_spill] sm:$0xff]  ;;  %vm15783_vm2 = vmmov %vm15776_vm1 }
 0x86c   : >> { %v7946_v51 = vpack.i.bf16 %v14053_v35, %v14057_v54  ;;  %v3856_v37 = vmin.f32 %v13755_v7, %v3824_v4  ;;  %v3888_v22 = vmax.f32 %v13755_v7, %v3824_v4  ;;  %v3855_v61 = vmin.f32 %v13759_v6, %v3823_v34  ;;  %v7818_v8 = vpop.permute.xlu1 %7817  ;;  %v7813_v14 = vpop.permute.xlu0 %7812 }
 0x86d   : >> { %v3887_v19 = vmax.f32 %v13759_v6, %v3823_v34  ;;  %v7820_v10 = vunpack.i.h.bf16 %v7818_v8  ;;  %v7819_v49 = vunpack.i.l.bf16 %v7818_v8  ;;  %v7815_v53 = vunpack.i.h.bf16 %v7813_v14  ;;  %v15778_v6 = vld [vmem:[#allocation59_spill] sm:$0xff] }
 0x86e   : >> { %v7814_v1 = vunpack.i.l.bf16 %v7813_v14  ;;  %7947 = vrot.lane.b32.xlu1 %v7946_v51, %s8381_s25  ;;  %7942 = vrot.lane.b32.xlu0 %v7946_v51, %s8380_s14  ;;  %v14074_v60 = vsel %vm15775_vm0, %v3856_v37, %v3888_v22  ;;  %v5363_v45 = vcombine.low %v15779_v13, %v15778_v6 }
 0x86f   : >> { %v14078_v7 = vsel %vm15775_vm0, %v3855_v61, %v3887_v19  ;;  %v3826_v4 = vsel %vm15780_vm5, %v7815_v53, %v7820_v10  ;;  %vm15784_vm5 = vmmov %vm15776_vm1 }
 0x870   : >> { %v3825_v34 = vsel %vm15776_vm1, %v7814_v1, %v7819_v49  ;;  %v7956_v51 = vpack.i.bf16 %v14074_v60, %v14078_v7  ;;  %v3858_v8 = vmin.f32 %v13775_v24, %v3826_v4  ;;  %v3890_v37 = vmax.f32 %v13775_v24, %v3826_v4  ;;  %v7828_v19 = vpop.permute.xlu1 %7827  ;;  %v7823_v14 = vpop.permute.xlu0 %7822  ;;  %5477 = vmatprep.subr.bf16.mxu0 %v5363_v45  ;;  %v15781_v1 = vld [vmem:[#allocation10_spill] sm:$0xff]  ;;  %v15782_v4 = vld [vmem:[#allocation9_spill] sm:$0xff] }
 0x871   : >> { %v3857_v22 = vmin.f32 %v13779_v5, %v3825_v34  ;;  %v3889_v61 = vmax.f32 %v13779_v5, %v3825_v34  ;;  %v7830_v6 = vunpack.i.h.bf16 %v7828_v19  ;;  %v7829_v13 = vunpack.i.l.bf16 %v7828_v19  ;;  %5478 = vmatpush3.bf16.msra.mxu0 %v5363_v45  ;;  %5602 = vmatprep.subr.bf16.mxu1 %v5363_v45 }
 0x872   : >> { %v7825_v10 = vunpack.i.h.bf16 %v7823_v14  ;;  %v7824_v53 = vunpack.i.l.bf16 %v7823_v14  ;;  %7957 = vrot.lane.b32.xlu1 %v7956_v51, %s8381_s25  ;;  %7952 = vrot.lane.b32.xlu0 %v7956_v51, %s8380_s14  ;;  %v7789_v49 = vunpack.i.l.bf16 %v14035_v9  ;;  %v14097_v24 = vsel %vm15775_vm0, %v3858_v8, %v3890_v37 }
 0x873   : >> { %v14101_v5 = vsel %vm15775_vm0, %v3857_v22, %v3889_v61  ;;  %v14105_v34 = vcombine.low %v15782_v4, %v15781_v1  ;;  %5610 = vmatpush3.bf16.msra.mxu1 %v5363_v45  ;;  %v7785_v45 = vunpack.i.h.bf16 %v14037_v55 }
 0x874   : >> { %v3828_v19 = vsel %vm15783_vm2, %v7825_v10, %v7830_v6  ;;  %v3827_v51 = vsel %vm15784_vm5, %v7824_v53, %v7829_v13  ;;  %v7966_v8 = vpack.i.bf16 %v14097_v24, %v14101_v5  ;;  %v7838_v1 = vpop.permute.xlu1 %7837  ;;  %v7833_v4 = vpop.permute.xlu0 %7832  ;;  %vm15785_vm2 = vmmov %vm15776_vm1  ;;  %vm15787_vm5 = vcmp.eq.s32.totalorder %v15600_v31, 0 }
 0x875   : >> { %v3860_v37 = vmin.f32 %v13795_v33, %v3828_v19  ;;  %v3892_v22 = vmax.f32 %v13795_v33, %v3828_v19  ;;  %v3859_v61 = vmin.f32 %v13799_v46, %v3827_v51  ;;  %v3891_v14 = vmax.f32 %v13799_v46, %v3827_v51  ;;  %5511 = vmatprep.subr.bf16.mxu0 %v14105_v34  ;;  %vm15789_vm3 = vmmov %vm15785_vm2 }
 0x876   : >> { %v7840_v6 = vunpack.i.h.bf16 %v7838_v1  ;;  %v7839_v10 = vunpack.i.l.bf16 %v7838_v1  ;;  %v7835_v27 = vunpack.i.h.bf16 %v7833_v4  ;;  %v7834_v13 = vunpack.i.l.bf16 %v7833_v4  ;;  %7967 = vrot.lane.b32.xlu1 %v7966_v8, %s8381_s25  ;;  %7962 = vrot.lane.b32.xlu0 %v7966_v8, %s8380_s14 }
 0x877   : >> { %v7784_v33 = vunpack.i.l.bf16 %v14037_v55  ;;  %v14124_v53 = vsel %vm15775_vm0, %v3860_v37, %v3892_v22  ;;  %v14128_v46 = vsel %vm15775_vm0, %v3859_v61, %v3891_v14 }
 0x878   : >> { %v3830_v19 = vsel %vm15776_vm1, %v7835_v27, %v7840_v6  ;;  %v3829_v51 = vsel %vm15785_vm2, %v7834_v13, %v7839_v10  ;;  %v7976_v8 = vpack.i.bf16 %v14124_v53, %v14128_v46  ;;  %v7848_v4 = vpop.permute.xlu1 %7847  ;;  %v7843_v61 = vpop.permute.xlu0 %7842  ;;  %v15786_v6 = vunpack.i.h.bf16 %v14035_v9  ;;  %vm15788_vm1 = vmmov %vm15787_vm5 }
 0x879   : >> { %v3862_v1 = vmin.f32 %v13815_v38, %v3830_v19  ;;  %v3894_v55 = vmax.f32 %v13815_v38, %v3830_v19  ;;  %v3861_v37 = vmin.f32 %v13819_v57, %v3829_v51  ;;  %v3893_v22 = vmax.f32 %v13819_v57, %v3829_v51 }
 0x87a   : >> { %v7850_v14 = vunpack.i.h.bf16 %v7848_v4  ;;  %v7849_v0 = vunpack.i.l.bf16 %v7848_v4  ;;  %v7845_v12 = vunpack.i.h.bf16 %v7843_v61  ;;  %v7844_v27 = vunpack.i.l.bf16 %v7843_v61  ;;  %7977 = vrot.lane.b32.xlu1 %v7976_v8, %s8381_s25  ;;  %7972 = vrot.lane.b32.xlu0 %v7976_v8, %s8380_s14 }
 0x87b   : >> { %v3594_v10 = vsel %vm15787_vm5, %v7785_v45, %v15786_v6  ;;  %v3593_v38 = vsel %vm15788_vm1, %v7784_v33, %v7789_v49  ;;  %v14150_v57 = vsel %vm15775_vm0, %v3862_v1, %v3894_v55  ;;  %v14154_v13 = vsel %vm15775_vm0, %v3861_v37, %v3893_v22  ;;  %vm15791_vm5 = vmmov %vm15785_vm2 }
 0x87c   : >> { %v3832_v19 = vsel %vm15785_vm2, %v7845_v12, %v7850_v14  ;;  %v3831_v9 = vsel %vm15789_vm3, %v7844_v27, %v7849_v0  ;;  %v7986_v45 = vpack.i.bf16 %v14150_v57, %v14154_v13  ;;  %v7858_v1 = vpop.permute.xlu1 %7857  ;;  %v7853_v55 = vpop.permute.xlu0 %7852  ;;  %v3626_v0 = vmin.f32 %v13715_v29, %v3594_v10  ;;  %vm15790_vm3 = vmmov %vm15785_vm2 }
 0x87d   : >> { %v3864_v51 = vmin.f32 %v13835_v2, %v3832_v19  ;;  %v3896_v49 = vmax.f32 %v13835_v2, %v3832_v19  ;;  %v3863_v33 = vmin.f32 %v13839_v40, %v3831_v9  ;;  %v3895_v8 = vmax.f32 %v13839_v40, %v3831_v9  ;;  %vm15792_vm1 = vmmov %vm15785_vm2 }
 0x87e   : >> { %v7860_v37 = vunpack.i.h.bf16 %v7858_v1  ;;  %v7859_v22 = vunpack.i.l.bf16 %v7858_v1  ;;  %v7855_v4 = vunpack.i.h.bf16 %v7853_v55  ;;  %v7854_v12 = vunpack.i.l.bf16 %v7853_v55  ;;  %7987 = vrot.lane.b32.xlu1 %v7986_v45, %s8381_s25  ;;  %7982 = vrot.lane.b32.xlu0 %v7986_v45, %s8380_s14  ;;  %vm15793_vm2 = vmmov %vm15792_vm1 }
 0x87f   : >> { %v3658_v61 = vmax.f32 %v13715_v29, %v3594_v10  ;;  %v14172_v2 = vsel %vm15775_vm0, %v3864_v51, %v3896_v49  ;;  %v14176_v40 = vsel %vm15775_vm0, %v3863_v33, %v3895_v8  ;;  %v3625_v55 = vmin.f32 %v13719_v3, %v3593_v38 }
 0x880   : >> { %v3834_v14 = vsel %vm15790_vm3, %v7855_v4, %v7860_v37  ;;  %v3833_v27 = vsel %vm15791_vm5, %v7854_v12, %v7859_v22  ;;  %v7996_v6 = vpack.i.bf16 %v14172_v2, %v14176_v40  ;;  %v7868_v45 = vpop.permute.xlu1 %7867  ;;  %v7863_v51 = vpop.permute.xlu0 %7862  ;;  %v3657_v37 = vmax.f32 %v13719_v3, %v3593_v38  ;;  %vm15794_vm3 = vmmov %vm15792_vm1 }
 0x881   : >> { %v3866_v19 = vmin.f32 %v13855_v59, %v3834_v14  ;;  %v3898_v29 = vmax.f32 %v13855_v59, %v3834_v14  ;;  %v3865_v10 = vmin.f32 %v13859_v23, %v3833_v27  ;;  %v3897_v9 = vmax.f32 %v13859_v23, %v3833_v27  ;;  %vm15795_vm5 = vmmov %vm15792_vm1 }
 0x882   : >> { %v7870_v49 = vunpack.i.h.bf16 %v7868_v45  ;;  %v7869_v33 = vunpack.i.l.bf16 %v7868_v45  ;;  %v7865_v8 = vunpack.i.h.bf16 %v7863_v51  ;;  %v7864_v1 = vunpack.i.l.bf16 %v7863_v51  ;;  %7997 = vrot.lane.b32.xlu1 %v7996_v6, %s8381_s25  ;;  %7992 = vrot.lane.b32.xlu0 %v7996_v6, %s8380_s14 }
 0x883   : >> { %v14194_v59 = vsel %vm15775_vm0, %v3866_v19, %v3898_v29  ;;  %v14198_v23 = vsel %vm15775_vm0, %v3865_v10, %v3897_v9  ;;  %v14214_v51 = vsel %vm8685_vm14, %v3626_v0, %v3658_v61 }
 0x884   : >> { %v3836_v22 = vsel %vm15792_vm1, %v7865_v8, %v7870_v49  ;;  %v3835_v4 = vsel %vm15793_vm2, %v7864_v1, %v7869_v33  ;;  %v8006_v12 = vpack.i.bf16 %v14194_v59, %v14198_v23  ;;  %v7878_v6 = vpop.permute.xlu1 %7877  ;;  %v7873_v19 = vpop.permute.xlu0 %7872  ;;  %vm15796_vm2 = vmmov %vm15792_vm1 }
 0x885   : >> { %v3868_v14 = vmin.f32 %v13875_v44, %v3836_v22  ;;  %v3900_v3 = vmax.f32 %v13875_v44, %v3836_v22  ;;  %v3867_v38 = vmin.f32 %v13879_v58, %v3835_v4  ;;  %v3899_v27 = vmax.f32 %v13879_v58, %v3835_v4 }
 0x886   : >> { %v7880_v29 = vunpack.i.h.bf16 %v7878_v6  ;;  %v7879_v10 = vunpack.i.l.bf16 %v7878_v6  ;;  %v7875_v9 = vunpack.i.h.bf16 %v7873_v19  ;;  %v7874_v45 = vunpack.i.l.bf16 %v7873_v19  ;;  %8007 = vrot.lane.b32.xlu1 %v8006_v12, %s8381_s25  ;;  %8002 = vrot.lane.b32.xlu0 %v8006_v12, %s8380_s14 }
 0x887   : >> { %v14218_v44 = vsel %vm8685_vm14, %v3625_v55, %v3657_v37  ;;  %v14222_v58 = vsel %vm15775_vm0, %v3868_v14, %v3900_v3  ;;  %v14226_v49 = vsel %vm15775_vm0, %v3867_v38, %v3899_v27 }
 0x888   : >> { %v3838_v33 = vsel %vm15794_vm3, %v7875_v9, %v7880_v29  ;;  %v3837_v8 = vsel %vm15795_vm5, %v7874_v45, %v7879_v10  ;;  %v8021_v0 = vpack.i.bf16 %v14222_v58, %v14226_v49  ;;  %v7888_v22 = vpop.permute.xlu1 %7887  ;;  %v7883_v4 = vpop.permute.xlu0 %7882  ;;  %v8026_v27 = vpack.i.bf16 %v14214_v51, %v14218_v44  ;;  %vm15797_vm3 = vmmov %vm15792_vm1 }
 0x889   : >> { %v3870_v61 = vmin.f32 %v13895_v62, %v3838_v33  ;;  %v3902_v1 = vmax.f32 %v13895_v62, %v3838_v33  ;;  %v3869_v55 = vmin.f32 %v13899_v56, %v3837_v8  ;;  %v3901_v37 = vmax.f32 %v13899_v56, %v3837_v8  ;;  %vm15798_vm5 = vmmov %vm15792_vm1 }
 0x88a   : >> { %v7890_v12 = vunpack.i.h.bf16 %v7888_v22  ;;  %v7889_v14 = vunpack.i.l.bf16 %v7888_v22  ;;  %v7885_v3 = vunpack.i.h.bf16 %v7883_v4  ;;  %v7884_v38 = vunpack.i.l.bf16 %v7883_v4  ;;  %8022 = vrot.lane.b32.xlu1 %v8021_v0, %s8381_s25  ;;  %8012 = vrot.lane.b32.xlu0 %v8021_v0, %s8380_s14 }
 0x88b   : >> { %v14244_v62 = vsel %vm15775_vm0, %v3870_v61, %v3902_v1  ;;  %v14248_v56 = vsel %vm15775_vm0, %v3869_v55, %v3901_v37 }
 0x88c   : >> { %v3840_v6 = vsel %vm15792_vm1, %v7885_v3, %v7890_v12  ;;  %v3839_v19 = vsel %vm15796_vm2, %v7884_v38, %v7889_v14  ;;  %v7898_v33 = vpop.permute.xlu1 %7897  ;;  %v7893_v8 = vpop.permute.xlu0 %7892  ;;  %v8036_v37 = vpack.i.bf16 %v14244_v62, %v14248_v56  ;;  %vm15799_vm2 = vmmov %vm15792_vm1 }
 0x88d   : >> { %v3872_v29 = vmin.f32 %v13915_v36, %v3840_v6  ;;  %v3904_v10 = vmax.f32 %v13915_v36, %v3840_v6  ;;  %v3871_v9 = vmin.f32 %v13919_v47, %v3839_v19  ;;  %v3903_v45 = vmax.f32 %v13919_v47, %v3839_v19 }
 0x88e   : >> { %v7900_v0 = vunpack.i.h.bf16 %v7898_v33  ;;  %v7899_v61 = vunpack.i.l.bf16 %v7898_v33  ;;  %v7895_v1 = vunpack.i.h.bf16 %v7893_v8  ;;  %v7894_v55 = vunpack.i.l.bf16 %v7893_v8  ;;  %8027 = vrot.lane.b32.xlu1 %v8026_v27, %s8383_s30  ;;  %8017 = vrot.lane.b32.xlu0 %v8026_v27, %s8382_s29  ;;  %s5264_s29 = sshll.u32 (%p291_p6), %s8816_s11, 4  ;;  %s5251_s30 = scalar_lea.sflag (%p291_p6), [#allocation4], %s8522_s13  ;;  %s14990_s29 = int_to_ptr.vmem [resolvable:$true] %s5264_s29 }
 0x88f   : >> { %v14264_v36 = vsel %vm15775_vm0, %v3872_v29, %v3904_v10  ;;  %v14268_v47 = vsel %vm15775_vm0, %v3871_v9, %v3903_v45  ;;  %s8301_s5 = scalar_lea.vmem (%p291_p6), %s14990_s29, 16384  ;;  %p8308_p10 = scmp.lt.s32.totalorder (%p291_p6), %s14990_s29, %s8306_s12 }
 0x890   : >> { %v3842_v22 = vsel %vm15797_vm3, %v7895_v1, %v7900_v0  ;;  %v3841_v4 = vsel %vm15798_vm5, %v7894_v55, %v7899_v61  ;;  %v7908_v27 = vpop.permute.xlu1 %7907  ;;  %v7903_v6 = vpop.permute.xlu0 %7902  ;;  %v8046_v45 = vpack.i.bf16 %v14264_v36, %v14268_v47  ;;  %vm15800_vm3 = vmmov %vm15792_vm1  ;;  %p8302_p11 = scmp.ne.s32.totalorder (%p291_p6), %s14990_s29, %s8301_s5  ;;  %p8309_p0 = scmp.lt.s32.totalorder (%p291_p6), %s8307_s19, %s8301_s5 }
 0x891   : >> { %v3874_v12 = vmin.f32 %v13935_v18, %v3842_v22  ;;  %v3906_v14 = vmax.f32 %v13935_v18, %v3842_v22  ;;  %v3873_v3 = vmin.f32 %v13939_v30, %v3841_v4  ;;  %v3905_v38 = vmax.f32 %v13939_v30, %v3841_v4  ;;  %vm15801_vm5 = vmmov %vm15792_vm1 }
 0x892   : >> { %v7910_v19 = vunpack.i.h.bf16 %v7908_v27  ;;  %v7909_v29 = vunpack.i.l.bf16 %v7908_v27  ;;  %v7905_v10 = vunpack.i.h.bf16 %v7903_v6  ;;  %v7904_v9 = vunpack.i.l.bf16 %v7903_v6  ;;  %8037 = vrot.lane.b32.xlu1 %v8036_v37, %s8381_s25  ;;  %8032 = vrot.lane.b32.xlu0 %v8036_v37, %s8380_s14  ;;  %p8303_p13 = pnand (%p291_p6), %p8302_p11, %p15848_p12  ;;  %p8310_p2 = por (%p291_p6), %p8309_p0, %p8308_p10 }
 0x893   : >> { %v14284_v18 = vsel %vm15775_vm0, %v3874_v12, %v3906_v14  ;;  %v14288_v30 = vsel %vm15775_vm0, %v3873_v3, %v3905_v38 }
 0x894   : >> { %v3844_v33 = vsel %vm15792_vm1, %v7905_v10, %v7910_v19  ;;  %v3843_v8 = vsel %vm15799_vm2, %v7904_v9, %v7909_v29  ;;  %v7918_v37 = vpop.permute.xlu1 %7917  ;;  %v7913_v22 = vpop.permute.xlu0 %7912  ;;  %v8056_v38 = vpack.i.bf16 %v14284_v18, %v14288_v30  ;;  %vm15802_vm2 = vmmov %vm15792_vm1  ;;  %p8304_p8 = pneg (%p291_p6), %p8303_p13 }
 0x895   : >> { %v3876_v0 = vmin.f32 %v13955_v17, %v3844_v33  ;;  %v3908_v61 = vmax.f32 %v13955_v17, %v3844_v33  ;;  %v3875_v1 = vmin.f32 %v13959_v41, %v3843_v8  ;;  %v3907_v55 = vmax.f32 %v13959_v41, %v3843_v8 }
 0x896   : >> { %v7920_v4 = vunpack.i.h.bf16 %v7918_v37  ;;  %v7919_v12 = vunpack.i.l.bf16 %v7918_v37  ;;  %v7915_v14 = vunpack.i.h.bf16 %v7913_v22  ;;  %v7914_v3 = vunpack.i.l.bf16 %v7913_v22  ;;  %8047 = vrot.lane.b32.xlu1 %v8046_v45, %s8381_s25  ;;  %8042 = vrot.lane.b32.xlu0 %v8046_v45, %s8380_s14  ;;  %p8311_p4 = pnand (%p291_p6), %p8310_p2, %p8304_p8 }
 0x897   : >> { %v14304_v17 = vsel %vm15775_vm0, %v3876_v0, %v3908_v61  ;;  %v14308_v41 = vsel %vm15775_vm0, %v3875_v1, %v3907_v55 }
 0x898   : >> { %v3846_v27 = vsel %vm15800_vm3, %v7915_v14, %v7920_v4  ;;  %v3845_v6 = vsel %vm15801_vm5, %v7914_v3, %v7919_v12  ;;  %v7928_v45 = vpop.permute.xlu1 %7927  ;;  %v7923_v33 = vpop.permute.xlu0 %7922  ;;  %v8066_v55 = vpack.i.bf16 %v14304_v17, %v14308_v41  ;;  %vm15803_vm3 = vmmov %vm15792_vm1 }
 0x899   : >> { %v3878_v19 = vmin.f32 %v13975_v63, %v3846_v27  ;;  %v3910_v29 = vmax.f32 %v13975_v63, %v3846_v27  ;;  %v3877_v10 = vmin.f32 %v13979_v50, %v3845_v6  ;;  %v3909_v9 = vmax.f32 %v13979_v50, %v3845_v6  ;;  %vm15804_vm5 = vmmov %vm15792_vm1 }
 0x89a   : >> { %v7930_v8 = vunpack.i.h.bf16 %v7928_v45  ;;  %v7929_v0 = vunpack.i.l.bf16 %v7928_v45  ;;  %v7925_v61 = vunpack.i.h.bf16 %v7923_v33  ;;  %v7924_v1 = vunpack.i.l.bf16 %v7923_v33  ;;  %8057 = vrot.lane.b32.xlu1 %v8056_v38, %s8381_s25  ;;  %8052 = vrot.lane.b32.xlu0 %v8056_v38, %s8380_s14 }
 0x89b   : >> { %v14324_v63 = vsel %vm15775_vm0, %v3878_v19, %v3910_v29  ;;  %v14328_v50 = vsel %vm15775_vm0, %v3877_v10, %v3909_v9 }
 0x89c   : >> { %v3848_v37 = vsel %vm15792_vm1, %v7925_v61, %v7930_v8  ;;  %v3847_v22 = vsel %vm15802_vm2, %v7924_v1, %v7929_v0  ;;  %v7938_v38 = vpop.permute.xlu1 %7937  ;;  %v7933_v27 = vpop.permute.xlu0 %7932  ;;  %v8076_v9 = vpack.i.bf16 %v14324_v63, %v14328_v50  ;;  %vm15805_vm1 = vcmp.eq.s32.totalorder %v15654_v42, 0 }
 0x89d   : >> { %v3880_v4 = vmin.f32 %v13995_v32, %v3848_v37  ;;  %v3912_v12 = vmax.f32 %v13995_v32, %v3848_v37  ;;  %v3879_v14 = vmin.f32 %v13999_v43, %v3847_v22  ;;  %v3911_v3 = vmax.f32 %v13999_v43, %v3847_v22  ;;  %vm15806_vm2 = vmmov %vm15805_vm1 }
 0x89e   : >> { %v7940_v6 = vunpack.i.h.bf16 %v7938_v38  ;;  %v7939_v19 = vunpack.i.l.bf16 %v7938_v38  ;;  %v7935_v29 = vunpack.i.h.bf16 %v7933_v27  ;;  %v7934_v10 = vunpack.i.l.bf16 %v7933_v27  ;;  %8067 = vrot.lane.b32.xlu1 %v8066_v55, %s8381_s25  ;;  %8062 = vrot.lane.b32.xlu0 %v8066_v55, %s8380_s14 }
 0x89f   : >> { %v14344_v32 = vsel %vm15775_vm0, %v3880_v4, %v3912_v12  ;;  %v14348_v43 = vsel %vm15775_vm0, %v3879_v14, %v3911_v3 }
 0x8a0   : >> { %v3850_v45 = vsel %vm15803_vm3, %v7935_v29, %v7940_v6  ;;  %v3849_v33 = vsel %vm15804_vm5, %v7934_v10, %v7939_v19  ;;  %v8086_v55 = vpack.i.bf16 %v14344_v32, %v14348_v43  ;;  %vm15809_vm5 = vmmov %vm15805_vm1 }
 0x8a1   : >> { %v3882_v8 = vmin.f32 %v14015_v21, %v3850_v45  ;;  %v3914_v0 = vmax.f32 %v14015_v21, %v3850_v45  ;;  %v3881_v61 = vmin.f32 %v14019_v48, %v3849_v33  ;;  %v3913_v1 = vmax.f32 %v14019_v48, %v3849_v33 }
 0x8a2   : >> { %8077 = vrot.lane.b32.xlu1 %v8076_v9, %s8381_s25  ;;  %8072 = vrot.lane.b32.xlu0 %v8076_v9, %s8380_s14 }
 0x8a3   : >> { %v14364_v37 = vsel %vm15775_vm0, %v3882_v8, %v3914_v0  ;;  %v14368_v22 = vsel %vm15775_vm0, %v3881_v61, %v3913_v1 }
 0x8a4   : >> { %v8096_v21 = vpack.i.bf16 %v14364_v37, %v14368_v22 }
 0x8a6   : >> { %8087 = vrot.lane.b32.xlu1 %v8086_v55, %s8381_s25  ;;  %8082 = vrot.lane.b32.xlu0 %v8086_v55, %s8380_s14  ;;  %v15807_v55 = vld [vmem:[#allocation40_spill] sm:$0xff] }
 0x8a7   : >> { %vm15808_vm3 = vnez %v15807_v55 }
 0x8aa   : >> { %8097 = vrot.lane.b32.xlu1 %v8096_v21, %s8381_s25  ;;  %8092 = vrot.lane.b32.xlu0 %v8096_v21, %s8380_s14 }
 0x8e0   : >> { %v7948_v48 = vpop.permute.xlu1 %7947  ;;  %v7943_v4 = vpop.permute.xlu0 %7942 }
 0x8e1   : >> { %v7950_v12 = vunpack.i.h.bf16 %v7948_v48  ;;  %v7949_v14 = vunpack.i.l.bf16 %v7948_v48  ;;  %v7945_v3 = vunpack.i.h.bf16 %v7943_v4  ;;  %v7944_v38 = vunpack.i.l.bf16 %v7943_v4 }
 0x8e3   : >> { %v4080_v27 = vsel %vm15805_vm1, %v7945_v3, %v7950_v12  ;;  %v4079_v6 = vsel %vm15806_vm2, %v7944_v38, %v7949_v14  ;;  %vm15810_vm2 = vmmov %vm15805_vm1 }
 0x8e4   : >> { %v7958_v19 = vpop.permute.xlu1 %7957  ;;  %v7953_v29 = vpop.permute.xlu0 %7952  ;;  %v4111_v10 = vmin.f32 %v14057_v54, %v4079_v6  ;;  %v4112_v9 = vmin.f32 %v14053_v35, %v4080_v27  ;;  %v4143_v45 = vmax.f32 %v14057_v54, %v4079_v6  ;;  %v4144_v33 = vmax.f32 %v14053_v35, %v4080_v27 }
 0x8e5   : >> { %v7960_v8 = vunpack.i.h.bf16 %v7958_v19  ;;  %v7959_v0 = vunpack.i.l.bf16 %v7958_v19  ;;  %v7955_v61 = vunpack.i.h.bf16 %v7953_v29  ;;  %v7954_v1 = vunpack.i.l.bf16 %v7953_v29 }
 0x8e6   : >> { %v4177_v21 = vsel %vm15808_vm3, %v4111_v10, %v4143_v45  ;;  %v4178_v48 = vsel %vm15808_vm3, %v4112_v9, %v4144_v33 }
 0x8e7   : >> { %v4082_v4 = vsel %vm15809_vm5, %v7955_v61, %v7960_v8  ;;  %v4081_v12 = vsel %vm15805_vm1, %v7954_v1, %v7959_v0  ;;  %v4225_v14 = vpack.c.bf16 %v4178_v48, %v4177_v21  ;;  %vm15811_vm5 = vmmov %vm15805_vm1  ;;  %v15812_v0 = vld [vmem:[#allocation16_spill] sm:$0xff]  ;;  %v15813_v61 = vld [vmem:[#allocation14_spill] sm:$0xff] }
 0x8e8   : >> { %v4114_v54 = vmin.f32 %v14074_v60, %v4082_v4  ;;  %v4146_v35 = vmax.f32 %v14074_v60, %v4082_v4  ;;  %v4113_v3 = vmin.f32 %v14078_v7, %v4081_v12  ;;  %v4145_v38 = vmax.f32 %v14078_v7, %v4081_v12  ;;  %v7968_v27 = vpop.permute.xlu1 %7967  ;;  %v7963_v6 = vpop.permute.xlu0 %7962 }
 0x8e9   : >> { %v7970_v19 = vunpack.i.h.bf16 %v7968_v27  ;;  %v7969_v29 = vunpack.i.l.bf16 %v7968_v27  ;;  %v7965_v10 = vunpack.i.h.bf16 %v7963_v6  ;;  %v7964_v9 = vunpack.i.l.bf16 %v7963_v6  ;;  %5479 = vmatprep.mubr.bf16.mxu0 %v4225_v14 }
 0x8ea   : >> { %v4179_v45 = vsel %vm15808_vm3, %v4113_v3, %v4145_v38  ;;  %v4180_v33 = vsel %vm15808_vm3, %v4114_v54, %v4146_v35  ;;  %v5365_v1 = vcombine.low %v15813_v61, %v15812_v0 }
 0x8eb   : >> { %v4084_v60 = vsel %vm15810_vm2, %v7965_v10, %v7970_v19  ;;  %v4083_v8 = vsel %vm15811_vm5, %v7964_v9, %v7969_v29  ;;  %v4226_v7 = vpack.c.bf16 %v4180_v33, %v4179_v45  ;;  %vm15814_vm2 = vmmov %vm15805_vm1  ;;  %v15815_v10 = vld [vmem:[#allocation21_spill] sm:$0xff] }
 0x8ec   : >> { %v4116_v21 = vmin.f32 %v14097_v24, %v4084_v60  ;;  %v4148_v48 = vmax.f32 %v14097_v24, %v4084_v60  ;;  %v4115_v4 = vmin.f32 %v14101_v5, %v4083_v8  ;;  %v4147_v12 = vmax.f32 %v14101_v5, %v4083_v8  ;;  %v7978_v14 = vpop.permute.xlu1 %7977  ;;  %v7973_v54 = vpop.permute.xlu0 %7972  ;;  %v15816_v9 = vld [vmem:[#allocation17_spill] sm:$0xff]  ;;  %vm15817_vm5 = vmmov %vm15805_vm1 }
 0x8ed   : >> { %v7980_v35 = vunpack.i.h.bf16 %v7978_v14  ;;  %v7979_v3 = vunpack.i.l.bf16 %v7978_v14  ;;  %v7975_v38 = vunpack.i.h.bf16 %v7973_v54  ;;  %v7974_v27 = vunpack.i.l.bf16 %v7973_v54  ;;  %5480 = vmatmul.mubr.bf16.vlgmr.msra.gmra.mrb[0].mxu0 %v4226_v7 }
 0x8ee   : >> { %5512 = vmatpush3.bf16.msra.mxu0 %v14105_v34  ;;  %v4181_v6 = vsel %vm15808_vm3, %v4115_v4, %v4147_v12  ;;  %v4182_v19 = vsel %vm15808_vm3, %v4116_v21, %v4148_v48  ;;  %v5366_v45 = vcombine.low %v15816_v9, %v15815_v10 }
 0x8ef   : >> { %v4086_v24 = vsel %vm15805_vm1, %v7975_v38, %v7980_v35  ;;  %v4085_v5 = vsel %vm15814_vm2, %v7974_v27, %v7979_v3  ;;  %v4227_v29 = vpack.c.bf16 %v4182_v19, %v4181_v6  ;;  %5513 = vmatprep.subr.bf16.mxu0 %v5365_v1  ;;  %v15818_v35 = vld [vmem:[#allocation26_spill] sm:$0xff]  ;;  %vm15820_vm2 = vmmov %vm15805_vm1 }
 0x8f0   : >> { %v4118_v33 = vmin.f32 %v14124_v53, %v4086_v24  ;;  %v4150_v34 = vmax.f32 %v14124_v53, %v4086_v24  ;;  %v4117_v60 = vmin.f32 %v14128_v46, %v4085_v5  ;;  %v4149_v8 = vmax.f32 %v14128_v46, %v4085_v5  ;;  %v7988_v7 = vpop.permute.xlu1 %7987  ;;  %v7983_v0 = vpop.permute.xlu0 %7982  ;;  %v15819_v3 = vld [vmem:[#allocation22_spill] sm:$0xff] }
 0x8f1   : >> { %v7990_v61 = vunpack.i.h.bf16 %v7988_v7  ;;  %v7989_v21 = vunpack.i.l.bf16 %v7988_v7  ;;  %v7985_v48 = vunpack.i.h.bf16 %v7983_v0  ;;  %v7984_v4 = vunpack.i.l.bf16 %v7983_v0  ;;  %5483 = vmatprep.mubr.bf16.mxu0 %v4227_v29  ;;  %v15822_v7 = vld [vmem:[#allocation31_spill] sm:$0xff] }
 0x8f2   : >> { %5514 = vmatpush3.bf16.msra.mxu0 %v5365_v1  ;;  %v4183_v12 = vsel %vm15808_vm3, %v4117_v60, %v4149_v8  ;;  %v4184_v14 = vsel %vm15808_vm3, %v4118_v33, %v4150_v34  ;;  %v5367_v38 = vcombine.low %v15819_v3, %v15818_v35  ;;  %v15823_v0 = vld [vmem:[#allocation27_spill] sm:$0xff] }
 0x8f3   : >> { %v4088_v53 = vsel %vm15817_vm5, %v7985_v48, %v7990_v61  ;;  %v4087_v46 = vsel %vm15805_vm1, %v7984_v4, %v7989_v21  ;;  %v4228_v54 = vpack.c.bf16 %v4184_v14, %v4183_v12  ;;  %5515 = vmatprep.subr.bf16.mxu0 %v5366_v45  ;;  %vm15821_vm5 = vmmov %vm15805_vm1  ;;  %v5368_v61 = vcombine.low %v15823_v0, %v15822_v7 }
 0x8f4   : >> { %v4120_v27 = vmin.f32 %v14150_v57, %v4088_v53  ;;  %v4152_v1 = vmax.f32 %v14150_v57, %v4088_v53  ;;  %v4119_v6 = vmin.f32 %v14154_v13, %v4087_v46  ;;  %v4151_v19 = vmax.f32 %v14154_v13, %v4087_v46  ;;  %v7998_v24 = vpop.permute.xlu1 %7997  ;;  %v7993_v5 = vpop.permute.xlu0 %7992 }
 0x8f5   : >> { %v8000_v29 = vunpack.i.h.bf16 %v7998_v24  ;;  %v7999_v10 = vunpack.i.l.bf16 %v7998_v24  ;;  %v7995_v9 = vunpack.i.h.bf16 %v7993_v5  ;;  %v7994_v33 = vunpack.i.l.bf16 %v7993_v5  ;;  %5484 = vmatmul.mubr.bf16.gmra.mrb[4].mxu0 %v4228_v54 }
 0x8f6   : >> { %5516 = vmatpush3.bf16.msra.mxu0 %v5366_v45  ;;  %v4185_v34 = vsel %vm15808_vm3, %v4119_v6, %v4151_v19  ;;  %v4186_v60 = vsel %vm15808_vm3, %v4120_v27, %v4152_v1  ;;  %v15825_v6 = vld [vmem:[#allocation36_spill] sm:$0xff] }
 0x8f7   : >> { %v4090_v57 = vsel %vm15820_vm2, %v7995_v9, %v8000_v29  ;;  %v4089_v13 = vsel %vm15821_vm5, %v7994_v33, %v7999_v10  ;;  %v4229_v8 = vpack.c.bf16 %v4186_v60, %v4185_v34  ;;  %5517 = vmatprep.subr.bf16.mxu0 %v5367_v38  ;;  %vm15824_vm2 = vmmov %vm15805_vm1  ;;  %v15826_v19 = vld [vmem:[#allocation32_spill] sm:$0xff] }
 0x8f8   : >> { %v4122_v21 = vmin.f32 %v14172_v2, %v4090_v57  ;;  %v4154_v45 = vmax.f32 %v14172_v2, %v4090_v57  ;;  %v4121_v48 = vmin.f32 %v14176_v40, %v4089_v13  ;;  %v4153_v4 = vmax.f32 %v14176_v40, %v4089_v13  ;;  %v8008_v12 = vpop.permute.xlu1 %8007  ;;  %v8003_v14 = vpop.permute.xlu0 %8002  ;;  %vm15827_vm5 = vmmov %vm15805_vm1 }
 0x8f9   : >> { %v8010_v53 = vunpack.i.h.bf16 %v8008_v12  ;;  %v8009_v46 = vunpack.i.l.bf16 %v8008_v12  ;;  %v8005_v54 = vunpack.i.h.bf16 %v8003_v14  ;;  %v8004_v35 = vunpack.i.l.bf16 %v8003_v14  ;;  %5487 = vmatprep.mubr.bf16.mxu0 %v4229_v8 }
 0x8fa   : >> { %5518 = vmatpush3.bf16.msra.mxu0 %v5367_v38  ;;  %v4187_v3 = vsel %vm15808_vm3, %v4121_v48, %v4153_v4  ;;  %v4188_v27 = vsel %vm15808_vm3, %v4122_v21, %v4154_v45  ;;  %v5369_v24 = vcombine.low %v15826_v19, %v15825_v6  ;;  %v15828_v21 = vld [vmem:[#allocation41_spill] sm:$0xff] }
 0x8fb   : >> { %v4092_v2 = vsel %vm15805_vm1, %v8005_v54, %v8010_v53  ;;  %v4091_v40 = vsel %vm15824_vm2, %v8004_v35, %v8009_v46  ;;  %v4230_v1 = vpack.c.bf16 %v4188_v27, %v4187_v3  ;;  %5519 = vmatprep.subr.bf16.mxu0 %v5368_v61  ;;  %v15829_v45 = vld [vmem:[#allocation37_spill] sm:$0xff]  ;;  %vm15830_vm2 = vcmp.eq.s32.totalorder %v15627_v11, 0 }
 0x8fc   : >> { %v4124_v5 = vmin.f32 %v14194_v59, %v4092_v2  ;;  %v4156_v38 = vmax.f32 %v14194_v59, %v4092_v2  ;;  %v4123_v29 = vmin.f32 %v14198_v23, %v4091_v40  ;;  %v4155_v10 = vmax.f32 %v14198_v23, %v4091_v40  ;;  %v8023_v9 = vpop.permute.xlu1 %8022  ;;  %v8013_v33 = vpop.permute.xlu0 %8012 }
 0x8fd   : >> { %v8025_v34 = vunpack.i.h.bf16 %v8023_v9  ;;  %v8024_v60 = vunpack.i.l.bf16 %v8023_v9  ;;  %v8015_v57 = vunpack.i.h.bf16 %v8013_v33  ;;  %v8014_v13 = vunpack.i.l.bf16 %v8013_v33  ;;  %5488 = vmatmul.mubr.bf16.gmra.mrb[8].mxu0 %v4230_v1  ;;  %v14486_v1 = vld [vmem:[%s8827_s23] sm:$0xff] }
 0x8fe   : >> { %5520 = vmatpush3.bf16.msra.mxu0 %v5368_v61  ;;  %v4189_v8 = vsel %vm15808_vm3, %v4123_v29, %v4155_v10  ;;  %v4190_v7 = vsel %vm15808_vm3, %v4124_v5, %v4156_v38  ;;  %v5370_v48 = vcombine.low %v15829_v45, %v15828_v21  ;;  %v15832_v5 = vld [vmem:[#allocation43_spill] sm:$0xff]  ;;  %v15833_v38 = vld [vmem:[#allocation42_spill] sm:$0xff] }
 0x8ff   : >> { %v4094_v59 = vsel %vm15827_vm5, %v8015_v57, %v8025_v34  ;;  %v4093_v23 = vsel %vm15805_vm1, %v8014_v13, %v8024_v60  ;;  %v4231_v0 = vpack.c.bf16 %v4190_v7, %v4189_v8  ;;  %5521 = vmatprep.subr.bf16.mxu0 %v5369_v24  ;;  %vm15831_vm5 = vmmov %vm15830_vm2  ;;  %v5371_v29 = vcombine.low %v15833_v38, %v15832_v5 }
 0x900   : >> { %v4126_v61 = vmin.f32 %v14222_v58, %v4094_v59  ;;  %v4158_v4 = vmax.f32 %v14222_v58, %v4094_v59  ;;  %v4125_v12 = vmin.f32 %v14226_v49, %v4093_v23  ;;  %v4157_v14 = vmax.f32 %v14226_v49, %v4093_v23  ;;  %v8028_v53 = vpop.permute.xlu1 %8027  ;;  %v8018_v46 = vpop.permute.xlu0 %8017  ;;  %v14489_v58 = vld [vmem:[%s8827_s23 + $0x8] sm:$0xff] }
 0x901   : >> { %v8030_v54 = vunpack.i.h.bf16 %v8028_v53  ;;  %v8029_v35 = vunpack.i.l.bf16 %v8028_v53  ;;  %v8020_v3 = vunpack.i.h.bf16 %v8018_v46  ;;  %v8019_v27 = vunpack.i.l.bf16 %v8018_v46  ;;  %5491 = vmatprep.mubr.bf16.mxu0 %v4231_v0 }
 0x902   : >> { %5522 = vmatpush3.bf16.msra.mxu0 %v5369_v24  ;;  %v4191_v2 = vsel %vm15808_vm3, %v4125_v12, %v4157_v14  ;;  %v4192_v40 = vsel %vm15808_vm3, %v4126_v61, %v4158_v4  ;;  %v4209_v49 = vpack.c.bf16 %v14489_v58, %v14486_v1 }
 0x903   : >> { %v3852_v6 = vsel %vm15830_vm2, %v8020_v3, %v8030_v54  ;;  %v3851_v19 = vsel %vm15831_vm5, %v8019_v27, %v8029_v35  ;;  %v4232_v24 = vpack.c.bf16 %v4192_v40, %v4191_v2  ;;  %5523 = vmatprep.subr.bf16.mxu0 %v5370_v48  ;;  %vm15834_vm2 = vmmov %vm15805_vm1 }
 0x904   : >> { %v3884_v10 = vmin.f32 %v14214_v51, %v3852_v6  ;;  %v3916_v9 = vmax.f32 %v14214_v51, %v3852_v6  ;;  %v3883_v33 = vmin.f32 %v14218_v44, %v3851_v19  ;;  %v3915_v34 = vmax.f32 %v14218_v44, %v3851_v19  ;;  %v8038_v60 = vpop.permute.xlu1 %8037  ;;  %v8033_v57 = vpop.permute.xlu0 %8032  ;;  %v14512_v51 = vld [vmem:[%s8827_s23 + $0x10] sm:$0xff]  ;;  %v14515_v44 = vld [vmem:[%s8827_s23 + $0x18] sm:$0xff]  ;;  %v14536_v6 = vld [vmem:[%s8827_s23 + $0x20] sm:$0xff] }
 0x905   : >> { %v8040_v13 = vunpack.i.h.bf16 %v8038_v60  ;;  %v8039_v8 = vunpack.i.l.bf16 %v8038_v60  ;;  %v8035_v7 = vunpack.i.h.bf16 %v8033_v57  ;;  %v8034_v59 = vunpack.i.l.bf16 %v8033_v57  ;;  %5492 = vmatmul.mubr.bf16.gmra.mrb[12].mxu0 %v4232_v24  ;;  %vm15835_vm5 = vmmov %vm15805_vm1 }
 0x906   : >> { %v14505_v23 = vsel %vm15775_vm0, %v3884_v10, %v3916_v9  ;;  %v14509_v0 = vsel %vm15775_vm0, %v3883_v33, %v3915_v34  ;;  %5524 = vmatpush3.bf16.msra.mxu0 %v5370_v48  ;;  %5527 = vmatprep.mubr.bf16.mxu0 %v4209_v49  ;;  %v4210_v21 = vpack.c.bf16 %v14515_v44, %v14512_v51 }
 0x907   : >> { %v4096_v45 = vsel %vm15805_vm1, %v8035_v7, %v8040_v13  ;;  %v4095_v61 = vsel %vm15834_vm2, %v8034_v59, %v8039_v8  ;;  %v8106_v4 = vpack.i.bf16 %v14505_v23, %v14509_v0  ;;  %5525 = vmatprep.subr.bf16.mxu0 %v5371_v29  ;;  %vm15836_vm2 = vmmov %vm15805_vm1 }
 0x908   : >> { %v8048_v48 = vpop.permute.xlu1 %8047  ;;  %v8043_v12 = vpop.permute.xlu0 %8042  ;;  %v4127_v14 = vmin.f32 %v14248_v56, %v4095_v61  ;;  %v4128_v53 = vmin.f32 %v14244_v62, %v4096_v45  ;;  %v4159_v46 = vmax.f32 %v14248_v56, %v4095_v61  ;;  %v4160_v54 = vmax.f32 %v14244_v62, %v4096_v45  ;;  %v14539_v56 = vld [vmem:[%s8827_s23 + $0x28] sm:$0xff]  ;;  %v14560_v61 = vld [vmem:[%s8827_s23 + $0x30] sm:$0xff] }
 0x909   : >> { %v8050_v35 = vunpack.i.h.bf16 %v8048_v48  ;;  %v8049_v3 = vunpack.i.l.bf16 %v8048_v48  ;;  %v8045_v27 = vunpack.i.h.bf16 %v8043_v12  ;;  %v8044_v2 = vunpack.i.l.bf16 %v8043_v12  ;;  %8107 = vrot.lane.b32.xlu1 %v8106_v4, %s8381_s25  ;;  %8102 = vrot.lane.b32.xlu0 %v8106_v4, %s8380_s14  ;;  %v14563_v4 = vld [vmem:[%s8827_s23 + $0x38] sm:$0xff]  ;;  %s14987_s25 = scalar_lea.hbm (%p291_p6), %s15038_s4, %s5396_s26 }
 0x90a   : >> { %5526 = vmatpush3.bf16.msra.mxu0 %v5371_v29  ;;  %v4193_v40 = vsel %vm15808_vm3, %v4127_v14, %v4159_v46  ;;  %v4194_v49 = vsel %vm15808_vm3, %v4128_v53, %v4160_v54  ;;  %v4211_v62 = vpack.c.bf16 %v14539_v56, %v14536_v6 }
 0x90b   : >> { %v4098_v19 = vsel %vm15835_vm5, %v8045_v27, %v8050_v35  ;;  %v4097_v24 = vsel %vm15805_vm1, %v8044_v2, %v8049_v3  ;;  %v4233_v5 = vpack.c.bf16 %v4194_v49, %v4193_v40  ;;  %vm15837_vm5 = vmmov %vm15805_vm1 }
 0x90c   : >> { %v4130_v38 = vmin.f32 %v14264_v36, %v4098_v19  ;;  %v4162_v29 = vmax.f32 %v14264_v36, %v4098_v19  ;;  %v4129_v10 = vmin.f32 %v14268_v47, %v4097_v24  ;;  %v4161_v9 = vmax.f32 %v14268_v47, %v4097_v24  ;;  %v8058_v33 = vpop.permute.xlu1 %8057  ;;  %v8053_v34 = vpop.permute.xlu0 %8052 }
 0x90d   : >> { %v8060_v60 = vunpack.i.h.bf16 %v8058_v33  ;;  %v8059_v57 = vunpack.i.l.bf16 %v8058_v33  ;;  %v8055_v13 = vunpack.i.h.bf16 %v8053_v34  ;;  %v8054_v8 = vunpack.i.l.bf16 %v8053_v34  ;;  %5495 = vmatprep.mubr.bf16.mxu1 %v4233_v5  ;;  %5528 = vmatmul.mubr.bf16.vlgmr.msra.gmra.mrb[0].mxu0 %v4210_v21 }
 0x90e   : >> { %v4195_v7 = vsel %vm15808_vm3, %v4129_v10, %v4161_v9  ;;  %v4196_v36 = vsel %vm15808_vm3, %v4130_v38, %v4162_v29  ;;  %5531 = vmatprep.mubr.bf16.mxu0 %v4211_v62  ;;  %v4212_v21 = vpack.c.bf16 %v14563_v4, %v14560_v61  ;;  %v14576_v62 = vld [vmem:[%s8827_s23 + $0x40] sm:$0xff] }
 0x90f   : >> { %v4100_v59 = vsel %vm15836_vm2, %v8055_v13, %v8060_v60  ;;  %v4099_v47 = vsel %vm15837_vm5, %v8054_v8, %v8059_v57  ;;  %v4234_v45 = vpack.c.bf16 %v4196_v36, %v4195_v7  ;;  %vm15838_vm2 = vmmov %vm15805_vm1 }
 0x910   : >> { %v4132_v48 = vmin.f32 %v14284_v18, %v4100_v59  ;;  %v4164_v12 = vmax.f32 %v14284_v18, %v4100_v59  ;;  %v4131_v14 = vmin.f32 %v14288_v30, %v4099_v47  ;;  %v4163_v53 = vmax.f32 %v14288_v30, %v4099_v47  ;;  %v8068_v46 = vpop.permute.xlu1 %8067  ;;  %v8063_v54 = vpop.permute.xlu0 %8062  ;;  %v14579_v18 = vld [vmem:[%s8827_s23 + $0x48] sm:$0xff]  ;;  %vm15839_vm5 = vmmov %vm15805_vm1  ;;  %v14600_v47 = vld [vmem:[%s8827_s23 + $0x50] sm:$0xff] }
 0x911   : >> { %v8070_v35 = vunpack.i.h.bf16 %v8068_v46  ;;  %v8069_v3 = vunpack.i.l.bf16 %v8068_v46  ;;  %v8065_v27 = vunpack.i.h.bf16 %v8063_v54  ;;  %v8064_v2 = vunpack.i.l.bf16 %v8063_v54  ;;  %5496 = vmatmul.mubr.bf16.vlgmr.msra.gmra.mrb[0].mxu1 %v4234_v45  ;;  %v14603_v45 = vld [vmem:[%s8827_s23 + $0x58] sm:$0xff] }
 0x912   : >> { %v4197_v40 = vsel %vm15808_vm3, %v4131_v14, %v4163_v53  ;;  %v4198_v49 = vsel %vm15808_vm3, %v4132_v48, %v4164_v12  ;;  %v4213_v30 = vpack.c.bf16 %v14579_v18, %v14576_v62 }
 0x913   : >> { %v4102_v19 = vsel %vm15805_vm1, %v8065_v27, %v8070_v35  ;;  %v4101_v24 = vsel %vm15838_vm2, %v8064_v2, %v8069_v3  ;;  %v4235_v5 = vpack.c.bf16 %v4198_v49, %v4197_v40  ;;  %vm15840_vm2 = vmmov %vm15805_vm1 }
 0x914   : >> { %v4134_v38 = vmin.f32 %v14304_v17, %v4102_v19  ;;  %v4166_v29 = vmax.f32 %v14304_v17, %v4102_v19  ;;  %v4133_v10 = vmin.f32 %v14308_v41, %v4101_v24  ;;  %v4165_v9 = vmax.f32 %v14308_v41, %v4101_v24  ;;  %v8078_v33 = vpop.permute.xlu1 %8077  ;;  %v8073_v34 = vpop.permute.xlu0 %8072 }
 0x915   : >> { %v8080_v60 = vunpack.i.h.bf16 %v8078_v33  ;;  %v8079_v57 = vunpack.i.l.bf16 %v8078_v33  ;;  %v8075_v13 = vunpack.i.h.bf16 %v8073_v34  ;;  %v8074_v8 = vunpack.i.l.bf16 %v8073_v34  ;;  %5499 = vmatprep.mubr.bf16.mxu1 %v4235_v5  ;;  %5532 = vmatmul.mubr.bf16.gmra.mrb[4].mxu0 %v4212_v21 }
 0x916   : >> { %v4199_v7 = vsel %vm15808_vm3, %v4133_v10, %v4165_v9  ;;  %v4200_v17 = vsel %vm15808_vm3, %v4134_v38, %v4166_v29  ;;  %5535 = vmatprep.mubr.bf16.mxu0 %v4213_v30  ;;  %v4214_v21 = vpack.c.bf16 %v14603_v45, %v14600_v47  ;;  %v14616_v30 = vld [vmem:[%s8827_s23 + $0x60] sm:$0xff] }
 0x917   : >> { %v4104_v36 = vsel %vm15839_vm5, %v8075_v13, %v8080_v60  ;;  %v4103_v41 = vsel %vm15805_vm1, %v8074_v8, %v8079_v57  ;;  %v4236_v59 = vpack.c.bf16 %v4200_v17, %v4199_v7  ;;  %vm15841_vm5 = vmmov %vm15805_vm1 }
 0x918   : >> { %v4136_v48 = vmin.f32 %v14324_v63, %v4104_v36  ;;  %v4168_v12 = vmax.f32 %v14324_v63, %v4104_v36  ;;  %v4135_v14 = vmin.f32 %v14328_v50, %v4103_v41  ;;  %v4167_v53 = vmax.f32 %v14328_v50, %v4103_v41  ;;  %v8088_v46 = vpop.permute.xlu1 %8087  ;;  %v8083_v54 = vpop.permute.xlu0 %8082  ;;  %v14619_v63 = vld [vmem:[%s8827_s23 + $0x68] sm:$0xff] }
 0x919   : >> { %v8090_v35 = vunpack.i.h.bf16 %v8088_v46  ;;  %v8089_v3 = vunpack.i.l.bf16 %v8088_v46  ;;  %v8085_v27 = vunpack.i.h.bf16 %v8083_v54  ;;  %v8084_v2 = vunpack.i.l.bf16 %v8083_v54  ;;  %5500 = vmatmul.mubr.bf16.gmra.mrb[4].mxu1 %v4236_v59  ;;  %v14656_v54 = vld [vmem:[%s8827_s23 + $0x80] sm:$0xff] }
 0x91a   : >> { %v4201_v40 = vsel %vm15808_vm3, %v4135_v14, %v4167_v53  ;;  %v4202_v49 = vsel %vm15808_vm3, %v4136_v48, %v4168_v12  ;;  %v4215_v50 = vpack.c.bf16 %v14619_v63, %v14616_v30  ;;  %v14644_v12 = vld [vmem:[%s8827_s23 + $0x70] sm:$0xff]  ;;  %v14647_v14 = vld [vmem:[%s8827_s23 + $0x78] sm:$0xff] }
 0x91b   : >> { %v4106_v19 = vsel %vm15840_vm2, %v8085_v27, %v8090_v35  ;;  %v4105_v24 = vsel %vm15841_vm5, %v8084_v2, %v8089_v3  ;;  %v4237_v5 = vpack.c.bf16 %v4202_v49, %v4201_v40  ;;  %vm15842_vm2 = vmmov %vm15805_vm1  ;;  %v4216_v53 = vpack.c.bf16 %v14647_v14, %v14644_v12  ;;  %v14664_v27 = vld [vmem:[%s8827_s23 + $0x90] sm:$0xff]  ;;  %v14667_v2 = vld [vmem:[%s8827_s23 + $0x98] sm:$0xff] }
 0x91c   : >> { %v4138_v38 = vmin.f32 %v14344_v32, %v4106_v19  ;;  %v4170_v29 = vmax.f32 %v14344_v32, %v4106_v19  ;;  %v4137_v10 = vmin.f32 %v14348_v43, %v4105_v24  ;;  %v4169_v9 = vmax.f32 %v14348_v43, %v4105_v24  ;;  %v8098_v33 = vpop.permute.xlu1 %8097  ;;  %v8093_v34 = vpop.permute.xlu0 %8092  ;;  %v14672_v49 = vld [vmem:[%s8827_s23 + $0xa0] sm:$0xff]  ;;  %v14680_v24 = vld [vmem:[%s8827_s23 + $0xb0] sm:$0xff]  ;;  %vm15847_vm5 = vmmov %vm15805_vm1 }
 0x91d   : >> { %v8100_v60 = vunpack.i.h.bf16 %v8098_v33  ;;  %v8099_v57 = vunpack.i.l.bf16 %v8098_v33  ;;  %v8095_v13 = vunpack.i.h.bf16 %v8093_v34  ;;  %v8094_v8 = vunpack.i.l.bf16 %v8093_v34  ;;  %5503 = vmatprep.mubr.bf16.mxu1 %v4237_v5  ;;  %5536 = vmatmul.mubr.bf16.gmra.mrb[8].mxu0 %v4214_v21  ;;  %v14683_v5 = vld [vmem:[%s8827_s23 + $0xb8] sm:$0xff]  ;;  %v14696_v33 = vld [vmem:[%s8827_s23 + $0xd0] sm:$0xff] }
 0x91e   : >> { %v4203_v7 = vsel %vm15808_vm3, %v4137_v10, %v4169_v9  ;;  %v4204_v32 = vsel %vm15808_vm3, %v4138_v38, %v4170_v29  ;;  %5539 = vmatprep.mubr.bf16.mxu0 %v4215_v50  ;;  %v4218_v40 = vpack.c.bf16 %v14667_v2, %v14664_v27  ;;  %v14675_v50 = vld [vmem:[%s8827_s23 + $0xa8] sm:$0xff]  ;;  %v4220_v38 = vpack.c.bf16 %v14683_v5, %v14680_v24  ;;  %v14688_v29 = vld [vmem:[%s8827_s23 + $0xc0] sm:$0xff]  ;;  %v14699_v34 = vld [vmem:[%s8827_s23 + $0xd8] sm:$0xff] }
 0x91f   : >> { %v4108_v43 = vsel %vm15805_vm1, %v8095_v13, %v8100_v60  ;;  %v4107_v17 = vsel %vm15842_vm2, %v8094_v8, %v8099_v57  ;;  %v4238_v36 = vpack.c.bf16 %v4204_v32, %v4203_v7  ;;  %v4219_v19 = vpack.c.bf16 %v14675_v50, %v14672_v49  ;;  %v14691_v10 = vld [vmem:[%s8827_s23 + $0xc8] sm:$0xff]  ;;  %v14704_v57 = vld [vmem:[%s8827_s23 + $0xe0] sm:$0xff]  ;;  %v14712_v7 = vld [vmem:[%s8827_s23 + $0xf0] sm:$0xff] }
 0x920   : >> { %v4140_v41 = vmin.f32 %v14364_v37, %v4108_v43  ;;  %v4172_v59 = vmax.f32 %v14364_v37, %v4108_v43  ;;  %v4139_v21 = vmin.f32 %v14368_v22, %v4107_v17  ;;  %v4171_v48 = vmax.f32 %v14368_v22, %v4107_v17  ;;  %v14659_v22 = vld [vmem:[%s8827_s23 + $0x88] sm:$0xff]  ;;  %v14715_v32 = vld [vmem:[%s8827_s23 + $0xf8] sm:$0xff] }
 0x921   : >> { %5504 = vmatmul.mubr.bf16.gmra.mrb[8].mxu1 %v4238_v36  ;;  %v4217_v35 = vpack.c.bf16 %v14659_v22, %v14656_v54  ;;  %v4221_v9 = vpack.c.bf16 %v14691_v10, %v14688_v29  ;;  %v4222_v60 = vpack.c.bf16 %v14699_v34, %v14696_v33  ;;  %v14707_v13 = vld [vmem:[%s8827_s23 + $0xe8] sm:$0xff]  ;;  %v4224_v43 = vpack.c.bf16 %v14715_v32, %v14712_v7  ;;  %v15844_v36 = vld [vmem:[#allocation60_spill] sm:$0xff] }
 0x922   : >> { %v4205_v46 = vsel %vm15808_vm3, %v4139_v21, %v4171_v48  ;;  %v4206_v37 = vsel %vm15808_vm3, %v4140_v41, %v4172_v59  ;;  %v4223_v8 = vpack.c.bf16 %v14707_v13, %v14704_v57  ;;  %v15843_v17 = vld [vmem:[#allocation61_spill] sm:$0xff]  ;;  %v15845_v59 = vld [vmem:[#allocation63_spill] sm:$0xff]  ;;  %v15846_v21 = vld [vmem:[#allocation62_spill] sm:$0xff]  ;;  %vm4719_vm2 = vcmask 261120  }
 0x923   : >> { %v4239_v3 = vpack.c.bf16 %v4206_v37, %v4205_v46  ;;  %v5372_v41 = vcombine.low %v15844_v36, %v15843_v17  ;;  %v5373_v48 = vcombine.low %v15846_v21, %v15845_v59 }
 0x925   : >> { %5507 = vmatprep.mubr.bf16.mxu1 %v4239_v3  ;;  %5540 = vmatmul.mubr.bf16.gmra.mrb[12].mxu0 %v4216_v53 }
 0x926   : >> { %5543 = vmatprep.mubr.bf16.mxu0 %v4217_v35  ;;  %5559 = vmatprep.subr.bf16.mxu1 %v5372_v41 }
 0x927   : >> { %5560 = vmatpush3.bf16.msra.mxu1 %v5372_v41 }
 0x928   : >> { %5561 = vmatprep.subr.bf16.mxu1 %v5373_v48 }
 0x92b   : >> { %5562 = vmatpush3.bf16.msra.mxu1 %v5373_v48 }
 0x92d   : >> { %5544 = vmatmul.mubr.bf16.gmra.mrb[16].mxu0 %v4218_v40 }
 0x92e   : >> { %5547 = vmatprep.mubr.bf16.mxu0 %v4219_v19 }
 0x935   : >> { %5548 = vmatmul.mubr.bf16.gmra.mrb[20].mxu0 %v4220_v38 }
 0x936   : >> { %5551 = vmatprep.mubr.bf16.mxu0 %v4221_v9 }
 0x93d   : >> { %5552 = vmatmul.mubr.bf16.gmra.mrb[24].mxu0 %v4222_v60 }
 0x93e   : >> { %5555 = vmatprep.mubr.bf16.mxu0 %v4223_v8 }
 0x945   : >> { %5556 = vmatmul.mubr.bf16.gmra.mrb[28].mxu0 %v4224_v43 }
 0x97b   : >> { %v8108_v53 = vpop.permute.xlu1 %8107  ;;  %v8103_v46 = vpop.permute.xlu0 %8102 }
 0x97c   : >> { %v8110_v37 = vunpack.i.h.bf16 %v8108_v53  ;;  %v8109_v35 = vunpack.i.l.bf16 %v8108_v53  ;;  %v8105_v3 = vunpack.i.h.bf16 %v8103_v46  ;;  %v8104_v40 = vunpack.i.l.bf16 %v8103_v46 }
 0x97e   : >> { %v4110_v19 = vsel %vm15847_vm5, %v8105_v3, %v8110_v37  ;;  %v4109_v38 = vsel %vm15805_vm1, %v8104_v40, %v8109_v35 }
 0x97f   : >> { %v4142_v9 = vmin.f32 %v14505_v23, %v4110_v19  ;;  %v4174_v60 = vmax.f32 %v14505_v23, %v4110_v19  ;;  %v4141_v8 = vmin.f32 %v14509_v0, %v4109_v38  ;;  %v4173_v43 = vmax.f32 %v14509_v0, %v4109_v38 }
 0x981   : >> { %v4207_v17 = vsel %vm15808_vm3, %v4141_v8, %v4173_v43  ;;  %v4208_v36 = vsel %vm15808_vm3, %v4142_v9, %v4174_v60 }
 0x982   : >> { %v4240_v41 = vpack.c.bf16 %v4208_v36, %v4207_v17 }
 0x984   : >> { %5508 = vmatmul.mubr.bf16.gmra.mrb[12].mxu1 %v4240_v41 }
 0x9e0   : >> { %v5529_v59 = vpop.f32.mrb[0].mxu0 }
 0x9e1   : >> { %v4532_v21 = vpop.f32.mrb[1].mxu0  ;;  %v4661_v48 = vmax.f32 %v5529_v59, 0.0 }
 0x9e2   : >> { %v5530_v42 = vpop.f32.mrb[2].mxu0  ;;  %v4659_v37 = vmax.f32 %v4532_v21, 0.0 }
 0x9e3   : >> { %v4662_v53 = vmax.f32 %v5530_v42, 0.0  ;;  %v4535_v46 = vpop.f32.mrb[3].mxu0 }
 0x9e4   : >> { %v4660_v23 = vmax.f32 %v4535_v46, 0.0  ;;  %v5497_v35 = vpop.f32.mrb[0].mxu1 }
 0x9e5   : >> { %v4692_v3 = vpack.c.bf16 %v4662_v53, %v4661_v48  ;;  %v4387_v40 = vpop.f32.mrb[1].mxu1 }
 0x9e6   : >> { %v4691_v0 = vpack.c.bf16 %v4660_v23, %v4659_v37  ;;  %v5498_v19 = vpop.f32.mrb[2].mxu1 }
 0x9e7   : >> { %v4390_v38 = vpop.f32.mrb[3].mxu1 }
 0x9e8   : >> { %v5533_v8 = vpop.f32.mrb[4].mxu0  ;;  %5563 = vmatprep.mubr.msk.bf16.mxu1 %vm4719_vm2, %v4691_v0 }
 0x9e9   : >> { %v4548_v9 = vpop.f32.mrb[5].mxu0  ;;  %5564 = vmatmul.mubr.msk.bf16.vlgmr.msra.gmra.mrb[16].mxu1 %vm4719_vm2, %v4692_v3  ;;  %v4665_v43 = vmax.f32 %v5533_v8, 0.0 }
 0x9ea   : >> { %v5534_v60 = vpop.f32.mrb[6].mxu0  ;;  %v4663_v41 = vmax.f32 %v4548_v9, 0.0 }
 0x9eb   : >> { %v4666_v17 = vmax.f32 %v5534_v60, 0.0  ;;  %v4551_v36 = vpop.f32.mrb[7].mxu0 }
 0x9ec   : >> { %v4664_v59 = vmax.f32 %v4551_v36, 0.0  ;;  %v5501_v21 = vpop.f32.mrb[4].mxu1 }
 0x9ed   : >> { %v4694_v42 = vpack.c.bf16 %v4666_v17, %v4665_v43  ;;  %v4403_v48 = vpop.f32.mrb[5].mxu1 }
 0x9ee   : >> { %v4693_v53 = vpack.c.bf16 %v4664_v59, %v4663_v41  ;;  %v5502_v46 = vpop.f32.mrb[6].mxu1 }
 0x9ef   : >> { %v4406_v37 = vpop.f32.mrb[7].mxu1 }
 0x9f0   : >> { %v5537_v23 = vpop.f32.mrb[8].mxu0  ;;  %5567 = vmatprep.mubr.msk.bf16.mxu1 %vm4719_vm2, %v4693_v53 }
 0x9f1   : >> { %v4564_v11 = vpop.f32.mrb[9].mxu0  ;;  %5568 = vmatmul.mubr.msk.bf16.gmra.mrb[20].mxu1 %vm4719_vm2, %v4694_v42  ;;  %v4669_v3 = vmax.f32 %v5537_v23, 0.0 }
 0x9f2   : >> { %v5538_v0 = vpop.f32.mrb[10].mxu0  ;;  %v4667_v60 = vmax.f32 %v4564_v11, 0.0 }
 0x9f3   : >> { %v4670_v15 = vmax.f32 %v5538_v0, 0.0  ;;  %v4567_v8 = vpop.f32.mrb[11].mxu0 }
 0x9f4   : >> { %v4668_v16 = vmax.f32 %v4567_v8, 0.0  ;;  %v5505_v9 = vpop.f32.mrb[8].mxu1 }
 0x9f5   : >> { %v4696_v36 = vpack.c.bf16 %v4670_v15, %v4669_v3  ;;  %v4419_v20 = vpop.f32.mrb[9].mxu1 }
 0x9f6   : >> { %v4695_v43 = vpack.c.bf16 %v4668_v16, %v4667_v60  ;;  %v5506_v17 = vpop.f32.mrb[10].mxu1 }
 0x9f7   : >> { %v4422_v41 = vpop.f32.mrb[11].mxu1 }
 0x9f8   : >> { %v5541_v59 = vpop.f32.mrb[12].mxu0  ;;  %5571 = vmatprep.mubr.msk.bf16.mxu1 %vm4719_vm2, %v4695_v43 }
 0x9f9   : >> { %v4580_v25 = vpop.f32.mrb[13].mxu0  ;;  %5572 = vmatmul.mubr.msk.bf16.gmra.mrb[24].mxu1 %vm4719_vm2, %v4696_v36  ;;  %v4673_v42 = vmax.f32 %v5541_v59, 0.0 }
 0x9fa   : >> { %v5542_v53 = vpop.f32.mrb[14].mxu0  ;;  %v4671_v0 = vmax.f32 %v4580_v25, 0.0 }
 0x9fb   : >> { %v4674_v26 = vmax.f32 %v5542_v53, 0.0  ;;  %v4583_v23 = vpop.f32.mrb[15].mxu0 }
 0x9fc   : >> { %v4672_v28 = vmax.f32 %v4583_v23, 0.0 }
 0x9fd   : >> { %v4698_v11 = vpack.c.bf16 %v4674_v26, %v4673_v42 }
 0x9fe   : >> { %v4697_v8 = vpack.c.bf16 %v4672_v28, %v4671_v0 }
 0xa00   : >> { %v5545_v31 = vpop.f32.mrb[16].mxu0  ;;  %5575 = vmatprep.mubr.msk.bf16.mxu1 %vm4719_vm2, %v4697_v8 }
 0xa01   : >> { %v4605_v16 = vadd.f32 %v5545_v31, %v5497_v35  ;;  %v4596_v15 = vpop.f32.mrb[17].mxu0  ;;  %5576 = vmatmul.mubr.msk.bf16.gmra.mrb[28].mxu1 %vm4719_vm2, %v4698_v11 }
 0xa02   : >> { %v4597_v3 = vadd.f32 %v4596_v15, %v4387_v40  ;;  %v5546_v60 = vpop.f32.mrb[18].mxu0 }
 0xa03   : >> { %v4608_v43 = vadd.f32 %v5546_v60, %v5498_v19  ;;  %v4599_v39 = vpop.f32.mrb[19].mxu0  ;;  %v4677_v52 = vmax.f32 %v4605_v16, 0.0 }
 0xa04   : >> { %v4600_v36 = vadd.f32 %v4599_v39, %v4390_v38  ;;  %v4675_v53 = vmax.f32 %v4597_v3, 0.0 }
 0xa05   : >> { %v4678_v59 = vmax.f32 %v4608_v43, 0.0 }
 0xa06   : >> { %v4676_v55 = vmax.f32 %v4600_v36, 0.0 }
 0xa07   : >> { %v4700_v25 = vpack.c.bf16 %v4678_v59, %v4677_v52 }
 0xa08   : >> { %v4699_v23 = vpack.c.bf16 %v4676_v55, %v4675_v53  ;;  %v5549_v26 = vpop.f32.mrb[20].mxu0 }
 0xa09   : >> { %v4621_v28 = vadd.f32 %v5549_v26, %v5501_v21  ;;  %v4612_v42 = vpop.f32.mrb[21].mxu0 }
 0xa0a   : >> { %v4613_v0 = vadd.f32 %v4612_v42, %v4403_v48  ;;  %v5550_v8 = vpop.f32.mrb[22].mxu0  ;;  %5579 = vmatprep.mubr.msk.bf16.mxu1 %vm4719_vm2, %v4699_v23 }
 0xa0b   : >> { %v4624_v31 = vadd.f32 %v5550_v8, %v5502_v46  ;;  %v4615_v35 = vpop.f32.mrb[23].mxu0  ;;  %5580 = vmatmul.mubr.msk.bf16.gmra.mrb[32].mxu1 %vm4719_vm2, %v4700_v25  ;;  %v4681_v19 = vmax.f32 %v4621_v28, 0.0 }
 0xa0c   : >> { %v4616_v40 = vadd.f32 %v4615_v35, %v4406_v37  ;;  %v4679_v38 = vmax.f32 %v4613_v0, 0.0 }
 0xa0d   : >> { %v4682_v39 = vmax.f32 %v4624_v31, 0.0 }
 0xa0e   : >> { %v4680_v11 = vmax.f32 %v4616_v40, 0.0 }
 0xa0f   : >> { %v4702_v16 = vpack.c.bf16 %v4682_v39, %v4681_v19 }
 0xa10   : >> { %v4701_v15 = vpack.c.bf16 %v4680_v11, %v4679_v38  ;;  %v5553_v52 = vpop.f32.mrb[24].mxu0 }
 0xa11   : >> { %v4637_v55 = vadd.f32 %v5553_v52, %v5505_v9  ;;  %v4628_v3 = vpop.f32.mrb[25].mxu0 }
 0xa12   : >> { %v4629_v21 = vadd.f32 %v4628_v3, %v4419_v20  ;;  %v5554_v60 = vpop.f32.mrb[26].mxu0  ;;  %5583 = vmatprep.mubr.msk.bf16.mxu1 %vm4719_vm2, %v4701_v15 }
 0xa13   : >> { %v4640_v48 = vadd.f32 %v5554_v60, %v5506_v17  ;;  %v4631_v43 = vpop.f32.mrb[27].mxu0  ;;  %5584 = vmatmul.mubr.msk.bf16.gmra.mrb[36].mxu1 %vm4719_vm2, %v4702_v16  ;;  %v4685_v36 = vmax.f32 %v4637_v55, 0.0 }
 0xa14   : >> { %v4632_v46 = vadd.f32 %v4631_v43, %v4422_v41  ;;  %v4683_v59 = vmax.f32 %v4629_v21, 0.0 }
 0xa15   : >> { %v4686_v37 = vmax.f32 %v4640_v48, 0.0 }
 0xa16   : >> { %v4684_v53 = vmax.f32 %v4632_v46, 0.0 }
 0xa17   : >> { %v4704_v25 = vpack.c.bf16 %v4686_v37, %v4685_v36 }
 0xa18   : >> { %v4703_v23 = vpack.c.bf16 %v4684_v53, %v4683_v59  ;;  %v5557_v26 = vpop.f32.mrb[28].mxu0 }
 0xa19   : >> { %v4644_v28 = vpop.f32.mrb[29].mxu0 }
 0xa1a   : >> { %5587 = vmatprep.mubr.msk.bf16.mxu1 %vm4719_vm2, %v4703_v23  ;;  %v5558_v9 = vpop.f32.mrb[30].mxu0 }
 0xa1b   : >> { %5588 = vmatmul.mubr.msk.bf16.gmra.mrb[40].mxu1 %vm4719_vm2, %v4704_v25  ;;  %v4647_v20 = vpop.f32.mrb[31].mxu0 }
 0xa57   : >> { %v5509_v42 = vpop.f32.mrb[12].mxu1 }
 0xa58   : >> { %v4653_v17 = vadd.f32 %v5557_v26, %v5509_v42  ;;  %v4435_v0 = vpop.f32.mrb[13].mxu1 }
 0xa59   : >> { %v4645_v8 = vadd.f32 %v4644_v28, %v4435_v0  ;;  %v5510_v31 = vpop.f32.mrb[14].mxu1 }
 0xa5a   : >> { %v4656_v41 = vadd.f32 %v5558_v9, %v5510_v31  ;;  %v4438_v35 = vpop.f32.mrb[15].mxu1  ;;  %v4689_v19 = vmax.f32 %v4653_v17, 0.0 }
 0xa5b   : >> { %v4648_v40 = vadd.f32 %v4647_v20, %v4438_v35  ;;  %v4687_v38 = vmax.f32 %v4645_v8, 0.0 }
 0xa5c   : >> { %v4690_v39 = vmax.f32 %v4656_v41, 0.0 }
 0xa5d   : >> { %v4688_v11 = vmax.f32 %v4648_v40, 0.0 }
 0xa5e   : >> { %v4706_v16 = vpack.c.bf16 %v4690_v39, %v4689_v19 }
 0xa5f   : >> { %v4705_v15 = vpack.c.bf16 %v4688_v11, %v4687_v38 }
 0xa61   : >> { %5591 = vmatprep.mubr.msk.bf16.mxu1 %vm4719_vm2, %v4705_v15 }
 0xa62   : >> { %5592 = vmatmul.mubr.msk.bf16.gmra.mrb[44].mxu1 %vm4719_vm2, %v4706_v16 }
 0xabc   : >> { %v5565_v52 = vpop.f32.mrb[16].mxu1 }
 0xabd   : >> { %v4931_v55 = vsub.f32 0.0, %v5565_v52  ;;  %v4802_v3 = vpop.f32.mrb[17].mxu1 }
 0xabe   : >> { %v4929_v21 = vsub.f32 0.0, %v4802_v3  ;;  %v5566_v60 = vpop.f32.mrb[18].mxu1 }
 0xabf   : >> { %v4965_v48 = vmul.f32 1.442695, %v4931_v55  ;;  %v4932_v43 = vsub.f32 0.0, %v5566_v60  ;;  %v4805_v46 = vpop.f32.mrb[19].mxu1 }
 0xac0   : >> { %v4961_v36 = vmul.f32 1.442695, %v4929_v21  ;;  %v4930_v37 = vsub.f32 0.0, %v4805_v46 }
 0xac1   : >> { %8111 = vpow2.f32 %v4965_v48  ;;  %v4967_v59 = vmul.f32 1.442695, %v4932_v43 }
 0xac2   : >> { %8113 = vpow2.f32 %v4961_v36  ;;  %v4963_v53 = vmul.f32 1.442695, %v4930_v37 }
 0xac3   : >> { %8115 = vpow2.f32 %v4967_v59 }
 0xac4   : >> { %8117 = vpow2.f32 %v4963_v53  ;;  %v5569_v25 = vpop.f32.mrb[20].mxu1 }
 0xac5   : >> { %v4935_v23 = vsub.f32 0.0, %v5569_v25  ;;  %v4818_v26 = vpop.f32.mrb[21].mxu1 }
 0xac6   : >> { %v4933_v28 = vsub.f32 0.0, %v4818_v26  ;;  %v5570_v9 = vpop.f32.mrb[22].mxu1 }
 0xac7   : >> { %v4973_v20 = vmul.f32 1.442695, %v4935_v23  ;;  %v4936_v42 = vsub.f32 0.0, %v5570_v9  ;;  %v4821_v17 = vpop.f32.mrb[23].mxu1 }
 0xac8   : >> { %v4969_v0 = vmul.f32 1.442695, %v4933_v28  ;;  %v4934_v8 = vsub.f32 0.0, %v4821_v17 }
 0xac9   : >> { %8119 = vpow2.f32 %v4973_v20  ;;  %v4975_v31 = vmul.f32 1.442695, %v4936_v42 }
 0xaca   : >> { %8121 = vpow2.f32 %v4969_v0  ;;  %v4971_v41 = vmul.f32 1.442695, %v4934_v8 }
 0xacb   : >> { %v8112_v35 = vpop.eup %8111  ;;  %8123 = vpow2.f32 %v4975_v31 }
 0xacc   : >> { %v8114_v40 = vpop.eup %8113  ;;  %v5027_v19 = vadd.f32 1.0, %v8112_v35  ;;  %8125 = vpow2.f32 %v4971_v41  ;;  %v5573_v39 = vpop.f32.mrb[24].mxu1 }
 0xacd   : >> { %v8116_v38 = vpop.eup %8115  ;;  %v5025_v11 = vadd.f32 1.0, %v8114_v40  ;;  %v4939_v16 = vsub.f32 0.0, %v5573_v39  ;;  %v4834_v15 = vpop.f32.mrb[25].mxu1 }
 0xace   : >> { %v8118_v52 = vpop.eup %8117  ;;  %8127 = vrcp.f32 %v5027_v19  ;;  %v5028_v55 = vadd.f32 1.0, %v8116_v38  ;;  %v4937_v3 = vsub.f32 0.0, %v4834_v15  ;;  %v5574_v21 = vpop.f32.mrb[26].mxu1 }
 0xacf   : >> { %8129 = vrcp.f32 %v5025_v11  ;;  %v5026_v60 = vadd.f32 1.0, %v8118_v52  ;;  %v4981_v48 = vmul.f32 1.442695, %v4939_v16  ;;  %v4940_v43 = vsub.f32 0.0, %v5574_v21  ;;  %v4837_v46 = vpop.f32.mrb[27].mxu1 }
 0xad0   : >> { %8131 = vrcp.f32 %v5028_v55  ;;  %v4977_v36 = vmul.f32 1.442695, %v4937_v3  ;;  %v4938_v37 = vsub.f32 0.0, %v4837_v46 }
 0xad1   : >> { %8133 = vrcp.f32 %v5026_v60  ;;  %v4983_v59 = vmul.f32 1.442695, %v4940_v43 }
 0xad2   : >> { %8135 = vpow2.f32 %v4981_v48  ;;  %v4979_v53 = vmul.f32 1.442695, %v4938_v37 }
 0xad3   : >> { %v8120_v25 = vpop.eup %8119  ;;  %8137 = vpow2.f32 %v4977_v36 }
 0xad4   : >> { %v8122_v23 = vpop.eup %8121  ;;  %v5031_v26 = vadd.f32 1.0, %v8120_v25  ;;  %8139 = vpow2.f32 %v4983_v59  ;;  %v5577_v28 = vpop.f32.mrb[28].mxu1 }
 0xad5   : >> { %v8124_v9 = vpop.eup %8123  ;;  %v5029_v20 = vadd.f32 1.0, %v8122_v23  ;;  %8141 = vpow2.f32 %v4979_v53  ;;  %v4943_v42 = vsub.f32 0.0, %v5577_v28  ;;  %v4850_v17 = vpop.f32.mrb[29].mxu1 }
 0xad6   : >> { %v8126_v0 = vpop.eup %8125  ;;  %8143 = vrcp.f32 %v5031_v26  ;;  %v5032_v8 = vadd.f32 1.0, %v8124_v9  ;;  %v4941_v31 = vsub.f32 0.0, %v4850_v17  ;;  %v5578_v41 = vpop.f32.mrb[30].mxu1 }
 0xad7   : >> { %8145 = vrcp.f32 %v5029_v20  ;;  %v5030_v35 = vadd.f32 1.0, %v8126_v0  ;;  %v4989_v40 = vmul.f32 1.442695, %v4943_v42  ;;  %v4944_v19 = vsub.f32 0.0, %v5578_v41  ;;  %v4853_v39 = vpop.f32.mrb[31].mxu1 }
 0xad8   : >> { %v8128_v38 = vpop.eup %8127  ;;  %8147 = vrcp.f32 %v5032_v8  ;;  %v4985_v11 = vmul.f32 1.442695, %v4941_v31  ;;  %v4942_v16 = vsub.f32 0.0, %v4853_v39 }
 0xad9   : >> { %v8130_v15 = vpop.eup %8129  ;;  %8149 = vrcp.f32 %v5030_v35  ;;  %v4991_v52 = vmul.f32 1.442695, %v4944_v19  ;;  %v14752_v55 = vmul.f32 %v14512_v51, %v8128_v38 }
 0xada   : >> { %v8132_v3 = vpop.eup %8131  ;;  %8151 = vpow2.f32 %v4989_v40  ;;  %v4987_v21 = vmul.f32 1.442695, %v4942_v16  ;;  %v14762_v51 = vmul.f32 %v14486_v1, %v8130_v15 }
 0xadb   : >> { %v8134_v60 = vpop.eup %8133  ;;  %8153 = vpow2.f32 %v4985_v11  ;;  %5125 = vrot.lane.b32.xlu0 %v14752_v55, %s8389_s8  ;;  %v14757_v48 = vmul.f32 %v14515_v44, %v8132_v3 }
 0xadc   : >> { %v8136_v43 = vpop.eup %8135  ;;  %8155 = vpow2.f32 %v4991_v52  ;;  %v14767_v28 = vmul.f32 %v14489_v58, %v8134_v60 }
 0xadd   : >> { %v8138_v46 = vpop.eup %8137  ;;  %v5035_v36 = vadd.f32 1.0, %v8136_v43  ;;  %8157 = vpow2.f32 %v4987_v21  ;;  %5127 = vrot.lane.b32.xlu1 %v14757_v48, %s8389_s8 }
 0xade   : >> { %v8140_v37 = vpop.eup %8139  ;;  %v5033_v59 = vadd.f32 1.0, %v8138_v46  ;;  %v5581_v53 = vpop.f32.mrb[32].mxu1 }
 0xadf   : >> { %v8142_v25 = vpop.eup %8141  ;;  %8159 = vrcp.f32 %v5035_v36  ;;  %v5036_v23 = vadd.f32 1.0, %v8140_v37  ;;  %v4947_v26 = vsub.f32 0.0, %v5581_v53  ;;  %5121 = vrot.lane.b32.xlu0 %v14762_v51, %s8389_s8  ;;  %v4866_v44 = vpop.f32.mrb[33].mxu1 }
 0xae0   : >> { %v8144_v9 = vpop.eup %8143  ;;  %8161 = vrcp.f32 %v5033_v59  ;;  %v5034_v20 = vadd.f32 1.0, %v8142_v25  ;;  %v4945_v42 = vsub.f32 0.0, %v4866_v44  ;;  %v5582_v1 = vpop.f32.mrb[34].mxu1 }
 0xae1   : >> { %v8146_v17 = vpop.eup %8145  ;;  %8163 = vrcp.f32 %v5036_v23  ;;  %v4997_v0 = vmul.f32 1.442695, %v4947_v26  ;;  %v4948_v8 = vsub.f32 0.0, %v5582_v1  ;;  %5123 = vrot.lane.b32.xlu1 %v14767_v28, %s8389_s8  ;;  %v4869_v31 = vpop.f32.mrb[35].mxu1  ;;  %v14772_v41 = vmul.f32 %v14560_v61, %v8144_v9 }
 0xae2   : >> { %v8148_v35 = vpop.eup %8147  ;;  %8165 = vrcp.f32 %v5034_v20  ;;  %v4993_v58 = vmul.f32 1.442695, %v4945_v42  ;;  %v4946_v40 = vsub.f32 0.0, %v4869_v31  ;;  %v14782_v61 = vmul.f32 %v14536_v6, %v8146_v17 }
 0xae3   : >> { %v8150_v19 = vpop.eup %8149  ;;  %8167 = vpow2.f32 %v4997_v0  ;;  %v4999_v39 = vmul.f32 1.442695, %v4948_v8  ;;  %5133 = vrot.lane.b32.xlu0 %v14772_v41, %s8389_s8  ;;  %v14777_v38 = vmul.f32 %v14563_v4, %v8148_v35 }
 0xae4   : >> { %v8152_v11 = vpop.eup %8151  ;;  %8169 = vpow2.f32 %v4993_v58  ;;  %v4995_v16 = vmul.f32 1.442695, %v4946_v40  ;;  %v14787_v37 = vmul.f32 %v14539_v56, %v8150_v19 }
 0xae5   : >> { %v8154_v15 = vpop.eup %8153  ;;  %v5039_v52 = vadd.f32 1.0, %v8152_v11  ;;  %8171 = vpow2.f32 %v4999_v39  ;;  %5135 = vrot.lane.b32.xlu1 %v14777_v38, %s8389_s8 }
 0xae6   : >> { %v8156_v3 = vpop.eup %8155  ;;  %v5037_v21 = vadd.f32 1.0, %v8154_v15  ;;  %8173 = vpow2.f32 %v4995_v16  ;;  %v5585_v60 = vpop.f32.mrb[36].mxu1 }
 0xae7   : >> { %v8158_v43 = vpop.eup %8157  ;;  %8175 = vrcp.f32 %v5039_v52  ;;  %v5040_v4 = vadd.f32 1.0, %v8156_v3  ;;  %v4951_v46 = vsub.f32 0.0, %v5585_v60  ;;  %5129 = vrot.lane.b32.xlu0 %v14782_v61, %s8389_s8  ;;  %v4882_v36 = vpop.f32.mrb[37].mxu1 }
 0xae8   : >> { %8177 = vrcp.f32 %v5037_v21  ;;  %v5038_v59 = vadd.f32 1.0, %v8158_v43  ;;  %v4949_v53 = vsub.f32 0.0, %v4882_v36  ;;  %v5586_v6 = vpop.f32.mrb[38].mxu1 }
 0xae9   : >> { %v8160_v25 = vpop.eup %8159  ;;  %8179 = vrcp.f32 %v5040_v4  ;;  %v5005_v23 = vmul.f32 1.442695, %v4951_v46  ;;  %v4952_v26 = vsub.f32 0.0, %v5586_v6  ;;  %5131 = vrot.lane.b32.xlu1 %v14787_v37, %s8389_s8  ;;  %v4885_v44 = vpop.f32.mrb[39].mxu1 }
 0xaea   : >> { %v8162_v9 = vpop.eup %8161  ;;  %8181 = vrcp.f32 %v5038_v59  ;;  %v5001_v20 = vmul.f32 1.442695, %v4949_v53  ;;  %v4950_v42 = vsub.f32 0.0, %v4885_v44  ;;  %v14792_v1 = vmul.f32 %v14600_v47, %v8160_v25 }
 0xaeb   : >> { %v8164_v56 = vpop.eup %8163  ;;  %8183 = vpow2.f32 %v5005_v23  ;;  %v5007_v17 = vmul.f32 1.442695, %v4952_v26  ;;  %v14802_v19 = vmul.f32 %v14576_v62, %v8162_v9 }
 0xaec   : >> { %v8166_v0 = vpop.eup %8165  ;;  %8185 = vpow2.f32 %v5001_v20  ;;  %v5003_v8 = vmul.f32 1.442695, %v4950_v42  ;;  %5141 = vrot.lane.b32.xlu0 %v14792_v1, %s8389_s8  ;;  %v14797_v31 = vmul.f32 %v14603_v45, %v8164_v56 }
 0xaed   : >> { %v8168_v35 = vpop.eup %8167  ;;  %8187 = vpow2.f32 %v5007_v17  ;;  %v14807_v60 = vmul.f32 %v14579_v18, %v8166_v0 }
 0xaee   : >> { %v8170_v58 = vpop.eup %8169  ;;  %v5043_v40 = vadd.f32 1.0, %v8168_v35  ;;  %8189 = vpow2.f32 %v5003_v8  ;;  %5143 = vrot.lane.b32.xlu1 %v14797_v31, %s8389_s8  ;;  %v5589_v47 = vpop.f32.mrb[40].mxu1 }
 0xaef   : >> { %v8172_v39 = vpop.eup %8171  ;;  %v5041_v11 = vadd.f32 1.0, %v8170_v58  ;;  %v4955_v16 = vsub.f32 0.0, %v5589_v47  ;;  %v4898_v15 = vpop.f32.mrb[41].mxu1 }
 0xaf0   : >> { %v8174_v52 = vpop.eup %8173  ;;  %8191 = vrcp.f32 %v5043_v40  ;;  %v5044_v45 = vadd.f32 1.0, %v8172_v39  ;;  %5137 = vrot.lane.b32.xlu0 %v14802_v19, %s8389_s8  ;;  %v4953_v3 = vsub.f32 0.0, %v4898_v15  ;;  %v5590_v21 = vpop.f32.mrb[42].mxu1 }
 0xaf1   : >> { %v8176_v43 = vpop.eup %8175  ;;  %8193 = vrcp.f32 %v5041_v11  ;;  %v5042_v4 = vadd.f32 1.0, %v8174_v52  ;;  %v5013_v62 = vmul.f32 1.442695, %v4955_v16  ;;  %v4956_v46 = vsub.f32 0.0, %v5590_v21  ;;  %v4901_v36 = vpop.f32.mrb[43].mxu1 }
 0xaf2   : >> { %v8178_v59 = vpop.eup %8177  ;;  %8195 = vrcp.f32 %v5044_v45  ;;  %v5009_v53 = vmul.f32 1.442695, %v4953_v3  ;;  %5139 = vrot.lane.b32.xlu1 %v14807_v60, %s8389_s8  ;;  %v4954_v6 = vsub.f32 0.0, %v4901_v36  ;;  %v14812_v25 = vmul.f32 %v14644_v12, %v8176_v43 }
 0xaf3   : >> { %v8180_v23 = vpop.eup %8179  ;;  %8197 = vrcp.f32 %v5042_v4  ;;  %v5015_v18 = vmul.f32 1.442695, %v4956_v46  ;;  %v14822_v12 = vmul.f32 %v14616_v30, %v8178_v59 }
 0xaf4   : >> { %v8182_v26 = vpop.eup %8181  ;;  %8199 = vpow2.f32 %v5013_v62  ;;  %v5011_v44 = vmul.f32 1.442695, %v4954_v6  ;;  %5149 = vrot.lane.b32.xlu0 %v14812_v25, %s8389_s8  ;;  %v14817_v9 = vmul.f32 %v14647_v14, %v8180_v23 }
 0xaf5   : >> { %v8184_v20 = vpop.eup %8183  ;;  %8201 = vpow2.f32 %v5009_v53  ;;  %v14827_v14 = vmul.f32 %v14619_v63, %v8182_v26 }
 0xaf6   : >> { %v8186_v42 = vpop.eup %8185  ;;  %v5047_v56 = vadd.f32 1.0, %v8184_v20  ;;  %8203 = vpow2.f32 %v5015_v18  ;;  %5151 = vrot.lane.b32.xlu1 %v14817_v9, %s8389_s8 }
 0xaf7   : >> { %v8188_v17 = vpop.eup %8187  ;;  %v5045_v0 = vadd.f32 1.0, %v8186_v42  ;;  %8205 = vpow2.f32 %v5011_v44 }
 0xaf8   : >> { %v8190_v8 = vpop.eup %8189  ;;  %8207 = vrcp.f32 %v5047_v56  ;;  %v5048_v35 = vadd.f32 1.0, %v8188_v17  ;;  %5145 = vrot.lane.b32.xlu0 %v14822_v12, %s8389_s8 }
 0xaf9   : >> { %8209 = vrcp.f32 %v5045_v0  ;;  %v5046_v58 = vadd.f32 1.0, %v8190_v8 }
 0xafa   : >> { %v8192_v40 = vpop.eup %8191  ;;  %8211 = vrcp.f32 %v5048_v35  ;;  %5147 = vrot.lane.b32.xlu1 %v14827_v14, %s8389_s8 }
 0xafb   : >> { %v8194_v30 = vpop.eup %8193  ;;  %v14832_v47 = vmul.f32 %v14664_v27, %v8192_v40  ;;  %8213 = vrcp.f32 %v5046_v58 }
 0xafc   : >> { %v8196_v39 = vpop.eup %8195  ;;  %v14842_v45 = vmul.f32 %v14656_v54, %v8194_v30 }
 0xafd   : >> { %v8198_v11 = vpop.eup %8197  ;;  %5157 = vrot.lane.b32.xlu0 %v14832_v47, %s8389_s8  ;;  %v14837_v63 = vmul.f32 %v14667_v2, %v8196_v39 }
 0xafe   : >> { %v8200_v16 = vpop.eup %8199  ;;  %v14847_v2 = vmul.f32 %v14659_v22, %v8198_v11 }
 0xaff   : >> { %v8202_v15 = vpop.eup %8201  ;;  %v5051_v52 = vadd.f32 1.0, %v8200_v16  ;;  %5159 = vrot.lane.b32.xlu1 %v14837_v63, %s8389_s8 }
 0xb00   : >> { %v8204_v27 = vpop.eup %8203  ;;  %v5049_v3 = vadd.f32 1.0, %v8202_v15 }
 0xb01   : >> { %v8206_v21 = vpop.eup %8205  ;;  %8215 = vrcp.f32 %v5051_v52  ;;  %v5052_v43 = vadd.f32 1.0, %v8204_v27  ;;  %5153 = vrot.lane.b32.xlu0 %v14842_v45, %s8389_s8 }
 0xb02   : >> { %v8208_v4 = vpop.eup %8207  ;;  %8217 = vrcp.f32 %v5049_v3  ;;  %v5050_v62 = vadd.f32 1.0, %v8206_v21 }
 0xb03   : >> { %v8210_v46 = vpop.eup %8209  ;;  %8219 = vrcp.f32 %v5052_v43  ;;  %5155 = vrot.lane.b32.xlu1 %v14847_v2, %s8389_s8  ;;  %v14852_v54 = vmul.f32 %v14680_v24, %v8208_v4 }
 0xb04   : >> { %v8212_v36 = vpop.eup %8211  ;;  %8221 = vrcp.f32 %v5050_v62  ;;  %v14862_v53 = vmul.f32 %v14672_v49, %v8210_v46 }
 0xb05   : >> { %5165 = vrot.lane.b32.xlu0 %v14852_v54, %s8389_s8  ;;  %v14857_v59 = vmul.f32 %v14683_v5, %v8212_v36  ;;  %v8214_v22 = vpop.eup %8213 }
 0xb06   : >> { %v14867_v24 = vmul.f32 %v14675_v50, %v8214_v22 }
 0xb07   : >> { %5167 = vrot.lane.b32.xlu1 %v14857_v59, %s8389_s8 }
 0xb09   : >> { %5161 = vrot.lane.b32.xlu0 %v14862_v53, %s8389_s8 }
 0xb0b   : >> { %v8216_v6 = vpop.eup %8215  ;;  %5163 = vrot.lane.b32.xlu1 %v14867_v24, %s8389_s8 }
 0xb0c   : >> { %v8218_v23 = vpop.eup %8217  ;;  %v14872_v5 = vmul.f32 %v14696_v33, %v8216_v6 }
 0xb0d   : >> { %v8220_v18 = vpop.eup %8219  ;;  %v14882_v50 = vmul.f32 %v14688_v29, %v8218_v23 }
 0xb0e   : >> { %5173 = vrot.lane.b32.xlu0 %v14872_v5, %s8389_s8  ;;  %v14877_v49 = vmul.f32 %v14699_v34, %v8220_v18  ;;  %v8222_v26 = vpop.eup %8221 }
 0xb0f   : >> { %v14887_v33 = vmul.f32 %v14691_v10, %v8222_v26 }
 0xb10   : >> { %5175 = vrot.lane.b32.xlu1 %v14877_v49, %s8389_s8 }
 0xb12   : >> { %5169 = vrot.lane.b32.xlu0 %v14882_v50, %s8389_s8 }
 0xb14   : >> { %5171 = vrot.lane.b32.xlu1 %v14887_v33, %s8389_s8 }
 0xb35   : >> { %v5593_v44 = vpop.f32.mrb[44].mxu1 }
 0xb36   : >> { %v4959_v20 = vsub.f32 0.0, %v5593_v44  ;;  %v4914_v34 = vpop.f32.mrb[45].mxu1 }
 0xb37   : >> { %v4957_v42 = vsub.f32 0.0, %v4914_v34  ;;  %v5594_v56 = vpop.f32.mrb[46].mxu1 }
 0xb38   : >> { %v5021_v17 = vmul.f32 1.442695, %v4959_v20  ;;  %v4960_v0 = vsub.f32 0.0, %v5594_v56  ;;  %v4917_v8 = vpop.f32.mrb[47].mxu1 }
 0xb39   : >> { %v5017_v35 = vmul.f32 1.442695, %v4957_v42  ;;  %v4958_v29 = vsub.f32 0.0, %v4917_v8 }
 0xb3a   : >> { %8223 = vpow2.f32 %v5021_v17  ;;  %v5023_v58 = vmul.f32 1.442695, %v4960_v0 }
 0xb3b   : >> { %8225 = vpow2.f32 %v5017_v35  ;;  %v5019_v10 = vmul.f32 1.442695, %v4958_v29 }
 0xb3c   : >> { %8227 = vpow2.f32 %v5023_v58 }
 0xb3d   : >> { %8229 = vpow2.f32 %v5019_v10 }
 0xb44   : >> { %v8224_v40 = vpop.eup %8223 }
 0xb45   : >> { %v8226_v30 = vpop.eup %8225  ;;  %v5055_v39 = vadd.f32 1.0, %v8224_v40 }
 0xb46   : >> { %v8228_v11 = vpop.eup %8227  ;;  %v5053_v16 = vadd.f32 1.0, %v8226_v30 }
 0xb47   : >> { %v8230_v15 = vpop.eup %8229  ;;  %v5056_v52 = vadd.f32 1.0, %v8228_v11 }
 0xb48   : >> { %8231 = vrcp.f32 %v5053_v16  ;;  %v5054_v27 = vadd.f32 1.0, %v8230_v15 }
 0xb49   : >> { %8233 = vrcp.f32 %v5055_v39 }
 0xb4a   : >> { %8235 = vrcp.f32 %v5054_v27 }
 0xb4b   : >> { %8237 = vrcp.f32 %v5056_v52 }
 0xb4d   : >> { %v5126_v3 = vpop.permute.xlu0 %5125 }
 0xb4e   : >> { %v5187_v21 = vadd.f32 %v5126_v3, %v14752_v55 }
 0xb4f   : >> { %v5128_v43 = vpop.permute.xlu1 %5127 }
 0xb50   : >> { %5220 = vst [vmem:[%s14894_s10 + $0x10] sm:$0xff] %v5187_v21  ;;  %v5188_v4 = vadd.f32 %v5128_v43, %v14757_v48 }
 0xb51   : >> { %v5122_v62 = vpop.permute.xlu0 %5121 }
 0xb52   : >> { %v8232_v46 = vpop.eup %8231  ;;  %5221 = vst [vmem:[%s14894_s10 + $0x18] sm:$0xff] %v5188_v4  ;;  %v5185_v36 = vadd.f32 %v5122_v62, %v14762_v51 }
 0xb53   : >> { %v8234_v22 = vpop.eup %8233  ;;  %v5124_v6 = vpop.permute.xlu1 %5123  ;;  %v14902_v23 = vmul.f32 %v14704_v57, %v8232_v46 }
 0xb54   : >> { %v8236_v18 = vpop.eup %8235  ;;  %5218 = vst [vmem:[%s14894_s10] sm:$0xff] %v5185_v36  ;;  %v5186_v55 = vadd.f32 %v5124_v6, %v14767_v28  ;;  %v14916_v20 = vmul.f32 %v14712_v7, %v8234_v22 }
 0xb55   : >> { %v5134_v26 = vpop.permute.xlu0 %5133  ;;  %5177 = vrot.lane.b32.xlu0 %v14902_v23, %s8389_s8  ;;  %v14909_v48 = vmul.f32 %v14707_v13, %v8236_v18  ;;  %v8238_v51 = vpop.eup %8237 }
 0xb56   : >> { %5219 = vst [vmem:[%s14894_s10 + $0x8] sm:$0xff] %v5186_v55  ;;  %v5191_v44 = vadd.f32 %v5134_v26, %v14772_v41  ;;  %v14923_v13 = vmul.f32 %v14715_v32, %v8238_v51 }
 0xb57   : >> { %v5136_v57 = vpop.permute.xlu1 %5135  ;;  %5179 = vrot.lane.b32.xlu1 %v14909_v48, %s8389_s8 }
 0xb58   : >> { %5224 = vst [vmem:[%s14894_s10 + $0x30] sm:$0xff] %v5191_v44  ;;  %v5192_v28 = vadd.f32 %v5136_v57, %v14777_v38 }
 0xb59   : >> { %v5130_v34 = vpop.permute.xlu0 %5129  ;;  %5181 = vrot.lane.b32.xlu0 %v14916_v20, %s8389_s8 }
 0xb5a   : >> { %5225 = vst [vmem:[%s14894_s10 + $0x38] sm:$0xff] %v5192_v28  ;;  %v5189_v41 = vadd.f32 %v5130_v34, %v14782_v61 }
 0xb5b   : >> { %v5132_v42 = vpop.permute.xlu1 %5131  ;;  %5183 = vrot.lane.b32.xlu1 %v14923_v13, %s8389_s8 }
 0xb5c   : >> { %5222 = vst [vmem:[%s14894_s10 + $0x20] sm:$0xff] %v5189_v41  ;;  %v5190_v7 = vadd.f32 %v5132_v42, %v14787_v37 }
 0xb5e   : >> { %5223 = vst [vmem:[%s14894_s10 + $0x28] sm:$0xff] %v5190_v7  ;;  %v5142_v38 = vpop.permute.xlu0 %5141 }
 0xb5f   : >> { %v5195_v56 = vadd.f32 %v5142_v38, %v14792_v1 }
 0xb60   : >> { %v5144_v17 = vpop.permute.xlu1 %5143 }
 0xb61   : >> { %5228 = vst [vmem:[%s14894_s10 + $0x50] sm:$0xff] %v5195_v56  ;;  %v5196_v32 = vadd.f32 %v5144_v17, %v14797_v31 }
 0xb62   : >> { %v5138_v0 = vpop.permute.xlu0 %5137 }
 0xb63   : >> { %5229 = vst [vmem:[%s14894_s10 + $0x58] sm:$0xff] %v5196_v32  ;;  %v5193_v61 = vadd.f32 %v5138_v0, %v14802_v19 }
 0xb64   : >> { %v5140_v8 = vpop.permute.xlu1 %5139 }
 0xb65   : >> { %5226 = vst [vmem:[%s14894_s10 + $0x40] sm:$0xff] %v5193_v61  ;;  %v5194_v37 = vadd.f32 %v5140_v8, %v14807_v60 }
 0xb66   : >> { %v5150_v35 = vpop.permute.xlu0 %5149 }
 0xb67   : >> { %5227 = vst [vmem:[%s14894_s10 + $0x48] sm:$0xff] %v5194_v37  ;;  %v5199_v1 = vadd.f32 %v5150_v35, %v14812_v25 }
 0xb68   : >> { %v5152_v29 = vpop.permute.xlu1 %5151 }
 0xb69   : >> { %5232 = vst [vmem:[%s14894_s10 + $0x70] sm:$0xff] %v5199_v1  ;;  %v5200_v31 = vadd.f32 %v5152_v29, %v14817_v9 }
 0xb6a   : >> { %v5146_v58 = vpop.permute.xlu0 %5145 }
 0xb6b   : >> { %5233 = vst [vmem:[%s14894_s10 + $0x78] sm:$0xff] %v5200_v31  ;;  %v5197_v19 = vadd.f32 %v5146_v58, %v14822_v12 }
 0xb6c   : >> { %v5148_v10 = vpop.permute.xlu1 %5147 }
 0xb6d   : >> { %5230 = vst [vmem:[%s14894_s10 + $0x60] sm:$0xff] %v5197_v19  ;;  %v5198_v60 = vadd.f32 %v5148_v10, %v14827_v14 }
 0xb6f   : >> { %5231 = vst [vmem:[%s14894_s10 + $0x68] sm:$0xff] %v5198_v60  ;;  %v5158_v40 = vpop.permute.xlu0 %5157 }
 0xb70   : >> { %v5203_v25 = vadd.f32 %v5158_v40, %v14832_v47 }
 0xb71   : >> { %v5160_v30 = vpop.permute.xlu1 %5159 }
 0xb72   : >> { %5236 = vst [vmem:[%s14894_s10 + $0x90] sm:$0xff] %v5203_v25  ;;  %v5204_v9 = vadd.f32 %v5160_v30, %v14837_v63 }
 0xb73   : >> { %v5154_v39 = vpop.permute.xlu0 %5153 }
 0xb74   : >> { %5237 = vst [vmem:[%s14894_s10 + $0x98] sm:$0xff] %v5204_v9  ;;  %v5201_v12 = vadd.f32 %v5154_v39, %v14842_v45 }
 0xb75   : >> { %v5156_v11 = vpop.permute.xlu1 %5155 }
 0xb76   : >> { %5234 = vst [vmem:[%s14894_s10 + $0x80] sm:$0xff] %v5201_v12  ;;  %v5202_v14 = vadd.f32 %v5156_v11, %v14847_v2 }
 0xb77   : >> { %v5166_v16 = vpop.permute.xlu0 %5165 }
 0xb78   : >> { %5235 = vst [vmem:[%s14894_s10 + $0x88] sm:$0xff] %v5202_v14  ;;  %v5207_v47 = vadd.f32 %v5166_v16, %v14852_v54 }
 0xb79   : >> { %v5168_v15 = vpop.permute.xlu1 %5167 }
 0xb7a   : >> { %5240 = vst [vmem:[%s14894_s10 + $0xb0] sm:$0xff] %v5207_v47  ;;  %v5208_v63 = vadd.f32 %v5168_v15, %v14857_v59 }
 0xb7b   : >> { %v5162_v52 = vpop.permute.xlu0 %5161 }
 0xb7c   : >> { %5241 = vst [vmem:[%s14894_s10 + $0xb8] sm:$0xff] %v5208_v63  ;;  %v5205_v45 = vadd.f32 %v5162_v52, %v14862_v53 }
 0xb7d   : >> { %v5164_v27 = vpop.permute.xlu1 %5163 }
 0xb7e   : >> { %5238 = vst [vmem:[%s14894_s10 + $0xa0] sm:$0xff] %v5205_v45  ;;  %v5206_v2 = vadd.f32 %v5164_v27, %v14867_v24 }
 0xb80   : >> { %5239 = vst [vmem:[%s14894_s10 + $0xa8] sm:$0xff] %v5206_v2  ;;  %v5174_v3 = vpop.permute.xlu0 %5173 }
 0xb81   : >> { %v5211_v54 = vadd.f32 %v5174_v3, %v14872_v5 }
 0xb82   : >> { %v5176_v21 = vpop.permute.xlu1 %5175 }
 0xb83   : >> { %5244 = vst [vmem:[%s14894_s10 + $0xd0] sm:$0xff] %v5211_v54  ;;  %v5212_v59 = vadd.f32 %v5176_v21, %v14877_v49 }
 0xb84   : >> { %v5170_v43 = vpop.permute.xlu0 %5169 }
 0xb85   : >> { %5245 = vst [vmem:[%s14894_s10 + $0xd8] sm:$0xff] %v5212_v59  ;;  %v5209_v53 = vadd.f32 %v5170_v43, %v14882_v50 }
 0xb86   : >> { %v5172_v4 = vpop.permute.xlu1 %5171 }
 0xb87   : >> { %5242 = vst [vmem:[%s14894_s10 + $0xc0] sm:$0xff] %v5209_v53  ;;  %v5210_v24 = vadd.f32 %v5172_v4, %v14887_v33 }
 0xb89   : >> { %5243 = vst [vmem:[%s14894_s10 + $0xc8] sm:$0xff] %v5210_v24 }
 0xbc7   : >> { %v5178_v62 = vpop.permute.xlu0 %5177 }
 0xbc8   : >> { %v5213_v46 = vadd.f32 %v5178_v62, %v14902_v23 }
 0xbc9   : >> { %v5180_v5 = vpop.permute.xlu1 %5179 }
 0xbca   : >> { %5246 = vst [vmem:[%s14894_s10 + $0xe0] sm:$0xff] %v5213_v46  ;;  %v5214_v36 = vadd.f32 %v5180_v5, %v14909_v48  ;;  %293 = sbr.rel (!%p291_p6) target bundleno = 92 (0x5c), region = 90 }
 0xbcb   : >> { %v5182_v22 = vpop.permute.xlu0 %5181 }
 0xbcc   : >> { %5247 = vst [vmem:[%s14894_s10 + $0xe8] sm:$0xff] %v5214_v36  ;;  %v5215_v49 = vadd.f32 %v5182_v22, %v14916_v20 }
 0xbcd   : >> { %v5184_v6 = vpop.permute.xlu1 %5183 }
 0xbce   : >> { %5248 = vst [vmem:[%s14894_s10 + $0xf0] sm:$0xff] %v5215_v49  ;;  %v5216_v50 = vadd.f32 %v5184_v6, %v14923_v13 }
 0xbd0   : >> { %5249 = vst [vmem:[%s14894_s10 + $0xf8] sm:$0xff] %v5216_v50 }
 0xbd1   : > { %8314 = shalt.err (!%p8311_p4)
}
 0xbd2   : > { %s8315_s11 = scalar_lea.hbm %s14987_s25, 16384  ;;  %s8319_s9 = scalar_lea.hbm %s15038_s4, 32768 }
 0xbd3   : > { %p8316_p5 = scmp.ne.s32.totalorder %s14987_s25, %s8315_s11  ;;  %p8320_p1 = scmp.lt.u32.totalorder %s14987_s25, %s15038_s4 }
 0xbd4   : > { %p8321_p3 = scmp.lt.u32.totalorder %s8319_s9, %s8315_s11  ;;  %p8323_p11 = scmp.lt.u32.totalorder %s8315_s11, %s14987_s25 }
 0xbd5   : > { %p8317_p7 = pnand %p8316_p5, %p15848_p12 }
 0xbd6   : > { %p8322_p6 = por %p8321_p3, %p8320_p1 }
 0xbd7   : > { %p8318_p9 = pneg %p8317_p7 }
 0xbd8   : > { %p8324_p13 = por %p8323_p11, %p8322_p6 }
 0xbda   : > { %p8325_p8 = pnand %p8324_p13, %p8318_p9 }
 0xbdc   : > { %8328 = shalt.err (!%p8325_p8)
}
 0xbdd   : > { %s8391_s10 = smov 128   ;;  %s8392_s26 = smov 8  }
 0xbde   : > { %5645 = dma.vmem_to_hbm [thread:$0]  (%p15848_p12), %s14990_s29, 16384, %s14987_s25, %s5251_s30, %s8391_s10, %s8391_s10, %s8392_s26  }
 0xbdf PF: > { %s5279_s23 = sand.u32 1, %s8359_s15   ;;  %p15849_p10 = scmp.ne.s32.totalorder %s15163_s28, 0 }
 0xbe0   : > { %p15850_p0 = scmp.ge.s32.totalorder %s8371_s18, 2  ;;  %s5280_s14 = scalar_lea.sflag [#allocation4], %s5279_s23 }
 0xbe2   : > { %p5652_p2 = pnand %p15850_p0, %p15849_p10 }
 0xbe4   : > { %8354 = dma.done.wait (!%p5652_p2), %s5280_s14, 16384  }
 0xbe5   : > { %8356 = vsyncadd (!%p5652_p2), %s5280_s14, 4294950912  ;;  %p17_p4 = scmp.ge.s32.totalorder %s8443_s21, 4   ;;  %s15851_s15 = smov %s8363_s16 }
 0xbe6   : > { %s15852_s16 = smov %s8367_s17  ;;  %s15853_s17 = smov %s8455_s24 }
 0xbe7   : > { %s15854_s18 = smov %s8443_s21  ;;  %19 = sbr.rel (!%p17_p4) target bundleno = 5 (0x5), region = 101 }
 0xbee   :  { %5285 = vsyncpa [#allocation3], 1 }
 0xbef   :  { %5287 = vsyncpa [#allocation3 + $0x1], 1 }
 0xbf0   :  { %5288 = vsyncpa [#allocation4], 1 }
 0xbf1   :  { %5290 = vsyncpa [#allocation4 + $0x1], 1 }

</bundles_post_ra>
